<compile_context>
chip_gen: v7x
topology: tpu7x:2x2x1
jax: 0.10.0
libtpu: 0.0.40
codegen_flags: <defaults>
</compile_context>

<pallas_src>
import functools

import jax
import jax.numpy as jnp
from jax.experimental import pallas as pl
from jax.experimental.pallas import tpu as pltpu

EPS = 1e-5   # PyTorch BatchNorm default eps
KP = 8       # input-channel dim zero-padded to a sublane-friendly width


# ----------------------------- Pallas kernels ------------------------------ #

def _point_mlp_max_kernel(x_ref, t_ref, w1_ref, b1_ref, w2_ref, b2_ref,
                          w3_ref, b3_ref, o_ref, acc_ref,
                          *, relu_last, n_points, tile_n):
    """Fused per-point MLP (3 x matmul, folded BN) + max over points.

    Grid = (B, f3_tiles, n_tiles); the point axis (last) is the reduction: a
    (1, F3_tile) running max lives in VMEM scratch and is written to the output
    block only on the last point tile.  The layer-3 bias and the optional last
    ReLU are applied on the accumulator at finalize (they commute with max).
    """
    nj = pl.program_id(2)
    n_last = pl.num_programs(2) - 1

    @pl.when(nj == 0)
    def _():
        acc_ref[...] = jnp.full(acc_ref.shape, -jnp.inf, dtype=acc_ref.dtype)

    # Layer 1: fold the (KP, KP) per-batch transform into W1 in-kernel (tiny f32
    # matmul), then run the bf16 point tile through it on the MXU.
    w1_eff = jnp.dot(t_ref[...], w1_ref[...],
                     preferred_element_type=jnp.float32).astype(jnp.bfloat16)
    h = jnp.dot(x_ref[...], w1_eff,
                preferred_element_type=jnp.float32) + b1_ref[...]
    h = jnp.maximum(h, 0.0)
    # Layer 2.
    h = jnp.dot(h.astype(jnp.bfloat16), w2_ref[...],
                preferred_element_type=jnp.float32) + b2_ref[...]
    h = jnp.maximum(h, 0.0)
    # Layer 3: no bias / no ReLU here -- deferred to the finalize below.
    h = jnp.dot(h.astype(jnp.bfloat16), w3_ref[...],
                preferred_element_type=jnp.float32)               # (tile_n, F3t) f32

    if n_points % tile_n == 0:
        acc_ref[...] = jnp.maximum(acc_ref[...],
                                   jnp.max(h, axis=0, keepdims=True))
    else:
        # Ragged case: the -inf mask runs ONLY on the last point tile.
        @pl.when(nj != n_last)
        def _():
            acc_ref[...] = jnp.maximum(acc_ref[...],
                                       jnp.max(h, axis=0, keepdims=True))

        @pl.when(nj == n_last)
        def _():
            row = jax.lax.broadcasted_iota(jnp.int32, (tile_n, 1), 0) + nj * tile_n
            hm = jnp.where(row < n_points, h, -jnp.inf)
            acc_ref[...] = jnp.maximum(acc_ref[...],
                                       jnp.max(hm, axis=0, keepdims=True))

    @pl.when(nj == n_last)
    def _():
        r = acc_ref[...] + b3_ref[...]          # deferred column-constant bias
        if relu_last:
            r = jnp.maximum(r, 0.0)             # deferred ReLU (monotone)
        o_ref[...] = r


def _fc_head_kernel(x_ref, w1_ref, b1_ref, w2_ref, b2_ref, w3_ref, b3_ref, o_ref):
    """Fused fc1(+foldedBN+ReLU) -> fc2(+foldedBN+ReLU) -> fc3 on a small (B, K)."""
    h = jnp.dot(x_ref[...].astype(jnp.bfloat16), w1_ref[...],
                preferred_element_type=jnp.float32) + b1_ref[...]
    h = jnp.maximum(h, 0.0)
    h = jnp.dot(h.astype(jnp.bfloat16), w2_ref[...],
                preferred_element_type=jnp.float32) + b2_ref[...]
    h = jnp.maximum(h, 0.0)
    h = jnp.dot(h.astype(jnp.bfloat16), w3_ref[...],
                preferred_element_type=jnp.float32) + b3_ref[...]
    o_ref[...] = h


# ------------------------------ call wrappers ------------------------------ #

def _choose_tile_n(n_points, max_tile):
    """Full extent if it fits, else the largest multiple-of-8 divisor of n_points
    (no ragged tile / no mask / no wasted MXU rows), else a ragged max_tile."""
    if n_points <= max_tile:
        return n_points
    lo = max(128, max_tile // 4)
    for t in range(max_tile - max_tile % 8, lo - 1, -8):
        if n_points % t == 0:
            return t
    return max_tile - max_tile % 8 if max_tile % 8 else max_tile


def point_mlp_max(x, trans, w1, b1, w2, b2, w3, b3, *, relu_last, per_batch_trans,
                  max_tile_n=1024, f3_tiles=None, vmem_limit_bytes=None):
    """(B, Np, KP) -> (B, F3): fused 3-layer point MLP followed by max over points.

    trans: (B, KP, KP) per-batch transform (or (1, KP, KP) shared identity); folded
    into w1 inside the kernel.  w1 is f32 (KP, F1); w2/w3 are shared bf16 weights.
    """
    B, Np, KPx = x.shape
    F1, F2, F3 = w1.shape[-1], w2.shape[-1], w3.shape[-1]

    tile_n = _choose_tile_n(Np, max_tile_n)
    n_tiles = pl.cdiv(Np, tile_n)

    if f3_tiles is None:
        f3_tiles = 2 if (F3 % 256 == 0 and F3 >= 512) else 1
    assert F3 % f3_tiles == 0
    f3t = F3 // f3_tiles

    t_map = ((lambda b, f, n: (b, 0, 0)) if per_batch_trans
             else (lambda b, f, n: (0, 0, 0)))

    kernel = functools.partial(_point_mlp_max_kernel, relu_last=relu_last,
                               n_points=Np, tile_n=tile_n)
    out = pl.pallas_call(
        kernel,
        out_shape=jax.ShapeDtypeStruct((B, 1, F3), jnp.float32),
        grid=(B, f3_tiles, n_tiles),
        in_specs=[
            pl.BlockSpec((None, tile_n, KPx), lambda b, f, n: (b, n, 0)),  # x tile
            pl.BlockSpec((None, KPx, KPx), t_map),                         # transform
            pl.BlockSpec((KPx, F1), lambda b, f, n: (0, 0)),               # w1 (f32)
            pl.BlockSpec((1, F1), lambda b, f, n: (0, 0)),                 # b1
            pl.BlockSpec((F1, F2), lambda b, f, n: (0, 0)),                # w2
            pl.BlockSpec((1, F2), lambda b, f, n: (0, 0)),                 # b2
            pl.BlockSpec((F2, f3t), lambda b, f, n: (0, f)),               # w3 tile
            pl.BlockSpec((1, f3t), lambda b, f, n: (0, f)),                # b3 tile
        ],
        out_specs=pl.BlockSpec((None, 1, f3t), lambda b, f, n: (b, 0, f)),
        scratch_shapes=[pltpu.VMEM((1, f3t), jnp.float32)],
        compiler_params=pltpu.CompilerParams(
            dimension_semantics=("parallel", "parallel", "arbitrary"),
            vmem_limit_bytes=vmem_limit_bytes),
    )(x, trans, w1, b1.reshape(1, F1), w2, b2.reshape(1, F2), w3,
      b3.reshape(1, F3))
    return out.reshape(B, F3)


def fc_head(x, w1, b1, w2, b2, w3, b3):
    """(B, 1024) -> (B, F3): fused 3-layer FC head (BN pre-folded, ReLU on 1 & 2)."""
    B, _ = x.shape
    F1, F2, F3 = w1.shape[1], w2.shape[1], w3.shape[1]
    inputs = (x, w1, b1.reshape(1, F1), w2, b2.reshape(1, F2), w3, b3.reshape(1, F3))

    def full_spec(shape):
        nd = len(shape)
        return pl.BlockSpec(shape, lambda i: (0,) * nd)

    return pl.pallas_call(
        _fc_head_kernel,
        out_shape=jax.ShapeDtypeStruct((B, F3), jnp.float32),
        grid=(1,),
        in_specs=[full_spec(a.shape) for a in inputs],
        out_specs=full_spec((B, F3)),
    )(*inputs)


# ------------------------------- parameters -------------------------------- #

def init_params(key, k=3, output_vars=2):
    def lin(kk, fan_in, fan_out):
        k1, k2 = jax.random.split(kk)
        w = jax.random.normal(k1, (fan_in, fan_out), jnp.float32) * 0.05
        b = jax.random.normal(k2, (fan_out,), jnp.float32) * 0.05
        return w, b

    def bn(kk, n):
        k1, k2, k3, k4 = jax.random.split(kk, 4)
        gamma = 1.0 + 0.1 * jax.random.normal(k1, (n,), jnp.float32)
        beta = 0.1 * jax.random.normal(k2, (n,), jnp.float32)
        mean = 0.1 * jax.random.normal(k3, (n,), jnp.float32)
        var = jnp.abs(jax.random.normal(k4, (n,), jnp.float32)) + 0.5
        return (gamma, beta, mean, var)

    keys = jax.random.split(key, 22)
    p = {}
    # STNkD
    p['stn_conv1'] = lin(keys[0], k, 64);       p['stn_bn1'] = bn(keys[1], 64)
    p['stn_conv2'] = lin(keys[2], 64, 128);     p['stn_bn2'] = bn(keys[3], 128)
    p['stn_conv3'] = lin(keys[4], 128, 1024);   p['stn_bn3'] = bn(keys[5], 1024)
    p['stn_fc1']   = lin(keys[6], 1024, 512);   p['stn_bn4'] = bn(keys[7], 512)
    p['stn_fc2']   = lin(keys[8], 512, 256);    p['stn_bn5'] = bn(keys[9], 256)
    p['stn_fc3']   = lin(keys[10], 256, k * k)
    # PointNetFeat
    p['feat_conv1'] = lin(keys[11], k, 64);     p['feat_bn1'] = bn(keys[12], 64)
    p['feat_conv2'] = lin(keys[13], 64, 128);   p['feat_bn2'] = bn(keys[14], 128)
    p['feat_conv3'] = lin(keys[15], 128, 1024); p['feat_bn3'] = bn(keys[16], 1024)
    # PointNet head
    p['fc1'] = lin(keys[17], 1024, 512);        p['bn1'] = bn(keys[18], 512)
    p['fc2'] = lin(keys[19], 512, 256);         p['bn2'] = bn(keys[20], 256)
    p['fc3'] = lin(keys[21], 256, output_vars)
    return p


def prepare_params(params, k, kp=KP):
    """Fold eval-mode BatchNorm into weights/biases; cast MXU weights to bf16.

    Layer-1 point-conv weights stay f32 and are zero-padded to kp input rows
    (they are combined with the per-batch transform inside the kernel).  The STN
    fc3 output columns are remapped into the zero-padded (kp*kp) layout with the
    identity folded into the bias, so the head emits the padded transform directly.
    """
    def fold(lin, bn=None):
        w, b = lin
        if bn is not None:
            gamma, beta, mean, var = bn
            scale = gamma * jax.lax.rsqrt(var + EPS)
            w = w * scale[None, :]
            b = (b - mean) * scale + beta
        return w, b

    p = params
    fp = {}

    def add_bf16(name, lin, bn=None):
        w, b = fold(lin, bn)
        fp[name] = (w.astype(jnp.bfloat16), b.astype(jnp.float32))

    def add_conv1(name, lin, bn):
        w, b = fold(lin, bn)
        w = jnp.pad(w, ((0, kp - k), (0, 0)))
        fp[name] = (w.astype(jnp.float32), b.astype(jnp.float32))

    add_conv1('stn_conv1', p['stn_conv1'], p['stn_bn1'])
    add_bf16('stn_conv2', p['stn_conv2'], p['stn_bn2'])
    add_bf16('stn_conv3', p['stn_conv3'], p['stn_bn3'])
    add_bf16('stn_fc1', p['stn_fc1'], p['stn_bn4'])
    add_bf16('stn_fc2', p['stn_fc2'], p['stn_bn5'])

    w, b = p['stn_fc3']
    w_pad = jnp.pad(w.reshape(-1, k, k), ((0, 0), (0, kp - k), (0, kp - k)))
    b_eye = (b + jnp.eye(k, dtype=jnp.float32).reshape(-1)).reshape(k, k)
    b_pad = jnp.pad(b_eye, ((0, kp - k), (0, kp - k)))
    fp['stn_fc3'] = (w_pad.reshape(-1, kp * kp).astype(jnp.bfloat16),
                     b_pad.reshape(kp * kp).astype(jnp.float32))

    add_conv1('feat_conv1', p['feat_conv1'], p['feat_bn1'])
    add_bf16('feat_conv2', p['feat_conv2'], p['feat_bn2'])
    add_bf16('feat_conv3', p['feat_conv3'], p['feat_bn3'])
    add_bf16('fc1', p['fc1'], p['bn1'])
    add_bf16('fc2', p['fc2'], p['bn2'])
    add_bf16('fc3', p['fc3'])
    return fp


# --------------------------------- forward --------------------------------- #

def pointnet_forward(fp, x_bcn, k=3):
    B, C, Np = x_bcn.shape
    assert C == k
    kp = fp['stn_conv1'][0].shape[0]                               # padded channel dim

    # channels-last + zero-pad channels k -> kp (lane/operand friendly), bf16 for MXU.
    x = jnp.transpose(x_bcn, (0, 2, 1))
    x = jnp.pad(x, ((0, 0), (0, 0), (0, kp - C))).astype(jnp.bfloat16)   # (B, Np, kp)

    eye = jnp.eye(kp, dtype=jnp.float32)[None]                     # (1, kp, kp)

    # ----- STNkD: fused point-MLP + max (identity transform), then fused FC head ---
    g = point_mlp_max(x, eye,
                      fp['stn_conv1'][0], fp['stn_conv1'][1],
                      fp['stn_conv2'][0], fp['stn_conv2'][1],
                      fp['stn_conv3'][0], fp['stn_conv3'][1],
                      relu_last=True, per_batch_trans=False)       # (B, 1024)
    trans = fc_head(g, *fp['stn_fc1'], *fp['stn_fc2'], *fp['stn_fc3'])  # (B, kp*kp)
    trans = trans.reshape(B, kp, kp)                               # padded transform

    # ----- PointNetFeat: transform folded into layer-1 inside the kernel -----------
    g = point_mlp_max(x, trans,
                      fp['feat_conv1'][0], fp['feat_conv1'][1],
                      fp['feat_conv2'][0], fp['feat_conv2'][1],
                      fp['feat_conv3'][0], fp['feat_conv3'][1],
                      relu_last=False, per_batch_trans=True)       # (B, 1024)

    # ----- classification head ------------------------------------------------------
    return fc_head(g, *fp['fc1'], *fp['fc2'], *fp['fc3'])          # (B, output_vars)


# ------------------------- pure-JAX f32 reference --------------------------- #

def _bn_eval(x, bn):
    gamma, beta, mean, var = bn
    return (x - mean) * gamma * jax.lax.rsqrt(var + EPS) + beta


def pointnet_reference(p, x_bcn, k):
    B = x_bcn.shape[0]
    x = jnp.transpose(x_bcn, (0, 2, 1))                            # (B, Np, k)

    def point_mlp(y, lins, bns, relu_last):
        for i, (lin, bn) in enumerate(zip(lins, bns)):
            w, b = p[lin]
            y = _bn_eval(y @ w + b, p[bn])
            if i < 2 or relu_last:
                y = jax.nn.relu(y)
        return jnp.max(y, axis=1)

    g = point_mlp(x, ['stn_conv1', 'stn_conv2', 'stn_conv3'],
                  ['stn_bn1', 'stn_bn2', 'stn_bn3'], relu_last=True)
    h = jax.nn.relu(_bn_eval(g @ p['stn_fc1'][0] + p['stn_fc1'][1], p['stn_bn4']))
    h = jax.nn.relu(_bn_eval(h @ p['stn_fc2'][0] + p['stn_fc2'][1], p['stn_bn5']))
    t = h @ p['stn_fc3'][0] + p['stn_fc3'][1] + jnp.eye(k, dtype=jnp.float32).reshape(-1)
    trans = t.reshape(B, k, k)

    xt = jnp.einsum('bnc,bcd->bnd', x, trans)
    g = point_mlp(xt, ['feat_conv1', 'feat_conv2', 'feat_conv3'],
                  ['feat_bn1', 'feat_bn2', 'feat_bn3'], relu_last=False)
    h = jax.nn.relu(_bn_eval(g @ p['fc1'][0] + p['fc1'][1], p['bn1']))
    h = jax.nn.relu(_bn_eval(h @ p['fc2'][0] + p['fc2'][1], p['bn2']))
    return h @ p['fc3'][0] + p['fc3'][1]


# ----------------------------------- main ----------------------------------- #

if __name__ == "__main__":
    key = jax.random.PRNGKey(0)
    k_x, k_p = jax.random.split(key)

    B, C, Np = 2, 3, 600        # batch, input_channels, num points
    output_vars = 2
    x = jax.random.normal(k_x, (B, C, Np), jnp.float32)    # PyTorch-style (B, C, N)

    params = init_params(k_p, k=C, output_vars=output_vars)
    fparams = prepare_params(params, k=C)                   # fold BN + cast bf16 once

    fwd = jax.jit(functools.partial(pointnet_forward, k=C))
    out = jax.block_until_ready(fwd(fparams, x))

    assert out.shape == (B, output_vars)
    assert bool(jnp.all(jnp.isfinite(out)))

    # Loose tolerance vs f32 reference: the Pallas path runs MXU matmuls in bf16.
    ref = pointnet_reference(params, x, k=C)
    err = float(jnp.max(jnp.abs(out - ref)))
    tol = 5e-2 + 5e-2 * float(jnp.max(jnp.abs(ref)))
    assert err < tol, f"max abs err {err} vs tol {tol}"

    print("KERNEL_OK")
</pallas_src>

<mosaic_0001>
module attributes {stable_mosaic.version = 11 : i64} {
  func.func @_point_mlp_max_kernel(%arg0: i32, %arg1: i32, %arg2: i32, %arg3: memref<1x600x8xbf16, #tpu.memory_space<vmem>>, %arg4: memref<1x8x8xf32, #tpu.memory_space<vmem>>, %arg5: memref<8x64xf32, #tpu.memory_space<vmem>>, %arg6: memref<1x64xf32, #tpu.memory_space<vmem>>, %arg7: memref<64x128xbf16, #tpu.memory_space<vmem>>, %arg8: memref<1x128xf32, #tpu.memory_space<vmem>>, %arg9: memref<128x512xbf16, #tpu.memory_space<vmem>>, %arg10: memref<1x512xf32, #tpu.memory_space<vmem>>, %arg11: memref<1x1x512xf32, #tpu.memory_space<vmem>>, %arg12: memref<1x512xf32, #tpu.memory_space<vmem>>) attributes {dimension_semantics = [#tpu.dimension_semantics<parallel>, #tpu.dimension_semantics<parallel>, #tpu.dimension_semantics<arbitrary>], iteration_bounds = array<i64: 2, 2, 1>, scalar_prefetch = 0 : i64, scratch_operands = 1 : i64, tpu.core_type = #tpu.core_type<tc>, window_params = [{transform_indices = @transform_0, window_bounds = array<i64: 1, 600, 8>}, {pipeline_mode = #tpu.pipeline_mode<synchronous>, transform_indices = @transform_1, window_bounds = array<i64: 1, 8, 8>}, {pipeline_mode = #tpu.pipeline_mode<synchronous>, transform_indices = @transform_2, window_bounds = array<i64: 8, 64>}, {pipeline_mode = #tpu.pipeline_mode<synchronous>, transform_indices = @transform_3, window_bounds = array<i64: 1, 64>}, {pipeline_mode = #tpu.pipeline_mode<synchronous>, transform_indices = @transform_4, window_bounds = array<i64: 64, 128>}, {pipeline_mode = #tpu.pipeline_mode<synchronous>, transform_indices = @transform_5, window_bounds = array<i64: 1, 128>}, {transform_indices = @transform_6, window_bounds = array<i64: 128, 512>}, {transform_indices = @transform_7, window_bounds = array<i64: 1, 512>}, {transform_indices = @transform_8, window_bounds = array<i64: 1, 1, 512>}]} {
    %c0_i32 = arith.constant 0 : i32
    %0 = arith.cmpi eq, %arg2, %c0_i32 : i32
    %1 = arith.extui %0 : i1 to i32
    %c0_i32_0 = arith.constant 0 : i32
    %2 = arith.cmpi ne, %1, %c0_i32_0 : i32
    scf.if %2 {
      %cst_28 = arith.constant 0xFF800000 : f32
      %35 = vector.broadcast %cst_28 : f32 to vector<1x512xf32>
      %c0_29 = arith.constant 0 : index
      %c0_30 = arith.constant 0 : index
      %36 = vector.load %arg12[%c0_29, %c0_30] : memref<1x512xf32, #tpu.memory_space<vmem>>, vector<1x512xf32>
      tpu.vector_store %arg12[%c0_29, %c0_30], %35 {strides = array<i32>} : memref<1x512xf32, #tpu.memory_space<vmem>>, vector<1x512xf32>,
    } else {
    }
    %c0 = arith.constant 0 : index
    %c0_1 = arith.constant 0 : index
    %c0_2 = arith.constant 0 : index
    %3 = vector.load %arg4[%c0, %c0_1, %c0_2] : memref<1x8x8xf32, #tpu.memory_space<vmem>>, vector<1x8x8xf32>
    %4 = vector.shape_cast %3 : vector<1x8x8xf32> to vector<8x8xf32>
    %c0_3 = arith.constant 0 : index
    %c0_4 = arith.constant 0 : index
    %5 = vector.load %arg5[%c0_3, %c0_4] : memref<8x64xf32, #tpu.memory_space<vmem>>, vector<8x64xf32>
    %cst = arith.constant dense<0.000000e+00> : vector<8x64xf32>
    %6 = tpu.matmul %4, %5, %cst {dimension_numbers = #tpu.dot_dimension_numbers<[1], [0], [0], [1], [0, 0, 1, 1], [], []>} : vector<8x8xf32>, vector<8x64xf32>, vector<8x64xf32> -> vector<8x64xf32>
    %7 = arith.truncf %6 : vector<8x64xf32> to vector<8x64xbf16>
    %c0_5 = arith.constant 0 : index
    %c0_6 = arith.constant 0 : index
    %c0_7 = arith.constant 0 : index
    %8 = vector.load %arg3[%c0_5, %c0_6, %c0_7] : memref<1x600x8xbf16, #tpu.memory_space<vmem>>, vector<1x600x8xbf16>
    %9 = vector.shape_cast %8 : vector<1x600x8xbf16> to vector<600x8xbf16>
    %cst_8 = arith.constant dense<0.000000e+00> : vector<600x64xf32>
    %10 = tpu.matmul %9, %7, %cst_8 {dimension_numbers = #tpu.dot_dimension_numbers<[1], [0], [0], [1], [0, 0, 1, 1], [], []>} : vector<600x8xbf16>, vector<8x64xbf16>, vector<600x64xf32> -> vector<600x64xf32>
    %c0_9 = arith.constant 0 : index
    %c0_10 = arith.constant 0 : index
    %11 = vector.load %arg6[%c0_9, %c0_10] : memref<1x64xf32, #tpu.memory_space<vmem>>, vector<1x64xf32>
    %12 = vector.broadcast %11 : vector<1x64xf32> to vector<600x64xf32>
    %13 = arith.addf %10, %12 : vector<600x64xf32>
    %cst_11 = arith.constant 0.000000e+00 : f32
    %14 = vector.broadcast %cst_11 : f32 to vector<600x64xf32>
    %15 = arith.maximumf %13, %14 : vector<600x64xf32>
    %16 = arith.truncf %15 : vector<600x64xf32> to vector<600x64xbf16>
    %c0_12 = arith.constant 0 : index
    %c0_13 = arith.constant 0 : index
    %17 = vector.load %arg7[%c0_12, %c0_13] : memref<64x128xbf16, #tpu.memory_space<vmem>>, vector<64x128xbf16>
    %cst_14 = arith.constant dense<0.000000e+00> : vector<600x128xf32>
    %18 = tpu.matmul %16, %17, %cst_14 {dimension_numbers = #tpu.dot_dimension_numbers<[1], [0], [0], [1], [0, 0, 1, 1], [], []>} : vector<600x64xbf16>, vector<64x128xbf16>, vector<600x128xf32> -> vector<600x128xf32>
    %c0_15 = arith.constant 0 : index
    %c0_16 = arith.constant 0 : index
    %19 = vector.load %arg8[%c0_15, %c0_16] : memref<1x128xf32, #tpu.memory_space<vmem>>, vector<1x128xf32>
    %20 = vector.broadcast %19 : vector<1x128xf32> to vector<600x128xf32>
    %21 = arith.addf %18, %20 : vector<600x128xf32>
    %cst_17 = arith.constant 0.000000e+00 : f32
    %22 = vector.broadcast %cst_17 : f32 to vector<600x128xf32>
    %23 = arith.maximumf %21, %22 : vector<600x128xf32>
    %24 = arith.truncf %23 : vector<600x128xf32> to vector<600x128xbf16>
    %c0_18 = arith.constant 0 : index
    %c0_19 = arith.constant 0 : index
    %25 = vector.load %arg9[%c0_18, %c0_19] : memref<128x512xbf16, #tpu.memory_space<vmem>>, vector<128x512xbf16>
    %cst_20 = arith.constant dense<0.000000e+00> : vector<600x512xf32>
    %26 = tpu.matmul %24, %25, %cst_20 {dimension_numbers = #tpu.dot_dimension_numbers<[1], [0], [0], [1], [0, 0, 1, 1], [], []>} : vector<600x128xbf16>, vector<128x512xbf16>, vector<600x512xf32> -> vector<600x512xf32>
    %c0_21 = arith.constant 0 : index
    %c0_22 = arith.constant 0 : index
    %27 = vector.load %arg12[%c0_21, %c0_22] : memref<1x512xf32, #tpu.memory_space<vmem>>, vector<1x512xf32>
    %cst_23 = arith.constant dense<0xFF800000> : vector<512xf32>
    %28 = vector.multi_reduction <maximumf>, %26, %cst_23 [0] : vector<600x512xf32> to vector<512xf32>
    %29 = vector.shape_cast %28 : vector<512xf32> to vector<1x512xf32>
    %30 = arith.maximumf %27, %29 : vector<1x512xf32>
    %c0_24 = arith.constant 0 : index
    %c0_25 = arith.constant 0 : index
    %31 = vector.load %arg12[%c0_24, %c0_25] : memref<1x512xf32, #tpu.memory_space<vmem>>, vector<1x512xf32>
    tpu.vector_store %arg12[%c0_24, %c0_25], %30 {strides = array<i32>} : memref<1x512xf32, #tpu.memory_space<vmem>>, vector<1x512xf32>,
    %c0_i32_26 = arith.constant 0 : i32
    %32 = arith.cmpi eq, %arg2, %c0_i32_26 : i32
    %33 = arith.extui %32 : i1 to i32
    %c0_i32_27 = arith.constant 0 : i32
    %34 = arith.cmpi ne, %33, %c0_i32_27 : i32
    scf.if %34 {
      %c0_28 = arith.constant 0 : index
      %c0_29 = arith.constant 0 : index
      %35 = vector.load %arg12[%c0_28, %c0_29] : memref<1x512xf32, #tpu.memory_space<vmem>>, vector<1x512xf32>
      %c0_30 = arith.constant 0 : index
      %c0_31 = arith.constant 0 : index
      %36 = vector.load %arg10[%c0_30, %c0_31] : memref<1x512xf32, #tpu.memory_space<vmem>>, vector<1x512xf32>
      %37 = arith.addf %35, %36 : vector<1x512xf32>
      %cst_32 = arith.constant 0.000000e+00 : f32
      %38 = vector.broadcast %cst_32 : f32 to vector<1x512xf32>
      %39 = arith.maximumf %37, %38 : vector<1x512xf32>
      %c0_33 = arith.constant 0 : index
      %c0_34 = arith.constant 0 : index
      %c0_35 = arith.constant 0 : index
      %40 = vector.load %arg11[%c0_33, %c0_34, %c0_35] : memref<1x1x512xf32, #tpu.memory_space<vmem>>, vector<1x1x512xf32>
      %41 = vector.shape_cast %40 : vector<1x1x512xf32> to vector<1x512xf32>
      %42 = vector.shape_cast %39 : vector<1x512xf32> to vector<1x1x512xf32>
      tpu.vector_store %arg11[%c0_33, %c0_34, %c0_35], %42 {strides = array<i32>} : memref<1x1x512xf32, #tpu.memory_space<vmem>>, vector<1x1x512xf32>,
    } else {
    }
    return
  }
  func.func @transform_0(%arg0: i32, %arg1: i32, %arg2: i32) -> (i32, i32, i32) {
    %c0_i32 = arith.constant 0 : i32
    %c0_i32_0 = arith.constant 0 : i32
    return %arg0, %arg2, %c0_i32 : i32, i32, i32
  }
  func.func @transform_1(%arg0: i32, %arg1: i32, %arg2: i32) -> (i32, i32, i32) {
    %c0_i32 = arith.constant 0 : i32
    %c0_i32_0 = arith.constant 0 : i32
    %c0_i32_1 = arith.constant 0 : i32
    %c0_i32_2 = arith.constant 0 : i32
    return %c0_i32, %c0_i32_0, %c0_i32_1 : i32, i32, i32
  }
  func.func @transform_2(%arg0: i32, %arg1: i32, %arg2: i32) -> (i32, i32) {
    %c0_i32 = arith.constant 0 : i32
    %c0_i32_0 = arith.constant 0 : i32
    %c0_i32_1 = arith.constant 0 : i32
    return %c0_i32, %c0_i32_0 : i32, i32
  }
  func.func @transform_3(%arg0: i32, %arg1: i32, %arg2: i32) -> (i32, i32) {
    %c0_i32 = arith.constant 0 : i32
    %c0_i32_0 = arith.constant 0 : i32
    %c0_i32_1 = arith.constant 0 : i32
    return %c0_i32, %c0_i32_0 : i32, i32
  }
  func.func @transform_4(%arg0: i32, %arg1: i32, %arg2: i32) -> (i32, i32) {
    %c0_i32 = arith.constant 0 : i32
    %c0_i32_0 = arith.constant 0 : i32
    %c0_i32_1 = arith.constant 0 : i32
    return %c0_i32, %c0_i32_0 : i32, i32
  }
  func.func @transform_5(%arg0: i32, %arg1: i32, %arg2: i32) -> (i32, i32) {
    %c0_i32 = arith.constant 0 : i32
    %c0_i32_0 = arith.constant 0 : i32
    %c0_i32_1 = arith.constant 0 : i32
    return %c0_i32, %c0_i32_0 : i32, i32
  }
  func.func @transform_6(%arg0: i32, %arg1: i32, %arg2: i32) -> (i32, i32) {
    %c0_i32 = arith.constant 0 : i32
    %c0_i32_0 = arith.constant 0 : i32
    return %c0_i32, %arg1 : i32, i32
  }
  func.func @transform_7(%arg0: i32, %arg1: i32, %arg2: i32) -> (i32, i32) {
    %c0_i32 = arith.constant 0 : i32
    %c0_i32_0 = arith.constant 0 : i32
    return %c0_i32, %arg1 : i32, i32
  }
  func.func @transform_8(%arg0: i32, %arg1: i32, %arg2: i32) -> (i32, i32, i32) {
    %c0_i32 = arith.constant 0 : i32
    %c0_i32_0 = arith.constant 0 : i32
    return %arg0, %c0_i32, %arg1 : i32, i32, i32
  }
}

module attributes {stable_mosaic.version = 11 : i64} {
  func.func @_fc_head_kernel(%arg0: i32, %arg1: memref<2x1024xf32, #tpu.memory_space<vmem>>, %arg2: memref<1024x512xbf16, #tpu.memory_space<vmem>>, %arg3: memref<1x512xf32, #tpu.memory_space<vmem>>, %arg4: memref<512x256xbf16, #tpu.memory_space<vmem>>, %arg5: memref<1x256xf32, #tpu.memory_space<vmem>>, %arg6: memref<256x64xbf16, #tpu.memory_space<vmem>>, %arg7: memref<1x64xf32, #tpu.memory_space<vmem>>, %arg8: memref<2x64xf32, #tpu.memory_space<vmem>>) attributes {dimension_semantics = [#tpu.dimension_semantics<arbitrary>], iteration_bounds = array<i64: 1>, scalar_prefetch = 0 : i64, scratch_operands = 0 : i64, tpu.core_type = #tpu.core_type<tc>, window_params = [{pipeline_mode = #tpu.pipeline_mode<synchronous>, transform_indices = @transform_0, window_bounds = array<i64: 2, 1024>}, {pipeline_mode = #tpu.pipeline_mode<synchronous>, transform_indices = @transform_1, window_bounds = array<i64: 1024, 512>}, {pipeline_mode = #tpu.pipeline_mode<synchronous>, transform_indices = @transform_2, window_bounds = array<i64: 1, 512>}, {pipeline_mode = #tpu.pipeline_mode<synchronous>, transform_indices = @transform_3, window_bounds = array<i64: 512, 256>}, {pipeline_mode = #tpu.pipeline_mode<synchronous>, transform_indices = @transform_4, window_bounds = array<i64: 1, 256>}, {pipeline_mode = #tpu.pipeline_mode<synchronous>, transform_indices = @transform_5, window_bounds = array<i64: 256, 64>}, {pipeline_mode = #tpu.pipeline_mode<synchronous>, transform_indices = @transform_6, window_bounds = array<i64: 1, 64>}, {pipeline_mode = #tpu.pipeline_mode<synchronous>, transform_indices = @transform_7, window_bounds = array<i64: 2, 64>}]} {
    %c0 = arith.constant 0 : index
    %c0_0 = arith.constant 0 : index
    %0 = vector.load %arg1[%c0, %c0_0] : memref<2x1024xf32, #tpu.memory_space<vmem>>, vector<2x1024xf32>
    %1 = arith.truncf %0 : vector<2x1024xf32> to vector<2x1024xbf16>
    %c0_1 = arith.constant 0 : index
    %c0_2 = arith.constant 0 : index
    %2 = vector.load %arg2[%c0_1, %c0_2] : memref<1024x512xbf16, #tpu.memory_space<vmem>>, vector<1024x512xbf16>
    %cst = arith.constant dense<0.000000e+00> : vector<2x512xf32>
    %3 = tpu.matmul %1, %2, %cst {dimension_numbers = #tpu.dot_dimension_numbers<[1], [0], [0], [1], [0, 0, 1, 1], [], []>} : vector<2x1024xbf16>, vector<1024x512xbf16>, vector<2x512xf32> -> vector<2x512xf32>
    %c0_3 = arith.constant 0 : index
    %c0_4 = arith.constant 0 : index
    %4 = vector.load %arg3[%c0_3, %c0_4] : memref<1x512xf32, #tpu.memory_space<vmem>>, vector<1x512xf32>
    %5 = vector.broadcast %4 : vector<1x512xf32> to vector<2x512xf32>
    %6 = arith.addf %3, %5 : vector<2x512xf32>
    %cst_5 = arith.constant 0.000000e+00 : f32
    %7 = vector.broadcast %cst_5 : f32 to vector<2x512xf32>
    %8 = arith.maximumf %6, %7 : vector<2x512xf32>
    %9 = arith.truncf %8 : vector<2x512xf32> to vector<2x512xbf16>
    %c0_6 = arith.constant 0 : index
    %c0_7 = arith.constant 0 : index
    %10 = vector.load %arg4[%c0_6, %c0_7] : memref<512x256xbf16, #tpu.memory_space<vmem>>, vector<512x256xbf16>
    %cst_8 = arith.constant dense<0.000000e+00> : vector<2x256xf32>
    %11 = tpu.matmul %9, %10, %cst_8 {dimension_numbers = #tpu.dot_dimension_numbers<[1], [0], [0], [1], [0, 0, 1, 1], [], []>} : vector<2x512xbf16>, vector<512x256xbf16>, vector<2x256xf32> -> vector<2x256xf32>
    %c0_9 = arith.constant 0 : index
    %c0_10 = arith.constant 0 : index
    %12 = vector.load %arg5[%c0_9, %c0_10] : memref<1x256xf32, #tpu.memory_space<vmem>>, vector<1x256xf32>
    %13 = vector.broadcast %12 : vector<1x256xf32> to vector<2x256xf32>
    %14 = arith.addf %11, %13 : vector<2x256xf32>
    %cst_11 = arith.constant 0.000000e+00 : f32
    %15 = vector.broadcast %cst_11 : f32 to vector<2x256xf32>
    %16 = arith.maximumf %14, %15 : vector<2x256xf32>
    %17 = arith.truncf %16 : vector<2x256xf32> to vector<2x256xbf16>
    %c0_12 = arith.constant 0 : index
    %c0_13 = arith.constant 0 : index
    %18 = vector.load %arg6[%c0_12, %c0_13] : memref<256x64xbf16, #tpu.memory_space<vmem>>, vector<256x64xbf16>
    %cst_14 = arith.constant dense<0.000000e+00> : vector<2x64xf32>
    %19 = tpu.matmul %17, %18, %cst_14 {dimension_numbers = #tpu.dot_dimension_numbers<[1], [0], [0], [1], [0, 0, 1, 1], [], []>} : vector<2x256xbf16>, vector<256x64xbf16>, vector<2x64xf32> -> vector<2x64xf32>
    %c0_15 = arith.constant 0 : index
    %c0_16 = arith.constant 0 : index
    %20 = vector.load %arg7[%c0_15, %c0_16] : memref<1x64xf32, #tpu.memory_space<vmem>>, vector<1x64xf32>
    %21 = vector.broadcast %20 : vector<1x64xf32> to vector<2x64xf32>
    %22 = arith.addf %19, %21 : vector<2x64xf32>
    %c0_17 = arith.constant 0 : index
    %c0_18 = arith.constant 0 : index
    %23 = vector.load %arg8[%c0_17, %c0_18] : memref<2x64xf32, #tpu.memory_space<vmem>>, vector<2x64xf32>
    tpu.vector_store %arg8[%c0_17, %c0_18], %22 {strides = array<i32>} : memref<2x64xf32, #tpu.memory_space<vmem>>, vector<2x64xf32>,
    return
  }
  func.func @transform_0(%arg0: i32) -> (i32, i32) {
    %c0_i32 = arith.constant 0 : i32
    %c0_i32_0 = arith.constant 0 : i32
    %c0_i32_1 = arith.constant 0 : i32
    return %c0_i32, %c0_i32_0 : i32, i32
  }
  func.func @transform_1(%arg0: i32) -> (i32, i32) {
    %c0_i32 = arith.constant 0 : i32
    %c0_i32_0 = arith.constant 0 : i32
    %c0_i32_1 = arith.constant 0 : i32
    return %c0_i32, %c0_i32_0 : i32, i32
  }
  func.func @transform_2(%arg0: i32) -> (i32, i32) {
    %c0_i32 = arith.constant 0 : i32
    %c0_i32_0 = arith.constant 0 : i32
    %c0_i32_1 = arith.constant 0 : i32
    return %c0_i32, %c0_i32_0 : i32, i32
  }
  func.func @transform_3(%arg0: i32) -> (i32, i32) {
    %c0_i32 = arith.constant 0 : i32
    %c0_i32_0 = arith.constant 0 : i32
    %c0_i32_1 = arith.constant 0 : i32
    return %c0_i32, %c0_i32_0 : i32, i32
  }
  func.func @transform_4(%arg0: i32) -> (i32, i32) {
    %c0_i32 = arith.constant 0 : i32
    %c0_i32_0 = arith.constant 0 : i32
    %c0_i32_1 = arith.constant 0 : i32
    return %c0_i32, %c0_i32_0 : i32, i32
  }
  func.func @transform_5(%arg0: i32) -> (i32, i32) {
    %c0_i32 = arith.constant 0 : i32
    %c0_i32_0 = arith.constant 0 : i32
    %c0_i32_1 = arith.constant 0 : i32
    return %c0_i32, %c0_i32_0 : i32, i32
  }
  func.func @transform_6(%arg0: i32) -> (i32, i32) {
    %c0_i32 = arith.constant 0 : i32
    %c0_i32_0 = arith.constant 0 : i32
    %c0_i32_1 = arith.constant 0 : i32
    return %c0_i32, %c0_i32_0 : i32, i32
  }
  func.func @transform_7(%arg0: i32) -> (i32, i32) {
    %c0_i32 = arith.constant 0 : i32
    %c0_i32_0 = arith.constant 0 : i32
    %c0_i32_1 = arith.constant 0 : i32
    return %c0_i32, %c0_i32_0 : i32, i32
  }
}

module attributes {stable_mosaic.version = 11 : i64} {
  func.func @_point_mlp_max_kernel(%arg0: i32, %arg1: i32, %arg2: i32, %arg3: memref<1x600x8xbf16, #tpu.memory_space<vmem>>, %arg4: memref<1x8x8xf32, #tpu.memory_space<vmem>>, %arg5: memref<8x64xf32, #tpu.memory_space<vmem>>, %arg6: memref<1x64xf32, #tpu.memory_space<vmem>>, %arg7: memref<64x128xbf16, #tpu.memory_space<vmem>>, %arg8: memref<1x128xf32, #tpu.memory_space<vmem>>, %arg9: memref<128x512xbf16, #tpu.memory_space<vmem>>, %arg10: memref<1x512xf32, #tpu.memory_space<vmem>>, %arg11: memref<1x1x512xf32, #tpu.memory_space<vmem>>, %arg12: memref<1x512xf32, #tpu.memory_space<vmem>>) attributes {dimension_semantics = [#tpu.dimension_semantics<parallel>, #tpu.dimension_semantics<parallel>, #tpu.dimension_semantics<arbitrary>], iteration_bounds = array<i64: 2, 2, 1>, scalar_prefetch = 0 : i64, scratch_operands = 1 : i64, tpu.core_type = #tpu.core_type<tc>, window_params = [{transform_indices = @transform_0, window_bounds = array<i64: 1, 600, 8>}, {transform_indices = @transform_1, window_bounds = array<i64: 1, 8, 8>}, {pipeline_mode = #tpu.pipeline_mode<synchronous>, transform_indices = @transform_2, window_bounds = array<i64: 8, 64>}, {pipeline_mode = #tpu.pipeline_mode<synchronous>, transform_indices = @transform_3, window_bounds = array<i64: 1, 64>}, {pipeline_mode = #tpu.pipeline_mode<synchronous>, transform_indices = @transform_4, window_bounds = array<i64: 64, 128>}, {pipeline_mode = #tpu.pipeline_mode<synchronous>, transform_indices = @transform_5, window_bounds = array<i64: 1, 128>}, {transform_indices = @transform_6, window_bounds = array<i64: 128, 512>}, {transform_indices = @transform_7, window_bounds = array<i64: 1, 512>}, {transform_indices = @transform_8, window_bounds = array<i64: 1, 1, 512>}]} {
    %c0_i32 = arith.constant 0 : i32
    %0 = arith.cmpi eq, %arg2, %c0_i32 : i32
    %1 = arith.extui %0 : i1 to i32
    %c0_i32_0 = arith.constant 0 : i32
    %2 = arith.cmpi ne, %1, %c0_i32_0 : i32
    scf.if %2 {
      %cst_28 = arith.constant 0xFF800000 : f32
      %35 = vector.broadcast %cst_28 : f32 to vector<1x512xf32>
      %c0_29 = arith.constant 0 : index
      %c0_30 = arith.constant 0 : index
      %36 = vector.load %arg12[%c0_29, %c0_30] : memref<1x512xf32, #tpu.memory_space<vmem>>, vector<1x512xf32>
      tpu.vector_store %arg12[%c0_29, %c0_30], %35 {strides = array<i32>} : memref<1x512xf32, #tpu.memory_space<vmem>>, vector<1x512xf32>,
    } else {
    }
    %c0 = arith.constant 0 : index
    %c0_1 = arith.constant 0 : index
    %c0_2 = arith.constant 0 : index
    %3 = vector.load %arg4[%c0, %c0_1, %c0_2] : memref<1x8x8xf32, #tpu.memory_space<vmem>>, vector<1x8x8xf32>
    %4 = vector.shape_cast %3 : vector<1x8x8xf32> to vector<8x8xf32>
    %c0_3 = arith.constant 0 : index
    %c0_4 = arith.constant 0 : index
    %5 = vector.load %arg5[%c0_3, %c0_4] : memref<8x64xf32, #tpu.memory_space<vmem>>, vector<8x64xf32>
    %cst = arith.constant dense<0.000000e+00> : vector<8x64xf32>
    %6 = tpu.matmul %4, %5, %cst {dimension_numbers = #tpu.dot_dimension_numbers<[1], [0], [0], [1], [0, 0, 1, 1], [], []>} : vector<8x8xf32>, vector<8x64xf32>, vector<8x64xf32> -> vector<8x64xf32>
    %7 = arith.truncf %6 : vector<8x64xf32> to vector<8x64xbf16>
    %c0_5 = arith.constant 0 : index
    %c0_6 = arith.constant 0 : index
    %c0_7 = arith.constant 0 : index
    %8 = vector.load %arg3[%c0_5, %c0_6, %c0_7] : memref<1x600x8xbf16, #tpu.memory_space<vmem>>, vector<1x600x8xbf16>
    %9 = vector.shape_cast %8 : vector<1x600x8xbf16> to vector<600x8xbf16>
    %cst_8 = arith.constant dense<0.000000e+00> : vector<600x64xf32>
    %10 = tpu.matmul %9, %7, %cst_8 {dimension_numbers = #tpu.dot_dimension_numbers<[1], [0], [0], [1], [0, 0, 1, 1], [], []>} : vector<600x8xbf16>, vector<8x64xbf16>, vector<600x64xf32> -> vector<600x64xf32>
    %c0_9 = arith.constant 0 : index
    %c0_10 = arith.constant 0 : index
    %11 = vector.load %arg6[%c0_9, %c0_10] : memref<1x64xf32, #tpu.memory_space<vmem>>, vector<1x64xf32>
    %12 = vector.broadcast %11 : vector<1x64xf32> to vector<600x64xf32>
    %13 = arith.addf %10, %12 : vector<600x64xf32>
    %cst_11 = arith.constant 0.000000e+00 : f32
    %14 = vector.broadcast %cst_11 : f32 to vector<600x64xf32>
    %15 = arith.maximumf %13, %14 : vector<600x64xf32>
    %16 = arith.truncf %15 : vector<600x64xf32> to vector<600x64xbf16>
    %c0_12 = arith.constant 0 : index
    %c0_13 = arith.constant 0 : index
    %17 = vector.load %arg7[%c0_12, %c0_13] : memref<64x128xbf16, #tpu.memory_space<vmem>>, vector<64x128xbf16>
    %cst_14 = arith.constant dense<0.000000e+00> : vector<600x128xf32>
    %18 = tpu.matmul %16, %17, %cst_14 {dimension_numbers = #tpu.dot_dimension_numbers<[1], [0], [0], [1], [0, 0, 1, 1], [], []>} : vector<600x64xbf16>, vector<64x128xbf16>, vector<600x128xf32> -> vector<600x128xf32>
    %c0_15 = arith.constant 0 : index
    %c0_16 = arith.constant 0 : index
    %19 = vector.load %arg8[%c0_15, %c0_16] : memref<1x128xf32, #tpu.memory_space<vmem>>, vector<1x128xf32>
    %20 = vector.broadcast %19 : vector<1x128xf32> to vector<600x128xf32>
    %21 = arith.addf %18, %20 : vector<600x128xf32>
    %cst_17 = arith.constant 0.000000e+00 : f32
    %22 = vector.broadcast %cst_17 : f32 to vector<600x128xf32>
    %23 = arith.maximumf %21, %22 : vector<600x128xf32>
    %24 = arith.truncf %23 : vector<600x128xf32> to vector<600x128xbf16>
    %c0_18 = arith.constant 0 : index
    %c0_19 = arith.constant 0 : index
    %25 = vector.load %arg9[%c0_18, %c0_19] : memref<128x512xbf16, #tpu.memory_space<vmem>>, vector<128x512xbf16>
    %cst_20 = arith.constant dense<0.000000e+00> : vector<600x512xf32>
    %26 = tpu.matmul %24, %25, %cst_20 {dimension_numbers = #tpu.dot_dimension_numbers<[1], [0], [0], [1], [0, 0, 1, 1], [], []>} : vector<600x128xbf16>, vector<128x512xbf16>, vector<600x512xf32> -> vector<600x512xf32>
    %c0_21 = arith.constant 0 : index
    %c0_22 = arith.constant 0 : index
    %27 = vector.load %arg12[%c0_21, %c0_22] : memref<1x512xf32, #tpu.memory_space<vmem>>, vector<1x512xf32>
    %cst_23 = arith.constant dense<0xFF800000> : vector<512xf32>
    %28 = vector.multi_reduction <maximumf>, %26, %cst_23 [0] : vector<600x512xf32> to vector<512xf32>
    %29 = vector.shape_cast %28 : vector<512xf32> to vector<1x512xf32>
    %30 = arith.maximumf %27, %29 : vector<1x512xf32>
    %c0_24 = arith.constant 0 : index
    %c0_25 = arith.constant 0 : index
    %31 = vector.load %arg12[%c0_24, %c0_25] : memref<1x512xf32, #tpu.memory_space<vmem>>, vector<1x512xf32>
    tpu.vector_store %arg12[%c0_24, %c0_25], %30 {strides = array<i32>} : memref<1x512xf32, #tpu.memory_space<vmem>>, vector<1x512xf32>,
    %c0_i32_26 = arith.constant 0 : i32
    %32 = arith.cmpi eq, %arg2, %c0_i32_26 : i32
    %33 = arith.extui %32 : i1 to i32
    %c0_i32_27 = arith.constant 0 : i32
    %34 = arith.cmpi ne, %33, %c0_i32_27 : i32
    scf.if %34 {
      %c0_28 = arith.constant 0 : index
      %c0_29 = arith.constant 0 : index
      %35 = vector.load %arg12[%c0_28, %c0_29] : memref<1x512xf32, #tpu.memory_space<vmem>>, vector<1x512xf32>
      %c0_30 = arith.constant 0 : index
      %c0_31 = arith.constant 0 : index
      %36 = vector.load %arg10[%c0_30, %c0_31] : memref<1x512xf32, #tpu.memory_space<vmem>>, vector<1x512xf32>
      %37 = arith.addf %35, %36 : vector<1x512xf32>
      %c0_32 = arith.constant 0 : index
      %c0_33 = arith.constant 0 : index
      %c0_34 = arith.constant 0 : index
      %38 = vector.load %arg11[%c0_32, %c0_33, %c0_34] : memref<1x1x512xf32, #tpu.memory_space<vmem>>, vector<1x1x512xf32>
      %39 = vector.shape_cast %38 : vector<1x1x512xf32> to vector<1x512xf32>
      %40 = vector.shape_cast %37 : vector<1x512xf32> to vector<1x1x512xf32>
      tpu.vector_store %arg11[%c0_32, %c0_33, %c0_34], %40 {strides = array<i32>} : memref<1x1x512xf32, #tpu.memory_space<vmem>>, vector<1x1x512xf32>,
    } else {
    }
    return
  }
  func.func @transform_0(%arg0: i32, %arg1: i32, %arg2: i32) -> (i32, i32, i32) {
    %c0_i32 = arith.constant 0 : i32
    %c0_i32_0 = arith.constant 0 : i32
    return %arg0, %arg2, %c0_i32 : i32, i32, i32
  }
  func.func @transform_1(%arg0: i32, %arg1: i32, %arg2: i32) -> (i32, i32, i32) {
    %c0_i32 = arith.constant 0 : i32
    %c0_i32_0 = arith.constant 0 : i32
    %c0_i32_1 = arith.constant 0 : i32
    return %arg0, %c0_i32, %c0_i32_0 : i32, i32, i32
  }
  func.func @transform_2(%arg0: i32, %arg1: i32, %arg2: i32) -> (i32, i32) {
    %c0_i32 = arith.constant 0 : i32
    %c0_i32_0 = arith.constant 0 : i32
    %c0_i32_1 = arith.constant 0 : i32
    return %c0_i32, %c0_i32_0 : i32, i32
  }
  func.func @transform_3(%arg0: i32, %arg1: i32, %arg2: i32) -> (i32, i32) {
    %c0_i32 = arith.constant 0 : i32
    %c0_i32_0 = arith.constant 0 : i32
    %c0_i32_1 = arith.constant 0 : i32
    return %c0_i32, %c0_i32_0 : i32, i32
  }
  func.func @transform_4(%arg0: i32, %arg1: i32, %arg2: i32) -> (i32, i32) {
    %c0_i32 = arith.constant 0 : i32
    %c0_i32_0 = arith.constant 0 : i32
    %c0_i32_1 = arith.constant 0 : i32
    return %c0_i32, %c0_i32_0 : i32, i32
  }
  func.func @transform_5(%arg0: i32, %arg1: i32, %arg2: i32) -> (i32, i32) {
    %c0_i32 = arith.constant 0 : i32
    %c0_i32_0 = arith.constant 0 : i32
    %c0_i32_1 = arith.constant 0 : i32
    return %c0_i32, %c0_i32_0 : i32, i32
  }
  func.func @transform_6(%arg0: i32, %arg1: i32, %arg2: i32) -> (i32, i32) {
    %c0_i32 = arith.constant 0 : i32
    %c0_i32_0 = arith.constant 0 : i32
    return %c0_i32, %arg1 : i32, i32
  }
  func.func @transform_7(%arg0: i32, %arg1: i32, %arg2: i32) -> (i32, i32) {
    %c0_i32 = arith.constant 0 : i32
    %c0_i32_0 = arith.constant 0 : i32
    return %c0_i32, %arg1 : i32, i32
  }
  func.func @transform_8(%arg0: i32, %arg1: i32, %arg2: i32) -> (i32, i32, i32) {
    %c0_i32 = arith.constant 0 : i32
    %c0_i32_0 = arith.constant 0 : i32
    return %arg0, %c0_i32, %arg1 : i32, i32, i32
  }
}

module attributes {stable_mosaic.version = 11 : i64} {
  func.func @_fc_head_kernel(%arg0: i32, %arg1: memref<2x1024xf32, #tpu.memory_space<vmem>>, %arg2: memref<1024x512xbf16, #tpu.memory_space<vmem>>, %arg3: memref<1x512xf32, #tpu.memory_space<vmem>>, %arg4: memref<512x256xbf16, #tpu.memory_space<vmem>>, %arg5: memref<1x256xf32, #tpu.memory_space<vmem>>, %arg6: memref<256x2xbf16, #tpu.memory_space<vmem>>, %arg7: memref<1x2xf32, #tpu.memory_space<vmem>>, %arg8: memref<2x2xf32, #tpu.memory_space<vmem>>) attributes {dimension_semantics = [#tpu.dimension_semantics<arbitrary>], iteration_bounds = array<i64: 1>, scalar_prefetch = 0 : i64, scratch_operands = 0 : i64, tpu.core_type = #tpu.core_type<tc>, window_params = [{pipeline_mode = #tpu.pipeline_mode<synchronous>, transform_indices = @transform_0, window_bounds = array<i64: 2, 1024>}, {pipeline_mode = #tpu.pipeline_mode<synchronous>, transform_indices = @transform_1, window_bounds = array<i64: 1024, 512>}, {pipeline_mode = #tpu.pipeline_mode<synchronous>, transform_indices = @transform_2, window_bounds = array<i64: 1, 512>}, {pipeline_mode = #tpu.pipeline_mode<synchronous>, transform_indices = @transform_3, window_bounds = array<i64: 512, 256>}, {pipeline_mode = #tpu.pipeline_mode<synchronous>, transform_indices = @transform_4, window_bounds = array<i64: 1, 256>}, {pipeline_mode = #tpu.pipeline_mode<synchronous>, transform_indices = @transform_5, window_bounds = array<i64: 256, 2>}, {pipeline_mode = #tpu.pipeline_mode<synchronous>, transform_indices = @transform_6, window_bounds = array<i64: 1, 2>}, {pipeline_mode = #tpu.pipeline_mode<synchronous>, transform_indices = @transform_7, window_bounds = array<i64: 2, 2>}]} {
    %c0 = arith.constant 0 : index
    %c0_0 = arith.constant 0 : index
    %0 = vector.load %arg1[%c0, %c0_0] : memref<2x1024xf32, #tpu.memory_space<vmem>>, vector<2x1024xf32>
    %1 = arith.truncf %0 : vector<2x1024xf32> to vector<2x1024xbf16>
    %c0_1 = arith.constant 0 : index
    %c0_2 = arith.constant 0 : index
    %2 = vector.load %arg2[%c0_1, %c0_2] : memref<1024x512xbf16, #tpu.memory_space<vmem>>, vector<1024x512xbf16>
    %cst = arith.constant dense<0.000000e+00> : vector<2x512xf32>
    %3 = tpu.matmul %1, %2, %cst {dimension_numbers = #tpu.dot_dimension_numbers<[1], [0], [0], [1], [0, 0, 1, 1], [], []>} : vector<2x1024xbf16>, vector<1024x512xbf16>, vector<2x512xf32> -> vector<2x512xf32>
    %c0_3 = arith.constant 0 : index
    %c0_4 = arith.constant 0 : index
    %4 = vector.load %arg3[%c0_3, %c0_4] : memref<1x512xf32, #tpu.memory_space<vmem>>, vector<1x512xf32>
    %5 = vector.broadcast %4 : vector<1x512xf32> to vector<2x512xf32>
    %6 = arith.addf %3, %5 : vector<2x512xf32>
    %cst_5 = arith.constant 0.000000e+00 : f32
    %7 = vector.broadcast %cst_5 : f32 to vector<2x512xf32>
    %8 = arith.maximumf %6, %7 : vector<2x512xf32>
    %9 = arith.truncf %8 : vector<2x512xf32> to vector<2x512xbf16>
    %c0_6 = arith.constant 0 : index
    %c0_7 = arith.constant 0 : index
    %10 = vector.load %arg4[%c0_6, %c0_7] : memref<512x256xbf16, #tpu.memory_space<vmem>>, vector<512x256xbf16>
    %cst_8 = arith.constant dense<0.000000e+00> : vector<2x256xf32>
    %11 = tpu.matmul %9, %10, %cst_8 {dimension_numbers = #tpu.dot_dimension_numbers<[1], [0], [0], [1], [0, 0, 1, 1], [], []>} : vector<2x512xbf16>, vector<512x256xbf16>, vector<2x256xf32> -> vector<2x256xf32>
    %c0_9 = arith.constant 0 : index
    %c0_10 = arith.constant 0 : index
    %12 = vector.load %arg5[%c0_9, %c0_10] : memref<1x256xf32, #tpu.memory_space<vmem>>, vector<1x256xf32>
    %13 = vector.broadcast %12 : vector<1x256xf32> to vector<2x256xf32>
    %14 = arith.addf %11, %13 : vector<2x256xf32>
    %cst_11 = arith.constant 0.000000e+00 : f32
    %15 = vector.broadcast %cst_11 : f32 to vector<2x256xf32>
    %16 = arith.maximumf %14, %15 : vector<2x256xf32>
    %17 = arith.truncf %16 : vector<2x256xf32> to vector<2x256xbf16>
    %c0_12 = arith.constant 0 : index
    %c0_13 = arith.constant 0 : index
    %18 = vector.load %arg6[%c0_12, %c0_13] : memref<256x2xbf16, #tpu.memory_space<vmem>>, vector<256x2xbf16>
    %cst_14 = arith.constant dense<0.000000e+00> : vector<2x2xf32>
    %19 = tpu.matmul %17, %18, %cst_14 {dimension_numbers = #tpu.dot_dimension_numbers<[1], [0], [0], [1], [0, 0, 1, 1], [], []>} : vector<2x256xbf16>, vector<256x2xbf16>, vector<2x2xf32> -> vector<2x2xf32>
    %c0_15 = arith.constant 0 : index
    %c0_16 = arith.constant 0 : index
    %20 = vector.load %arg7[%c0_15, %c0_16] : memref<1x2xf32, #tpu.memory_space<vmem>>, vector<1x2xf32>
    %21 = vector.broadcast %20 : vector<1x2xf32> to vector<2x2xf32>
    %22 = arith.addf %19, %21 : vector<2x2xf32>
    %c0_17 = arith.constant 0 : index
    %c0_18 = arith.constant 0 : index
    %23 = vector.load %arg8[%c0_17, %c0_18] : memref<2x2xf32, #tpu.memory_space<vmem>>, vector<2x2xf32>
    tpu.vector_store %arg8[%c0_17, %c0_18], %22 {strides = array<i32>} : memref<2x2xf32, #tpu.memory_space<vmem>>, vector<2x2xf32>,
    return
  }
  func.func @transform_0(%arg0: i32) -> (i32, i32) {
    %c0_i32 = arith.constant 0 : i32
    %c0_i32_0 = arith.constant 0 : i32
    %c0_i32_1 = arith.constant 0 : i32
    return %c0_i32, %c0_i32_0 : i32, i32
  }
  func.func @transform_1(%arg0: i32) -> (i32, i32) {
    %c0_i32 = arith.constant 0 : i32
    %c0_i32_0 = arith.constant 0 : i32
    %c0_i32_1 = arith.constant 0 : i32
    return %c0_i32, %c0_i32_0 : i32, i32
  }
  func.func @transform_2(%arg0: i32) -> (i32, i32) {
    %c0_i32 = arith.constant 0 : i32
    %c0_i32_0 = arith.constant 0 : i32
    %c0_i32_1 = arith.constant 0 : i32
    return %c0_i32, %c0_i32_0 : i32, i32
  }
  func.func @transform_3(%arg0: i32) -> (i32, i32) {
    %c0_i32 = arith.constant 0 : i32
    %c0_i32_0 = arith.constant 0 : i32
    %c0_i32_1 = arith.constant 0 : i32
    return %c0_i32, %c0_i32_0 : i32, i32
  }
  func.func @transform_4(%arg0: i32) -> (i32, i32) {
    %c0_i32 = arith.constant 0 : i32
    %c0_i32_0 = arith.constant 0 : i32
    %c0_i32_1 = arith.constant 0 : i32
    return %c0_i32, %c0_i32_0 : i32, i32
  }
  func.func @transform_5(%arg0: i32) -> (i32, i32) {
    %c0_i32 = arith.constant 0 : i32
    %c0_i32_0 = arith.constant 0 : i32
    %c0_i32_1 = arith.constant 0 : i32
    return %c0_i32, %c0_i32_0 : i32, i32
  }
  func.func @transform_6(%arg0: i32) -> (i32, i32) {
    %c0_i32 = arith.constant 0 : i32
    %c0_i32_0 = arith.constant 0 : i32
    %c0_i32_1 = arith.constant 0 : i32
    return %c0_i32, %c0_i32_0 : i32, i32
  }
  func.func @transform_7(%arg0: i32) -> (i32, i32) {
    %c0_i32 = arith.constant 0 : i32
    %c0_i32_0 = arith.constant 0 : i32
    %c0_i32_1 = arith.constant 0 : i32
    return %c0_i32, %c0_i32_0 : i32, i32
  }
}

</mosaic_0001>

<bundles_post_ra>
// kernel: pointnet_forward.4
= control target key start
LH: loop header
LB: loop body
LE: loop exit
PB: predicated region body
PF: predicated region fallthrough
CT: control target
= control target key end

     0   :  { %s5120_s0 = inlined_call_operand.vmem [shape: bf16[2,600,8], index: 0, kind: input, shape index: {}]   ;;  %s5121_s1 = inlined_call_operand.vmem [shape: f32[1,8,8], index: 1, kind: input, shape index: {}]   ;;  %s5122_s2 = inlined_call_operand.hbm [shape: f32[8,64], index: 2, kind: input, shape index: {}]   ;;  %s5123_s3 = inlined_call_operand.vmem [shape: f32[1,64], index: 3, kind: input, shape index: {}]   ;;  %s5124_s4 = inlined_call_operand.vmem [shape: bf16[64,128], index: 4, kind: input, shape index: {}]   ;;  %s5125_s5 = inlined_call_operand.vmem [shape: f32[1,128], index: 5, kind: input, shape index: {}]   ;;  %s5126_s6 = inlined_call_operand.vmem [shape: bf16[128,1024], index: 6, kind: input, shape index: {}]   ;;  %s5127_s7 = inlined_call_operand.hbm [shape: f32[1,1024], index: 7, kind: input, shape index: {}]   ;;  %s5128_s8 = inlined_call_operand.vmem [shape: f32[2,1,1024], index: 8, kind: output, shape index: {}]  }
   0x1   :  { %5136 = sst [smem:[#allocation13_spill]] %s5122_s2 }
   0x2   :  { %5137 = sst [smem:[#allocation14_spill]] %s5126_s6 }
   0x3   :  { %13 = vsyncpa [#allocation4], 0 }
   0x4   :  { %14 = vsyncpa [#allocation7], 0 }
   0x5   :  { %16 = vsyncpa [#allocation7 + $0x1], 0  ;;  %s4330_s27 = smov 0   ;;  %s4332_s28 = smov 0  }
   0x6   :  { %s4334_s29 = smov 0   ;;  %s4336_s30 = smov 0  }
   0x7   :  { %s4338_s9 = smov 0   ;;  %s4340_s10 = smov 0  }
   0x8   :  { %s4342_s11 = smov 0   ;;  %s4344_s12 = smov 0  }
   0x9 LB: > { %5138 = sst [smem:[#allocation10_spill]] %s4272_s11  ;;  %s3550_s13 = sadd.s32 4294967295, %s4276_s12   ;;  %s4276_s12 = sphi %s4344_s12, %s22_s12   ;;  %s4272_s11 = sphi %s4342_s11, %s5157_s11   ;;  %s4268_s10 = sphi %s4340_s10, %s5162_s10   ;;  %s4264_s9 = sphi %s4338_s9, %s5155_s9   ;;  %s4260_s30 = sphi %s4336_s30, %s5161_s30   ;;  %s4256_s29 = sphi %s4334_s29, %s5160_s29   ;;  %s4252_s28 = sphi %s4332_s28, %s5159_s28   ;;  %s4248_s27 = sphi %s4330_s27, %s5158_s27  }
   0xa   : > { %s37_s14 = sadd.s32 1, %s4268_s10  ;;  %s41_s15 = sadd.s32 1, %s4272_s11 }
   0xb   : > { %p39_p0 = scmp.ge.s32.totalorder %s37_s14, 2  ;;  %s181_s16 = sadd.s32 1, %s4256_s29 }
   0xc   : > { %p188_p1 = scmp.ne.s32.totalorder %s4256_s29, %s4252_s28  ;;  %p189_p2 = scmp.eq.s32.totalorder %s4276_s12, 0 }
   0xd   : > { %s5164_s14 = smov (%p39_p0, %s37_s14), 0  ;;  %s5166_s15 = smov (!%p39_p0, %s41_s15), %s4272_s11 }
   0xe   : > { %5139 = sst [smem:[#allocation11_spill]] %s5164_s14  ;;  %s178_s17 = ssub.s32 %s4268_s10, %s5164_s14 }
   0xf   : > { %p43_p3 = scmp.ge.s32.totalorder %s5166_s15, 2  ;;  %p179_p4 = scmp.eq.s32.totalorder %s178_s17, 0 }
  0x10   : > { %p4380_p5 = por %p189_p2, %p188_p1  ;;  %p220_p6 = scmp.ne.s32.totalorder %s4252_s28, %s4248_s27 }
  0x11   : > { %s5168_s15 = smov (%p43_p3, %s5166_s15), 0  ;;  %p4390_p7 = scmp.eq.s32.totalorder %s3550_s13, 0 }
  0x12   : > { %s5140_s18 = scalar_select %p4380_p5, 1, 0 }
  0x13   : > { %5141 = sst [smem:[#allocation12_spill]] %s5168_s15  ;;  %p3552_p8 = scmp.ge.s32.totalorder %s4276_s12, 1 }
  0x14   : > { %s4388_s19 = scalar_select %p179_p4, %s4256_s29, %s181_s16  }
  0x15   : > { %s5142_s20 = scalar_select %p4390_p7, 1, 0 }
  0x16   : > { %p259_p9 = scmp.lt.s32.totalorder %s4276_s12, 5  ;;  %p4398_p10 = por %p4390_p7, %p220_p6 }
  0x17   : > { %s4278_s23 = smov [#allocation3]   ;;  %s5146_s2 = sld [smem:[#allocation13_spill]] }
  0x18   : > { %s5143_s21 = scalar_select %p4398_p10, 1, 0 }
  0x19   : > { %p4402_p11 = pnand %p3552_p8, %p259_p9  ;;  %s275_s24 = sshll.u32 %s4278_s23, 4  ;;  %s276_s24 = int_to_ptr.vmem [resolvable:$true] %s275_s24 }
  0x1b   : > { %s5144_s22 = scalar_select %p4402_p11, 1, 0 }
  0x1c   : > { %p3983_p12 = pneg %p4402_p11 }
  0x1d   : > { %s4150_s13 = scalar_lea.hbm %s5146_s2, 128 }
  0x1e   : > { %p4410_p13 = pnand %p3983_p12, %p4390_p7  ;;  %p4151_p0 = scmp.ne.s32.totalorder %s5146_s2, %s4150_s13 }
  0x1f   : > { %p4157_p4 = scmp.lt.u32.totalorder %s4150_s13, %s5146_s2 }
  0x20   : > { %p4152_p1 = pneg %p4410_p13 }
  0x22   : > { %p4153_p2 = pnand %p4152_p1, %p4151_p0 }
  0x24   : > { %p4154_p3 = pneg %p4153_p2 }
  0x26   : > { %p4159_p6 = pnand %p4157_p4, %p4154_p3 }
  0x28   : > { %4162 = shalt.err (!%p4159_p6)
}
  0x29   : > { %s4163_s14 = scalar_lea.vmem %s276_s24, 128  ;;  %p4171_p10 = scmp.lt.s32.totalorder %s276_s24, %s276_s24 }
  0x2a   : > { %p4164_p8 = scmp.ne.s32.totalorder %s276_s24, %s4163_s14  ;;  %p4172_p7 = scmp.lt.s32.totalorder %s4163_s14, %s4163_s14 }
  0x2c   : > { %p4166_p9 = pnand %p4164_p8, %p4152_p1  ;;  %p4173_p11 = por %p4172_p7, %p4171_p10 }
  0x2e   : > { %p4167_p12 = pneg %p4166_p9 }
  0x30   : > { %p4174_p5 = pnand %p4173_p11, %p4167_p12 }
  0x32   : > { %4177 = shalt.err (!%p4174_p5)
}
  0x33   : > { %3986 = dma.hbm_to_vmem [thread:$0]  (!%p4410_p13), %s5146_s2, 128, %s276_s24, [#allocation4]  }
  0x34   : > { %p3554_p0 = scmp.ge.s32.totalorder %s4276_s12, 4 }
  0x35   : > { %p5147_p2 = scmp.ne.s32.totalorder (!%p3554_p0), %s5140_s18, 0 }
  0x36   : > { %291 = sbr.rel (%p3554_p0) target bundleno = 113 (0x71), region = 36 }
  0x3d   : > { %307 = sbr.rel (!%p5147_p2) target bundleno = 87 (0x57), region = 44  ;;  %s309_s15 = sand.u32 (%p5147_p2), 1, %s4256_s29  }
  0x3e   : > { %s3723_s13 = sshll.u32 (%p5147_p2), %s4268_s10, 4  ;;  %s3555_s14 = sshll.u32 (%p5147_p2), %s309_s15, 8 }
  0x3f   : > { %s5148_s6 = sld [smem:[#allocation14_spill]] (%p5147_p2)  ;;  %s4443_s24 = scalar_lea.vmem (%p5147_p2), [#allocation5], %s3555_s14 }
  0x45   : > { %s4438_s23 = scalar_lea.vmem %s5148_s6, %s3723_s13 }
  0x46   : > { %v327_v0 = vld [vmem:[%s4438_s23] sm:$0xff]  ;;  %v329_v1 = vld [vmem:[%s4438_s23 + $0x8] sm:$0xff] }
  0x47   : > { %v331_v2 = vld [vmem:[%s4438_s23 + $0x20] sm:$0xff]  ;;  %328 = vst [vmem:[%s4443_s24] sm:$0xff] %v327_v0  ;;  %330 = vst [vmem:[%s4443_s24 + $0x8] sm:$0xff] %v329_v1  ;;  %v333_v3 = vld [vmem:[%s4438_s23 + $0x28] sm:$0xff] }
  0x48   : > { %332 = vst [vmem:[%s4443_s24 + $0x10] sm:$0xff] %v331_v2  ;;  %v335_v4 = vld [vmem:[%s4438_s23 + $0x40] sm:$0xff]  ;;  %v337_v5 = vld [vmem:[%s4438_s23 + $0x48] sm:$0xff]  ;;  %334 = vst [vmem:[%s4443_s24 + $0x18] sm:$0xff] %v333_v3 }
  0x49   : > { %336 = vst [vmem:[%s4443_s24 + $0x20] sm:$0xff] %v335_v4  ;;  %338 = vst [vmem:[%s4443_s24 + $0x28] sm:$0xff] %v337_v5  ;;  %v339_v6 = vld [vmem:[%s4438_s23 + $0x60] sm:$0xff]  ;;  %v341_v7 = vld [vmem:[%s4438_s23 + $0x68] sm:$0xff] }
  0x4a   : > { %v343_v8 = vld [vmem:[%s4438_s23 + $0x80] sm:$0xff]  ;;  %340 = vst [vmem:[%s4443_s24 + $0x30] sm:$0xff] %v339_v6  ;;  %342 = vst [vmem:[%s4443_s24 + $0x38] sm:$0xff] %v341_v7  ;;  %v345_v9 = vld [vmem:[%s4438_s23 + $0x88] sm:$0xff] }
  0x4b   : > { %344 = vst [vmem:[%s4443_s24 + $0x40] sm:$0xff] %v343_v8  ;;  %v347_v10 = vld [vmem:[%s4438_s23 + $0xa0] sm:$0xff]  ;;  %v349_v11 = vld [vmem:[%s4438_s23 + $0xa8] sm:$0xff]  ;;  %346 = vst [vmem:[%s4443_s24 + $0x48] sm:$0xff] %v345_v9 }
  0x4c   : > { %348 = vst [vmem:[%s4443_s24 + $0x50] sm:$0xff] %v347_v10  ;;  %350 = vst [vmem:[%s4443_s24 + $0x58] sm:$0xff] %v349_v11  ;;  %v351_v12 = vld [vmem:[%s4438_s23 + $0xc0] sm:$0xff]  ;;  %v353_v13 = vld [vmem:[%s4438_s23 + $0xc8] sm:$0xff] }
  0x4d   : > { %v355_v14 = vld [vmem:[%s4438_s23 + $0xe0] sm:$0xff]  ;;  %352 = vst [vmem:[%s4443_s24 + $0x60] sm:$0xff] %v351_v12  ;;  %354 = vst [vmem:[%s4443_s24 + $0x68] sm:$0xff] %v353_v13  ;;  %v357_v15 = vld [vmem:[%s4438_s23 + $0xe8] sm:$0xff] }
  0x4e   : > { %356 = vst [vmem:[%s4443_s24 + $0x70] sm:$0xff] %v355_v14  ;;  %v359_v16 = vld [vmem:[%s4438_s23 + $0x100] sm:$0xff]  ;;  %v361_v17 = vld [vmem:[%s4438_s23 + $0x108] sm:$0xff]  ;;  %358 = vst [vmem:[%s4443_s24 + $0x78] sm:$0xff] %v357_v15 }
  0x4f   : > { %360 = vst [vmem:[%s4443_s24 + $0x80] sm:$0xff] %v359_v16  ;;  %362 = vst [vmem:[%s4443_s24 + $0x88] sm:$0xff] %v361_v17  ;;  %v363_v18 = vld [vmem:[%s4438_s23 + $0x120] sm:$0xff]  ;;  %v365_v19 = vld [vmem:[%s4438_s23 + $0x128] sm:$0xff] }
  0x50   : > { %v367_v20 = vld [vmem:[%s4438_s23 + $0x140] sm:$0xff]  ;;  %364 = vst [vmem:[%s4443_s24 + $0x90] sm:$0xff] %v363_v18  ;;  %366 = vst [vmem:[%s4443_s24 + $0x98] sm:$0xff] %v365_v19  ;;  %v369_v21 = vld [vmem:[%s4438_s23 + $0x148] sm:$0xff] }
  0x51   : > { %368 = vst [vmem:[%s4443_s24 + $0xa0] sm:$0xff] %v367_v20  ;;  %v371_v22 = vld [vmem:[%s4438_s23 + $0x160] sm:$0xff]  ;;  %v373_v23 = vld [vmem:[%s4438_s23 + $0x168] sm:$0xff]  ;;  %370 = vst [vmem:[%s4443_s24 + $0xa8] sm:$0xff] %v369_v21 }
  0x52   : > { %372 = vst [vmem:[%s4443_s24 + $0xb0] sm:$0xff] %v371_v22  ;;  %374 = vst [vmem:[%s4443_s24 + $0xb8] sm:$0xff] %v373_v23  ;;  %v375_v24 = vld [vmem:[%s4438_s23 + $0x180] sm:$0xff]  ;;  %v377_v25 = vld [vmem:[%s4438_s23 + $0x188] sm:$0xff] }
  0x53   : > { %v379_v26 = vld [vmem:[%s4438_s23 + $0x1a0] sm:$0xff]  ;;  %376 = vst [vmem:[%s4443_s24 + $0xc0] sm:$0xff] %v375_v24  ;;  %378 = vst [vmem:[%s4443_s24 + $0xc8] sm:$0xff] %v377_v25  ;;  %v381_v27 = vld [vmem:[%s4438_s23 + $0x1a8] sm:$0xff] }
  0x54   : > { %380 = vst [vmem:[%s4443_s24 + $0xd0] sm:$0xff] %v379_v26  ;;  %v383_v28 = vld [vmem:[%s4438_s23 + $0x1c0] sm:$0xff]  ;;  %v385_v29 = vld [vmem:[%s4438_s23 + $0x1c8] sm:$0xff]  ;;  %382 = vst [vmem:[%s4443_s24 + $0xd8] sm:$0xff] %v381_v27 }
  0x55   : > { %384 = vst [vmem:[%s4443_s24 + $0xe0] sm:$0xff] %v383_v28  ;;  %386 = vst [vmem:[%s4443_s24 + $0xe8] sm:$0xff] %v385_v29  ;;  %v387_v30 = vld [vmem:[%s4438_s23 + $0x1e0] sm:$0xff]  ;;  %v389_v31 = vld [vmem:[%s4438_s23 + $0x1e8] sm:$0xff] }
  0x56   : > { %388 = vst [vmem:[%s4443_s24 + $0xf0] sm:$0xff] %v387_v30  ;;  %390 = vst [vmem:[%s4443_s24 + $0xf8] sm:$0xff] %v389_v31 }
  0x57 PF: > { %s397_s25 = sand.u32 1, %s4256_s29   ;;  %s3724_s26 = sshll.u32 %s4268_s10, 6 }
  0x58   : > { %s3558_s27 = sshll.u32 %s397_s25, 2  ;;  %s4511_s14 = scalar_lea.hbm %s5127_s7, %s3724_s26 }
  0x59   : > { %s401_s16 = scalar_lea.vmem [#allocation6], %s3558_s27  ;;  %s398_s23 = scalar_lea.sflag [#allocation7], %s397_s25 }
  0x5a   : > { %s409_s17 = sshll.u32 %s401_s16, 4  ;;  %s4178_s24 = scalar_lea.hbm %s4511_s14, 64  ;;  %s410_s17 = int_to_ptr.vmem [resolvable:$true] %s409_s17 }
  0x5b   : > { %p4179_p5 = scmp.ne.s32.totalorder %s4511_s14, %s4178_s24  ;;  %p5149_p7 = scmp.ne.s32.totalorder %s5140_s18, 0 }
  0x5c   : > { %s4182_s11 = scalar_lea.hbm %s5127_s7, 128  ;;  %p4183_p13 = scmp.lt.u32.totalorder %s4511_s14, %s5127_s7 }
  0x5d   : > { %p4180_p10 = pnand %p4179_p5, %p5149_p7  ;;  %p4184_p1 = scmp.lt.u32.totalorder %s4182_s11, %s4178_s24 }
  0x5e   : > { %p4186_p4 = scmp.lt.u32.totalorder %s4178_s24, %s4511_s14 }
  0x5f   : > { %p4181_p11 = pneg %p4180_p10  ;;  %p4185_p3 = por %p4184_p1, %p4183_p13 }
  0x61   : > { %p4187_p6 = por %p4186_p4, %p4185_p3 }
  0x63   : > { %p4188_p8 = pnand %p4187_p6, %p4181_p11 }
  0x65   : > { %4191 = shalt.err (!%p4188_p8)
}
  0x66   : > { %s4192_s25 = scalar_lea.vmem %s410_s17, 64  ;;  %s4279_s27 = smov [#allocation6]  }
  0x67   : > { %p4193_p9 = scmp.ne.s32.totalorder %s410_s17, %s4192_s25  ;;  %s4196_s13 = sshll.u32 %s4279_s27, 4  ;;  %s4197_s13 = int_to_ptr.vmem [resolvable:$false] %s4196_s13 }
  0x68   : > { %s4198_s2 = scalar_lea.vmem %s4197_s13, 128  ;;  %p4199_p2 = scmp.lt.s32.totalorder %s410_s17, %s4197_s13 }
  0x69   : > { %p4194_p12 = pnand %p4193_p9, %p5149_p7  ;;  %p4200_p5 = scmp.lt.s32.totalorder %s4198_s2, %s4192_s25 }
  0x6b   : > { %p4195_p0 = pneg %p4194_p12  ;;  %p4201_p10 = por %p4200_p5, %p4199_p2 }
  0x6d   : > { %p4202_p1 = pnand %p4201_p10, %p4195_p0 }
  0x6f   : > { %4205 = shalt.err (!%p4202_p1)
}
  0x70   : > { %3979 = dma.hbm_to_vmem [thread:$0]  (%p5149_p7), %s4511_s14, 64, %s410_s17, %s398_s23  }
  0x71 PF: > { %p5150_p11 = scmp.ne.s32.totalorder %s5144_s22, 0 }
  0x72   : > { %p5151_p13 = scmp.ne.s32.totalorder (!%p5150_p11), %s5142_s20, 0 }
  0x73   : > { %418 = sbr.rel (%p5150_p11) target bundleno = 1338 (0x53a), region = 71 }
  0x7a   : > { %4239 = dma.done.wait (%p5151_p13), [#allocation4], 128  }
  0x7b   : > { %4241 = vsyncadd (%p5151_p13), [#allocation4], 4294967168  ;;  %s425_s6 = sand.u32 1, %s4252_s28   ;;  %p5152_p7 = scmp.ne.s32.totalorder %s5143_s21, 0 }
  0x7c   : > { %s3563_s11 = sshll.u32 %s425_s6, 8  ;;  %s3564_s16 = sshll.u32 %s425_s6, 2 }
  0x7d   : > { %s4537_s24 = scalar_lea.vmem [#allocation5], %s3563_s11  ;;  %s432_s18 = scalar_lea.sflag [#allocation7], %s425_s6 }
  0x7e   : > { %s4539_s15 = scalar_lea.vmem [#allocation6], %s3564_s16 }
  0x7f   : > { %4243 = dma.done.wait (%p5152_p7), %s432_s18, 64  }
  0x80   : > { %4245 = vsyncadd (%p5152_p7), %s432_s18, 4294967232  ;;  %v4280_v32 = vmov 0.0   ;;  %vm4281_vm0 = vmmov 0   ;;  %vm517_vm1 = vcmask 64512   ;;  %v516_v33 = vld [vmem:[#allocation3] sm:$0xff]  ;;  %p485_p3 = scmp.lt.s32.totalorder %s4264_s9, 1 }
  0x81   : > { %3808 = vmatprep.subr.mxu1 %v4280_v32  ;;  %3810 = vmatprep.mubr.msk.f32.mxu1 %vm4281_vm0, %v4280_v32  ;;  %v515_v34 = vld [vmem:[%s5121_s1] sm:$0xff]  ;;  %vm976_vm2 = vcmask 1043456   ;;  %v4098_v47 = vld [vmem:[%s5124_s4 + $0x8] sm:$0xff]   ;;  %v4099_v1 = vld [vmem:[%s5124_s4 + $0x10] sm:$0xff]   ;;  %vm1468_vm3 = vcmask 523264   ;;  %s3566_s17 = sshll.u32 %s4260_s30, 2 }
  0x82   : > { %3809 = vmatpush3.msra.mxu1 %v516_v33  ;;  %s5170_s9 = smov (!%p485_p3, %s4264_s9), 1  ;;  %v4096_v44 = vld [vmem:[%s5124_s4] sm:$0xff]   ;;  %v4100_v3 = vld [vmem:[%s5124_s4 + $0x18] sm:$0xff]   ;;  %p499_p4 = scmp.lt.s32.totalorder %s3566_s17, 7 }
  0x83   : > { %3811 = vmatmul.mubr.msk.f32.vlgmr.msra.gmra.mrb[0].mxu1 %vm517_vm1, %v515_v34  ;;  %s3976_s21 = smul.u32 300, %s5170_s9  ;;  %3891 = vmatprep.subr.bf16.mxu0 %v4096_v44  ;;  %v4101_v14 = vld [vmem:[%s4537_s24] ss:$16 sps:$4 sm:$0xff]   ;;  %v4103_v15 = vld [vmem:[%s4537_s24 + $0x4] ss:$16 sps:$4 sm:$0xff]  }
  0x84   : > { %3892 = vmatpush3.bf16.msra.mxu0 %v4096_v44  ;;  %v4106_v17 = vld [vmem:[%s4537_s24 + $0xc] ss:$16 sps:$4 sm:$0xff]   ;;  %v4107_v19 = vld [vmem:[%s4537_s24 + $0x20] ss:$16 sps:$4 sm:$0xff]   ;;  %v4109_v20 = vld [vmem:[%s4537_s24 + $0x24] ss:$16 sps:$4 sm:$0xff]  }
  0x85   : > { %s4557_s23 = scalar_lea.vmem %s5120_s0, %s3976_s21  ;;  %3893 = vmatprep.subr.bf16.mxu0 %v4098_v47  ;;  %v4113_v22 = vld [vmem:[%s4537_s24 + $0x40] ss:$16 sps:$4 sm:$0xff]   ;;  %v4115_v23 = vld [vmem:[%s4537_s24 + $0x44] ss:$16 sps:$4 sm:$0xff]   ;;  %v4104_v44 = vld [vmem:[%s4537_s24 + $0x8] ss:$16 sps:$4 sm:$0xff]  }
  0x86   : > { %v4059_v35 = vld [vmem:[%s4557_s23] sm:$0xff]   ;;  %v4060_v40 = vld [vmem:[%s4557_s23 + $0x8] sm:$0xff]   ;;  %v4061_v41 = vld [vmem:[%s4557_s23 + $0x10] sm:$0xff]   ;;  %s5172_s17 = smov (!%p499_p4, %s3566_s17), 7 }
  0x87   : > { %3815 = vmatprep.mubr.msk.bf16.mxu1 %vm517_vm1, %v4059_v35  ;;  %v4062_v42 = vld [vmem:[%s4557_s23 + $0x18] sm:$0xff]   ;;  %v4063_v43 = vld [vmem:[%s4557_s23 + $0x20] sm:$0xff]   ;;  %v4064_v45 = vld [vmem:[%s4557_s23 + $0x28] sm:$0xff]  }
  0x88   : > { %v4065_v46 = vld [vmem:[%s4557_s23 + $0x30] sm:$0xff]   ;;  %3894 = vmatpush3.bf16.msra.mxu0 %v4098_v47  ;;  %v4066_v48 = vld [vmem:[%s4557_s23 + $0x38] sm:$0xff]   ;;  %v4067_v49 = vld [vmem:[%s4557_s23 + $0x40] sm:$0xff]  }
  0x89   : > { %v4068_v50 = vld [vmem:[%s4557_s23 + $0x48] sm:$0xff]   ;;  %v4069_v51 = vld [vmem:[%s4557_s23 + $0x50] sm:$0xff]   ;;  %v4070_v52 = vld [vmem:[%s4557_s23 + $0x58] sm:$0xff]   ;;  %3895 = vmatprep.subr.bf16.mxu0 %v4099_v1 }
  0x8a   : > { %v4071_v53 = vld [vmem:[%s4557_s23 + $0x60] sm:$0xff]   ;;  %v4072_v54 = vld [vmem:[%s4557_s23 + $0x68] sm:$0xff]   ;;  %v4073_v55 = vld [vmem:[%s4557_s23 + $0x70] sm:$0xff]  }
  0x8b   : > { %v4074_v56 = vld [vmem:[%s4557_s23 + $0x78] sm:$0xff]   ;;  %v4075_v57 = vld [vmem:[%s4557_s23 + $0x80] sm:$0xff]   ;;  %v4076_v58 = vld [vmem:[%s4557_s23 + $0x88] sm:$0xff]  }
  0x8c   : > { %v4077_v59 = vld [vmem:[%s4557_s23 + $0x90] sm:$0xff]   ;;  %v4078_v60 = vld [vmem:[%s4557_s23 + $0x98] sm:$0xff]   ;;  %v4079_v61 = vld [vmem:[%s4557_s23 + $0xa0] sm:$0xff]   ;;  %3896 = vmatpush3.bf16.msra.mxu0 %v4099_v1 }
  0x8d   : > { %v4080_v62 = vld [vmem:[%s4557_s23 + $0xa8] sm:$0xff]   ;;  %v4081_v63 = vld [vmem:[%s4557_s23 + $0xb0] sm:$0xff]   ;;  %v4082_v0 = vld [vmem:[%s4557_s23 + $0xb8] sm:$0xff]   ;;  %3897 = vmatprep.subr.bf16.mxu0 %v4100_v3 }
  0x8e   : > { %v4083_v2 = vld [vmem:[%s4557_s23 + $0xc0] sm:$0xff]   ;;  %v4084_v4 = vld [vmem:[%s4557_s23 + $0xc8] sm:$0xff]   ;;  %v4085_v5 = vld [vmem:[%s4557_s23 + $0xd0] sm:$0xff]  }
  0x8f   : > { %v4086_v6 = vld [vmem:[%s4557_s23 + $0xd8] sm:$0xff]   ;;  %v4087_v7 = vld [vmem:[%s4557_s23 + $0xe0] sm:$0xff]   ;;  %v4088_v8 = vld [vmem:[%s4557_s23 + $0xe8] sm:$0xff]  }
  0x90   : > { %3898 = vmatpush3.bf16.msra.mxu0 %v4100_v3  ;;  %v4089_v9 = vld [vmem:[%s4557_s23 + $0xf0] sm:$0xff]   ;;  %v4090_v10 = vld [vmem:[%s4557_s23 + $0xf8] sm:$0xff]   ;;  %v4091_v11 = vld [vmem:[%s4557_s23 + $0x100] sm:$0xff]  }
  0x91   : > { %v4092_v12 = vld [vmem:[%s4557_s23 + $0x108] sm:$0xff]   ;;  %v4093_v13 = vld [vmem:[%s4557_s23 + $0x110] sm:$0xff]   ;;  %v4094_v16 = vld [vmem:[%s4557_s23 + $0x118] sm:$0xff]   ;;  %2635 = vmatprep.subr.bf16.mxu0 %v4106_v17 }
  0x92   : > { %v4095_v18 = vld [vmem:[%s4557_s23 + $0x120] sm:$0xff]   ;;  %v4097_v21 = vld [vmem:[%s4557_s23 + $0x128] ss:$0 sps:$4 sm:$0xff]   ;;  %v4119_v24 = vld [vmem:[%s4537_s24 + $0x60] ss:$16 sps:$4 sm:$0xff]   ;;  %s3567_s23 = sshll.u32 %s5170_s9, 3 }
  0x93   : > { %v4121_v25 = vld [vmem:[%s4537_s24 + $0x64] ss:$16 sps:$4 sm:$0xff]   ;;  %v4125_v26 = vld [vmem:[%s4537_s24 + $0x80] ss:$16 sps:$4 sm:$0xff]   ;;  %s502_s26 = sadd.s32 %s3567_s23, %s5172_s17 }
  0x94   : > { %v4127_v27 = vld [vmem:[%s4537_s24 + $0x84] ss:$16 sps:$4 sm:$0xff]   ;;  %v4131_v28 = vld [vmem:[%s4537_s24 + $0xa0] ss:$16 sps:$4 sm:$0xff]   ;;  %s503_s13 = scalar_lea.vmem %s5128_s8, %s502_s26 }
  0x95   : > { %v4133_v29 = vld [vmem:[%s4537_s24 + $0xa4] ss:$16 sps:$4 sm:$0xff]   ;;  %v4137_v47 = vld [vmem:[%s4537_s24 + $0xc0] ss:$16 sps:$4 sm:$0xff]  }
  0x96   : > { %v4663_v30 = vld [vmem:[%s5123_s3] ss:$0 sm:$0xff] }
 0x156   : > { %v587_v36 = vpop.f32.mrb[0].mxu1 }
 0x157   : > { %v591_v37 = vpack.c.bf16 %v587_v36, %v587_v36  ;;  %v3812_v38 = vpop.f32.mrb[1].mxu1 }
 0x159   : > { %v978_v39 = vsel %vm976_vm2, %v591_v37, 0  ;;  %3975 = vmatprep.subr.msk.bf16.mxu1 %vm976_vm2, %v591_v37 }
 0x15a   : > { %3814 = vmatpush3.bf16.msra.mxu1 %v978_v39 }
 0x15b   : > { %2224 = vmatprep.subr.bf16.mxu1 %v4103_v15  ;;  %v4130_v15 = vld [vmem:[%s4537_s24 + $0x8c] ss:$16 sps:$4 sm:$0xff]  }
 0x15d   : > { %3816 = vmatmul.mubr.msk.bf16.vlgmr.msra.gmra.mrb[4].mxu1 %vm517_vm1, %v4060_v40 }
 0x15e   : > { %3819 = vmatprep.mubr.msk.bf16.mxu1 %vm517_vm1, %v4061_v41  ;;  %2225 = vmatpush1.bf16.msra.mxu1 %v4101_v14 }
 0x15f   : > { %2226 = vmatprep.subr.bf16.mxu1 %v4109_v20 }
 0x162   : > { %2227 = vmatpush1.bf16.msra.mxu1 %v4107_v19 }
 0x163   : > { %2228 = vmatprep.subr.bf16.mxu1 %v4115_v23 }
 0x165   : > { %3820 = vmatmul.mubr.msk.bf16.gmra.mrb[8].mxu1 %vm517_vm1, %v4062_v42 }
 0x166   : > { %3823 = vmatprep.mubr.msk.bf16.mxu1 %vm517_vm1, %v4063_v43  ;;  %2229 = vmatpush1.bf16.msra.mxu1 %v4113_v22  ;;  %v4145_v22 = vld [vmem:[%s4537_s24 + $0xe4] ss:$16 sps:$4 sm:$0xff]  }
 0x167   : > { %2230 = vmatprep.subr.bf16.mxu1 %v4121_v25  ;;  %v4136_v25 = vld [vmem:[%s4537_s24 + $0xac] ss:$16 sps:$4 sm:$0xff]  }
 0x16a   : > { %2231 = vmatpush1.bf16.msra.mxu1 %v4119_v24 }
 0x16b   : > { %2232 = vmatprep.subr.bf16.mxu1 %v4127_v27 }
 0x16d   : > { %3824 = vmatmul.mubr.msk.bf16.gmra.mrb[12].mxu1 %vm517_vm1, %v4064_v45 }
 0x16e   : > { %3827 = vmatprep.mubr.msk.bf16.mxu1 %vm517_vm1, %v4065_v46  ;;  %2233 = vmatpush1.bf16.msra.mxu1 %v4125_v26 }
 0x16f   : > { %2234 = vmatprep.subr.bf16.mxu1 %v4133_v29 }
 0x172   : > { %2235 = vmatpush1.bf16.msra.mxu1 %v4131_v28 }
 0x175   : > { %3828 = vmatmul.mubr.msk.bf16.gmra.mrb[16].mxu1 %vm517_vm1, %v4066_v48  ;;  %v4139_v48 = vld [vmem:[%s4537_s24 + $0xc4] ss:$16 sps:$4 sm:$0xff]  }
 0x176   : > { %3831 = vmatprep.mubr.msk.bf16.mxu1 %vm517_vm1, %v4067_v49  ;;  %2236 = vmatprep.subr.bf16.mxu1 %v4139_v48 }
 0x177   : > { %2237 = vmatpush1.bf16.msra.mxu1 %v4137_v47 }
 0x178   : > { %2238 = vmatprep.subr.bf16.mxu1 %v4145_v22 }
 0x17d   : > { %3832 = vmatmul.mubr.msk.bf16.gmra.mrb[20].mxu1 %vm517_vm1, %v4068_v50 }
 0x17e   : > { %3835 = vmatprep.mubr.msk.bf16.mxu1 %vm517_vm1, %v4069_v51  ;;  %v4112_v51 = vld [vmem:[%s4537_s24 + $0x2c] ss:$16 sps:$4 sm:$0xff]  }
 0x185   : > { %3836 = vmatmul.mubr.msk.bf16.gmra.mrb[24].mxu1 %vm517_vm1, %v4070_v52 }
 0x186   : > { %3839 = vmatprep.mubr.msk.bf16.mxu1 %vm517_vm1, %v4071_v53 }
 0x18d   : > { %3840 = vmatmul.mubr.msk.bf16.gmra.mrb[28].mxu1 %vm517_vm1, %v4072_v54 }
 0x18e   : > { %3843 = vmatprep.mubr.msk.bf16.mxu1 %vm517_vm1, %v4073_v55 }
 0x195   : > { %3844 = vmatmul.mubr.msk.bf16.gmra.mrb[32].mxu1 %vm517_vm1, %v4074_v56 }
 0x196   : > { %3847 = vmatprep.mubr.msk.bf16.mxu1 %vm517_vm1, %v4075_v57 }
 0x19d   : > { %3848 = vmatmul.mubr.msk.bf16.gmra.mrb[36].mxu1 %vm517_vm1, %v4076_v58 }
 0x19e   : > { %3851 = vmatprep.mubr.msk.bf16.mxu1 %vm517_vm1, %v4077_v59  ;;  %v4110_v59 = vld [vmem:[%s4537_s24 + $0x28] ss:$16 sps:$4 sm:$0xff]  }
 0x1a5   : > { %3852 = vmatmul.mubr.msk.bf16.gmra.mrb[40].mxu1 %vm517_vm1, %v4078_v60 }
 0x1a6   : > { %3855 = vmatprep.mubr.msk.bf16.mxu1 %vm517_vm1, %v4079_v61  ;;  %v4118_v61 = vld [vmem:[%s4537_s24 + $0x4c] ss:$16 sps:$4 sm:$0xff]  }
 0x1ad   : > { %3856 = vmatmul.mubr.msk.bf16.gmra.mrb[44].mxu1 %vm517_vm1, %v4080_v62 }
 0x1ae   : > { %3859 = vmatprep.mubr.msk.bf16.mxu1 %vm517_vm1, %v4081_v63 }
 0x1b5   : > { %3860 = vmatmul.mubr.msk.bf16.gmra.mrb[48].mxu1 %vm517_vm1, %v4082_v0 }
 0x1b6   : > { %3863 = vmatprep.mubr.msk.bf16.mxu1 %vm517_vm1, %v4083_v2  ;;  %v4116_v2 = vld [vmem:[%s4537_s24 + $0x48] ss:$16 sps:$4 sm:$0xff]  }
 0x1bd   : > { %3864 = vmatmul.mubr.msk.bf16.gmra.mrb[52].mxu1 %vm517_vm1, %v4084_v4 }
 0x1be   : > { %3867 = vmatprep.mubr.msk.bf16.mxu1 %vm517_vm1, %v4085_v5  ;;  %v4124_v5 = vld [vmem:[%s4537_s24 + $0x6c] ss:$16 sps:$4 sm:$0xff]  }
 0x1c5   : > { %3868 = vmatmul.mubr.msk.bf16.gmra.mrb[56].mxu1 %vm517_vm1, %v4086_v6 }
 0x1c6   : > { %3871 = vmatprep.mubr.msk.bf16.mxu1 %vm517_vm1, %v4087_v7 }
 0x1cd   : > { %3872 = vmatmul.mubr.msk.bf16.gmra.mrb[60].mxu1 %vm517_vm1, %v4088_v8 }
 0x1ce   : > { %3875 = vmatprep.mubr.msk.bf16.mxu1 %vm517_vm1, %v4089_v9 }
 0x1d5   : > { %3876 = vmatmul.mubr.msk.bf16.gmra.mrb[64].mxu1 %vm517_vm1, %v4090_v10 }
 0x1d6   : > { %3879 = vmatprep.mubr.msk.bf16.mxu1 %vm517_vm1, %v4091_v11 }
 0x1dd   : > { %3880 = vmatmul.mubr.msk.bf16.gmra.mrb[68].mxu1 %vm517_vm1, %v4092_v12 }
 0x1de   : > { %3883 = vmatprep.mubr.msk.bf16.mxu1 %vm517_vm1, %v4093_v13  ;;  %v4122_v13 = vld [vmem:[%s4537_s24 + $0x68] ss:$16 sps:$4 sm:$0xff]  }
 0x1e5   : > { %3884 = vmatmul.mubr.msk.bf16.gmra.mrb[72].mxu1 %vm517_vm1, %v4094_v16 }
 0x1e6   : > { %3887 = vmatprep.mubr.msk.bf16.mxu1 %vm517_vm1, %v4095_v18  ;;  %v4128_v18 = vld [vmem:[%s4537_s24 + $0x88] ss:$16 sps:$4 sm:$0xff]  }
 0x1ed   : > { %3888 = vmatmul.mubr.msk.bf16.gmra.mrb[76].mxu1 %vm517_vm1, %v4097_v21  ;;  %v4143_v21 = vld [vmem:[%s4537_s24 + $0xe0] ss:$16 sps:$4 sm:$0xff]  }
 0x1ee   : > { %2239 = vmatpush1.bf16.msra.mxu1 %v4143_v21 }
 0x230   : > { %v3817_v31 = vpop.f32.mrb[4].mxu1 }
 0x231   : > { %v1023_v32 = vadd.f32 %v3817_v31, %v4663_v30  ;;  %v1014_v33 = vpop.f32.mrb[5].mxu1 }
 0x232   : > { %v1015_v34 = vadd.f32 %v4663_v30, %v1014_v33  ;;  %v3818_v35 = vpop.f32.mrb[6].mxu1 }
 0x233   : > { %v1026_v36 = vadd.f32 %v3818_v35, %v4663_v30  ;;  %v1017_v37 = vpop.f32.mrb[7].mxu1  ;;  %v1318_v39 = vmax.f32 %v1023_v32, 0.0 }
 0x234   : > { %v1018_v38 = vadd.f32 %v4663_v30, %v1017_v37  ;;  %v1316_v41 = vmax.f32 %v1015_v34, 0.0  ;;  %v4134_v34 = vld [vmem:[%s4537_s24 + $0xa8] ss:$16 sps:$4 sm:$0xff]  }
 0x235   : > { %v1319_v40 = vmax.f32 %v1026_v36, 0.0  ;;  %v4142_v36 = vld [vmem:[%s4537_s24 + $0xcc] ss:$16 sps:$4 sm:$0xff]  }
 0x236   : > { %v1317_v42 = vmax.f32 %v1018_v38, 0.0 }
 0x237   : > { %v1392_v43 = vpack.c.bf16 %v1319_v40, %v1318_v39 }
 0x238   : > { %v3821_v45 = vpop.f32.mrb[8].mxu1  ;;  %v1391_v46 = vpack.c.bf16 %v1317_v42, %v1316_v41  ;;  %v4140_v41 = vld [vmem:[%s4537_s24 + $0xc8] ss:$16 sps:$4 sm:$0xff]  }
 0x239   : > { %v1039_v49 = vadd.f32 %v3821_v45, %v4663_v30  ;;  %v1030_v50 = vpop.f32.mrb[9].mxu1 }
 0x23a   : > { %3899 = vmatprep.mubr.msk.bf16.mxu0 %vm1468_vm3, %v1391_v46  ;;  %v1031_v52 = vadd.f32 %v4663_v30, %v1030_v50  ;;  %v3822_v53 = vpop.f32.mrb[10].mxu1 }
 0x23b   : > { %v1322_v54 = vmax.f32 %v1039_v49, 0.0  ;;  %3900 = vmatmul.mubr.msk.bf16.vlgmr.msra.gmra.mrb[0].mxu0 %vm1468_vm3, %v1392_v43  ;;  %v1042_v55 = vadd.f32 %v3822_v53, %v4663_v30  ;;  %v1033_v56 = vpop.f32.mrb[11].mxu1 }
 0x23c   : > { %v1320_v57 = vmax.f32 %v1031_v52, 0.0  ;;  %v1034_v58 = vadd.f32 %v4663_v30, %v1033_v56  ;;  %2636 = vmatpush1.bf16.msra.mxu0 %v4104_v44  ;;  %v4148_v44 = vld [vmem:[%s4537_s24 + $0xec] ss:$16 sps:$4 sm:$0xff]   ;;  %v4146_v52 = vld [vmem:[%s4537_s24 + $0xe8] ss:$16 sps:$4 sm:$0xff]  }
 0x23d   : > { %v1323_v60 = vmax.f32 %v1042_v55, 0.0  ;;  %2637 = vmatprep.subr.bf16.mxu0 %v4112_v51 }
 0x23e   : > { %v1321_v62 = vmax.f32 %v1034_v58, 0.0 }
 0x23f   : > { %v1394_v63 = vpack.c.bf16 %v1323_v60, %v1322_v54 }
 0x240   : > { %v1393_v0 = vpack.c.bf16 %v1321_v62, %v1320_v57  ;;  %v3825_v1 = vpop.f32.mrb[12].mxu1  ;;  %2638 = vmatpush1.bf16.msra.mxu0 %v4110_v59 }
 0x241   : > { %v1055_v3 = vadd.f32 %v3825_v1, %v4663_v30  ;;  %v1046_v4 = vpop.f32.mrb[13].mxu1  ;;  %2639 = vmatprep.subr.bf16.mxu0 %v4118_v61 }
 0x242   : > { %3903 = vmatprep.mubr.msk.bf16.mxu0 %vm1468_vm3, %v1393_v0  ;;  %v1047_v6 = vadd.f32 %v4663_v30, %v1046_v4  ;;  %v3826_v7 = vpop.f32.mrb[14].mxu1 }
 0x243   : > { %3904 = vmatmul.mubr.msk.bf16.gmra.mrb[4].mxu0 %vm1468_vm3, %v1394_v63  ;;  %v1326_v8 = vmax.f32 %v1055_v3, 0.0  ;;  %v1058_v9 = vadd.f32 %v3826_v7, %v4663_v30  ;;  %v1049_v10 = vpop.f32.mrb[15].mxu1 }
 0x244   : > { %v1324_v11 = vmax.f32 %v1047_v6, 0.0  ;;  %v1050_v12 = vadd.f32 %v4663_v30, %v1049_v10  ;;  %2640 = vmatpush1.bf16.msra.mxu0 %v4116_v2 }
 0x245   : > { %v1327_v14 = vmax.f32 %v1058_v9, 0.0  ;;  %2641 = vmatprep.subr.bf16.mxu0 %v4124_v5 }
 0x246   : > { %v1325_v16 = vmax.f32 %v1050_v12, 0.0 }
 0x247   : > { %v1396_v17 = vpack.c.bf16 %v1327_v14, %v1326_v8 }
 0x248   : > { %v1395_v19 = vpack.c.bf16 %v1325_v16, %v1324_v11  ;;  %v3829_v20 = vpop.f32.mrb[16].mxu1  ;;  %2642 = vmatpush1.bf16.msra.mxu0 %v4122_v13 }
 0x249   : > { %v1071_v23 = vadd.f32 %v3829_v20, %v4663_v30  ;;  %v1062_v24 = vpop.f32.mrb[17].mxu1  ;;  %2643 = vmatprep.subr.bf16.mxu0 %v4130_v15 }
 0x24a   : > { %3907 = vmatprep.mubr.msk.bf16.mxu0 %vm1468_vm3, %v1395_v19  ;;  %v1063_v26 = vadd.f32 %v4663_v30, %v1062_v24  ;;  %v3830_v27 = vpop.f32.mrb[18].mxu1 }
 0x24b   : > { %3908 = vmatmul.mubr.msk.bf16.gmra.mrb[8].mxu0 %vm1468_vm3, %v1396_v17  ;;  %v1330_v28 = vmax.f32 %v1071_v23, 0.0  ;;  %v1074_v29 = vadd.f32 %v3830_v27, %v4663_v30  ;;  %v1065_v31 = vpop.f32.mrb[19].mxu1 }
 0x24c   : > { %v1328_v32 = vmax.f32 %v1063_v26, 0.0  ;;  %v1066_v33 = vadd.f32 %v4663_v30, %v1065_v31  ;;  %2644 = vmatpush1.bf16.msra.mxu0 %v4128_v18 }
 0x24d   : > { %v1331_v35 = vmax.f32 %v1074_v29, 0.0  ;;  %2645 = vmatprep.subr.bf16.mxu0 %v4136_v25 }
 0x24e   : > { %v1329_v37 = vmax.f32 %v1066_v33, 0.0 }
 0x24f   : > { %v1398_v38 = vpack.c.bf16 %v1331_v35, %v1330_v28 }
 0x250   : > { %v1397_v39 = vpack.c.bf16 %v1329_v37, %v1328_v32  ;;  %v3833_v40 = vpop.f32.mrb[20].mxu1  ;;  %2646 = vmatpush1.bf16.msra.mxu0 %v4134_v34 }
 0x251   : > { %v1087_v42 = vadd.f32 %v3833_v40, %v4663_v30  ;;  %v1078_v43 = vpop.f32.mrb[21].mxu1  ;;  %2647 = vmatprep.subr.bf16.mxu0 %v4142_v36 }
 0x252   : > { %3911 = vmatprep.mubr.msk.bf16.mxu0 %vm1468_vm3, %v1397_v39  ;;  %v1079_v45 = vadd.f32 %v4663_v30, %v1078_v43  ;;  %v3834_v46 = vpop.f32.mrb[22].mxu1 }
 0x253   : > { %3912 = vmatmul.mubr.msk.bf16.gmra.mrb[12].mxu0 %vm1468_vm3, %v1398_v38  ;;  %v1334_v47 = vmax.f32 %v1087_v42, 0.0  ;;  %v1090_v48 = vadd.f32 %v3834_v46, %v4663_v30  ;;  %v1081_v49 = vpop.f32.mrb[23].mxu1 }
 0x254   : > { %v1332_v50 = vmax.f32 %v1079_v45, 0.0  ;;  %v1082_v51 = vadd.f32 %v4663_v30, %v1081_v49  ;;  %2648 = vmatpush1.bf16.msra.mxu0 %v4140_v41 }
 0x255   : > { %v1335_v53 = vmax.f32 %v1090_v48, 0.0  ;;  %2649 = vmatprep.subr.bf16.mxu0 %v4148_v44 }
 0x256   : > { %v1333_v54 = vmax.f32 %v1082_v51, 0.0 }
 0x257   : > { %v1400_v55 = vpack.c.bf16 %v1335_v53, %v1334_v47 }
 0x258   : > { %v1399_v56 = vpack.c.bf16 %v1333_v54, %v1332_v50  ;;  %v3837_v57 = vpop.f32.mrb[24].mxu1  ;;  %2650 = vmatpush1.bf16.msra.mxu0 %v4146_v52 }
 0x259   : > { %v1103_v58 = vadd.f32 %v3837_v57, %v4663_v30  ;;  %v1094_v59 = vpop.f32.mrb[25].mxu1 }
 0x25a   : > { %3915 = vmatprep.mubr.msk.bf16.mxu0 %vm1468_vm3, %v1399_v56  ;;  %v1095_v60 = vadd.f32 %v4663_v30, %v1094_v59  ;;  %v3838_v61 = vpop.f32.mrb[26].mxu1 }
 0x25b   : > { %3916 = vmatmul.mubr.msk.bf16.gmra.mrb[16].mxu0 %vm1468_vm3, %v1400_v55  ;;  %v1338_v62 = vmax.f32 %v1103_v58, 0.0  ;;  %v1106_v63 = vadd.f32 %v3838_v61, %v4663_v30  ;;  %v1097_v0 = vpop.f32.mrb[27].mxu1 }
 0x25c   : > { %v1336_v1 = vmax.f32 %v1095_v60, 0.0  ;;  %v1098_v2 = vadd.f32 %v4663_v30, %v1097_v0 }
 0x25d   : > { %v1339_v3 = vmax.f32 %v1106_v63, 0.0 }
 0x25e   : > { %v1337_v4 = vmax.f32 %v1098_v2, 0.0 }
 0x25f   : > { %v1402_v5 = vpack.c.bf16 %v1339_v3, %v1338_v62 }
 0x260   : > { %v1401_v6 = vpack.c.bf16 %v1337_v4, %v1336_v1  ;;  %v3841_v7 = vpop.f32.mrb[28].mxu1 }
 0x261   : > { %v1119_v8 = vadd.f32 %v3841_v7, %v4663_v30  ;;  %v1110_v9 = vpop.f32.mrb[29].mxu1 }
 0x262   : > { %3919 = vmatprep.mubr.msk.bf16.mxu0 %vm1468_vm3, %v1401_v6  ;;  %v1111_v10 = vadd.f32 %v4663_v30, %v1110_v9  ;;  %v3842_v11 = vpop.f32.mrb[30].mxu1 }
 0x263   : > { %3920 = vmatmul.mubr.msk.bf16.gmra.mrb[20].mxu0 %vm1468_vm3, %v1402_v5  ;;  %v1342_v12 = vmax.f32 %v1119_v8, 0.0  ;;  %v1122_v13 = vadd.f32 %v3842_v11, %v4663_v30  ;;  %v1113_v14 = vpop.f32.mrb[31].mxu1 }
 0x264   : > { %v1340_v15 = vmax.f32 %v1111_v10, 0.0  ;;  %v1114_v16 = vadd.f32 %v4663_v30, %v1113_v14 }
 0x265   : > { %v1343_v17 = vmax.f32 %v1122_v13, 0.0 }
 0x266   : > { %v1341_v18 = vmax.f32 %v1114_v16, 0.0 }
 0x267   : > { %v1404_v19 = vpack.c.bf16 %v1343_v17, %v1342_v12 }
 0x268   : > { %v1403_v20 = vpack.c.bf16 %v1341_v18, %v1340_v15  ;;  %v3845_v21 = vpop.f32.mrb[32].mxu1 }
 0x269   : > { %v1135_v22 = vadd.f32 %v3845_v21, %v4663_v30  ;;  %v1126_v23 = vpop.f32.mrb[33].mxu1 }
 0x26a   : > { %3923 = vmatprep.mubr.msk.bf16.mxu0 %vm1468_vm3, %v1403_v20  ;;  %v1127_v24 = vadd.f32 %v4663_v30, %v1126_v23  ;;  %v3846_v25 = vpop.f32.mrb[34].mxu1 }
 0x26b   : > { %3924 = vmatmul.mubr.msk.bf16.gmra.mrb[24].mxu0 %vm1468_vm3, %v1404_v19  ;;  %v1346_v26 = vmax.f32 %v1135_v22, 0.0  ;;  %v1138_v27 = vadd.f32 %v3846_v25, %v4663_v30  ;;  %v1129_v28 = vpop.f32.mrb[35].mxu1 }
 0x26c   : > { %v1344_v29 = vmax.f32 %v1127_v24, 0.0  ;;  %v1130_v31 = vadd.f32 %v4663_v30, %v1129_v28 }
 0x26d   : > { %v1347_v32 = vmax.f32 %v1138_v27, 0.0 }
 0x26e   : > { %v1345_v33 = vmax.f32 %v1130_v31, 0.0 }
 0x26f   : > { %v1406_v34 = vpack.c.bf16 %v1347_v32, %v1346_v26 }
 0x270   : > { %v1405_v35 = vpack.c.bf16 %v1345_v33, %v1344_v29  ;;  %v3849_v36 = vpop.f32.mrb[36].mxu1 }
 0x271   : > { %v1151_v37 = vadd.f32 %v3849_v36, %v4663_v30  ;;  %v1142_v38 = vpop.f32.mrb[37].mxu1 }
 0x272   : > { %3927 = vmatprep.mubr.msk.bf16.mxu0 %vm1468_vm3, %v1405_v35  ;;  %v1143_v39 = vadd.f32 %v4663_v30, %v1142_v38  ;;  %v3850_v40 = vpop.f32.mrb[38].mxu1 }
 0x273   : > { %3928 = vmatmul.mubr.msk.bf16.gmra.mrb[28].mxu0 %vm1468_vm3, %v1406_v34  ;;  %v1350_v41 = vmax.f32 %v1151_v37, 0.0  ;;  %v1154_v42 = vadd.f32 %v3850_v40, %v4663_v30  ;;  %v1145_v43 = vpop.f32.mrb[39].mxu1 }
 0x274   : > { %v1348_v44 = vmax.f32 %v1143_v39, 0.0  ;;  %v1146_v45 = vadd.f32 %v4663_v30, %v1145_v43 }
 0x275   : > { %v1351_v46 = vmax.f32 %v1154_v42, 0.0  ;;  %v4282_v42 = vmov 0  }
 0x276   : > { %v1349_v47 = vmax.f32 %v1146_v45, 0.0  ;;  %2256 = vmatprep.mubr.bf16.mxu1 %v4282_v42 }
 0x277   : > { %v1408_v48 = vpack.c.bf16 %v1351_v46, %v1350_v41 }
 0x278   : > { %v1407_v49 = vpack.c.bf16 %v1349_v47, %v1348_v44  ;;  %v3853_v50 = vpop.f32.mrb[40].mxu1 }
 0x279   : > { %v1167_v51 = vadd.f32 %v3853_v50, %v4663_v30  ;;  %v1158_v52 = vpop.f32.mrb[41].mxu1 }
 0x27a   : > { %3931 = vmatprep.mubr.msk.bf16.mxu0 %vm1468_vm3, %v1407_v49  ;;  %v1159_v53 = vadd.f32 %v4663_v30, %v1158_v52  ;;  %v3854_v54 = vpop.f32.mrb[42].mxu1 }
 0x27b   : > { %3932 = vmatmul.mubr.msk.bf16.gmra.mrb[32].mxu0 %vm1468_vm3, %v1408_v48  ;;  %v1354_v55 = vmax.f32 %v1167_v51, 0.0  ;;  %v1170_v56 = vadd.f32 %v3854_v54, %v4663_v30  ;;  %v1161_v57 = vpop.f32.mrb[43].mxu1 }
 0x27c   : > { %v1352_v58 = vmax.f32 %v1159_v53, 0.0  ;;  %v1162_v59 = vadd.f32 %v4663_v30, %v1161_v57 }
 0x27d   : > { %v1355_v60 = vmax.f32 %v1170_v56, 0.0 }
 0x27e   : > { %v1353_v61 = vmax.f32 %v1162_v59, 0.0 }
 0x27f   : > { %v1410_v62 = vpack.c.bf16 %v1355_v60, %v1354_v55 }
 0x280   : > { %v1409_v63 = vpack.c.bf16 %v1353_v61, %v1352_v58  ;;  %v3857_v0 = vpop.f32.mrb[44].mxu1 }
 0x281   : > { %v1183_v1 = vadd.f32 %v3857_v0, %v4663_v30  ;;  %v1174_v2 = vpop.f32.mrb[45].mxu1 }
 0x282   : > { %v1175_v3 = vadd.f32 %v4663_v30, %v1174_v2  ;;  %v3858_v4 = vpop.f32.mrb[46].mxu1  ;;  %3935 = vmatprep.mubr.msk.bf16.mxu0 %vm1468_vm3, %v1409_v63 }
 0x283   : > { %v1358_v5 = vmax.f32 %v1183_v1, 0.0  ;;  %v1186_v6 = vadd.f32 %v3858_v4, %v4663_v30  ;;  %v1177_v7 = vpop.f32.mrb[47].mxu1  ;;  %3936 = vmatmul.mubr.msk.bf16.gmra.mrb[36].mxu0 %vm1468_vm3, %v1410_v62 }
 0x284   : > { %v1356_v8 = vmax.f32 %v1175_v3, 0.0  ;;  %v1178_v9 = vadd.f32 %v4663_v30, %v1177_v7 }
 0x285   : > { %v1359_v10 = vmax.f32 %v1186_v6, 0.0 }
 0x286   : > { %v1357_v11 = vmax.f32 %v1178_v9, 0.0 }
 0x287   : > { %v1412_v12 = vpack.c.bf16 %v1359_v10, %v1358_v5 }
 0x288   : > { %v1411_v13 = vpack.c.bf16 %v1357_v11, %v1356_v8  ;;  %v3861_v14 = vpop.f32.mrb[48].mxu1 }
 0x289   : > { %v1199_v15 = vadd.f32 %v3861_v14, %v4663_v30  ;;  %v1190_v16 = vpop.f32.mrb[49].mxu1 }
 0x28a   : > { %v1191_v17 = vadd.f32 %v4663_v30, %v1190_v16  ;;  %v3862_v18 = vpop.f32.mrb[50].mxu1  ;;  %3939 = vmatprep.mubr.msk.bf16.mxu0 %vm1468_vm3, %v1411_v13 }
 0x28b   : > { %v1362_v19 = vmax.f32 %v1199_v15, 0.0  ;;  %v1202_v20 = vadd.f32 %v3862_v18, %v4663_v30  ;;  %v1193_v21 = vpop.f32.mrb[51].mxu1  ;;  %3940 = vmatmul.mubr.msk.bf16.gmra.mrb[40].mxu0 %vm1468_vm3, %v1412_v12 }
 0x28c   : > { %v1360_v22 = vmax.f32 %v1191_v17, 0.0  ;;  %v1194_v23 = vadd.f32 %v4663_v30, %v1193_v21 }
 0x28d   : > { %v1363_v24 = vmax.f32 %v1202_v20, 0.0 }
 0x28e   : > { %v1361_v25 = vmax.f32 %v1194_v23, 0.0 }
 0x28f   : > { %v1414_v26 = vpack.c.bf16 %v1363_v24, %v1362_v19 }
 0x290   : > { %v1413_v27 = vpack.c.bf16 %v1361_v25, %v1360_v22  ;;  %v3865_v28 = vpop.f32.mrb[52].mxu1 }
 0x291   : > { %v1215_v29 = vadd.f32 %v3865_v28, %v4663_v30  ;;  %v1206_v31 = vpop.f32.mrb[53].mxu1 }
 0x292   : > { %v1207_v32 = vadd.f32 %v4663_v30, %v1206_v31  ;;  %v3866_v33 = vpop.f32.mrb[54].mxu1  ;;  %3943 = vmatprep.mubr.msk.bf16.mxu0 %vm1468_vm3, %v1413_v27 }
 0x293   : > { %v1366_v34 = vmax.f32 %v1215_v29, 0.0  ;;  %v1218_v35 = vadd.f32 %v3866_v33, %v4663_v30  ;;  %v1209_v36 = vpop.f32.mrb[55].mxu1  ;;  %3944 = vmatmul.mubr.msk.bf16.gmra.mrb[44].mxu0 %vm1468_vm3, %v1414_v26 }
 0x294   : > { %v1364_v37 = vmax.f32 %v1207_v32, 0.0  ;;  %v1210_v38 = vadd.f32 %v4663_v30, %v1209_v36 }
 0x295   : > { %v1367_v39 = vmax.f32 %v1218_v35, 0.0 }
 0x296   : > { %v1365_v40 = vmax.f32 %v1210_v38, 0.0 }
 0x297   : > { %v1416_v41 = vpack.c.bf16 %v1367_v39, %v1366_v34 }
 0x298   : > { %v1415_v43 = vpack.c.bf16 %v1365_v40, %v1364_v37  ;;  %v3869_v44 = vpop.f32.mrb[56].mxu1 }
 0x299   : > { %v1231_v45 = vadd.f32 %v3869_v44, %v4663_v30  ;;  %v1222_v46 = vpop.f32.mrb[57].mxu1 }
 0x29a   : > { %v1223_v47 = vadd.f32 %v4663_v30, %v1222_v46  ;;  %v3870_v48 = vpop.f32.mrb[58].mxu1  ;;  %3947 = vmatprep.mubr.msk.bf16.mxu0 %vm1468_vm3, %v1415_v43 }
 0x29b   : > { %v1370_v49 = vmax.f32 %v1231_v45, 0.0  ;;  %v1234_v50 = vadd.f32 %v3870_v48, %v4663_v30  ;;  %v1225_v51 = vpop.f32.mrb[59].mxu1  ;;  %3948 = vmatmul.mubr.msk.bf16.gmra.mrb[48].mxu0 %vm1468_vm3, %v1416_v41 }
 0x29c   : > { %v1368_v52 = vmax.f32 %v1223_v47, 0.0  ;;  %v1226_v53 = vadd.f32 %v4663_v30, %v1225_v51 }
 0x29d   : > { %v1371_v54 = vmax.f32 %v1234_v50, 0.0 }
 0x29e   : > { %v1369_v55 = vmax.f32 %v1226_v53, 0.0 }
 0x29f   : > { %v1418_v56 = vpack.c.bf16 %v1371_v54, %v1370_v49 }
 0x2a0   : > { %v1417_v57 = vpack.c.bf16 %v1369_v55, %v1368_v52  ;;  %v3873_v58 = vpop.f32.mrb[60].mxu1 }
 0x2a1   : > { %v1247_v59 = vadd.f32 %v3873_v58, %v4663_v30  ;;  %v1238_v60 = vpop.f32.mrb[61].mxu1 }
 0x2a2   : > { %v1239_v61 = vadd.f32 %v4663_v30, %v1238_v60  ;;  %v3874_v62 = vpop.f32.mrb[62].mxu1  ;;  %3951 = vmatprep.mubr.msk.bf16.mxu0 %vm1468_vm3, %v1417_v57 }
 0x2a3   : > { %v1374_v63 = vmax.f32 %v1247_v59, 0.0  ;;  %v1250_v0 = vadd.f32 %v3874_v62, %v4663_v30  ;;  %v1241_v1 = vpop.f32.mrb[63].mxu1  ;;  %3952 = vmatmul.mubr.msk.bf16.gmra.mrb[52].mxu0 %vm1468_vm3, %v1418_v56 }
 0x2a4   : > { %v1372_v2 = vmax.f32 %v1239_v61, 0.0  ;;  %v1242_v3 = vadd.f32 %v4663_v30, %v1241_v1 }
 0x2a5   : > { %v1375_v4 = vmax.f32 %v1250_v0, 0.0  ;;  %v4802_v0 = vld [vmem:[%s5125_s5] ss:$0 sm:$0xff] }
 0x2a6   : > { %v1373_v5 = vmax.f32 %v1242_v3, 0.0 }
 0x2a7   : > { %v1420_v6 = vpack.c.bf16 %v1375_v4, %v1374_v63 }
 0x2a8   : > { %v1419_v7 = vpack.c.bf16 %v1373_v5, %v1372_v2  ;;  %v3877_v8 = vpop.f32.mrb[64].mxu1 }
 0x2a9   : > { %v1263_v9 = vadd.f32 %v3877_v8, %v4663_v30  ;;  %v1254_v10 = vpop.f32.mrb[65].mxu1 }
 0x2aa   : > { %v1255_v11 = vadd.f32 %v4663_v30, %v1254_v10  ;;  %v3878_v12 = vpop.f32.mrb[66].mxu1  ;;  %3955 = vmatprep.mubr.msk.bf16.mxu0 %vm1468_vm3, %v1419_v7 }
 0x2ab   : > { %v1378_v13 = vmax.f32 %v1263_v9, 0.0  ;;  %v1266_v14 = vadd.f32 %v3878_v12, %v4663_v30  ;;  %v1257_v15 = vpop.f32.mrb[67].mxu1  ;;  %3956 = vmatmul.mubr.msk.bf16.gmra.mrb[56].mxu0 %vm1468_vm3, %v1420_v6 }
 0x2ac   : > { %v1376_v16 = vmax.f32 %v1255_v11, 0.0  ;;  %v1258_v17 = vadd.f32 %v4663_v30, %v1257_v15 }
 0x2ad   : > { %v1379_v18 = vmax.f32 %v1266_v14, 0.0 }
 0x2ae   : > { %v1377_v19 = vmax.f32 %v1258_v17, 0.0 }
 0x2af   : > { %v1422_v20 = vpack.c.bf16 %v1379_v18, %v1378_v13 }
 0x2b0   : > { %v1421_v21 = vpack.c.bf16 %v1377_v19, %v1376_v16  ;;  %v3881_v22 = vpop.f32.mrb[68].mxu1 }
 0x2b1   : > { %v1279_v23 = vadd.f32 %v3881_v22, %v4663_v30  ;;  %v1270_v24 = vpop.f32.mrb[69].mxu1 }
 0x2b2   : > { %v1271_v25 = vadd.f32 %v4663_v30, %v1270_v24  ;;  %v3882_v26 = vpop.f32.mrb[70].mxu1  ;;  %3959 = vmatprep.mubr.msk.bf16.mxu0 %vm1468_vm3, %v1421_v21 }
 0x2b3   : > { %v1382_v27 = vmax.f32 %v1279_v23, 0.0  ;;  %v1282_v28 = vadd.f32 %v3882_v26, %v4663_v30  ;;  %v1273_v29 = vpop.f32.mrb[71].mxu1  ;;  %3960 = vmatmul.mubr.msk.bf16.gmra.mrb[60].mxu0 %vm1468_vm3, %v1422_v20 }
 0x2b4   : > { %v1380_v31 = vmax.f32 %v1271_v25, 0.0  ;;  %v1274_v32 = vadd.f32 %v4663_v30, %v1273_v29 }
 0x2b5   : > { %v1383_v33 = vmax.f32 %v1282_v28, 0.0 }
 0x2b6   : > { %v1381_v34 = vmax.f32 %v1274_v32, 0.0 }
 0x2b7   : > { %v1424_v35 = vpack.c.bf16 %v1383_v33, %v1382_v27 }
 0x2b8   : > { %v1423_v36 = vpack.c.bf16 %v1381_v34, %v1380_v31  ;;  %v3885_v37 = vpop.f32.mrb[72].mxu1 }
 0x2b9   : > { %v1295_v38 = vadd.f32 %v3885_v37, %v4663_v30  ;;  %v1286_v39 = vpop.f32.mrb[73].mxu1 }
 0x2ba   : > { %v1287_v40 = vadd.f32 %v4663_v30, %v1286_v39  ;;  %v3886_v41 = vpop.f32.mrb[74].mxu1  ;;  %3963 = vmatprep.mubr.msk.bf16.mxu0 %vm1468_vm3, %v1423_v36 }
 0x2bb   : > { %v1386_v43 = vmax.f32 %v1295_v38, 0.0  ;;  %v1298_v44 = vadd.f32 %v3886_v41, %v4663_v30  ;;  %v1289_v45 = vpop.f32.mrb[75].mxu1  ;;  %3964 = vmatmul.mubr.msk.bf16.gmra.mrb[64].mxu0 %vm1468_vm3, %v1424_v35 }
 0x2bc   : > { %v1384_v46 = vmax.f32 %v1287_v40, 0.0  ;;  %v1290_v47 = vadd.f32 %v4663_v30, %v1289_v45 }
 0x2bd   : > { %v1387_v48 = vmax.f32 %v1298_v44, 0.0 }
 0x2be   : > { %v1385_v49 = vmax.f32 %v1290_v47, 0.0 }
 0x2bf   : > { %v1426_v50 = vpack.c.bf16 %v1387_v48, %v1386_v43 }
 0x2c0   : > { %v1425_v51 = vpack.c.bf16 %v1385_v49, %v1384_v46  ;;  %v3889_v52 = vpop.f32.mrb[76].mxu1 }
 0x2c1   : > { %v1311_v53 = vadd.f32 %v3889_v52, %v4663_v30  ;;  %v1302_v54 = vpop.f32.mrb[77].mxu1 }
 0x2c2   : > { %v1303_v55 = vadd.f32 %v4663_v30, %v1302_v54  ;;  %v3890_v56 = vpop.f32.mrb[78].mxu1  ;;  %3967 = vmatprep.mubr.msk.bf16.mxu0 %vm1468_vm3, %v1425_v51 }
 0x2c3   : > { %v1390_v57 = vmax.f32 %v1311_v53, 0.0  ;;  %v1305_v58 = vpop.f32.mrb[79].mxu1  ;;  %3968 = vmatmul.mubr.msk.bf16.gmra.mrb[68].mxu0 %vm1468_vm3, %v1426_v50 }
 0x2c4   : > { %v1388_v59 = vmax.f32 %v1303_v55, 0.0  ;;  %v1306_v60 = vadd.f32 %v4663_v30, %v1305_v58 }
 0x2c5   : > { %v1428_v62 = vpack.c.bf16 %v1390_v57, %v1390_v57 }
 0x2c6   : > { %v1389_v61 = vmax.f32 %v1306_v60, 0.0 }
 0x2c8   : > { %v1427_v63 = vpack.c.bf16 %v1389_v61, %v1388_v59 }
 0x2ca   : > { %3971 = vmatprep.mubr.msk.bf16.mxu0 %vm1468_vm3, %v1427_v63 }
 0x2cb   : > { %3972 = vmatmul.mubr.msk.bf16.gmra.mrb[72].mxu0 %vm1468_vm3, %v1428_v62 }
 0x2cc   : > { %2667 = vmatprep.mubr.bf16.mxu0 %v4282_v42 }
 0x30e   : > { %v3901_v1 = vpop.f32.mrb[0].mxu0 }
 0x30f   : > { %v1626_v2 = vadd.f32 %v3901_v1, %v4802_v0  ;;  %v1617_v3 = vpop.f32.mrb[1].mxu0 }
 0x310   : > { %v1618_v30 = vadd.f32 %v4802_v0, %v1617_v3  ;;  %v3902_v4 = vpop.f32.mrb[2].mxu0 }
 0x311   : > { %v1629_v5 = vadd.f32 %v3902_v4, %v4802_v0  ;;  %v1620_v6 = vpop.f32.mrb[3].mxu0  ;;  %v1921_v8 = vmax.f32 %v1626_v2, 0.0 }
 0x312   : > { %v1621_v7 = vadd.f32 %v4802_v0, %v1620_v6  ;;  %v1919_v10 = vmax.f32 %v1618_v30, 0.0 }
 0x313   : > { %v1922_v9 = vmax.f32 %v1629_v5, 0.0 }
 0x314   : > { %v1920_v11 = vmax.f32 %v1621_v7, 0.0 }
 0x315   : > { %v1995_v12 = vpack.c.bf16 %v1922_v9, %v1921_v8 }
 0x316   : > { %v1994_v13 = vpack.c.bf16 %v1920_v11, %v1919_v10  ;;  %v3905_v14 = vpop.f32.mrb[4].mxu0 }
 0x317   : > { %v1642_v15 = vadd.f32 %v3905_v14, %v4802_v0  ;;  %v1633_v16 = vpop.f32.mrb[5].mxu0 }
 0x318   : > { %2257 = vmatmul.mubr.bf16.vlgmr.msra.gmra.mrb[80].mxu1 %v1994_v13  ;;  %2668 = vmatmul.mubr.bf16.vlgmr.msra.gmra.mrb[76].mxu0 %v1994_v13  ;;  %v1634_v17 = vadd.f32 %v4802_v0, %v1633_v16  ;;  %v3906_v18 = vpop.f32.mrb[6].mxu0 }
 0x319   : > { %v1925_v19 = vmax.f32 %v1642_v15, 0.0  ;;  %v1645_v20 = vadd.f32 %v3906_v18, %v4802_v0  ;;  %v1636_v21 = vpop.f32.mrb[7].mxu0  ;;  %2266 = vmatprep.mubr.bf16.mxu1 %v4282_v42  ;;  %2677 = vmatprep.mubr.bf16.mxu0 %v4282_v42 }
 0x31a   : > { %v1923_v22 = vmax.f32 %v1634_v17, 0.0  ;;  %v1637_v23 = vadd.f32 %v4802_v0, %v1636_v21 }
 0x31b   : > { %v1926_v24 = vmax.f32 %v1645_v20, 0.0 }
 0x31c   : > { %v1924_v25 = vmax.f32 %v1637_v23, 0.0 }
 0x31d   : > { %v1997_v26 = vpack.c.bf16 %v1926_v24, %v1925_v19 }
 0x31e   : > { %v1996_v27 = vpack.c.bf16 %v1924_v25, %v1923_v22  ;;  %v3909_v28 = vpop.f32.mrb[8].mxu0 }
 0x31f   : > { %v1658_v29 = vadd.f32 %v3909_v28, %v4802_v0  ;;  %v1649_v31 = vpop.f32.mrb[9].mxu0 }
 0x320   : > { %2267 = vmatmul.mubr.bf16.gmra.mrb[84].mxu1 %v1995_v12  ;;  %2678 = vmatmul.mubr.bf16.gmra.mrb[80].mxu0 %v1995_v12  ;;  %v1650_v32 = vadd.f32 %v4802_v0, %v1649_v31  ;;  %v3910_v33 = vpop.f32.mrb[10].mxu0 }
 0x321   : > { %2276 = vmatprep.mubr.bf16.mxu1 %v4282_v42  ;;  %2687 = vmatprep.mubr.bf16.mxu0 %v4282_v42  ;;  %v1929_v34 = vmax.f32 %v1658_v29, 0.0  ;;  %v1661_v35 = vadd.f32 %v3910_v33, %v4802_v0  ;;  %v1652_v36 = vpop.f32.mrb[11].mxu0 }
 0x322   : > { %v1927_v37 = vmax.f32 %v1650_v32, 0.0  ;;  %v1653_v38 = vadd.f32 %v4802_v0, %v1652_v36 }
 0x323   : > { %v1930_v39 = vmax.f32 %v1661_v35, 0.0 }
 0x324   : > { %v1928_v40 = vmax.f32 %v1653_v38, 0.0 }
 0x325   : > { %v1999_v41 = vpack.c.bf16 %v1930_v39, %v1929_v34 }
 0x326   : > { %v1998_v43 = vpack.c.bf16 %v1928_v40, %v1927_v37  ;;  %v3913_v44 = vpop.f32.mrb[12].mxu0 }
 0x327   : > { %v1674_v45 = vadd.f32 %v3913_v44, %v4802_v0  ;;  %v1665_v46 = vpop.f32.mrb[13].mxu0 }
 0x328   : > { %2277 = vmatmul.mubr.bf16.gmra.mrb[88].mxu1 %v1996_v27  ;;  %2688 = vmatmul.mubr.bf16.gmra.mrb[84].mxu0 %v1996_v27  ;;  %v1666_v47 = vadd.f32 %v4802_v0, %v1665_v46  ;;  %v3914_v48 = vpop.f32.mrb[14].mxu0 }
 0x329   : > { %2286 = vmatprep.mubr.bf16.mxu1 %v4282_v42  ;;  %2697 = vmatprep.mubr.bf16.mxu0 %v4282_v42  ;;  %v1933_v49 = vmax.f32 %v1674_v45, 0.0  ;;  %v1677_v50 = vadd.f32 %v3914_v48, %v4802_v0  ;;  %v1668_v51 = vpop.f32.mrb[15].mxu0 }
 0x32a   : > { %v1931_v52 = vmax.f32 %v1666_v47, 0.0  ;;  %v1669_v53 = vadd.f32 %v4802_v0, %v1668_v51 }
 0x32b   : > { %v1934_v54 = vmax.f32 %v1677_v50, 0.0 }
 0x32c   : > { %v1932_v55 = vmax.f32 %v1669_v53, 0.0 }
 0x32d   : > { %v4826_v56 = vpack.c.bf16 %v1934_v54, %v1933_v49 }
 0x32e   : > { %v2000_v57 = vpack.c.bf16 %v1932_v55, %v1931_v52  ;;  %v3917_v58 = vpop.f32.mrb[16].mxu0 }
 0x32f   : > { %v1690_v59 = vadd.f32 %v3917_v58, %v4802_v0  ;;  %v1681_v60 = vpop.f32.mrb[17].mxu0 }
 0x330   : > { %2287 = vmatmul.mubr.bf16.gmra.mrb[92].mxu1 %v1997_v26  ;;  %2698 = vmatmul.mubr.bf16.gmra.mrb[88].mxu0 %v1997_v26  ;;  %v1682_v61 = vadd.f32 %v4802_v0, %v1681_v60  ;;  %v3918_v62 = vpop.f32.mrb[18].mxu0 }
 0x331   : > { %2296 = vmatprep.mubr.bf16.mxu1 %v4282_v42  ;;  %2707 = vmatprep.mubr.bf16.mxu0 %v4282_v42  ;;  %v1937_v63 = vmax.f32 %v1690_v59, 0.0  ;;  %v1693_v1 = vadd.f32 %v3918_v62, %v4802_v0  ;;  %v1684_v2 = vpop.f32.mrb[19].mxu0 }
 0x332   : > { %v1935_v3 = vmax.f32 %v1682_v61, 0.0  ;;  %v1685_v30 = vadd.f32 %v4802_v0, %v1684_v2 }
 0x333   : > { %v1938_v4 = vmax.f32 %v1693_v1, 0.0 }
 0x334   : > { %v1936_v5 = vmax.f32 %v1685_v30, 0.0 }
 0x335   : > { %v4834_v6 = vpack.c.bf16 %v1938_v4, %v1937_v63 }
 0x336   : > { %v4836_v7 = vpack.c.bf16 %v1936_v5, %v1935_v3  ;;  %v3921_v8 = vpop.f32.mrb[20].mxu0 }
 0x337   : > { %v1706_v9 = vadd.f32 %v3921_v8, %v4802_v0  ;;  %v1697_v10 = vpop.f32.mrb[21].mxu0 }
 0x338   : > { %2297 = vmatmul.mubr.bf16.gmra.mrb[96].mxu1 %v1998_v43  ;;  %2708 = vmatmul.mubr.bf16.gmra.mrb[92].mxu0 %v1998_v43  ;;  %v1698_v11 = vadd.f32 %v4802_v0, %v1697_v10  ;;  %v3922_v12 = vpop.f32.mrb[22].mxu0 }
 0x339   : > { %2306 = vmatprep.mubr.bf16.mxu1 %v4282_v42  ;;  %2717 = vmatprep.mubr.bf16.mxu0 %v4282_v42  ;;  %v1941_v13 = vmax.f32 %v1706_v9, 0.0  ;;  %v1709_v14 = vadd.f32 %v3922_v12, %v4802_v0  ;;  %v1700_v15 = vpop.f32.mrb[23].mxu0 }
 0x33a   : > { %v1939_v16 = vmax.f32 %v1698_v11, 0.0  ;;  %v1701_v17 = vadd.f32 %v4802_v0, %v1700_v15 }
 0x33b   : > { %v1942_v18 = vmax.f32 %v1709_v14, 0.0 }
 0x33c   : > { %v1940_v19 = vmax.f32 %v1701_v17, 0.0 }
 0x33d   : > { %v4844_v20 = vpack.c.bf16 %v1942_v18, %v1941_v13 }
 0x33e   : > { %v4846_v21 = vpack.c.bf16 %v1940_v19, %v1939_v16  ;;  %v3925_v22 = vpop.f32.mrb[24].mxu0 }
 0x33f   : > { %v1722_v23 = vadd.f32 %v3925_v22, %v4802_v0  ;;  %v1713_v24 = vpop.f32.mrb[25].mxu0 }
 0x340   : > { %2307 = vmatmul.mubr.bf16.gmra.mrb[100].mxu1 %v1999_v41  ;;  %2718 = vmatmul.mubr.bf16.gmra.mrb[96].mxu0 %v1999_v41  ;;  %v1714_v25 = vadd.f32 %v4802_v0, %v1713_v24  ;;  %v3926_v26 = vpop.f32.mrb[26].mxu0 }
 0x341   : > { %2316 = vmatprep.mubr.bf16.mxu1 %v4282_v42  ;;  %2727 = vmatprep.mubr.bf16.mxu0 %v4282_v42  ;;  %v1945_v27 = vmax.f32 %v1722_v23, 0.0  ;;  %v1725_v28 = vadd.f32 %v3926_v26, %v4802_v0  ;;  %v1716_v29 = vpop.f32.mrb[27].mxu0 }
 0x342   : > { %v1943_v31 = vmax.f32 %v1714_v25, 0.0  ;;  %v1717_v32 = vadd.f32 %v4802_v0, %v1716_v29 }
 0x343   : > { %v1946_v33 = vmax.f32 %v1725_v28, 0.0 }
 0x344   : > { %v1944_v34 = vmax.f32 %v1717_v32, 0.0 }
 0x345   : > { %v4854_v35 = vpack.c.bf16 %v1946_v33, %v1945_v27 }
 0x346   : > { %v4856_v36 = vpack.c.bf16 %v1944_v34, %v1943_v31  ;;  %v3929_v37 = vpop.f32.mrb[28].mxu0 }
 0x347   : > { %v1738_v38 = vadd.f32 %v3929_v37, %v4802_v0  ;;  %v1729_v39 = vpop.f32.mrb[29].mxu0 }
 0x348   : > { %2317 = vmatmul.mubr.bf16.gmra.mrb[104].mxu1 %v2000_v57  ;;  %2728 = vmatmul.mubr.bf16.gmra.mrb[100].mxu0 %v2000_v57  ;;  %v1730_v40 = vadd.f32 %v4802_v0, %v1729_v39  ;;  %v3930_v41 = vpop.f32.mrb[30].mxu0 }
 0x349   : > { %2326 = vmatprep.mubr.bf16.mxu1 %v4282_v42  ;;  %2737 = vmatprep.mubr.bf16.mxu0 %v4282_v42  ;;  %v1949_v43 = vmax.f32 %v1738_v38, 0.0  ;;  %v1741_v44 = vadd.f32 %v3930_v41, %v4802_v0  ;;  %v1732_v45 = vpop.f32.mrb[31].mxu0 }
 0x34a   : > { %v1947_v46 = vmax.f32 %v1730_v40, 0.0  ;;  %v1733_v47 = vadd.f32 %v4802_v0, %v1732_v45 }
 0x34b   : > { %v1950_v48 = vmax.f32 %v1741_v44, 0.0 }
 0x34c   : > { %v1948_v49 = vmax.f32 %v1733_v47, 0.0 }
 0x34d   : > { %v4864_v50 = vpack.c.bf16 %v1950_v48, %v1949_v43 }
 0x34e   : > { %v4866_v51 = vpack.c.bf16 %v1948_v49, %v1947_v46  ;;  %v3933_v52 = vpop.f32.mrb[32].mxu0 }
 0x34f   : > { %v1754_v53 = vadd.f32 %v3933_v52, %v4802_v0  ;;  %v1745_v54 = vpop.f32.mrb[33].mxu0 }
 0x350   : > { %2327 = vmatmul.mubr.bf16.gmra.mrb[108].mxu1 %v4826_v56  ;;  %2738 = vmatmul.mubr.bf16.gmra.mrb[104].mxu0 %v4826_v56  ;;  %v1746_v55 = vadd.f32 %v4802_v0, %v1745_v54  ;;  %v3934_v57 = vpop.f32.mrb[34].mxu0 }
 0x351   : > { %2336 = vmatprep.mubr.bf16.mxu1 %v4282_v42  ;;  %2747 = vmatprep.mubr.bf16.mxu0 %v4282_v42  ;;  %v1953_v58 = vmax.f32 %v1754_v53, 0.0  ;;  %v1757_v59 = vadd.f32 %v3934_v57, %v4802_v0  ;;  %v1748_v60 = vpop.f32.mrb[35].mxu0 }
 0x352   : > { %v1951_v61 = vmax.f32 %v1746_v55, 0.0  ;;  %v1749_v62 = vadd.f32 %v4802_v0, %v1748_v60 }
 0x353   : > { %v1954_v63 = vmax.f32 %v1757_v59, 0.0 }
 0x354   : > { %v1952_v1 = vmax.f32 %v1749_v62, 0.0 }
 0x355   : > { %v4876_v2 = vpack.c.bf16 %v1954_v63, %v1953_v58 }
 0x356   : > { %v4878_v3 = vpack.c.bf16 %v1952_v1, %v1951_v61  ;;  %v3937_v56 = vpop.f32.mrb[36].mxu0 }
 0x357   : > { %v1770_v30 = vadd.f32 %v3937_v56, %v4802_v0  ;;  %v1761_v4 = vpop.f32.mrb[37].mxu0 }
 0x358   : > { %2337 = vmatmul.mubr.bf16.gmra.mrb[112].mxu1 %v4836_v7  ;;  %2748 = vmatmul.mubr.bf16.gmra.mrb[108].mxu0 %v4836_v7  ;;  %v1762_v5 = vadd.f32 %v4802_v0, %v1761_v4  ;;  %v3938_v8 = vpop.f32.mrb[38].mxu0 }
 0x359   : > { %2346 = vmatprep.mubr.bf16.mxu1 %v4282_v42  ;;  %2757 = vmatprep.mubr.bf16.mxu0 %v4282_v42  ;;  %v1957_v9 = vmax.f32 %v1770_v30, 0.0  ;;  %v1773_v10 = vadd.f32 %v3938_v8, %v4802_v0  ;;  %v1764_v11 = vpop.f32.mrb[39].mxu0 }
 0x35a   : > { %v1955_v12 = vmax.f32 %v1762_v5, 0.0  ;;  %v1765_v13 = vadd.f32 %v4802_v0, %v1764_v11 }
 0x35b   : > { %v1958_v14 = vmax.f32 %v1773_v10, 0.0 }
 0x35c   : > { %v1956_v15 = vmax.f32 %v1765_v13, 0.0 }
 0x35d   : > { %v4888_v16 = vpack.c.bf16 %v1958_v14, %v1957_v9 }
 0x35e   : > { %v4890_v17 = vpack.c.bf16 %v1956_v15, %v1955_v12  ;;  %v3941_v7 = vpop.f32.mrb[40].mxu0 }
 0x35f   : > { %v1786_v18 = vadd.f32 %v3941_v7, %v4802_v0  ;;  %v1777_v19 = vpop.f32.mrb[41].mxu0 }
 0x360   : > { %2347 = vmatmul.mubr.bf16.gmra.mrb[116].mxu1 %v4834_v6  ;;  %2758 = vmatmul.mubr.bf16.gmra.mrb[112].mxu0 %v4834_v6  ;;  %v1778_v22 = vadd.f32 %v4802_v0, %v1777_v19  ;;  %v3942_v23 = vpop.f32.mrb[42].mxu0 }
 0x361   : > { %2356 = vmatprep.mubr.bf16.mxu1 %v4282_v42  ;;  %2767 = vmatprep.mubr.bf16.mxu0 %v4282_v42  ;;  %v1961_v24 = vmax.f32 %v1786_v18, 0.0  ;;  %v1789_v25 = vadd.f32 %v3942_v23, %v4802_v0  ;;  %v1780_v26 = vpop.f32.mrb[43].mxu0 }
 0x362   : > { %v1959_v27 = vmax.f32 %v1778_v22, 0.0  ;;  %v1781_v28 = vadd.f32 %v4802_v0, %v1780_v26 }
 0x363   : > { %v1962_v29 = vmax.f32 %v1789_v25, 0.0 }
 0x364   : > { %v1960_v31 = vmax.f32 %v1781_v28, 0.0 }
 0x365   : > { %v4900_v32 = vpack.c.bf16 %v1962_v29, %v1961_v24 }
 0x366   : > { %v4902_v33 = vpack.c.bf16 %v1960_v31, %v1959_v27  ;;  %v3945_v6 = vpop.f32.mrb[44].mxu0 }
 0x367   : > { %v1802_v34 = vadd.f32 %v3945_v6, %v4802_v0  ;;  %v1793_v37 = vpop.f32.mrb[45].mxu0 }
 0x368   : > { %2357 = vmatmul.mubr.bf16.gmra.mrb[120].mxu1 %v4846_v21  ;;  %2768 = vmatmul.mubr.bf16.gmra.mrb[116].mxu0 %v4846_v21  ;;  %v1794_v38 = vadd.f32 %v4802_v0, %v1793_v37  ;;  %v3946_v39 = vpop.f32.mrb[46].mxu0 }
 0x369   : > { %2366 = vmatprep.mubr.bf16.mxu1 %v4282_v42  ;;  %2777 = vmatprep.mubr.bf16.mxu0 %v4282_v42  ;;  %v1965_v40 = vmax.f32 %v1802_v34, 0.0  ;;  %v1805_v41 = vadd.f32 %v3946_v39, %v4802_v0  ;;  %v1796_v43 = vpop.f32.mrb[47].mxu0 }
 0x36a   : > { %v1963_v44 = vmax.f32 %v1794_v38, 0.0  ;;  %v1797_v45 = vadd.f32 %v4802_v0, %v1796_v43 }
 0x36b   : > { %v1966_v46 = vmax.f32 %v1805_v41, 0.0 }
 0x36c   : > { %v1964_v47 = vmax.f32 %v1797_v45, 0.0 }
 0x36d   : > { %v4912_v48 = vpack.c.bf16 %v1966_v46, %v1965_v40 }
 0x36e   : > { %v4914_v49 = vpack.c.bf16 %v1964_v47, %v1963_v44  ;;  %v3949_v21 = vpop.f32.mrb[48].mxu0 }
 0x36f   : > { %v1818_v52 = vadd.f32 %v3949_v21, %v4802_v0  ;;  %v1809_v53 = vpop.f32.mrb[49].mxu0 }
 0x370   : > { %2367 = vmatmul.mubr.bf16.gmra.mrb[124].mxu1 %v4844_v20  ;;  %2778 = vmatmul.mubr.bf16.gmra.mrb[120].mxu0 %v4844_v20  ;;  %v1810_v54 = vadd.f32 %v4802_v0, %v1809_v53  ;;  %v3950_v55 = vpop.f32.mrb[50].mxu0 }
 0x371   : > { %2376 = vmatprep.mubr.bf16.mxu1 %v4282_v42  ;;  %2787 = vmatprep.mubr.bf16.mxu0 %v4282_v42  ;;  %v1969_v57 = vmax.f32 %v1818_v52, 0.0  ;;  %v1821_v58 = vadd.f32 %v3950_v55, %v4802_v0  ;;  %v1812_v59 = vpop.f32.mrb[51].mxu0 }
 0x372   : > { %v1967_v60 = vmax.f32 %v1810_v54, 0.0  ;;  %v1813_v61 = vadd.f32 %v4802_v0, %v1812_v59 }
 0x373   : > { %v1970_v62 = vmax.f32 %v1821_v58, 0.0 }
 0x374   : > { %v1968_v63 = vmax.f32 %v1813_v61, 0.0 }
 0x375   : > { %v4924_v1 = vpack.c.bf16 %v1970_v62, %v1969_v57 }
 0x376   : > { %v4926_v56 = vpack.c.bf16 %v1968_v63, %v1967_v60  ;;  %v3953_v20 = vpop.f32.mrb[52].mxu0 }
 0x377   : > { %v1834_v30 = vadd.f32 %v3953_v20, %v4802_v0  ;;  %v1825_v4 = vpop.f32.mrb[53].mxu0 }
 0x378   : > { %2377 = vmatmul.mubr.bf16.gmra.mrb[128].mxu1 %v4856_v36  ;;  %2788 = vmatmul.mubr.bf16.gmra.mrb[124].mxu0 %v4856_v36  ;;  %v1826_v5 = vadd.f32 %v4802_v0, %v1825_v4  ;;  %v3954_v8 = vpop.f32.mrb[54].mxu0 }
 0x379   : > { %2386 = vmatprep.mubr.bf16.mxu1 %v4282_v42  ;;  %2797 = vmatprep.mubr.bf16.mxu0 %v4282_v42  ;;  %v1973_v9 = vmax.f32 %v1834_v30, 0.0  ;;  %v1837_v10 = vadd.f32 %v3954_v8, %v4802_v0  ;;  %v1828_v11 = vpop.f32.mrb[55].mxu0 }
 0x37a   : > { %v1971_v12 = vmax.f32 %v1826_v5, 0.0  ;;  %v1829_v13 = vadd.f32 %v4802_v0, %v1828_v11 }
 0x37b   : > { %v1974_v14 = vmax.f32 %v1837_v10, 0.0 }
 0x37c   : > { %v1972_v15 = vmax.f32 %v1829_v13, 0.0 }
 0x37d   : > { %v4936_v7 = vpack.c.bf16 %v1974_v14, %v1973_v9 }
 0x37e   : > { %v4938_v18 = vpack.c.bf16 %v1972_v15, %v1971_v12  ;;  %v3957_v36 = vpop.f32.mrb[56].mxu0 }
 0x37f   : > { %v1850_v19 = vadd.f32 %v3957_v36, %v4802_v0  ;;  %v1841_v22 = vpop.f32.mrb[57].mxu0 }
 0x380   : > { %2387 = vmatmul.mubr.bf16.gmra.mrb[132].mxu1 %v4854_v35  ;;  %2798 = vmatmul.mubr.bf16.gmra.mrb[128].mxu0 %v4854_v35  ;;  %v1842_v23 = vadd.f32 %v4802_v0, %v1841_v22  ;;  %v3958_v24 = vpop.f32.mrb[58].mxu0 }
 0x381   : > { %2396 = vmatprep.mubr.bf16.mxu1 %v4282_v42  ;;  %2807 = vmatprep.mubr.bf16.mxu0 %v4282_v42  ;;  %v1977_v25 = vmax.f32 %v1850_v19, 0.0  ;;  %v1853_v26 = vadd.f32 %v3958_v24, %v4802_v0  ;;  %v1844_v27 = vpop.f32.mrb[59].mxu0 }
 0x382   : > { %v1975_v28 = vmax.f32 %v1842_v23, 0.0  ;;  %v1845_v29 = vadd.f32 %v4802_v0, %v1844_v27 }
 0x383   : > { %v1978_v31 = vmax.f32 %v1853_v26, 0.0 }
 0x384   : > { %v1976_v6 = vmax.f32 %v1845_v29, 0.0 }
 0x385   : > { %v4948_v34 = vpack.c.bf16 %v1978_v31, %v1977_v25 }
 0x386   : > { %v4950_v37 = vpack.c.bf16 %v1976_v6, %v1975_v28  ;;  %v3961_v35 = vpop.f32.mrb[60].mxu0 }
 0x387   : > { %v1866_v38 = vadd.f32 %v3961_v35, %v4802_v0  ;;  %v1857_v39 = vpop.f32.mrb[61].mxu0 }
 0x388   : > { %2397 = vmatmul.mubr.bf16.gmra.mrb[136].mxu1 %v4866_v51  ;;  %2808 = vmatmul.mubr.bf16.gmra.mrb[132].mxu0 %v4866_v51  ;;  %v1858_v40 = vadd.f32 %v4802_v0, %v1857_v39  ;;  %v3962_v41 = vpop.f32.mrb[62].mxu0 }
 0x389   : > { %2406 = vmatprep.mubr.bf16.mxu1 %v4282_v42  ;;  %2817 = vmatprep.mubr.bf16.mxu0 %v4282_v42  ;;  %v1981_v43 = vmax.f32 %v1866_v38, 0.0  ;;  %v1869_v44 = vadd.f32 %v3962_v41, %v4802_v0  ;;  %v1860_v45 = vpop.f32.mrb[63].mxu0 }
 0x38a   : > { %v1979_v46 = vmax.f32 %v1858_v40, 0.0  ;;  %v1861_v47 = vadd.f32 %v4802_v0, %v1860_v45 }
 0x38b   : > { %v1982_v21 = vmax.f32 %v1869_v44, 0.0 }
 0x38c   : > { %v1980_v52 = vmax.f32 %v1861_v47, 0.0 }
 0x38d   : > { %v4960_v53 = vpack.c.bf16 %v1982_v21, %v1981_v43 }
 0x38e   : > { %v4962_v54 = vpack.c.bf16 %v1980_v52, %v1979_v46  ;;  %v3965_v51 = vpop.f32.mrb[64].mxu0 }
 0x38f   : > { %v1882_v55 = vadd.f32 %v3965_v51, %v4802_v0  ;;  %v1873_v57 = vpop.f32.mrb[65].mxu0 }
 0x390   : > { %2407 = vmatmul.mubr.bf16.gmra.mrb[140].mxu1 %v4864_v50  ;;  %2818 = vmatmul.mubr.bf16.gmra.mrb[136].mxu0 %v4864_v50  ;;  %v1874_v58 = vadd.f32 %v4802_v0, %v1873_v57  ;;  %v3966_v59 = vpop.f32.mrb[66].mxu0 }
 0x391   : > { %2416 = vmatprep.mubr.bf16.mxu1 %v4282_v42  ;;  %2827 = vmatprep.mubr.bf16.mxu0 %v4282_v42  ;;  %v1985_v60 = vmax.f32 %v1882_v55, 0.0  ;;  %v1885_v61 = vadd.f32 %v3966_v59, %v4802_v0  ;;  %v1876_v62 = vpop.f32.mrb[67].mxu0 }
 0x392   : > { %v1983_v63 = vmax.f32 %v1874_v58, 0.0  ;;  %v1877_v20 = vadd.f32 %v4802_v0, %v1876_v62 }
 0x393   : > { %v1986_v30 = vmax.f32 %v1885_v61, 0.0 }
 0x394   : > { %v1984_v4 = vmax.f32 %v1877_v20, 0.0 }
 0x395   : > { %v4972_v5 = vpack.c.bf16 %v1986_v30, %v1985_v60 }
 0x396   : > { %v4974_v8 = vpack.c.bf16 %v1984_v4, %v1983_v63  ;;  %v3969_v50 = vpop.f32.mrb[68].mxu0 }
 0x397   : > { %v1898_v9 = vadd.f32 %v3969_v50, %v4802_v0  ;;  %v1889_v10 = vpop.f32.mrb[69].mxu0 }
 0x398   : > { %2417 = vmatmul.mubr.bf16.gmra.mrb[144].mxu1 %v4878_v3  ;;  %2828 = vmatmul.mubr.bf16.gmra.mrb[140].mxu0 %v4878_v3  ;;  %v1890_v11 = vadd.f32 %v4802_v0, %v1889_v10  ;;  %v3970_v12 = vpop.f32.mrb[70].mxu0 }
 0x399   : > { %2426 = vmatprep.mubr.bf16.mxu1 %v4282_v42  ;;  %2837 = vmatprep.mubr.bf16.mxu0 %v4282_v42  ;;  %v1989_v13 = vmax.f32 %v1898_v9, 0.0  ;;  %v1901_v14 = vadd.f32 %v3970_v12, %v4802_v0  ;;  %v1892_v15 = vpop.f32.mrb[71].mxu0 }
 0x39a   : > { %v1987_v36 = vmax.f32 %v1890_v11, 0.0  ;;  %v1893_v19 = vadd.f32 %v4802_v0, %v1892_v15 }
 0x39b   : > { %v1990_v22 = vmax.f32 %v1901_v14, 0.0 }
 0x39c   : > { %v1988_v23 = vmax.f32 %v1893_v19, 0.0 }
 0x39d   : > { %v4984_v24 = vpack.c.bf16 %v1990_v22, %v1989_v13 }
 0x39e   : > { %v4986_v25 = vpack.c.bf16 %v1988_v23, %v1987_v36  ;;  %v4988_v3 = vpop.f32.mrb[72].mxu0 }
 0x39f   : > { %v1905_v26 = vpop.f32.mrb[73].mxu0 }
 0x3a0   : > { %2427 = vmatmul.mubr.bf16.gmra.mrb[148].mxu1 %v4876_v2  ;;  %2838 = vmatmul.mubr.bf16.gmra.mrb[144].mxu0 %v4876_v2  ;;  %v1906_v27 = vadd.f32 %v4802_v0, %v1905_v26  ;;  %v3974_v28 = vpop.f32.mrb[74].mxu0 }
 0x3a1   : > { %2436 = vmatprep.mubr.bf16.mxu1 %v4282_v42  ;;  %2847 = vmatprep.mubr.bf16.mxu0 %v4282_v42  ;;  %v1908_v29 = vpop.f32.mrb[75].mxu0 }
 0x3a2   : > { %v1991_v31 = vmax.f32 %v1906_v27, 0.0  ;;  %v1909_v6 = vadd.f32 %v4802_v0, %v1908_v29 }
 0x3a4   : > { %v1992_v35 = vmax.f32 %v1909_v6, 0.0 }
 0x3a6   : > { %v4996_v38 = vpack.c.bf16 %v1992_v35, %v1991_v31 }
 0x3a8   : > { %2437 = vmatmul.mubr.bf16.gmra.mrb[152].mxu1 %v4890_v17  ;;  %2848 = vmatmul.mubr.bf16.gmra.mrb[148].mxu0 %v4890_v17 }
 0x3a9   : > { %2446 = vmatprep.mubr.bf16.mxu1 %v4282_v42  ;;  %2857 = vmatprep.mubr.bf16.mxu0 %v4282_v42 }
 0x3b0   : > { %2447 = vmatmul.mubr.bf16.gmra.mrb[156].mxu1 %v4888_v16  ;;  %2858 = vmatmul.mubr.bf16.gmra.mrb[152].mxu0 %v4888_v16 }
 0x3b1   : > { %2456 = vmatprep.mubr.bf16.mxu1 %v4282_v42  ;;  %2867 = vmatprep.mubr.bf16.mxu0 %v4282_v42 }
 0x3b8   : > { %2457 = vmatmul.mubr.bf16.gmra.mrb[160].mxu1 %v4902_v33  ;;  %2868 = vmatmul.mubr.bf16.gmra.mrb[156].mxu0 %v4902_v33 }
 0x3b9   : > { %2466 = vmatprep.mubr.bf16.mxu1 %v4282_v42  ;;  %2877 = vmatprep.mubr.bf16.mxu0 %v4282_v42 }
 0x3c0   : > { %2467 = vmatmul.mubr.bf16.gmra.mrb[164].mxu1 %v4900_v32  ;;  %2878 = vmatmul.mubr.bf16.gmra.mrb[160].mxu0 %v4900_v32 }
 0x3c1   : > { %2476 = vmatprep.mubr.bf16.mxu1 %v4282_v42  ;;  %2887 = vmatprep.mubr.bf16.mxu0 %v4282_v42 }
 0x3c8   : > { %2477 = vmatmul.mubr.bf16.gmra.mrb[168].mxu1 %v4914_v49  ;;  %2888 = vmatmul.mubr.bf16.gmra.mrb[164].mxu0 %v4914_v49 }
 0x3c9   : > { %2486 = vmatprep.mubr.bf16.mxu1 %v4282_v42  ;;  %2897 = vmatprep.mubr.bf16.mxu0 %v4282_v42 }
 0x3d0   : > { %2487 = vmatmul.mubr.bf16.gmra.mrb[172].mxu1 %v4912_v48  ;;  %2898 = vmatmul.mubr.bf16.gmra.mrb[168].mxu0 %v4912_v48 }
 0x3d1   : > { %2496 = vmatprep.mubr.bf16.mxu1 %v4282_v42  ;;  %2907 = vmatprep.mubr.bf16.mxu0 %v4282_v42 }
 0x3d8   : > { %2497 = vmatmul.mubr.bf16.gmra.mrb[176].mxu1 %v4926_v56  ;;  %2908 = vmatmul.mubr.bf16.gmra.mrb[172].mxu0 %v4926_v56 }
 0x3d9   : > { %2506 = vmatprep.mubr.bf16.mxu1 %v4282_v42  ;;  %2917 = vmatprep.mubr.bf16.mxu0 %v4282_v42 }
 0x3e0   : > { %2507 = vmatmul.mubr.bf16.gmra.mrb[180].mxu1 %v4924_v1  ;;  %2918 = vmatmul.mubr.bf16.gmra.mrb[176].mxu0 %v4924_v1 }
 0x3e1   : > { %2516 = vmatprep.mubr.bf16.mxu1 %v4282_v42  ;;  %2927 = vmatprep.mubr.bf16.mxu0 %v4282_v42 }
 0x3e8   : > { %2517 = vmatmul.mubr.bf16.gmra.mrb[184].mxu1 %v4938_v18  ;;  %2928 = vmatmul.mubr.bf16.gmra.mrb[180].mxu0 %v4938_v18 }
 0x3e9   : > { %2526 = vmatprep.mubr.bf16.mxu1 %v4282_v42  ;;  %2937 = vmatprep.mubr.bf16.mxu0 %v4282_v42 }
 0x3eb   : > { %v2258_v0 = vpop.f32.mrb[80].mxu1  ;;  %v2669_v2 = vpop.f32.mrb[76].mxu0 }
 0x3ec   : > { %v2260_v16 = vpop.f32.mrb[81].mxu1  ;;  %v2671_v17 = vpop.f32.mrb[77].mxu0 }
 0x3ed   : > { %v2262_v32 = vpop.f32.mrb[82].mxu1  ;;  %v2673_v33 = vpop.f32.mrb[78].mxu0 }
 0x3ee   : > { %v3047_v48 = vmax.f32 %v2258_v0, %v2262_v32  ;;  %v3207_v49 = vmax.f32 %v2669_v2, %v2673_v33  ;;  %v2264_v1 = vpop.f32.mrb[83].mxu1  ;;  %v2675_v56 = vpop.f32.mrb[79].mxu0 }
 0x3ef   : > { %v3127_v39 = vmax.f32 %v2260_v16, %v2264_v1  ;;  %v3287_v40 = vmax.f32 %v2671_v17, %v2675_v56 }
 0x3f0   : > { %2527 = vmatmul.mubr.bf16.gmra.mrb[188].mxu1 %v4936_v7  ;;  %2938 = vmatmul.mubr.bf16.gmra.mrb[184].mxu0 %v4936_v7 }
 0x3f1   : > { %2536 = vmatprep.mubr.bf16.mxu1 %v4282_v42  ;;  %2947 = vmatprep.mubr.bf16.mxu0 %v4282_v42 }
 0x3f3   : > { %v2268_v18 = vpop.f32.mrb[84].mxu1  ;;  %v2679_v41 = vpop.f32.mrb[80].mxu0 }
 0x3f4   : > { %v3048_v43 = vmax.f32 %v3047_v48, %v2268_v18  ;;  %v3208_v44 = vmax.f32 %v3207_v49, %v2679_v41  ;;  %v2270_v45 = vpop.f32.mrb[85].mxu1  ;;  %v2681_v46 = vpop.f32.mrb[81].mxu0 }
 0x3f5   : > { %v3128_v47 = vmax.f32 %v3127_v39, %v2270_v45  ;;  %v3288_v21 = vmax.f32 %v3287_v40, %v2681_v46  ;;  %v2272_v52 = vpop.f32.mrb[86].mxu1  ;;  %v2683_v51 = vpop.f32.mrb[82].mxu0 }
 0x3f6   : > { %v3049_v55 = vmax.f32 %v3048_v43, %v2272_v52  ;;  %v3209_v57 = vmax.f32 %v3208_v44, %v2683_v51  ;;  %v2274_v58 = vpop.f32.mrb[87].mxu1  ;;  %v2685_v59 = vpop.f32.mrb[83].mxu0 }
 0x3f7   : > { %v3129_v60 = vmax.f32 %v3128_v47, %v2274_v58  ;;  %v3289_v7 = vmax.f32 %v3288_v21, %v2685_v59 }
 0x3f8   : > { %2537 = vmatmul.mubr.bf16.gmra.mrb[192].mxu1 %v4950_v37  ;;  %2948 = vmatmul.mubr.bf16.gmra.mrb[188].mxu0 %v4950_v37 }
 0x3f9   : > { %2546 = vmatprep.mubr.bf16.mxu1 %v4282_v42  ;;  %2957 = vmatprep.mubr.bf16.mxu0 %v4282_v42 }
 0x3fb   : > { %v2278_v61 = vpop.f32.mrb[88].mxu1  ;;  %v2689_v62 = vpop.f32.mrb[84].mxu0 }
 0x3fc   : > { %v3050_v63 = vmax.f32 %v3049_v55, %v2278_v61  ;;  %v3210_v20 = vmax.f32 %v3209_v57, %v2689_v62  ;;  %v2280_v30 = vpop.f32.mrb[89].mxu1  ;;  %v2691_v4 = vpop.f32.mrb[85].mxu0 }
 0x3fd   : > { %v3130_v50 = vmax.f32 %v3129_v60, %v2280_v30  ;;  %v3290_v9 = vmax.f32 %v3289_v7, %v2691_v4  ;;  %v2282_v10 = vpop.f32.mrb[90].mxu1  ;;  %v2693_v11 = vpop.f32.mrb[86].mxu0 }
 0x3fe   : > { %v3051_v12 = vmax.f32 %v3050_v63, %v2282_v10  ;;  %v3211_v13 = vmax.f32 %v3210_v20, %v2693_v11  ;;  %v2284_v14 = vpop.f32.mrb[91].mxu1  ;;  %v2695_v15 = vpop.f32.mrb[87].mxu0 }
 0x3ff   : > { %v3131_v36 = vmax.f32 %v3130_v50, %v2284_v14  ;;  %v3291_v37 = vmax.f32 %v3290_v9, %v2695_v15 }
 0x400   : > { %2547 = vmatmul.mubr.bf16.gmra.mrb[196].mxu1 %v4948_v34  ;;  %2958 = vmatmul.mubr.bf16.gmra.mrb[192].mxu0 %v4948_v34 }
 0x401   : > { %2556 = vmatprep.mubr.bf16.mxu1 %v4282_v42  ;;  %2967 = vmatprep.mubr.bf16.mxu0 %v4282_v42 }
 0x403   : > { %v2288_v19 = vpop.f32.mrb[92].mxu1  ;;  %v2699_v22 = vpop.f32.mrb[88].mxu0 }
 0x404   : > { %v3052_v23 = vmax.f32 %v3051_v12, %v2288_v19  ;;  %v3212_v26 = vmax.f32 %v3211_v13, %v2699_v22  ;;  %v2290_v27 = vpop.f32.mrb[93].mxu1  ;;  %v2701_v28 = vpop.f32.mrb[89].mxu0 }
 0x405   : > { %v3132_v29 = vmax.f32 %v3131_v36, %v2290_v27  ;;  %v3292_v31 = vmax.f32 %v3291_v37, %v2701_v28  ;;  %v2292_v6 = vpop.f32.mrb[94].mxu1  ;;  %v2703_v35 = vpop.f32.mrb[90].mxu0 }
 0x406   : > { %v3053_v0 = vmax.f32 %v3052_v23, %v2292_v6  ;;  %v3213_v2 = vmax.f32 %v3212_v26, %v2703_v35  ;;  %v2294_v16 = vpop.f32.mrb[95].mxu1  ;;  %v2705_v17 = vpop.f32.mrb[91].mxu0 }
 0x407   : > { %v3133_v32 = vmax.f32 %v3132_v29, %v2294_v16  ;;  %v3293_v34 = vmax.f32 %v3292_v31, %v2705_v17 }
 0x408   : > { %2557 = vmatmul.mubr.bf16.gmra.mrb[200].mxu1 %v4962_v54  ;;  %2968 = vmatmul.mubr.bf16.gmra.mrb[196].mxu0 %v4962_v54 }
 0x409   : > { %2566 = vmatprep.mubr.bf16.mxu1 %v4282_v42  ;;  %2977 = vmatprep.mubr.bf16.mxu0 %v4282_v42 }
 0x40b   : > { %v2298_v33 = vpop.f32.mrb[96].mxu1  ;;  %v2709_v48 = vpop.f32.mrb[92].mxu0 }
 0x40c   : > { %v3054_v49 = vmax.f32 %v3053_v0, %v2298_v33  ;;  %v3214_v1 = vmax.f32 %v3213_v2, %v2709_v48  ;;  %v2300_v56 = vpop.f32.mrb[97].mxu1  ;;  %v2711_v39 = vpop.f32.mrb[93].mxu0 }
 0x40d   : > { %v3134_v40 = vmax.f32 %v3133_v32, %v2300_v56  ;;  %v3294_v18 = vmax.f32 %v3293_v34, %v2711_v39  ;;  %v2302_v41 = vpop.f32.mrb[98].mxu1  ;;  %v2713_v43 = vpop.f32.mrb[94].mxu0 }
 0x40e   : > { %v3055_v44 = vmax.f32 %v3054_v49, %v2302_v41  ;;  %v3215_v45 = vmax.f32 %v3214_v1, %v2713_v43  ;;  %v2304_v46 = vpop.f32.mrb[99].mxu1  ;;  %v2715_v47 = vpop.f32.mrb[95].mxu0 }
 0x40f   : > { %v3135_v21 = vmax.f32 %v3134_v40, %v2304_v46  ;;  %v3295_v54 = vmax.f32 %v3294_v18, %v2715_v47 }
 0x410   : > { %2567 = vmatmul.mubr.bf16.gmra.mrb[204].mxu1 %v4960_v53  ;;  %2978 = vmatmul.mubr.bf16.gmra.mrb[200].mxu0 %v4960_v53 }
 0x411   : > { %2576 = vmatprep.mubr.bf16.mxu1 %v4282_v42  ;;  %2987 = vmatprep.mubr.bf16.mxu0 %v4282_v42 }
 0x413   : > { %v2308_v52 = vpop.f32.mrb[100].mxu1  ;;  %v2719_v51 = vpop.f32.mrb[96].mxu0 }
 0x414   : > { %v3056_v55 = vmax.f32 %v3055_v44, %v2308_v52  ;;  %v3216_v57 = vmax.f32 %v3215_v45, %v2719_v51  ;;  %v2310_v58 = vpop.f32.mrb[101].mxu1  ;;  %v2721_v59 = vpop.f32.mrb[97].mxu0 }
 0x415   : > { %v3136_v60 = vmax.f32 %v3135_v21, %v2310_v58  ;;  %v3296_v7 = vmax.f32 %v3295_v54, %v2721_v59  ;;  %v2312_v61 = vpop.f32.mrb[102].mxu1  ;;  %v2723_v62 = vpop.f32.mrb[98].mxu0 }
 0x416   : > { %v3057_v63 = vmax.f32 %v3056_v55, %v2312_v61  ;;  %v3217_v20 = vmax.f32 %v3216_v57, %v2723_v62  ;;  %v2314_v30 = vpop.f32.mrb[103].mxu1  ;;  %v2725_v4 = vpop.f32.mrb[99].mxu0 }
 0x417   : > { %v3137_v50 = vmax.f32 %v3136_v60, %v2314_v30  ;;  %v3297_v53 = vmax.f32 %v3296_v7, %v2725_v4 }
 0x418   : > { %2577 = vmatmul.mubr.bf16.gmra.mrb[208].mxu1 %v4974_v8  ;;  %2988 = vmatmul.mubr.bf16.gmra.mrb[204].mxu0 %v4974_v8 }
 0x419   : > { %2586 = vmatprep.mubr.bf16.mxu1 %v4282_v42  ;;  %2997 = vmatprep.mubr.bf16.mxu0 %v4282_v42 }
 0x41b   : > { %v2318_v9 = vpop.f32.mrb[104].mxu1  ;;  %v2729_v10 = vpop.f32.mrb[100].mxu0 }
 0x41c   : > { %v3058_v11 = vmax.f32 %v3057_v63, %v2318_v9  ;;  %v3218_v12 = vmax.f32 %v3217_v20, %v2729_v10  ;;  %v2320_v13 = vpop.f32.mrb[105].mxu1  ;;  %v2731_v14 = vpop.f32.mrb[101].mxu0 }
 0x41d   : > { %v3138_v15 = vmax.f32 %v3137_v50, %v2320_v13  ;;  %v3298_v36 = vmax.f32 %v3297_v53, %v2731_v14  ;;  %v2322_v37 = vpop.f32.mrb[106].mxu1  ;;  %v2733_v19 = vpop.f32.mrb[102].mxu0  ;;  %v4149_v50 = vld [vmem:[%s5125_s5] ss:$0 sm:$0xff] }
 0x41e   : > { %v3059_v22 = vmax.f32 %v3058_v11, %v2322_v37  ;;  %v3219_v23 = vmax.f32 %v3218_v12, %v2733_v19  ;;  %v2324_v26 = vpop.f32.mrb[107].mxu1  ;;  %v2735_v27 = vpop.f32.mrb[103].mxu0 }
 0x41f   : > { %v3139_v28 = vmax.f32 %v3138_v15, %v2324_v26  ;;  %v3299_v8 = vmax.f32 %v3298_v36, %v2735_v27 }
 0x420   : > { %2587 = vmatmul.mubr.bf16.gmra.mrb[212].mxu1 %v4972_v5  ;;  %2998 = vmatmul.mubr.bf16.gmra.mrb[208].mxu0 %v4972_v5 }
 0x421   : > { %2596 = vmatprep.mubr.bf16.mxu1 %v4282_v42  ;;  %3007 = vmatprep.mubr.bf16.mxu0 %v4282_v42 }
 0x423   : > { %v2328_v29 = vpop.f32.mrb[108].mxu1  ;;  %v2739_v31 = vpop.f32.mrb[104].mxu0 }
 0x424   : > { %v3060_v6 = vmax.f32 %v3059_v22, %v2328_v29  ;;  %v3220_v35 = vmax.f32 %v3219_v23, %v2739_v31  ;;  %v2330_v0 = vpop.f32.mrb[109].mxu1  ;;  %v2741_v2 = vpop.f32.mrb[105].mxu0 }
 0x425   : > { %v3140_v16 = vmax.f32 %v3139_v28, %v2330_v0  ;;  %v3300_v17 = vmax.f32 %v3299_v8, %v2741_v2  ;;  %v2332_v32 = vpop.f32.mrb[110].mxu1  ;;  %v2743_v34 = vpop.f32.mrb[106].mxu0 }
 0x426   : > { %v3061_v33 = vmax.f32 %v3060_v6, %v2332_v32  ;;  %v3221_v48 = vmax.f32 %v3220_v35, %v2743_v34  ;;  %v2334_v49 = vpop.f32.mrb[111].mxu1  ;;  %v2745_v1 = vpop.f32.mrb[107].mxu0 }
 0x427   : > { %v3141_v56 = vmax.f32 %v3140_v16, %v2334_v49  ;;  %v3301_v5 = vmax.f32 %v3300_v17, %v2745_v1 }
 0x428   : > { %2597 = vmatmul.mubr.bf16.gmra.mrb[216].mxu1 %v4986_v25  ;;  %3008 = vmatmul.mubr.bf16.gmra.mrb[212].mxu0 %v4986_v25 }
 0x429   : > { %2606 = vmatprep.mubr.bf16.mxu1 %v4282_v42  ;;  %3017 = vmatprep.mubr.bf16.mxu0 %v4282_v42 }
 0x42b   : > { %v2338_v39 = vpop.f32.mrb[112].mxu1  ;;  %v2749_v40 = vpop.f32.mrb[108].mxu0 }
 0x42c   : > { %v3062_v18 = vmax.f32 %v3061_v33, %v2338_v39  ;;  %v3222_v41 = vmax.f32 %v3221_v48, %v2749_v40  ;;  %v2340_v43 = vpop.f32.mrb[113].mxu1  ;;  %v2751_v44 = vpop.f32.mrb[109].mxu0 }
 0x42d   : > { %v3142_v45 = vmax.f32 %v3141_v56, %v2340_v43  ;;  %v3302_v46 = vmax.f32 %v3301_v5, %v2751_v44  ;;  %v2342_v47 = vpop.f32.mrb[114].mxu1  ;;  %v2753_v21 = vpop.f32.mrb[110].mxu0 }
 0x42e   : > { %v3063_v54 = vmax.f32 %v3062_v18, %v2342_v47  ;;  %v3223_v52 = vmax.f32 %v3222_v41, %v2753_v21  ;;  %v2344_v51 = vpop.f32.mrb[115].mxu1  ;;  %v2755_v55 = vpop.f32.mrb[111].mxu0 }
 0x42f   : > { %v3143_v57 = vmax.f32 %v3142_v45, %v2344_v51  ;;  %v3303_v25 = vmax.f32 %v3302_v46, %v2755_v55 }
 0x430   : > { %2607 = vmatmul.mubr.bf16.gmra.mrb[220].mxu1 %v4984_v24  ;;  %3018 = vmatmul.mubr.bf16.gmra.mrb[216].mxu0 %v4984_v24  ;;  %v1914_v24 = vadd.f32 %v4149_v50, %v4988_v3 }
 0x431   : > { %2616 = vmatprep.mubr.bf16.mxu1 %v4282_v42  ;;  %3027 = vmatprep.mubr.bf16.mxu0 %v4282_v42 }
 0x432   : > { %v1993_v14 = vmax.f32 %v1914_v24, 0.0 }
 0x433   : > { %v2348_v58 = vpop.f32.mrb[116].mxu1  ;;  %v2759_v59 = vpop.f32.mrb[112].mxu0 }
 0x434   : > { %v3064_v60 = vmax.f32 %v3063_v54, %v2348_v58  ;;  %v3224_v7 = vmax.f32 %v3223_v52, %v2759_v59  ;;  %v2350_v61 = vpop.f32.mrb[117].mxu1  ;;  %v2761_v62 = vpop.f32.mrb[113].mxu0  ;;  %v2031_v8 = vpack.c.bf16 %v1993_v14, %v1993_v14 }
 0x435   : > { %v3144_v63 = vmax.f32 %v3143_v57, %v2350_v61  ;;  %v3304_v20 = vmax.f32 %v3303_v25, %v2761_v62  ;;  %v2352_v30 = vpop.f32.mrb[118].mxu1  ;;  %v2763_v4 = vpop.f32.mrb[114].mxu0 }
 0x436   : > { %v3065_v53 = vmax.f32 %v3064_v60, %v2352_v30  ;;  %v3225_v9 = vmax.f32 %v3224_v7, %v2763_v4  ;;  %v2354_v10 = vpop.f32.mrb[119].mxu1  ;;  %v2765_v11 = vpop.f32.mrb[115].mxu0 }
 0x437   : > { %v3145_v12 = vmax.f32 %v3144_v63, %v2354_v10  ;;  %v3305_v13 = vmax.f32 %v3304_v20, %v2765_v11 }
 0x438   : > { %2617 = vmatmul.mubr.bf16.gmra.mrb[224].mxu1 %v4996_v38  ;;  %3028 = vmatmul.mubr.bf16.gmra.mrb[220].mxu0 %v4996_v38 }
 0x439   : > { %2626 = vmatprep.mubr.bf16.mxu1 %v4282_v42  ;;  %3037 = vmatprep.mubr.bf16.mxu0 %v4282_v42 }
 0x43b   : > { %v2358_v15 = vpop.f32.mrb[120].mxu1  ;;  %v2769_v36 = vpop.f32.mrb[116].mxu0 }
 0x43c   : > { %v3066_v37 = vmax.f32 %v3065_v53, %v2358_v15  ;;  %v3226_v19 = vmax.f32 %v3225_v9, %v2769_v36  ;;  %v2360_v3 = vpop.f32.mrb[121].mxu1  ;;  %v2771_v22 = vpop.f32.mrb[117].mxu0 }
 0x43d   : > { %v3146_v23 = vmax.f32 %v3145_v12, %v2360_v3  ;;  %v3306_v26 = vmax.f32 %v3305_v13, %v2771_v22  ;;  %v2362_v27 = vpop.f32.mrb[122].mxu1  ;;  %v2773_v28 = vpop.f32.mrb[118].mxu0 }
 0x43e   : > { %v3067_v29 = vmax.f32 %v3066_v37, %v2362_v27  ;;  %v3227_v31 = vmax.f32 %v3226_v19, %v2773_v28  ;;  %v2364_v6 = vpop.f32.mrb[123].mxu1  ;;  %v2775_v38 = vpop.f32.mrb[119].mxu0 }
 0x43f   : > { %v3147_v35 = vmax.f32 %v3146_v23, %v2364_v6  ;;  %v3307_v0 = vmax.f32 %v3306_v26, %v2775_v38 }
 0x440   : > { %2627 = vmatmul.mubr.bf16.gmra.mrb[228].mxu1 %v2031_v8  ;;  %3038 = vmatmul.mubr.bf16.gmra.mrb[224].mxu0 %v2031_v8 }
 0x443   : > { %v2368_v42 = vpop.f32.mrb[124].mxu1  ;;  %v2779_v2 = vpop.f32.mrb[120].mxu0 }
 0x444   : > { %v3068_v16 = vmax.f32 %v3067_v29, %v2368_v42  ;;  %v3228_v17 = vmax.f32 %v3227_v31, %v2779_v2  ;;  %v2370_v32 = vpop.f32.mrb[125].mxu1  ;;  %v2781_v34 = vpop.f32.mrb[121].mxu0 }
 0x445   : > { %v3148_v33 = vmax.f32 %v3147_v35, %v2370_v32  ;;  %v3308_v48 = vmax.f32 %v3307_v0, %v2781_v34  ;;  %v2372_v49 = vpop.f32.mrb[126].mxu1  ;;  %v2783_v1 = vpop.f32.mrb[122].mxu0 }
 0x446   : > { %v3069_v56 = vmax.f32 %v3068_v16, %v2372_v49  ;;  %v3229_v5 = vmax.f32 %v3228_v17, %v2783_v1  ;;  %v2374_v39 = vpop.f32.mrb[127].mxu1  ;;  %v2785_v40 = vpop.f32.mrb[123].mxu0 }
 0x447   : > { %v3149_v18 = vmax.f32 %v3148_v33, %v2374_v39  ;;  %v3309_v41 = vmax.f32 %v3308_v48, %v2785_v40 }
 0x44b   : > { %v2378_v43 = vpop.f32.mrb[128].mxu1  ;;  %v2789_v44 = vpop.f32.mrb[124].mxu0 }
 0x44c   : > { %v3070_v45 = vmax.f32 %v3069_v56, %v2378_v43  ;;  %v3230_v46 = vmax.f32 %v3229_v5, %v2789_v44  ;;  %v2380_v47 = vpop.f32.mrb[129].mxu1  ;;  %v2791_v21 = vpop.f32.mrb[125].mxu0 }
 0x44d   : > { %v3150_v54 = vmax.f32 %v3149_v18, %v2380_v47  ;;  %v3310_v52 = vmax.f32 %v3309_v41, %v2791_v21  ;;  %v2382_v51 = vpop.f32.mrb[130].mxu1  ;;  %v2793_v55 = vpop.f32.mrb[126].mxu0 }
 0x44e   : > { %v3071_v57 = vmax.f32 %v3070_v45, %v2382_v51  ;;  %v3231_v25 = vmax.f32 %v3230_v46, %v2793_v55  ;;  %v2384_v58 = vpop.f32.mrb[131].mxu1  ;;  %v2795_v59 = vpop.f32.mrb[127].mxu0 }
 0x44f   : > { %v3151_v60 = vmax.f32 %v3150_v54, %v2384_v58  ;;  %v3311_v7 = vmax.f32 %v3310_v52, %v2795_v59 }
 0x453   : > { %v2388_v61 = vpop.f32.mrb[132].mxu1  ;;  %v2799_v62 = vpop.f32.mrb[128].mxu0 }
 0x454   : > { %v3072_v63 = vmax.f32 %v3071_v57, %v2388_v61  ;;  %v3232_v20 = vmax.f32 %v3231_v25, %v2799_v62  ;;  %v2390_v30 = vpop.f32.mrb[133].mxu1  ;;  %v2801_v4 = vpop.f32.mrb[129].mxu0 }
 0x455   : > { %v3152_v50 = vmax.f32 %v3151_v60, %v2390_v30  ;;  %v3312_v24 = vmax.f32 %v3311_v7, %v2801_v4  ;;  %v2392_v53 = vpop.f32.mrb[134].mxu1  ;;  %v2803_v9 = vpop.f32.mrb[130].mxu0 }
 0x456   : > { %v3073_v10 = vmax.f32 %v3072_v63, %v2392_v53  ;;  %v3233_v11 = vmax.f32 %v3232_v20, %v2803_v9  ;;  %v2394_v12 = vpop.f32.mrb[135].mxu1  ;;  %v2805_v13 = vpop.f32.mrb[131].mxu0 }
 0x457   : > { %v3153_v14 = vmax.f32 %v3152_v50, %v2394_v12  ;;  %v3313_v15 = vmax.f32 %v3312_v24, %v2805_v13 }
 0x45b   : > { %v2398_v36 = vpop.f32.mrb[136].mxu1  ;;  %v2809_v37 = vpop.f32.mrb[132].mxu0 }
 0x45c   : > { %v3074_v19 = vmax.f32 %v3073_v10, %v2398_v36  ;;  %v3234_v3 = vmax.f32 %v3233_v11, %v2809_v37  ;;  %v2400_v22 = vpop.f32.mrb[137].mxu1  ;;  %v2811_v23 = vpop.f32.mrb[133].mxu0 }
 0x45d   : > { %v3154_v26 = vmax.f32 %v3153_v14, %v2400_v22  ;;  %v3314_v27 = vmax.f32 %v3313_v15, %v2811_v23  ;;  %v2402_v28 = vpop.f32.mrb[138].mxu1  ;;  %v2813_v8 = vpop.f32.mrb[134].mxu0 }
 0x45e   : > { %v3075_v29 = vmax.f32 %v3074_v19, %v2402_v28  ;;  %v3235_v31 = vmax.f32 %v3234_v3, %v2813_v8  ;;  %v2404_v6 = vpop.f32.mrb[139].mxu1  ;;  %v2815_v38 = vpop.f32.mrb[135].mxu0 }
 0x45f   : > { %v3155_v35 = vmax.f32 %v3154_v26, %v2404_v6  ;;  %v3315_v0 = vmax.f32 %v3314_v27, %v2815_v38 }
 0x463   : > { %v2408_v42 = vpop.f32.mrb[140].mxu1  ;;  %v2819_v2 = vpop.f32.mrb[136].mxu0 }
 0x464   : > { %v3076_v16 = vmax.f32 %v3075_v29, %v2408_v42  ;;  %v3236_v17 = vmax.f32 %v3235_v31, %v2819_v2  ;;  %v2410_v32 = vpop.f32.mrb[141].mxu1  ;;  %v2821_v34 = vpop.f32.mrb[137].mxu0 }
 0x465   : > { %v3156_v33 = vmax.f32 %v3155_v35, %v2410_v32  ;;  %v3316_v48 = vmax.f32 %v3315_v0, %v2821_v34  ;;  %v2412_v49 = vpop.f32.mrb[142].mxu1  ;;  %v2823_v1 = vpop.f32.mrb[138].mxu0 }
 0x466   : > { %v3077_v56 = vmax.f32 %v3076_v16, %v2412_v49  ;;  %v3237_v5 = vmax.f32 %v3236_v17, %v2823_v1  ;;  %v2414_v39 = vpop.f32.mrb[143].mxu1  ;;  %v2825_v40 = vpop.f32.mrb[139].mxu0 }
 0x467   : > { %v3157_v18 = vmax.f32 %v3156_v33, %v2414_v39  ;;  %v3317_v41 = vmax.f32 %v3316_v48, %v2825_v40 }
 0x46b   : > { %v2418_v43 = vpop.f32.mrb[144].mxu1  ;;  %v2829_v44 = vpop.f32.mrb[140].mxu0 }
 0x46c   : > { %v3078_v45 = vmax.f32 %v3077_v56, %v2418_v43  ;;  %v3238_v46 = vmax.f32 %v3237_v5, %v2829_v44  ;;  %v2420_v47 = vpop.f32.mrb[145].mxu1  ;;  %v2831_v21 = vpop.f32.mrb[141].mxu0 }
 0x46d   : > { %v3158_v54 = vmax.f32 %v3157_v18, %v2420_v47  ;;  %v3318_v52 = vmax.f32 %v3317_v41, %v2831_v21  ;;  %v2422_v51 = vpop.f32.mrb[146].mxu1  ;;  %v2833_v55 = vpop.f32.mrb[142].mxu0 }
 0x46e   : > { %v3079_v57 = vmax.f32 %v3078_v45, %v2422_v51  ;;  %v3239_v25 = vmax.f32 %v3238_v46, %v2833_v55  ;;  %v2424_v58 = vpop.f32.mrb[147].mxu1  ;;  %v2835_v59 = vpop.f32.mrb[143].mxu0 }
 0x46f   : > { %v3159_v60 = vmax.f32 %v3158_v54, %v2424_v58  ;;  %v3319_v7 = vmax.f32 %v3318_v52, %v2835_v59 }
 0x473   : > { %v2428_v61 = vpop.f32.mrb[148].mxu1  ;;  %v2839_v62 = vpop.f32.mrb[144].mxu0 }
 0x474   : > { %v3080_v63 = vmax.f32 %v3079_v57, %v2428_v61  ;;  %v3240_v20 = vmax.f32 %v3239_v25, %v2839_v62  ;;  %v2430_v30 = vpop.f32.mrb[149].mxu1  ;;  %v2841_v4 = vpop.f32.mrb[145].mxu0 }
 0x475   : > { %v3160_v50 = vmax.f32 %v3159_v60, %v2430_v30  ;;  %v3320_v24 = vmax.f32 %v3319_v7, %v2841_v4  ;;  %v2432_v53 = vpop.f32.mrb[150].mxu1  ;;  %v2843_v9 = vpop.f32.mrb[146].mxu0 }
 0x476   : > { %v3081_v10 = vmax.f32 %v3080_v63, %v2432_v53  ;;  %v3241_v11 = vmax.f32 %v3240_v20, %v2843_v9  ;;  %v2434_v12 = vpop.f32.mrb[151].mxu1  ;;  %v2845_v13 = vpop.f32.mrb[147].mxu0 }
 0x477   : > { %v3161_v14 = vmax.f32 %v3160_v50, %v2434_v12  ;;  %v3321_v15 = vmax.f32 %v3320_v24, %v2845_v13 }
 0x47b   : > { %v2438_v36 = vpop.f32.mrb[152].mxu1  ;;  %v2849_v37 = vpop.f32.mrb[148].mxu0 }
 0x47c   : > { %v3082_v19 = vmax.f32 %v3081_v10, %v2438_v36  ;;  %v3242_v3 = vmax.f32 %v3241_v11, %v2849_v37  ;;  %v2440_v22 = vpop.f32.mrb[153].mxu1  ;;  %v2851_v23 = vpop.f32.mrb[149].mxu0 }
 0x47d   : > { %v3162_v26 = vmax.f32 %v3161_v14, %v2440_v22  ;;  %v3322_v27 = vmax.f32 %v3321_v15, %v2851_v23  ;;  %v2442_v28 = vpop.f32.mrb[154].mxu1  ;;  %v2853_v8 = vpop.f32.mrb[150].mxu0 }
 0x47e   : > { %v3083_v29 = vmax.f32 %v3082_v19, %v2442_v28  ;;  %v3243_v31 = vmax.f32 %v3242_v3, %v2853_v8  ;;  %v2444_v6 = vpop.f32.mrb[155].mxu1  ;;  %v2855_v38 = vpop.f32.mrb[151].mxu0 }
 0x47f   : > { %v3163_v35 = vmax.f32 %v3162_v26, %v2444_v6  ;;  %v3323_v0 = vmax.f32 %v3322_v27, %v2855_v38 }
 0x483   : > { %v2448_v42 = vpop.f32.mrb[156].mxu1  ;;  %v2859_v2 = vpop.f32.mrb[152].mxu0 }
 0x484   : > { %v3084_v16 = vmax.f32 %v3083_v29, %v2448_v42  ;;  %v3244_v17 = vmax.f32 %v3243_v31, %v2859_v2  ;;  %v2450_v32 = vpop.f32.mrb[157].mxu1  ;;  %v2861_v34 = vpop.f32.mrb[153].mxu0  ;;  %v510_v42 = vlaneseq }
 0x485   : > { %v3164_v33 = vmax.f32 %v3163_v35, %v2450_v32  ;;  %v3324_v48 = vmax.f32 %v3323_v0, %v2861_v34  ;;  %v2452_v49 = vpop.f32.mrb[158].mxu1  ;;  %v2863_v1 = vpop.f32.mrb[154].mxu0 }
 0x486   : > { %v3085_v56 = vmax.f32 %v3084_v16, %v2452_v49  ;;  %v3245_v5 = vmax.f32 %v3244_v17, %v2863_v1  ;;  %v2454_v39 = vpop.f32.mrb[159].mxu1  ;;  %v2865_v40 = vpop.f32.mrb[155].mxu0  ;;  %vm5079_vm4 = vcmp.lt.s32.totalorder %v510_v42, 512  ;;  %v4283_v16 = vmov -inf  }
 0x487   : > { %v3165_v18 = vmax.f32 %v3164_v33, %v2454_v39  ;;  %v3325_v41 = vmax.f32 %v3324_v48, %v2865_v40  ;;  %514 = vst.msk [vmem:[#allocation2] sm:$0xf] %vm5079_vm4, %v4283_v16 }
 0x48b   : > { %v2458_v43 = vpop.f32.mrb[160].mxu1  ;;  %v2869_v44 = vpop.f32.mrb[156].mxu0 }
 0x48c   : > { %v3086_v45 = vmax.f32 %v3085_v56, %v2458_v43  ;;  %v3246_v46 = vmax.f32 %v3245_v5, %v2869_v44  ;;  %v2460_v47 = vpop.f32.mrb[161].mxu1  ;;  %v2871_v21 = vpop.f32.mrb[157].mxu0 }
 0x48d   : > { %v3166_v54 = vmax.f32 %v3165_v18, %v2460_v47  ;;  %v3326_v52 = vmax.f32 %v3325_v41, %v2871_v21  ;;  %v2462_v51 = vpop.f32.mrb[162].mxu1  ;;  %v2873_v55 = vpop.f32.mrb[158].mxu0 }
 0x48e   : > { %v3087_v57 = vmax.f32 %v3086_v45, %v2462_v51  ;;  %v3247_v25 = vmax.f32 %v3246_v46, %v2873_v55  ;;  %v2464_v58 = vpop.f32.mrb[163].mxu1  ;;  %v2875_v59 = vpop.f32.mrb[159].mxu0 }
 0x48f   : > { %v3167_v60 = vmax.f32 %v3166_v54, %v2464_v58  ;;  %v3327_v7 = vmax.f32 %v3326_v52, %v2875_v59 }
 0x493   : > { %v2468_v61 = vpop.f32.mrb[164].mxu1  ;;  %v2879_v62 = vpop.f32.mrb[160].mxu0 }
 0x494   : > { %v3088_v63 = vmax.f32 %v3087_v57, %v2468_v61  ;;  %v3248_v20 = vmax.f32 %v3247_v25, %v2879_v62  ;;  %v2470_v30 = vpop.f32.mrb[165].mxu1  ;;  %v2881_v4 = vpop.f32.mrb[161].mxu0 }
 0x495   : > { %v3168_v50 = vmax.f32 %v3167_v60, %v2470_v30  ;;  %v3328_v24 = vmax.f32 %v3327_v7, %v2881_v4  ;;  %v2472_v53 = vpop.f32.mrb[166].mxu1  ;;  %v2883_v9 = vpop.f32.mrb[162].mxu0 }
 0x496   : > { %v3089_v10 = vmax.f32 %v3088_v63, %v2472_v53  ;;  %v3249_v11 = vmax.f32 %v3248_v20, %v2883_v9  ;;  %v2474_v12 = vpop.f32.mrb[167].mxu1  ;;  %v2885_v13 = vpop.f32.mrb[163].mxu0 }
 0x497   : > { %v3169_v14 = vmax.f32 %v3168_v50, %v2474_v12  ;;  %v3329_v15 = vmax.f32 %v3328_v24, %v2885_v13 }
 0x49b   : > { %v2478_v36 = vpop.f32.mrb[168].mxu1  ;;  %v2889_v37 = vpop.f32.mrb[164].mxu0 }
 0x49c   : > { %v3090_v19 = vmax.f32 %v3089_v10, %v2478_v36  ;;  %v3250_v3 = vmax.f32 %v3249_v11, %v2889_v37  ;;  %v2480_v22 = vpop.f32.mrb[169].mxu1  ;;  %v2891_v23 = vpop.f32.mrb[165].mxu0 }
 0x49d   : > { %v3170_v26 = vmax.f32 %v3169_v14, %v2480_v22  ;;  %v3330_v27 = vmax.f32 %v3329_v15, %v2891_v23  ;;  %v2482_v28 = vpop.f32.mrb[170].mxu1  ;;  %v2893_v8 = vpop.f32.mrb[166].mxu0 }
 0x49e   : > { %v3091_v29 = vmax.f32 %v3090_v19, %v2482_v28  ;;  %v3251_v31 = vmax.f32 %v3250_v3, %v2893_v8  ;;  %v2484_v6 = vpop.f32.mrb[171].mxu1  ;;  %v2895_v38 = vpop.f32.mrb[167].mxu0 }
 0x49f   : > { %v3171_v35 = vmax.f32 %v3170_v26, %v2484_v6  ;;  %v3331_v0 = vmax.f32 %v3330_v27, %v2895_v38 }
 0x4a3   : > { %v2488_v17 = vpop.f32.mrb[172].mxu1  ;;  %v2899_v32 = vpop.f32.mrb[168].mxu0 }
 0x4a4   : > { %v3092_v34 = vmax.f32 %v3091_v29, %v2488_v17  ;;  %v3252_v33 = vmax.f32 %v3251_v31, %v2899_v32  ;;  %v2490_v48 = vpop.f32.mrb[173].mxu1  ;;  %v2901_v49 = vpop.f32.mrb[169].mxu0 }
 0x4a5   : > { %v3172_v1 = vmax.f32 %v3171_v35, %v2490_v48  ;;  %v3332_v56 = vmax.f32 %v3331_v0, %v2901_v49  ;;  %v2492_v5 = vpop.f32.mrb[174].mxu1  ;;  %v2903_v39 = vpop.f32.mrb[170].mxu0 }
 0x4a6   : > { %v3093_v40 = vmax.f32 %v3092_v34, %v2492_v5  ;;  %v3253_v18 = vmax.f32 %v3252_v33, %v2903_v39  ;;  %v2494_v41 = vpop.f32.mrb[175].mxu1  ;;  %v2905_v43 = vpop.f32.mrb[171].mxu0 }
 0x4a7   : > { %v3173_v44 = vmax.f32 %v3172_v1, %v2494_v41  ;;  %v3333_v45 = vmax.f32 %v3332_v56, %v2905_v43 }
 0x4ab   : > { %v2498_v46 = vpop.f32.mrb[176].mxu1  ;;  %v2909_v47 = vpop.f32.mrb[172].mxu0 }
 0x4ac   : > { %v3094_v21 = vmax.f32 %v3093_v40, %v2498_v46  ;;  %v3254_v54 = vmax.f32 %v3253_v18, %v2909_v47  ;;  %v2500_v52 = vpop.f32.mrb[177].mxu1  ;;  %v2911_v51 = vpop.f32.mrb[173].mxu0 }
 0x4ad   : > { %v3174_v55 = vmax.f32 %v3173_v44, %v2500_v52  ;;  %v3334_v57 = vmax.f32 %v3333_v45, %v2911_v51  ;;  %v2502_v25 = vpop.f32.mrb[178].mxu1  ;;  %v2913_v58 = vpop.f32.mrb[174].mxu0 }
 0x4ae   : > { %v3095_v59 = vmax.f32 %v3094_v21, %v2502_v25  ;;  %v3255_v60 = vmax.f32 %v3254_v54, %v2913_v58  ;;  %v2504_v7 = vpop.f32.mrb[179].mxu1  ;;  %v2915_v61 = vpop.f32.mrb[175].mxu0 }
 0x4af   : > { %v3175_v62 = vmax.f32 %v3174_v55, %v2504_v7  ;;  %v3335_v63 = vmax.f32 %v3334_v57, %v2915_v61 }
 0x4b3   : > { %v2508_v20 = vpop.f32.mrb[180].mxu1  ;;  %v2919_v30 = vpop.f32.mrb[176].mxu0 }
 0x4b4   : > { %v3096_v4 = vmax.f32 %v3095_v59, %v2508_v20  ;;  %v3256_v50 = vmax.f32 %v3255_v60, %v2919_v30  ;;  %v2510_v24 = vpop.f32.mrb[181].mxu1  ;;  %v2921_v53 = vpop.f32.mrb[177].mxu0 }
 0x4b5   : > { %v3176_v9 = vmax.f32 %v3175_v62, %v2510_v24  ;;  %v3336_v10 = vmax.f32 %v3335_v63, %v2921_v53  ;;  %v2512_v11 = vpop.f32.mrb[182].mxu1  ;;  %v2923_v12 = vpop.f32.mrb[178].mxu0 }
 0x4b6   : > { %v3097_v13 = vmax.f32 %v3096_v4, %v2512_v11  ;;  %v3257_v14 = vmax.f32 %v3256_v50, %v2923_v12  ;;  %v2514_v15 = vpop.f32.mrb[183].mxu1  ;;  %v2925_v36 = vpop.f32.mrb[179].mxu0 }
 0x4b7   : > { %v3177_v37 = vmax.f32 %v3176_v9, %v2514_v15  ;;  %v3337_v19 = vmax.f32 %v3336_v10, %v2925_v36 }
 0x4bb   : > { %v2518_v3 = vpop.f32.mrb[184].mxu1  ;;  %v2929_v22 = vpop.f32.mrb[180].mxu0 }
 0x4bc   : > { %v3098_v23 = vmax.f32 %v3097_v13, %v2518_v3  ;;  %v3258_v26 = vmax.f32 %v3257_v14, %v2929_v22  ;;  %v2520_v27 = vpop.f32.mrb[185].mxu1  ;;  %v2931_v28 = vpop.f32.mrb[181].mxu0 }
 0x4bd   : > { %v3178_v8 = vmax.f32 %v3177_v37, %v2520_v27  ;;  %v3338_v29 = vmax.f32 %v3337_v19, %v2931_v28  ;;  %v2522_v31 = vpop.f32.mrb[186].mxu1  ;;  %v2933_v6 = vpop.f32.mrb[182].mxu0 }
 0x4be   : > { %v3099_v38 = vmax.f32 %v3098_v23, %v2522_v31  ;;  %v3259_v35 = vmax.f32 %v3258_v26, %v2933_v6  ;;  %v2524_v0 = vpop.f32.mrb[187].mxu1  ;;  %v2935_v16 = vpop.f32.mrb[183].mxu0 }
 0x4bf   : > { %v3179_v17 = vmax.f32 %v3178_v8, %v2524_v0  ;;  %v3339_v32 = vmax.f32 %v3338_v29, %v2935_v16 }
 0x4c3   : > { %v2528_v34 = vpop.f32.mrb[188].mxu1  ;;  %v2939_v33 = vpop.f32.mrb[184].mxu0 }
 0x4c4   : > { %v3100_v48 = vmax.f32 %v3099_v38, %v2528_v34  ;;  %v3260_v49 = vmax.f32 %v3259_v35, %v2939_v33  ;;  %v2530_v1 = vpop.f32.mrb[189].mxu1  ;;  %v2941_v56 = vpop.f32.mrb[185].mxu0 }
 0x4c5   : > { %v3180_v5 = vmax.f32 %v3179_v17, %v2530_v1  ;;  %v3340_v39 = vmax.f32 %v3339_v32, %v2941_v56  ;;  %v2532_v40 = vpop.f32.mrb[190].mxu1  ;;  %v2943_v18 = vpop.f32.mrb[186].mxu0 }
 0x4c6   : > { %v3101_v41 = vmax.f32 %v3100_v48, %v2532_v40  ;;  %v3261_v43 = vmax.f32 %v3260_v49, %v2943_v18  ;;  %v2534_v44 = vpop.f32.mrb[191].mxu1  ;;  %v2945_v45 = vpop.f32.mrb[187].mxu0 }
 0x4c7   : > { %v3181_v46 = vmax.f32 %v3180_v5, %v2534_v44  ;;  %v3341_v47 = vmax.f32 %v3340_v39, %v2945_v45 }
 0x4cb   : > { %v2538_v21 = vpop.f32.mrb[192].mxu1  ;;  %v2949_v54 = vpop.f32.mrb[188].mxu0 }
 0x4cc   : > { %v3102_v52 = vmax.f32 %v3101_v41, %v2538_v21  ;;  %v3262_v51 = vmax.f32 %v3261_v43, %v2949_v54  ;;  %v2540_v55 = vpop.f32.mrb[193].mxu1  ;;  %v2951_v57 = vpop.f32.mrb[189].mxu0 }
 0x4cd   : > { %v3182_v25 = vmax.f32 %v3181_v46, %v2540_v55  ;;  %v3342_v58 = vmax.f32 %v3341_v47, %v2951_v57  ;;  %v2542_v59 = vpop.f32.mrb[194].mxu1  ;;  %v2953_v60 = vpop.f32.mrb[190].mxu0 }
 0x4ce   : > { %v3103_v7 = vmax.f32 %v3102_v52, %v2542_v59  ;;  %v3263_v61 = vmax.f32 %v3262_v51, %v2953_v60  ;;  %v2544_v62 = vpop.f32.mrb[195].mxu1  ;;  %v2955_v63 = vpop.f32.mrb[191].mxu0 }
 0x4cf   : > { %v3183_v20 = vmax.f32 %v3182_v25, %v2544_v62  ;;  %v3343_v30 = vmax.f32 %v3342_v58, %v2955_v63 }
 0x4d3   : > { %v2548_v4 = vpop.f32.mrb[196].mxu1  ;;  %v2959_v50 = vpop.f32.mrb[192].mxu0 }
 0x4d4   : > { %v3104_v24 = vmax.f32 %v3103_v7, %v2548_v4  ;;  %v3264_v53 = vmax.f32 %v3263_v61, %v2959_v50  ;;  %v2550_v9 = vpop.f32.mrb[197].mxu1  ;;  %v2961_v10 = vpop.f32.mrb[193].mxu0 }
 0x4d5   : > { %v3184_v11 = vmax.f32 %v3183_v20, %v2550_v9  ;;  %v3344_v12 = vmax.f32 %v3343_v30, %v2961_v10  ;;  %v2552_v13 = vpop.f32.mrb[198].mxu1  ;;  %v2963_v14 = vpop.f32.mrb[194].mxu0 }
 0x4d6   : > { %v3105_v15 = vmax.f32 %v3104_v24, %v2552_v13  ;;  %v3265_v36 = vmax.f32 %v3264_v53, %v2963_v14  ;;  %v2554_v37 = vpop.f32.mrb[199].mxu1  ;;  %v2965_v19 = vpop.f32.mrb[195].mxu0 }
 0x4d7   : > { %v3185_v3 = vmax.f32 %v3184_v11, %v2554_v37  ;;  %v3345_v22 = vmax.f32 %v3344_v12, %v2965_v19 }
 0x4db   : > { %v2558_v23 = vpop.f32.mrb[200].mxu1  ;;  %v2969_v26 = vpop.f32.mrb[196].mxu0 }
 0x4dc   : > { %v3106_v27 = vmax.f32 %v3105_v15, %v2558_v23  ;;  %v3266_v28 = vmax.f32 %v3265_v36, %v2969_v26  ;;  %v2560_v8 = vpop.f32.mrb[201].mxu1  ;;  %v2971_v29 = vpop.f32.mrb[197].mxu0 }
 0x4dd   : > { %v3186_v31 = vmax.f32 %v3185_v3, %v2560_v8  ;;  %v3346_v6 = vmax.f32 %v3345_v22, %v2971_v29  ;;  %v2562_v38 = vpop.f32.mrb[202].mxu1  ;;  %v2973_v35 = vpop.f32.mrb[198].mxu0 }
 0x4de   : > { %v3107_v0 = vmax.f32 %v3106_v27, %v2562_v38  ;;  %v3267_v16 = vmax.f32 %v3266_v28, %v2973_v35  ;;  %v2564_v17 = vpop.f32.mrb[203].mxu1  ;;  %v2975_v32 = vpop.f32.mrb[199].mxu0 }
 0x4df   : > { %v3187_v34 = vmax.f32 %v3186_v31, %v2564_v17  ;;  %v3347_v33 = vmax.f32 %v3346_v6, %v2975_v32 }
 0x4e3   : > { %v2568_v48 = vpop.f32.mrb[204].mxu1  ;;  %v2979_v49 = vpop.f32.mrb[200].mxu0 }
 0x4e4   : > { %v3108_v1 = vmax.f32 %v3107_v0, %v2568_v48  ;;  %v3268_v56 = vmax.f32 %v3267_v16, %v2979_v49  ;;  %v2570_v5 = vpop.f32.mrb[205].mxu1  ;;  %v2981_v39 = vpop.f32.mrb[201].mxu0 }
 0x4e5   : > { %v3188_v40 = vmax.f32 %v3187_v34, %v2570_v5  ;;  %v3348_v18 = vmax.f32 %v3347_v33, %v2981_v39  ;;  %v2572_v41 = vpop.f32.mrb[206].mxu1  ;;  %v2983_v43 = vpop.f32.mrb[202].mxu0 }
 0x4e6   : > { %v3109_v44 = vmax.f32 %v3108_v1, %v2572_v41  ;;  %v3269_v45 = vmax.f32 %v3268_v56, %v2983_v43  ;;  %v2574_v46 = vpop.f32.mrb[207].mxu1  ;;  %v2985_v47 = vpop.f32.mrb[203].mxu0 }
 0x4e7   : > { %v3189_v21 = vmax.f32 %v3188_v40, %v2574_v46  ;;  %v3349_v54 = vmax.f32 %v3348_v18, %v2985_v47 }
 0x4eb   : > { %v2578_v52 = vpop.f32.mrb[208].mxu1  ;;  %v2989_v51 = vpop.f32.mrb[204].mxu0 }
 0x4ec   : > { %v3110_v55 = vmax.f32 %v3109_v44, %v2578_v52  ;;  %v3270_v57 = vmax.f32 %v3269_v45, %v2989_v51  ;;  %v2580_v25 = vpop.f32.mrb[209].mxu1  ;;  %v2991_v58 = vpop.f32.mrb[205].mxu0 }
 0x4ed   : > { %v3190_v59 = vmax.f32 %v3189_v21, %v2580_v25  ;;  %v3350_v60 = vmax.f32 %v3349_v54, %v2991_v58  ;;  %v2582_v7 = vpop.f32.mrb[210].mxu1  ;;  %v2993_v61 = vpop.f32.mrb[206].mxu0 }
 0x4ee   : > { %v3111_v62 = vmax.f32 %v3110_v55, %v2582_v7  ;;  %v3271_v63 = vmax.f32 %v3270_v57, %v2993_v61  ;;  %v2584_v20 = vpop.f32.mrb[211].mxu1  ;;  %v2995_v30 = vpop.f32.mrb[207].mxu0 }
 0x4ef   : > { %v3191_v4 = vmax.f32 %v3190_v59, %v2584_v20  ;;  %v3351_v50 = vmax.f32 %v3350_v60, %v2995_v30 }
 0x4f3   : > { %v2588_v24 = vpop.f32.mrb[212].mxu1  ;;  %v2999_v53 = vpop.f32.mrb[208].mxu0 }
 0x4f4   : > { %v3112_v9 = vmax.f32 %v3111_v62, %v2588_v24  ;;  %v3272_v10 = vmax.f32 %v3271_v63, %v2999_v53  ;;  %v2590_v11 = vpop.f32.mrb[213].mxu1  ;;  %v3001_v12 = vpop.f32.mrb[209].mxu0 }
 0x4f5   : > { %v3192_v13 = vmax.f32 %v3191_v4, %v2590_v11  ;;  %v3352_v14 = vmax.f32 %v3351_v50, %v3001_v12  ;;  %v2592_v15 = vpop.f32.mrb[214].mxu1  ;;  %v3003_v36 = vpop.f32.mrb[210].mxu0 }
 0x4f6   : > { %v3113_v37 = vmax.f32 %v3112_v9, %v2592_v15  ;;  %v3273_v19 = vmax.f32 %v3272_v10, %v3003_v36  ;;  %v2594_v3 = vpop.f32.mrb[215].mxu1  ;;  %v3005_v22 = vpop.f32.mrb[211].mxu0 }
 0x4f7   : > { %v3193_v23 = vmax.f32 %v3192_v13, %v2594_v3  ;;  %v3353_v26 = vmax.f32 %v3352_v14, %v3005_v22 }
 0x4fb   : > { %v2598_v27 = vpop.f32.mrb[216].mxu1  ;;  %v3009_v28 = vpop.f32.mrb[212].mxu0 }
 0x4fc   : > { %v3114_v8 = vmax.f32 %v3113_v37, %v2598_v27  ;;  %v3274_v29 = vmax.f32 %v3273_v19, %v3009_v28  ;;  %v2600_v31 = vpop.f32.mrb[217].mxu1  ;;  %v3011_v6 = vpop.f32.mrb[213].mxu0 }
 0x4fd   : > { %v3194_v38 = vmax.f32 %v3193_v23, %v2600_v31  ;;  %v3354_v35 = vmax.f32 %v3353_v26, %v3011_v6  ;;  %v2602_v0 = vpop.f32.mrb[218].mxu1  ;;  %v3013_v16 = vpop.f32.mrb[214].mxu0  ;;  %v4284_v6 = vmov 1966171168  }
 0x4fe   : > { %v3115_v17 = vmax.f32 %v3114_v8, %v2602_v0  ;;  %v3275_v32 = vmax.f32 %v3274_v29, %v3013_v16  ;;  %v2604_v34 = vpop.f32.mrb[219].mxu1  ;;  %v3015_v33 = vpop.f32.mrb[215].mxu0 }
 0x4ff   : > { %v3195_v48 = vmax.f32 %v3194_v38, %v2604_v34  ;;  %v3355_v49 = vmax.f32 %v3354_v35, %v3015_v33  ;;  %v3374_v38 = vunpack.c.l.s4 %v4284_v6 }
 0x503   : > { %v2608_v1 = vpop.f32.mrb[220].mxu1  ;;  %v3019_v56 = vpop.f32.mrb[216].mxu0 }
 0x504   : > { %v3116_v5 = vmax.f32 %v3115_v17, %v2608_v1  ;;  %v3276_v39 = vmax.f32 %v3275_v32, %v3019_v56  ;;  %v2610_v40 = vpop.f32.mrb[221].mxu1  ;;  %v3021_v18 = vpop.f32.mrb[217].mxu0  ;;  %v3377_v1 = vshrl.u32 %v510_v42, 7  ;;  %v3046_v42 = vld [vmem:[#allocation2] sm:$0xf] }
 0x505   : > { %v3196_v41 = vmax.f32 %v3195_v48, %v2610_v40  ;;  %v3356_v43 = vmax.f32 %v3355_v49, %v3021_v18  ;;  %v2612_v44 = vpop.f32.mrb[222].mxu1  ;;  %v3023_v45 = vpop.f32.mrb[218].mxu0  ;;  %v3375_v49 = vunpack.c.0.s8 %v3374_v38 }
 0x506   : > { %v3117_v46 = vmax.f32 %v3116_v5, %v2612_v44  ;;  %v3277_v47 = vmax.f32 %v3276_v39, %v3023_v45  ;;  %v2614_v21 = vpop.f32.mrb[223].mxu1  ;;  %v3025_v54 = vpop.f32.mrb[219].mxu0 }
 0x507   : > { %v3197_v52 = vmax.f32 %v3196_v41, %v2614_v21  ;;  %v3357_v51 = vmax.f32 %v3356_v43, %v3025_v54  ;;  %v3378_v45 = vsub.s32 %v3375_v49, %v3377_v1 }
 0x50b   : > { %v2618_v55 = vpop.f32.mrb[224].mxu1  ;;  %v3029_v57 = vpop.f32.mrb[220].mxu0 }
 0x50c   : > { %v3118_v25 = vmax.f32 %v3117_v46, %v2618_v55  ;;  %v3278_v58 = vmax.f32 %v3277_v47, %v3029_v57  ;;  %v2620_v59 = vpop.f32.mrb[225].mxu1  ;;  %v3031_v60 = vpop.f32.mrb[221].mxu0 }
 0x50d   : > { %v3198_v7 = vmax.f32 %v3197_v52, %v2620_v59  ;;  %v3358_v61 = vmax.f32 %v3357_v51, %v3031_v60  ;;  %v2622_v62 = vpop.f32.mrb[226].mxu1  ;;  %v3033_v63 = vpop.f32.mrb[222].mxu0 }
 0x50e   : > { %v3119_v20 = vmax.f32 %v3118_v25, %v2622_v62  ;;  %v3279_v30 = vmax.f32 %v3278_v58, %v3033_v63  ;;  %v2624_v4 = vpop.f32.mrb[227].mxu1  ;;  %v3035_v50 = vpop.f32.mrb[223].mxu0  ;;  %v3406_v25 = vld [vmem:[%s4539_s15] sm:$0xf] }
 0x50f   : > { %v3199_v24 = vmax.f32 %v3198_v7, %v2624_v4  ;;  %v3359_v53 = vmax.f32 %v3358_v61, %v3035_v50 }
 0x513   : > { %v2628_v9 = vpop.f32.mrb[228].mxu1  ;;  %v3039_v10 = vpop.f32.mrb[224].mxu0 }
 0x514   : > { %v3120_v11 = vmax.f32 %v3119_v20, %v2628_v9  ;;  %v3280_v12 = vmax.f32 %v3279_v30, %v3039_v10  ;;  %v2630_v13 = vpop.f32.mrb[229].mxu1  ;;  %v3041_v14 = vpop.f32.mrb[225].mxu0 }
 0x515   : > { %v3200_v15 = vmax.f32 %v3199_v24, %v2630_v13  ;;  %v3360_v36 = vmax.f32 %v3359_v53, %v3041_v14  ;;  %v2632_v37 = vpop.f32.mrb[230].mxu1  ;;  %v3043_v19 = vpop.f32.mrb[226].mxu0 }
 0x516   : > { %v3121_v3 = vrot.slane %v3120_v11, 4  ;;  %v3281_v22 = vrot.slane %v3280_v12, 4  ;;  %v2633_v23 = vpop.f32.mrb[231].mxu1  ;;  %v3044_v26 = vpop.f32.mrb[227].mxu0 }
 0x517   : > { %v3201_v27 = vrot.slane %v3200_v15, 4  ;;  %v3361_v28 = vrot.slane %v3360_v36, 4 }
 0x518   : > { %v3122_v8 = vmax.f32 %v3120_v11, %v3121_v3  ;;  %v3282_v29 = vmax.f32 %v3280_v12, %v3281_v22 }
 0x519   : > { %v3202_v31 = vmax.f32 %v3200_v15, %v3201_v27  ;;  %v3362_v35 = vmax.f32 %v3360_v36, %v3361_v28 }
 0x51a   : > { %v3123_v0 = vrot.slane %v3122_v8, 2  ;;  %v3283_v16 = vrot.slane %v3282_v29, 2 }
 0x51b   : > { %v3203_v17 = vrot.slane %v3202_v31, 2  ;;  %v3363_v32 = vrot.slane %v3362_v35, 2 }
 0x51c   : > { %v3124_v34 = vmax.f32 %v3122_v8, %v3123_v0  ;;  %v3284_v33 = vmax.f32 %v3282_v29, %v3283_v16 }
 0x51d   : > { %v3204_v48 = vmax.f32 %v3202_v31, %v3203_v17  ;;  %v3364_v56 = vmax.f32 %v3362_v35, %v3363_v32 }
 0x51e   : > { %v3125_v5 = vrot.slane %v3124_v34, 1  ;;  %v3285_v39 = vrot.slane %v3284_v33, 1 }
 0x51f   : > { %v3205_v40 = vrot.slane %v3204_v48, 1  ;;  %v3365_v18 = vrot.slane %v3364_v56, 1 }
 0x520   : > { %v3126_v41 = vmax.f32 %v3124_v34, %v3125_v5  ;;  %v3286_v43 = vmax.f32 %v3284_v33, %v3285_v39 }
 0x521   : > { %v3206_v44 = vmax.f32 %v3204_v48, %v3205_v40  ;;  %v3366_v46 = vmax.f32 %v3364_v56, %v3365_v18 }
 0x523   : > { %v3371_v47 = vcombine.low %v3126_v41, %v3206_v44  ;;  %v3372_v21 = vcombine.low %v3286_v43, %v3366_v46 }
 0x525   : > { %v3379_v54 = vrot.slane %v3371_v47, %v3378_v45  ;;  %v3386_v52 = vrot.slane %v3372_v21, %v3378_v45 }
 0x527   : > { %v3387_v51 = vcombine.low %v3379_v54, %v3386_v52 }
 0x529   : > { %v3394_v55 = vrot.slane %v3387_v51, %v3378_v45 }
 0x52b   : > { %v3396_v57 = vmax.f32 %v3046_v42, %v3394_v55 }
 0x52d   : > { %3401 = vst.msk [vmem:[#allocation2] sm:$0xf] %vm5079_vm4, %v3396_v57 }
 0x534   : > { %v3405_v58 = vld [vmem:[#allocation2] sm:$0xf] }
 0x535   : > { %v3407_v59 = vadd.f32 %v3406_v25, %v3405_v58 }
 0x537   : > { %v3408_v60 = vmax.f32 %v3407_v59, 0.0 }
 0x539   : > { %3409 = vst.msk [vmem:[%s503_s13] sm:$0xf] %vm5079_vm4, %v3408_v60 }
 0x53a PF: > { %s22_s12 = sadd.s32 1, %s4276_s12   ;;  %s5155_s9 = sld [smem:[#allocation10_spill]] }
 0x53b   : > { %p19_p6 = scmp.ge.s32.totalorder %s22_s12, 6   ;;  %s5156_s15 = sld [smem:[#allocation11_spill]] }
 0x53c   : > { %s5157_s11 = sld [smem:[#allocation12_spill]]  ;;  %s5158_s27 = smov %s4252_s28 }
 0x53d   : > { %s5159_s28 = smov %s4256_s29  ;;  %s5160_s29 = smov %s4388_s19 }
 0x53e   : > { %s5161_s30 = smov %s4268_s10  ;;  %21 = sbr.rel (!%p19_p6) target bundleno = 9 (0x9), region = 139 }
 0x541   : > { %s5162_s10 = smov %s5156_s15 }
 0x545   :  { %3438 = vsyncpa [#allocation4], 1 }
 0x546   :  { %3440 = vsyncpa [#allocation4 + $0x1], 1 }
 0x547   :  { %3441 = vsyncpa [#allocation7], 1 }
 0x548   :  { %3443 = vsyncpa [#allocation7 + $0x1], 1 }

// kernel: pointnet_forward.6
= control target key start
LH: loop header
LB: loop body
LE: loop exit
PB: predicated region body
PF: predicated region fallthrough
CT: control target
= control target key end

     0   :  { %s4199_s27 = smov 0   ;;  %s4201_s28 = smov 0   ;;  %s4910_s0 = inlined_call_operand.vmem [shape: bf16[2,600,8], index: 0, kind: input, shape index: {}]   ;;  %s4911_s1 = inlined_call_operand.vmem [shape: f32[2,8,8], index: 1, kind: input, shape index: {}]   ;;  %s4912_s2 = inlined_call_operand.vmem [shape: f32[8,64], index: 2, kind: input, shape index: {}]   ;;  %s4913_s3 = inlined_call_operand.vmem [shape: f32[1,64], index: 3, kind: input, shape index: {}]   ;;  %s4914_s4 = inlined_call_operand.vmem [shape: bf16[64,128], index: 4, kind: input, shape index: {}]   ;;  %s4915_s5 = inlined_call_operand.vmem [shape: f32[1,128], index: 5, kind: input, shape index: {}]   ;;  %s4916_s6 = inlined_call_operand.vmem [shape: bf16[128,1024], index: 6, kind: input, shape index: {}]   ;;  %s4917_s7 = inlined_call_operand.vmem [shape: f32[1,1024], index: 7, kind: input, shape index: {}]   ;;  %s4918_s8 = inlined_call_operand.vmem [shape: f32[2,1,1024], index: 8, kind: output, shape index: {}]  }
   0x1   :  { %s4203_s29 = smov 0   ;;  %s4205_s30 = smov 0  }
   0x2   :  { %s4207_s9 = smov 0   ;;  %s4209_s10 = smov 0  }
   0x3   :  { %s4211_s11 = smov 0  }
   0x4 LB: > { %s33_s12 = sadd.s32 1, %s4139_s9  ;;  %s37_s13 = sadd.s32 1, %s4143_s10  ;;  %s4147_s11 = sphi %s4211_s11, %s18_s11   ;;  %s4143_s10 = sphi %s4209_s10, %s4926_s10   ;;  %s4139_s9 = sphi %s4207_s9, %s4925_s9   ;;  %s4135_s30 = sphi %s4205_s30, %s4924_s30   ;;  %s4131_s29 = sphi %s4203_s29, %s4923_s29   ;;  %s4127_s28 = sphi %s4201_s28, %s4922_s28   ;;  %s4123_s27 = sphi %s4199_s27, %s4921_s27  }
   0x5   : > { %p35_p0 = scmp.ge.s32.totalorder %s33_s12, 2  ;;  %s182_s14 = sadd.s32 1, %s4127_s28 }
   0x6   : > { %p189_p1 = scmp.ne.s32.totalorder %s4127_s28, %s4123_s27  ;;  %p190_p2 = scmp.eq.s32.totalorder %s4147_s11, 0 }
   0x7   : > { %s4928_s12 = smov (%p35_p0, %s33_s12), 0  ;;  %s4930_s13 = smov (!%p35_p0, %s37_s13), %s4143_s10 }
   0x8   : > { %s179_s15 = ssub.s32 %s4139_s9, %s4928_s12  ;;  %p191_p3 = por %p190_p2, %p189_p1 }
   0x9   : > { %p39_p4 = scmp.ge.s32.totalorder %s4930_s13, 2  ;;  %p180_p5 = scmp.eq.s32.totalorder %s179_s15, 0 }
   0xa   : > { %p3522_p6 = scmp.ge.s32.totalorder %s4147_s11, 4 }
   0xb   : > { %s4932_s13 = smov (%p39_p4, %s4930_s13), 0 }
   0xc   : > { %s4248_s16 = scalar_select %p180_p5, %s4127_s28, %s182_s14  }
   0xd   : > { %281 = sbr.rel (%p3522_p6) target bundleno = 40 (0x28), region = 32 }
  0x14   : > { %304 = sbr.rel (!%p191_p3) target bundleno = 40 (0x28), region = 44  ;;  %s306_s17 = sand.u32 (%p191_p3), 1, %s4127_s28  }
  0x15   : > { %s3688_s18 = sshll.u32 (%p191_p3), %s4139_s9, 4  ;;  %s3523_s19 = sshll.u32 (%p191_p3), %s306_s17, 8 }
  0x16   : > { %s4256_s22 = scalar_lea.vmem (%p191_p3), %s4916_s6, %s3688_s18  ;;  %s4261_s23 = scalar_lea.vmem (%p191_p3), [#allocation3], %s3523_s19 }
  0x17   : > { %v324_v0 = vld [vmem:[%s4256_s22] sm:$0xff] (%p191_p3)  ;;  %v326_v1 = vld [vmem:[%s4256_s22 + $0x8] sm:$0xff] (%p191_p3) }
  0x18   : > { %v328_v2 = vld [vmem:[%s4256_s22 + $0x20] sm:$0xff] (%p191_p3)  ;;  %325 = vst [vmem:[%s4261_s23] sm:$0xff] (%p191_p3), %v324_v0  ;;  %327 = vst [vmem:[%s4261_s23 + $0x8] sm:$0xff] (%p191_p3), %v326_v1  ;;  %v330_v3 = vld [vmem:[%s4256_s22 + $0x28] sm:$0xff] (%p191_p3) }
  0x19   : > { %329 = vst [vmem:[%s4261_s23 + $0x10] sm:$0xff] (%p191_p3), %v328_v2  ;;  %v332_v4 = vld [vmem:[%s4256_s22 + $0x40] sm:$0xff] (%p191_p3)  ;;  %v334_v5 = vld [vmem:[%s4256_s22 + $0x48] sm:$0xff] (%p191_p3)  ;;  %331 = vst [vmem:[%s4261_s23 + $0x18] sm:$0xff] (%p191_p3), %v330_v3 }
  0x1a   : > { %333 = vst [vmem:[%s4261_s23 + $0x20] sm:$0xff] (%p191_p3), %v332_v4  ;;  %335 = vst [vmem:[%s4261_s23 + $0x28] sm:$0xff] (%p191_p3), %v334_v5  ;;  %v336_v6 = vld [vmem:[%s4256_s22 + $0x60] sm:$0xff] (%p191_p3)  ;;  %v338_v7 = vld [vmem:[%s4256_s22 + $0x68] sm:$0xff] (%p191_p3) }
  0x1b   : > { %v340_v8 = vld [vmem:[%s4256_s22 + $0x80] sm:$0xff]  ;;  %337 = vst [vmem:[%s4261_s23 + $0x30] sm:$0xff] %v336_v6  ;;  %339 = vst [vmem:[%s4261_s23 + $0x38] sm:$0xff] %v338_v7  ;;  %v342_v9 = vld [vmem:[%s4256_s22 + $0x88] sm:$0xff] }
  0x1c   : > { %341 = vst [vmem:[%s4261_s23 + $0x40] sm:$0xff] %v340_v8  ;;  %v344_v10 = vld [vmem:[%s4256_s22 + $0xa0] sm:$0xff]  ;;  %v346_v11 = vld [vmem:[%s4256_s22 + $0xa8] sm:$0xff]  ;;  %343 = vst [vmem:[%s4261_s23 + $0x48] sm:$0xff] %v342_v9 }
  0x1d   : > { %345 = vst [vmem:[%s4261_s23 + $0x50] sm:$0xff] %v344_v10  ;;  %347 = vst [vmem:[%s4261_s23 + $0x58] sm:$0xff] %v346_v11  ;;  %v348_v12 = vld [vmem:[%s4256_s22 + $0xc0] sm:$0xff]  ;;  %v350_v13 = vld [vmem:[%s4256_s22 + $0xc8] sm:$0xff] }
  0x1e   : > { %v352_v14 = vld [vmem:[%s4256_s22 + $0xe0] sm:$0xff]  ;;  %349 = vst [vmem:[%s4261_s23 + $0x60] sm:$0xff] %v348_v12  ;;  %351 = vst [vmem:[%s4261_s23 + $0x68] sm:$0xff] %v350_v13  ;;  %v354_v15 = vld [vmem:[%s4256_s22 + $0xe8] sm:$0xff] }
  0x1f   : > { %353 = vst [vmem:[%s4261_s23 + $0x70] sm:$0xff] %v352_v14  ;;  %v356_v16 = vld [vmem:[%s4256_s22 + $0x100] sm:$0xff]  ;;  %v358_v17 = vld [vmem:[%s4256_s22 + $0x108] sm:$0xff]  ;;  %355 = vst [vmem:[%s4261_s23 + $0x78] sm:$0xff] %v354_v15 }
  0x20   : > { %357 = vst [vmem:[%s4261_s23 + $0x80] sm:$0xff] %v356_v16  ;;  %359 = vst [vmem:[%s4261_s23 + $0x88] sm:$0xff] %v358_v17  ;;  %v360_v18 = vld [vmem:[%s4256_s22 + $0x120] sm:$0xff]  ;;  %v362_v19 = vld [vmem:[%s4256_s22 + $0x128] sm:$0xff] }
  0x21   : > { %v364_v20 = vld [vmem:[%s4256_s22 + $0x140] sm:$0xff]  ;;  %361 = vst [vmem:[%s4261_s23 + $0x90] sm:$0xff] %v360_v18  ;;  %363 = vst [vmem:[%s4261_s23 + $0x98] sm:$0xff] %v362_v19  ;;  %v366_v21 = vld [vmem:[%s4256_s22 + $0x148] sm:$0xff] }
  0x22   : > { %365 = vst [vmem:[%s4261_s23 + $0xa0] sm:$0xff] %v364_v20  ;;  %v368_v22 = vld [vmem:[%s4256_s22 + $0x160] sm:$0xff]  ;;  %v370_v23 = vld [vmem:[%s4256_s22 + $0x168] sm:$0xff]  ;;  %367 = vst [vmem:[%s4261_s23 + $0xa8] sm:$0xff] %v366_v21 }
  0x23   : > { %369 = vst [vmem:[%s4261_s23 + $0xb0] sm:$0xff] %v368_v22  ;;  %371 = vst [vmem:[%s4261_s23 + $0xb8] sm:$0xff] %v370_v23  ;;  %v372_v24 = vld [vmem:[%s4256_s22 + $0x180] sm:$0xff]  ;;  %v374_v25 = vld [vmem:[%s4256_s22 + $0x188] sm:$0xff] }
  0x24   : > { %v376_v26 = vld [vmem:[%s4256_s22 + $0x1a0] sm:$0xff]  ;;  %373 = vst [vmem:[%s4261_s23 + $0xc0] sm:$0xff] %v372_v24  ;;  %375 = vst [vmem:[%s4261_s23 + $0xc8] sm:$0xff] %v374_v25  ;;  %v378_v27 = vld [vmem:[%s4256_s22 + $0x1a8] sm:$0xff] }
  0x25   : > { %377 = vst [vmem:[%s4261_s23 + $0xd0] sm:$0xff] %v376_v26  ;;  %v380_v28 = vld [vmem:[%s4256_s22 + $0x1c0] sm:$0xff]  ;;  %v382_v29 = vld [vmem:[%s4256_s22 + $0x1c8] sm:$0xff]  ;;  %379 = vst [vmem:[%s4261_s23 + $0xd8] sm:$0xff] %v378_v27 }
  0x26   : > { %381 = vst [vmem:[%s4261_s23 + $0xe0] sm:$0xff] %v380_v28  ;;  %383 = vst [vmem:[%s4261_s23 + $0xe8] sm:$0xff] %v382_v29  ;;  %v384_v30 = vld [vmem:[%s4256_s22 + $0x1e0] sm:$0xff]  ;;  %v386_v31 = vld [vmem:[%s4256_s22 + $0x1e8] sm:$0xff] }
  0x27   : > { %385 = vst [vmem:[%s4261_s23 + $0xf0] sm:$0xff] %v384_v30  ;;  %387 = vst [vmem:[%s4261_s23 + $0xf8] sm:$0xff] %v386_v31 }
  0x28 PF: > { %p3526_p7 = scmp.ge.s32.totalorder %s4147_s11, 1  ;;  %p400_p8 = scmp.lt.s32.totalorder %s4147_s11, 5 }
  0x2a   : > { %p401_p9 = pnand %p3526_p7, %p400_p8 }
  0x2b   : > { %v500_v32 = vld [vmem:[%s4912_s2] sm:$0xff] (!%p401_p9)  ;;  %p461_p10 = scmp.lt.s32.totalorder (!%p401_p9), %s4135_s30, 1  ;;  %v4149_v33 = vmov (!%p401_p9), 0.0   ;;  %vm4150_vm0 = vmmov (!%p401_p9), 0   ;;  %vm501_vm1 = vcmask (!%p401_p9), 64512   ;;  %vm960_vm2 = vcmask (!%p401_p9), 1043456  }
  0x2c   : > { %404 = sbr.rel (%p401_p9) target bundleno = 1260 (0x4ec), region = 71  ;;  %3772 = vmatprep.subr.mxu1 (!%p401_p9), %v4149_v33  ;;  %3774 = vmatprep.mubr.msk.f32.mxu1 (!%p401_p9), %vm4150_vm0, %v4149_v33  ;;  %v4039_v44 = vld [vmem:[%s4914_s4] sm:$0xff] (!%p401_p9)   ;;  %v4041_v47 = vld [vmem:[%s4914_s4 + $0x8] sm:$0xff] (!%p401_p9)   ;;  %v4042_v1 = vld [vmem:[%s4914_s4 + $0x10] sm:$0xff] (!%p401_p9)   ;;  %s407_s19 = sand.u32 (!%p401_p9), 1, %s4123_s27   ;;  %vm1452_vm3 = vcmask (!%p401_p9), 523264  }
  0x2d   : > { %3773 = vmatpush3.msra.mxu1 (!%p401_p9), %v500_v32  ;;  %3855 = vmatprep.subr.bf16.mxu0 (!%p401_p9), %v4039_v44  ;;  %v4043_v3 = vld [vmem:[%s4914_s4 + $0x18] sm:$0xff] (!%p401_p9)   ;;  %s3527_s20 = sshll.u32 (!%p401_p9), %s407_s19, 8  ;;  %v4453_v30 = vld [vmem:[%s4913_s3] ss:$0 sm:$0xff] (!%p401_p9)  ;;  %s3530_s15 = sshll.u32 (!%p401_p9), %s4131_s29, 2 }
  0x2e   : > { %3856 = vmatpush3.bf16.msra.mxu0 (!%p401_p9), %v4039_v44  ;;  %s4431_s22 = scalar_lea.vmem (!%p401_p9), [#allocation3], %s3527_s20  ;;  %p476_p11 = scmp.lt.s32.totalorder (!%p401_p9), %s3530_s15, 7 }
  0x2f   : > { %3857 = vmatprep.subr.bf16.mxu0 (!%p401_p9), %v4041_v47  ;;  %v4044_v16 = vld [vmem:[%s4431_s22] ss:$16 sps:$4 sm:$0xff] (!%p401_p9)   ;;  %v4046_v17 = vld [vmem:[%s4431_s22 + $0x4] ss:$16 sps:$4 sm:$0xff] (!%p401_p9)   ;;  %v4049_v18 = vld [vmem:[%s4431_s22 + $0xc] ss:$16 sps:$4 sm:$0xff] (!%p401_p9)  }
  0x30   : > { %v4050_v19 = vld [vmem:[%s4431_s22 + $0x20] ss:$16 sps:$4 sm:$0xff] (!%p401_p9)   ;;  %v4052_v20 = vld [vmem:[%s4431_s22 + $0x24] ss:$16 sps:$4 sm:$0xff] (!%p401_p9)   ;;  %v4047_v44 = vld [vmem:[%s4431_s22 + $0x8] ss:$16 sps:$4 sm:$0xff] (!%p401_p9)  }
  0x31   : > { %v4056_v22 = vld [vmem:[%s4431_s22 + $0x40] ss:$16 sps:$4 sm:$0xff] (!%p401_p9)   ;;  %v4058_v23 = vld [vmem:[%s4431_s22 + $0x44] ss:$16 sps:$4 sm:$0xff] (!%p401_p9)  }
  0x32   : > { %3858 = vmatpush3.bf16.msra.mxu0 (!%p401_p9), %v4041_v47  ;;  %v4062_v24 = vld [vmem:[%s4431_s22 + $0x60] ss:$16 sps:$4 sm:$0xff] (!%p401_p9)   ;;  %v4064_v25 = vld [vmem:[%s4431_s22 + $0x64] ss:$16 sps:$4 sm:$0xff] (!%p401_p9)  }
  0x33   : > { %s4934_s30 = smov (!%p461_p10, %s4135_s30), 1  ;;  %3859 = vmatprep.subr.bf16.mxu0 %v4042_v1  ;;  %v4068_v26 = vld [vmem:[%s4431_s22 + $0x80] ss:$16 sps:$4 sm:$0xff]   ;;  %v4070_v27 = vld [vmem:[%s4431_s22 + $0x84] ss:$16 sps:$4 sm:$0xff]   ;;  %s4936_s15 = smov (!%p476_p11, %s3530_s15), 7 }
  0x34   : > { %s3940_s26 = smul.u32 300, %s4934_s30  ;;  %s3529_s14 = sshll.u32 %s4934_s30, 3  ;;  %v4074_v28 = vld [vmem:[%s4431_s22 + $0xa0] ss:$16 sps:$4 sm:$0xff]   ;;  %v4076_v29 = vld [vmem:[%s4431_s22 + $0xa4] ss:$16 sps:$4 sm:$0xff]  }
  0x35   : > { %s473_s18 = scalar_lea.vmem %s4911_s1, %s3529_s14  ;;  %v4080_v47 = vld [vmem:[%s4431_s22 + $0xc0] ss:$16 sps:$4 sm:$0xff]   ;;  %s478_s19 = scalar_lea.vmem %s4917_s7, %s4936_s15 }
  0x36   : > { %s4343_s21 = scalar_lea.vmem %s4910_s0, %s3940_s26  ;;  %v499_v34 = vld [vmem:[%s473_s18] sm:$0xff]  ;;  %3860 = vmatpush3.bf16.msra.mxu0 %v4042_v1  ;;  %s486_s20 = sadd.s32 %s3529_s14, %s4936_s15 }
  0x37   : > { %3775 = vmatmul.mubr.msk.f32.vlgmr.msra.gmra.mrb[0].mxu1 %vm501_vm1, %v499_v34  ;;  %v4002_v35 = vld [vmem:[%s4343_s21] sm:$0xff]   ;;  %v4003_v40 = vld [vmem:[%s4343_s21 + $0x8] sm:$0xff]   ;;  %v4004_v41 = vld [vmem:[%s4343_s21 + $0x10] sm:$0xff]   ;;  %3861 = vmatprep.subr.bf16.mxu0 %v4043_v3  ;;  %s487_s27 = scalar_lea.vmem %s4918_s8, %s486_s20 }
  0x38   : > { %3779 = vmatprep.mubr.msk.bf16.mxu1 %vm501_vm1, %v4002_v35  ;;  %v4005_v42 = vld [vmem:[%s4343_s21 + $0x18] sm:$0xff]   ;;  %v4006_v43 = vld [vmem:[%s4343_s21 + $0x20] sm:$0xff]   ;;  %v4007_v45 = vld [vmem:[%s4343_s21 + $0x28] sm:$0xff]  }
  0x39   : > { %v4008_v46 = vld [vmem:[%s4343_s21 + $0x30] sm:$0xff]   ;;  %v4009_v48 = vld [vmem:[%s4343_s21 + $0x38] sm:$0xff]   ;;  %v4010_v49 = vld [vmem:[%s4343_s21 + $0x40] sm:$0xff]  }
  0x3a   : > { %v4011_v50 = vld [vmem:[%s4343_s21 + $0x48] sm:$0xff]   ;;  %v4012_v51 = vld [vmem:[%s4343_s21 + $0x50] sm:$0xff]   ;;  %v4013_v52 = vld [vmem:[%s4343_s21 + $0x58] sm:$0xff]   ;;  %3862 = vmatpush3.bf16.msra.mxu0 %v4043_v3 }
  0x3b   : > { %v4014_v53 = vld [vmem:[%s4343_s21 + $0x60] sm:$0xff]   ;;  %v4015_v54 = vld [vmem:[%s4343_s21 + $0x68] sm:$0xff]   ;;  %v4016_v55 = vld [vmem:[%s4343_s21 + $0x70] sm:$0xff]   ;;  %2619 = vmatprep.subr.bf16.mxu0 %v4049_v18 }
  0x3c   : > { %v4017_v56 = vld [vmem:[%s4343_s21 + $0x78] sm:$0xff]   ;;  %v4018_v57 = vld [vmem:[%s4343_s21 + $0x80] sm:$0xff]   ;;  %v4019_v58 = vld [vmem:[%s4343_s21 + $0x88] sm:$0xff]  }
  0x3d   : > { %v4020_v59 = vld [vmem:[%s4343_s21 + $0x90] sm:$0xff]   ;;  %v4021_v60 = vld [vmem:[%s4343_s21 + $0x98] sm:$0xff]   ;;  %v4022_v61 = vld [vmem:[%s4343_s21 + $0xa0] sm:$0xff]  }
  0x3e   : > { %v4023_v62 = vld [vmem:[%s4343_s21 + $0xa8] sm:$0xff]   ;;  %v4024_v63 = vld [vmem:[%s4343_s21 + $0xb0] sm:$0xff]   ;;  %v4025_v0 = vld [vmem:[%s4343_s21 + $0xb8] sm:$0xff]  }
  0x3f   : > { %v4026_v2 = vld [vmem:[%s4343_s21 + $0xc0] sm:$0xff]   ;;  %v4027_v4 = vld [vmem:[%s4343_s21 + $0xc8] sm:$0xff]   ;;  %v4028_v5 = vld [vmem:[%s4343_s21 + $0xd0] sm:$0xff]  }
  0x40   : > { %v4029_v6 = vld [vmem:[%s4343_s21 + $0xd8] sm:$0xff]   ;;  %v4030_v7 = vld [vmem:[%s4343_s21 + $0xe0] sm:$0xff]   ;;  %v4031_v8 = vld [vmem:[%s4343_s21 + $0xe8] sm:$0xff]  }
  0x41   : > { %v4032_v9 = vld [vmem:[%s4343_s21 + $0xf0] sm:$0xff]   ;;  %v4033_v10 = vld [vmem:[%s4343_s21 + $0xf8] sm:$0xff]   ;;  %v4034_v11 = vld [vmem:[%s4343_s21 + $0x100] sm:$0xff]  }
  0x42   : > { %v4035_v12 = vld [vmem:[%s4343_s21 + $0x108] sm:$0xff]   ;;  %v4036_v13 = vld [vmem:[%s4343_s21 + $0x110] sm:$0xff]   ;;  %v4037_v14 = vld [vmem:[%s4343_s21 + $0x118] sm:$0xff]  }
  0x43   : > { %v4038_v15 = vld [vmem:[%s4343_s21 + $0x120] sm:$0xff]   ;;  %v4040_v21 = vld [vmem:[%s4343_s21 + $0x128] ss:$0 sps:$4 sm:$0xff]   ;;  %v4071_v18 = vld [vmem:[%s4431_s22 + $0x88] ss:$16 sps:$4 sm:$0xff]  }
 0x10a   : > { %v571_v36 = vpop.f32.mrb[0].mxu1 }
 0x10b   : > { %v575_v37 = vpack.c.bf16 %v571_v36, %v571_v36  ;;  %v3776_v38 = vpop.f32.mrb[1].mxu1 }
 0x10d   : > { %v962_v39 = vsel %vm960_vm2, %v575_v37, 0  ;;  %3939 = vmatprep.subr.msk.bf16.mxu1 %vm960_vm2, %v575_v37 }
 0x10e   : > { %3778 = vmatpush3.bf16.msra.mxu1 %v962_v39 }
 0x10f   : > { %2208 = vmatprep.subr.bf16.mxu1 %v4046_v17 }
 0x111   : > { %3780 = vmatmul.mubr.msk.bf16.vlgmr.msra.gmra.mrb[4].mxu1 %vm501_vm1, %v4003_v40 }
 0x112   : > { %3783 = vmatprep.mubr.msk.bf16.mxu1 %vm501_vm1, %v4004_v41  ;;  %2209 = vmatpush1.bf16.msra.mxu1 %v4044_v16 }
 0x113   : > { %2210 = vmatprep.subr.bf16.mxu1 %v4052_v20 }
 0x116   : > { %2211 = vmatpush1.bf16.msra.mxu1 %v4050_v19 }
 0x117   : > { %2212 = vmatprep.subr.bf16.mxu1 %v4058_v23 }
 0x119   : > { %3784 = vmatmul.mubr.msk.bf16.gmra.mrb[8].mxu1 %vm501_vm1, %v4005_v42 }
 0x11a   : > { %3787 = vmatprep.mubr.msk.bf16.mxu1 %vm501_vm1, %v4006_v43  ;;  %2213 = vmatpush1.bf16.msra.mxu1 %v4056_v22  ;;  %v4088_v22 = vld [vmem:[%s4431_s22 + $0xe4] ss:$16 sps:$4 sm:$0xff]  }
 0x11b   : > { %2214 = vmatprep.subr.bf16.mxu1 %v4064_v25  ;;  %v4079_v25 = vld [vmem:[%s4431_s22 + $0xac] ss:$16 sps:$4 sm:$0xff]  }
 0x11e   : > { %2215 = vmatpush1.bf16.msra.mxu1 %v4062_v24 }
 0x11f   : > { %2216 = vmatprep.subr.bf16.mxu1 %v4070_v27 }
 0x121   : > { %3788 = vmatmul.mubr.msk.bf16.gmra.mrb[12].mxu1 %vm501_vm1, %v4007_v45 }
 0x122   : > { %3791 = vmatprep.mubr.msk.bf16.mxu1 %vm501_vm1, %v4008_v46  ;;  %2217 = vmatpush1.bf16.msra.mxu1 %v4068_v26 }
 0x123   : > { %2218 = vmatprep.subr.bf16.mxu1 %v4076_v29 }
 0x126   : > { %2219 = vmatpush1.bf16.msra.mxu1 %v4074_v28 }
 0x129   : > { %3792 = vmatmul.mubr.msk.bf16.gmra.mrb[16].mxu1 %vm501_vm1, %v4009_v48  ;;  %v4082_v48 = vld [vmem:[%s4431_s22 + $0xc4] ss:$16 sps:$4 sm:$0xff]  }
 0x12a   : > { %3795 = vmatprep.mubr.msk.bf16.mxu1 %vm501_vm1, %v4010_v49  ;;  %2220 = vmatprep.subr.bf16.mxu1 %v4082_v48 }
 0x12b   : > { %2221 = vmatpush1.bf16.msra.mxu1 %v4080_v47 }
 0x12c   : > { %2222 = vmatprep.subr.bf16.mxu1 %v4088_v22 }
 0x131   : > { %3796 = vmatmul.mubr.msk.bf16.gmra.mrb[20].mxu1 %vm501_vm1, %v4011_v50 }
 0x132   : > { %3799 = vmatprep.mubr.msk.bf16.mxu1 %vm501_vm1, %v4012_v51  ;;  %v4055_v51 = vld [vmem:[%s4431_s22 + $0x2c] ss:$16 sps:$4 sm:$0xff]  }
 0x139   : > { %3800 = vmatmul.mubr.msk.bf16.gmra.mrb[24].mxu1 %vm501_vm1, %v4013_v52 }
 0x13a   : > { %3803 = vmatprep.mubr.msk.bf16.mxu1 %vm501_vm1, %v4014_v53 }
 0x141   : > { %3804 = vmatmul.mubr.msk.bf16.gmra.mrb[28].mxu1 %vm501_vm1, %v4015_v54 }
 0x142   : > { %3807 = vmatprep.mubr.msk.bf16.mxu1 %vm501_vm1, %v4016_v55 }
 0x149   : > { %3808 = vmatmul.mubr.msk.bf16.gmra.mrb[32].mxu1 %vm501_vm1, %v4017_v56 }
 0x14a   : > { %3811 = vmatprep.mubr.msk.bf16.mxu1 %vm501_vm1, %v4018_v57 }
 0x151   : > { %3812 = vmatmul.mubr.msk.bf16.gmra.mrb[36].mxu1 %vm501_vm1, %v4019_v58 }
 0x152   : > { %3815 = vmatprep.mubr.msk.bf16.mxu1 %vm501_vm1, %v4020_v59  ;;  %v4053_v59 = vld [vmem:[%s4431_s22 + $0x28] ss:$16 sps:$4 sm:$0xff]  }
 0x159   : > { %3816 = vmatmul.mubr.msk.bf16.gmra.mrb[40].mxu1 %vm501_vm1, %v4021_v60 }
 0x15a   : > { %3819 = vmatprep.mubr.msk.bf16.mxu1 %vm501_vm1, %v4022_v61  ;;  %v4061_v61 = vld [vmem:[%s4431_s22 + $0x4c] ss:$16 sps:$4 sm:$0xff]  }
 0x161   : > { %3820 = vmatmul.mubr.msk.bf16.gmra.mrb[44].mxu1 %vm501_vm1, %v4023_v62 }
 0x162   : > { %3823 = vmatprep.mubr.msk.bf16.mxu1 %vm501_vm1, %v4024_v63 }
 0x169   : > { %3824 = vmatmul.mubr.msk.bf16.gmra.mrb[48].mxu1 %vm501_vm1, %v4025_v0 }
 0x16a   : > { %3827 = vmatprep.mubr.msk.bf16.mxu1 %vm501_vm1, %v4026_v2  ;;  %v4059_v2 = vld [vmem:[%s4431_s22 + $0x48] ss:$16 sps:$4 sm:$0xff]  }
 0x171   : > { %3828 = vmatmul.mubr.msk.bf16.gmra.mrb[52].mxu1 %vm501_vm1, %v4027_v4 }
 0x172   : > { %3831 = vmatprep.mubr.msk.bf16.mxu1 %vm501_vm1, %v4028_v5  ;;  %v4067_v5 = vld [vmem:[%s4431_s22 + $0x6c] ss:$16 sps:$4 sm:$0xff]  }
 0x179   : > { %3832 = vmatmul.mubr.msk.bf16.gmra.mrb[56].mxu1 %vm501_vm1, %v4029_v6 }
 0x17a   : > { %3835 = vmatprep.mubr.msk.bf16.mxu1 %vm501_vm1, %v4030_v7 }
 0x181   : > { %3836 = vmatmul.mubr.msk.bf16.gmra.mrb[60].mxu1 %vm501_vm1, %v4031_v8 }
 0x182   : > { %3839 = vmatprep.mubr.msk.bf16.mxu1 %vm501_vm1, %v4032_v9 }
 0x189   : > { %3840 = vmatmul.mubr.msk.bf16.gmra.mrb[64].mxu1 %vm501_vm1, %v4033_v10 }
 0x18a   : > { %3843 = vmatprep.mubr.msk.bf16.mxu1 %vm501_vm1, %v4034_v11 }
 0x191   : > { %3844 = vmatmul.mubr.msk.bf16.gmra.mrb[68].mxu1 %vm501_vm1, %v4035_v12 }
 0x192   : > { %3847 = vmatprep.mubr.msk.bf16.mxu1 %vm501_vm1, %v4036_v13  ;;  %v4065_v13 = vld [vmem:[%s4431_s22 + $0x68] ss:$16 sps:$4 sm:$0xff]  }
 0x199   : > { %3848 = vmatmul.mubr.msk.bf16.gmra.mrb[72].mxu1 %vm501_vm1, %v4037_v14 }
 0x19a   : > { %3851 = vmatprep.mubr.msk.bf16.mxu1 %vm501_vm1, %v4038_v15  ;;  %v4073_v15 = vld [vmem:[%s4431_s22 + $0x8c] ss:$16 sps:$4 sm:$0xff]  }
 0x1a1   : > { %3852 = vmatmul.mubr.msk.bf16.gmra.mrb[76].mxu1 %vm501_vm1, %v4040_v21  ;;  %v4086_v21 = vld [vmem:[%s4431_s22 + $0xe0] ss:$16 sps:$4 sm:$0xff]  }
 0x1a2   : > { %2223 = vmatpush1.bf16.msra.mxu1 %v4086_v21 }
 0x1e4   : > { %v3781_v31 = vpop.f32.mrb[4].mxu1 }
 0x1e5   : > { %v1007_v32 = vadd.f32 %v3781_v31, %v4453_v30  ;;  %v998_v33 = vpop.f32.mrb[5].mxu1 }
 0x1e6   : > { %v999_v34 = vadd.f32 %v4453_v30, %v998_v33  ;;  %v3782_v35 = vpop.f32.mrb[6].mxu1 }
 0x1e7   : > { %v1010_v36 = vadd.f32 %v3782_v35, %v4453_v30  ;;  %v1001_v37 = vpop.f32.mrb[7].mxu1  ;;  %v1302_v39 = vmax.f32 %v1007_v32, 0.0 }
 0x1e8   : > { %v1002_v38 = vadd.f32 %v4453_v30, %v1001_v37  ;;  %v1300_v41 = vmax.f32 %v999_v34, 0.0  ;;  %v4077_v34 = vld [vmem:[%s4431_s22 + $0xa8] ss:$16 sps:$4 sm:$0xff]  }
 0x1e9   : > { %v1303_v40 = vmax.f32 %v1010_v36, 0.0  ;;  %v4085_v36 = vld [vmem:[%s4431_s22 + $0xcc] ss:$16 sps:$4 sm:$0xff]  }
 0x1ea   : > { %v1301_v42 = vmax.f32 %v1002_v38, 0.0 }
 0x1eb   : > { %v1376_v43 = vpack.c.bf16 %v1303_v40, %v1302_v39 }
 0x1ec   : > { %v3785_v45 = vpop.f32.mrb[8].mxu1  ;;  %v1375_v46 = vpack.c.bf16 %v1301_v42, %v1300_v41  ;;  %v4083_v41 = vld [vmem:[%s4431_s22 + $0xc8] ss:$16 sps:$4 sm:$0xff]  }
 0x1ed   : > { %v1023_v49 = vadd.f32 %v3785_v45, %v4453_v30  ;;  %v1014_v50 = vpop.f32.mrb[9].mxu1 }
 0x1ee   : > { %3863 = vmatprep.mubr.msk.bf16.mxu0 %vm1452_vm3, %v1375_v46  ;;  %v1015_v52 = vadd.f32 %v4453_v30, %v1014_v50  ;;  %v3786_v53 = vpop.f32.mrb[10].mxu1 }
 0x1ef   : > { %v1306_v54 = vmax.f32 %v1023_v49, 0.0  ;;  %3864 = vmatmul.mubr.msk.bf16.vlgmr.msra.gmra.mrb[0].mxu0 %vm1452_vm3, %v1376_v43  ;;  %v1026_v55 = vadd.f32 %v3786_v53, %v4453_v30  ;;  %v1017_v56 = vpop.f32.mrb[11].mxu1 }
 0x1f0   : > { %v1304_v57 = vmax.f32 %v1015_v52, 0.0  ;;  %v1018_v58 = vadd.f32 %v4453_v30, %v1017_v56  ;;  %2620 = vmatpush1.bf16.msra.mxu0 %v4047_v44  ;;  %v4091_v44 = vld [vmem:[%s4431_s22 + $0xec] ss:$16 sps:$4 sm:$0xff]   ;;  %v4089_v52 = vld [vmem:[%s4431_s22 + $0xe8] ss:$16 sps:$4 sm:$0xff]  }
 0x1f1   : > { %v1307_v60 = vmax.f32 %v1026_v55, 0.0  ;;  %2621 = vmatprep.subr.bf16.mxu0 %v4055_v51 }
 0x1f2   : > { %v1305_v62 = vmax.f32 %v1018_v58, 0.0 }
 0x1f3   : > { %v1378_v63 = vpack.c.bf16 %v1307_v60, %v1306_v54 }
 0x1f4   : > { %v1377_v0 = vpack.c.bf16 %v1305_v62, %v1304_v57  ;;  %v3789_v1 = vpop.f32.mrb[12].mxu1  ;;  %2622 = vmatpush1.bf16.msra.mxu0 %v4053_v59 }
 0x1f5   : > { %v1039_v3 = vadd.f32 %v3789_v1, %v4453_v30  ;;  %v1030_v4 = vpop.f32.mrb[13].mxu1  ;;  %2623 = vmatprep.subr.bf16.mxu0 %v4061_v61 }
 0x1f6   : > { %3867 = vmatprep.mubr.msk.bf16.mxu0 %vm1452_vm3, %v1377_v0  ;;  %v1031_v6 = vadd.f32 %v4453_v30, %v1030_v4  ;;  %v3790_v7 = vpop.f32.mrb[14].mxu1 }
 0x1f7   : > { %3868 = vmatmul.mubr.msk.bf16.gmra.mrb[4].mxu0 %vm1452_vm3, %v1378_v63  ;;  %v1310_v8 = vmax.f32 %v1039_v3, 0.0  ;;  %v1042_v9 = vadd.f32 %v3790_v7, %v4453_v30  ;;  %v1033_v10 = vpop.f32.mrb[15].mxu1 }
 0x1f8   : > { %v1308_v11 = vmax.f32 %v1031_v6, 0.0  ;;  %v1034_v12 = vadd.f32 %v4453_v30, %v1033_v10  ;;  %2624 = vmatpush1.bf16.msra.mxu0 %v4059_v2 }
 0x1f9   : > { %v1311_v14 = vmax.f32 %v1042_v9, 0.0  ;;  %2625 = vmatprep.subr.bf16.mxu0 %v4067_v5 }
 0x1fa   : > { %v1309_v16 = vmax.f32 %v1034_v12, 0.0 }
 0x1fb   : > { %v1380_v17 = vpack.c.bf16 %v1311_v14, %v1310_v8 }
 0x1fc   : > { %v1379_v19 = vpack.c.bf16 %v1309_v16, %v1308_v11  ;;  %v3793_v20 = vpop.f32.mrb[16].mxu1  ;;  %2626 = vmatpush1.bf16.msra.mxu0 %v4065_v13 }
 0x1fd   : > { %v1055_v23 = vadd.f32 %v3793_v20, %v4453_v30  ;;  %v1046_v24 = vpop.f32.mrb[17].mxu1  ;;  %2627 = vmatprep.subr.bf16.mxu0 %v4073_v15 }
 0x1fe   : > { %3871 = vmatprep.mubr.msk.bf16.mxu0 %vm1452_vm3, %v1379_v19  ;;  %v1047_v26 = vadd.f32 %v4453_v30, %v1046_v24  ;;  %v3794_v27 = vpop.f32.mrb[18].mxu1 }
 0x1ff   : > { %3872 = vmatmul.mubr.msk.bf16.gmra.mrb[8].mxu0 %vm1452_vm3, %v1380_v17  ;;  %v1314_v28 = vmax.f32 %v1055_v23, 0.0  ;;  %v1058_v29 = vadd.f32 %v3794_v27, %v4453_v30  ;;  %v1049_v31 = vpop.f32.mrb[19].mxu1 }
 0x200   : > { %v1312_v32 = vmax.f32 %v1047_v26, 0.0  ;;  %v1050_v33 = vadd.f32 %v4453_v30, %v1049_v31  ;;  %2628 = vmatpush1.bf16.msra.mxu0 %v4071_v18 }
 0x201   : > { %v1315_v35 = vmax.f32 %v1058_v29, 0.0  ;;  %2629 = vmatprep.subr.bf16.mxu0 %v4079_v25 }
 0x202   : > { %v1313_v37 = vmax.f32 %v1050_v33, 0.0 }
 0x203   : > { %v1382_v38 = vpack.c.bf16 %v1315_v35, %v1314_v28 }
 0x204   : > { %v1381_v39 = vpack.c.bf16 %v1313_v37, %v1312_v32  ;;  %v3797_v40 = vpop.f32.mrb[20].mxu1  ;;  %2630 = vmatpush1.bf16.msra.mxu0 %v4077_v34 }
 0x205   : > { %v1071_v42 = vadd.f32 %v3797_v40, %v4453_v30  ;;  %v1062_v43 = vpop.f32.mrb[21].mxu1  ;;  %2631 = vmatprep.subr.bf16.mxu0 %v4085_v36 }
 0x206   : > { %3875 = vmatprep.mubr.msk.bf16.mxu0 %vm1452_vm3, %v1381_v39  ;;  %v1063_v45 = vadd.f32 %v4453_v30, %v1062_v43  ;;  %v3798_v46 = vpop.f32.mrb[22].mxu1 }
 0x207   : > { %3876 = vmatmul.mubr.msk.bf16.gmra.mrb[12].mxu0 %vm1452_vm3, %v1382_v38  ;;  %v1318_v47 = vmax.f32 %v1071_v42, 0.0  ;;  %v1074_v48 = vadd.f32 %v3798_v46, %v4453_v30  ;;  %v1065_v49 = vpop.f32.mrb[23].mxu1 }
 0x208   : > { %v1316_v50 = vmax.f32 %v1063_v45, 0.0  ;;  %v1066_v51 = vadd.f32 %v4453_v30, %v1065_v49  ;;  %2632 = vmatpush1.bf16.msra.mxu0 %v4083_v41 }
 0x209   : > { %v1319_v53 = vmax.f32 %v1074_v48, 0.0  ;;  %2633 = vmatprep.subr.bf16.mxu0 %v4091_v44 }
 0x20a   : > { %v1317_v54 = vmax.f32 %v1066_v51, 0.0 }
 0x20b   : > { %v1384_v55 = vpack.c.bf16 %v1319_v53, %v1318_v47 }
 0x20c   : > { %v1383_v56 = vpack.c.bf16 %v1317_v54, %v1316_v50  ;;  %v3801_v57 = vpop.f32.mrb[24].mxu1  ;;  %2634 = vmatpush1.bf16.msra.mxu0 %v4089_v52 }
 0x20d   : > { %v1087_v58 = vadd.f32 %v3801_v57, %v4453_v30  ;;  %v1078_v59 = vpop.f32.mrb[25].mxu1 }
 0x20e   : > { %3879 = vmatprep.mubr.msk.bf16.mxu0 %vm1452_vm3, %v1383_v56  ;;  %v1079_v60 = vadd.f32 %v4453_v30, %v1078_v59  ;;  %v3802_v61 = vpop.f32.mrb[26].mxu1 }
 0x20f   : > { %3880 = vmatmul.mubr.msk.bf16.gmra.mrb[16].mxu0 %vm1452_vm3, %v1384_v55  ;;  %v1322_v62 = vmax.f32 %v1087_v58, 0.0  ;;  %v1090_v63 = vadd.f32 %v3802_v61, %v4453_v30  ;;  %v1081_v0 = vpop.f32.mrb[27].mxu1 }
 0x210   : > { %v1320_v1 = vmax.f32 %v1079_v60, 0.0  ;;  %v1082_v2 = vadd.f32 %v4453_v30, %v1081_v0 }
 0x211   : > { %v1323_v3 = vmax.f32 %v1090_v63, 0.0 }
 0x212   : > { %v1321_v4 = vmax.f32 %v1082_v2, 0.0 }
 0x213   : > { %v1386_v5 = vpack.c.bf16 %v1323_v3, %v1322_v62 }
 0x214   : > { %v1385_v6 = vpack.c.bf16 %v1321_v4, %v1320_v1  ;;  %v3805_v7 = vpop.f32.mrb[28].mxu1 }
 0x215   : > { %v1103_v8 = vadd.f32 %v3805_v7, %v4453_v30  ;;  %v1094_v9 = vpop.f32.mrb[29].mxu1 }
 0x216   : > { %3883 = vmatprep.mubr.msk.bf16.mxu0 %vm1452_vm3, %v1385_v6  ;;  %v1095_v10 = vadd.f32 %v4453_v30, %v1094_v9  ;;  %v3806_v11 = vpop.f32.mrb[30].mxu1 }
 0x217   : > { %3884 = vmatmul.mubr.msk.bf16.gmra.mrb[20].mxu0 %vm1452_vm3, %v1386_v5  ;;  %v1326_v12 = vmax.f32 %v1103_v8, 0.0  ;;  %v1106_v13 = vadd.f32 %v3806_v11, %v4453_v30  ;;  %v1097_v14 = vpop.f32.mrb[31].mxu1 }
 0x218   : > { %v1324_v15 = vmax.f32 %v1095_v10, 0.0  ;;  %v1098_v16 = vadd.f32 %v4453_v30, %v1097_v14 }
 0x219   : > { %v1327_v17 = vmax.f32 %v1106_v13, 0.0 }
 0x21a   : > { %v1325_v18 = vmax.f32 %v1098_v16, 0.0 }
 0x21b   : > { %v1388_v19 = vpack.c.bf16 %v1327_v17, %v1326_v12 }
 0x21c   : > { %v1387_v20 = vpack.c.bf16 %v1325_v18, %v1324_v15  ;;  %v3809_v21 = vpop.f32.mrb[32].mxu1 }
 0x21d   : > { %v1119_v22 = vadd.f32 %v3809_v21, %v4453_v30  ;;  %v1110_v23 = vpop.f32.mrb[33].mxu1 }
 0x21e   : > { %3887 = vmatprep.mubr.msk.bf16.mxu0 %vm1452_vm3, %v1387_v20  ;;  %v1111_v24 = vadd.f32 %v4453_v30, %v1110_v23  ;;  %v3810_v25 = vpop.f32.mrb[34].mxu1 }
 0x21f   : > { %3888 = vmatmul.mubr.msk.bf16.gmra.mrb[24].mxu0 %vm1452_vm3, %v1388_v19  ;;  %v1330_v26 = vmax.f32 %v1119_v22, 0.0  ;;  %v1122_v27 = vadd.f32 %v3810_v25, %v4453_v30  ;;  %v1113_v28 = vpop.f32.mrb[35].mxu1 }
 0x220   : > { %v1328_v29 = vmax.f32 %v1111_v24, 0.0  ;;  %v1114_v31 = vadd.f32 %v4453_v30, %v1113_v28 }
 0x221   : > { %v1331_v32 = vmax.f32 %v1122_v27, 0.0 }
 0x222   : > { %v1329_v33 = vmax.f32 %v1114_v31, 0.0 }
 0x223   : > { %v1390_v34 = vpack.c.bf16 %v1331_v32, %v1330_v26 }
 0x224   : > { %v1389_v35 = vpack.c.bf16 %v1329_v33, %v1328_v29  ;;  %v3813_v36 = vpop.f32.mrb[36].mxu1 }
 0x225   : > { %v1135_v37 = vadd.f32 %v3813_v36, %v4453_v30  ;;  %v1126_v38 = vpop.f32.mrb[37].mxu1 }
 0x226   : > { %3891 = vmatprep.mubr.msk.bf16.mxu0 %vm1452_vm3, %v1389_v35  ;;  %v1127_v39 = vadd.f32 %v4453_v30, %v1126_v38  ;;  %v3814_v40 = vpop.f32.mrb[38].mxu1 }
 0x227   : > { %3892 = vmatmul.mubr.msk.bf16.gmra.mrb[28].mxu0 %vm1452_vm3, %v1390_v34  ;;  %v1334_v41 = vmax.f32 %v1135_v37, 0.0  ;;  %v1138_v42 = vadd.f32 %v3814_v40, %v4453_v30  ;;  %v1129_v43 = vpop.f32.mrb[39].mxu1 }
 0x228   : > { %v1332_v44 = vmax.f32 %v1127_v39, 0.0  ;;  %v1130_v45 = vadd.f32 %v4453_v30, %v1129_v43 }
 0x229   : > { %v1335_v46 = vmax.f32 %v1138_v42, 0.0  ;;  %v4151_v42 = vmov 0  }
 0x22a   : > { %v1333_v47 = vmax.f32 %v1130_v45, 0.0  ;;  %2240 = vmatprep.mubr.bf16.mxu1 %v4151_v42 }
 0x22b   : > { %v1392_v48 = vpack.c.bf16 %v1335_v46, %v1334_v41 }
 0x22c   : > { %v1391_v49 = vpack.c.bf16 %v1333_v47, %v1332_v44  ;;  %v3817_v50 = vpop.f32.mrb[40].mxu1 }
 0x22d   : > { %v1151_v51 = vadd.f32 %v3817_v50, %v4453_v30  ;;  %v1142_v52 = vpop.f32.mrb[41].mxu1 }
 0x22e   : > { %3895 = vmatprep.mubr.msk.bf16.mxu0 %vm1452_vm3, %v1391_v49  ;;  %v1143_v53 = vadd.f32 %v4453_v30, %v1142_v52  ;;  %v3818_v54 = vpop.f32.mrb[42].mxu1 }
 0x22f   : > { %3896 = vmatmul.mubr.msk.bf16.gmra.mrb[32].mxu0 %vm1452_vm3, %v1392_v48  ;;  %v1338_v55 = vmax.f32 %v1151_v51, 0.0  ;;  %v1154_v56 = vadd.f32 %v3818_v54, %v4453_v30  ;;  %v1145_v57 = vpop.f32.mrb[43].mxu1 }
 0x230   : > { %v1336_v58 = vmax.f32 %v1143_v53, 0.0  ;;  %v1146_v59 = vadd.f32 %v4453_v30, %v1145_v57 }
 0x231   : > { %v1339_v60 = vmax.f32 %v1154_v56, 0.0 }
 0x232   : > { %v1337_v61 = vmax.f32 %v1146_v59, 0.0 }
 0x233   : > { %v1394_v62 = vpack.c.bf16 %v1339_v60, %v1338_v55 }
 0x234   : > { %v1393_v63 = vpack.c.bf16 %v1337_v61, %v1336_v58  ;;  %v3821_v0 = vpop.f32.mrb[44].mxu1 }
 0x235   : > { %v1167_v1 = vadd.f32 %v3821_v0, %v4453_v30  ;;  %v1158_v2 = vpop.f32.mrb[45].mxu1 }
 0x236   : > { %v1159_v3 = vadd.f32 %v4453_v30, %v1158_v2  ;;  %v3822_v4 = vpop.f32.mrb[46].mxu1  ;;  %3899 = vmatprep.mubr.msk.bf16.mxu0 %vm1452_vm3, %v1393_v63 }
 0x237   : > { %v1342_v5 = vmax.f32 %v1167_v1, 0.0  ;;  %v1170_v6 = vadd.f32 %v3822_v4, %v4453_v30  ;;  %v1161_v7 = vpop.f32.mrb[47].mxu1  ;;  %3900 = vmatmul.mubr.msk.bf16.gmra.mrb[36].mxu0 %vm1452_vm3, %v1394_v62 }
 0x238   : > { %v1340_v8 = vmax.f32 %v1159_v3, 0.0  ;;  %v1162_v9 = vadd.f32 %v4453_v30, %v1161_v7 }
 0x239   : > { %v1343_v10 = vmax.f32 %v1170_v6, 0.0 }
 0x23a   : > { %v1341_v11 = vmax.f32 %v1162_v9, 0.0 }
 0x23b   : > { %v1396_v12 = vpack.c.bf16 %v1343_v10, %v1342_v5 }
 0x23c   : > { %v1395_v13 = vpack.c.bf16 %v1341_v11, %v1340_v8  ;;  %v3825_v14 = vpop.f32.mrb[48].mxu1 }
 0x23d   : > { %v1183_v15 = vadd.f32 %v3825_v14, %v4453_v30  ;;  %v1174_v16 = vpop.f32.mrb[49].mxu1 }
 0x23e   : > { %v1175_v17 = vadd.f32 %v4453_v30, %v1174_v16  ;;  %v3826_v18 = vpop.f32.mrb[50].mxu1  ;;  %3903 = vmatprep.mubr.msk.bf16.mxu0 %vm1452_vm3, %v1395_v13 }
 0x23f   : > { %v1346_v19 = vmax.f32 %v1183_v15, 0.0  ;;  %v1186_v20 = vadd.f32 %v3826_v18, %v4453_v30  ;;  %v1177_v21 = vpop.f32.mrb[51].mxu1  ;;  %3904 = vmatmul.mubr.msk.bf16.gmra.mrb[40].mxu0 %vm1452_vm3, %v1396_v12 }
 0x240   : > { %v1344_v22 = vmax.f32 %v1175_v17, 0.0  ;;  %v1178_v23 = vadd.f32 %v4453_v30, %v1177_v21 }
 0x241   : > { %v1347_v24 = vmax.f32 %v1186_v20, 0.0 }
 0x242   : > { %v1345_v25 = vmax.f32 %v1178_v23, 0.0 }
 0x243   : > { %v1398_v26 = vpack.c.bf16 %v1347_v24, %v1346_v19 }
 0x244   : > { %v1397_v27 = vpack.c.bf16 %v1345_v25, %v1344_v22  ;;  %v3829_v28 = vpop.f32.mrb[52].mxu1 }
 0x245   : > { %v1199_v29 = vadd.f32 %v3829_v28, %v4453_v30  ;;  %v1190_v31 = vpop.f32.mrb[53].mxu1 }
 0x246   : > { %v1191_v32 = vadd.f32 %v4453_v30, %v1190_v31  ;;  %v3830_v33 = vpop.f32.mrb[54].mxu1  ;;  %3907 = vmatprep.mubr.msk.bf16.mxu0 %vm1452_vm3, %v1397_v27 }
 0x247   : > { %v1350_v34 = vmax.f32 %v1199_v29, 0.0  ;;  %v1202_v35 = vadd.f32 %v3830_v33, %v4453_v30  ;;  %v1193_v36 = vpop.f32.mrb[55].mxu1  ;;  %3908 = vmatmul.mubr.msk.bf16.gmra.mrb[44].mxu0 %vm1452_vm3, %v1398_v26 }
 0x248   : > { %v1348_v37 = vmax.f32 %v1191_v32, 0.0  ;;  %v1194_v38 = vadd.f32 %v4453_v30, %v1193_v36 }
 0x249   : > { %v1351_v39 = vmax.f32 %v1202_v35, 0.0 }
 0x24a   : > { %v1349_v40 = vmax.f32 %v1194_v38, 0.0 }
 0x24b   : > { %v1400_v41 = vpack.c.bf16 %v1351_v39, %v1350_v34 }
 0x24c   : > { %v1399_v43 = vpack.c.bf16 %v1349_v40, %v1348_v37  ;;  %v3833_v44 = vpop.f32.mrb[56].mxu1 }
 0x24d   : > { %v1215_v45 = vadd.f32 %v3833_v44, %v4453_v30  ;;  %v1206_v46 = vpop.f32.mrb[57].mxu1 }
 0x24e   : > { %v1207_v47 = vadd.f32 %v4453_v30, %v1206_v46  ;;  %v3834_v48 = vpop.f32.mrb[58].mxu1  ;;  %3911 = vmatprep.mubr.msk.bf16.mxu0 %vm1452_vm3, %v1399_v43 }
 0x24f   : > { %v1354_v49 = vmax.f32 %v1215_v45, 0.0  ;;  %v1218_v50 = vadd.f32 %v3834_v48, %v4453_v30  ;;  %v1209_v51 = vpop.f32.mrb[59].mxu1  ;;  %3912 = vmatmul.mubr.msk.bf16.gmra.mrb[48].mxu0 %vm1452_vm3, %v1400_v41 }
 0x250   : > { %v1352_v52 = vmax.f32 %v1207_v47, 0.0  ;;  %v1210_v53 = vadd.f32 %v4453_v30, %v1209_v51 }
 0x251   : > { %v1355_v54 = vmax.f32 %v1218_v50, 0.0 }
 0x252   : > { %v1353_v55 = vmax.f32 %v1210_v53, 0.0 }
 0x253   : > { %v1402_v56 = vpack.c.bf16 %v1355_v54, %v1354_v49 }
 0x254   : > { %v1401_v57 = vpack.c.bf16 %v1353_v55, %v1352_v52  ;;  %v3837_v58 = vpop.f32.mrb[60].mxu1 }
 0x255   : > { %v1231_v59 = vadd.f32 %v3837_v58, %v4453_v30  ;;  %v1222_v60 = vpop.f32.mrb[61].mxu1 }
 0x256   : > { %v1223_v61 = vadd.f32 %v4453_v30, %v1222_v60  ;;  %v3838_v62 = vpop.f32.mrb[62].mxu1  ;;  %3915 = vmatprep.mubr.msk.bf16.mxu0 %vm1452_vm3, %v1401_v57 }
 0x257   : > { %v1358_v63 = vmax.f32 %v1231_v59, 0.0  ;;  %v1234_v0 = vadd.f32 %v3838_v62, %v4453_v30  ;;  %v1225_v1 = vpop.f32.mrb[63].mxu1  ;;  %3916 = vmatmul.mubr.msk.bf16.gmra.mrb[52].mxu0 %vm1452_vm3, %v1402_v56 }
 0x258   : > { %v1356_v2 = vmax.f32 %v1223_v61, 0.0  ;;  %v1226_v3 = vadd.f32 %v4453_v30, %v1225_v1 }
 0x259   : > { %v1359_v4 = vmax.f32 %v1234_v0, 0.0  ;;  %v4592_v0 = vld [vmem:[%s4915_s5] ss:$0 sm:$0xff] }
 0x25a   : > { %v1357_v5 = vmax.f32 %v1226_v3, 0.0 }
 0x25b   : > { %v1404_v6 = vpack.c.bf16 %v1359_v4, %v1358_v63 }
 0x25c   : > { %v1403_v7 = vpack.c.bf16 %v1357_v5, %v1356_v2  ;;  %v3841_v8 = vpop.f32.mrb[64].mxu1 }
 0x25d   : > { %v1247_v9 = vadd.f32 %v3841_v8, %v4453_v30  ;;  %v1238_v10 = vpop.f32.mrb[65].mxu1 }
 0x25e   : > { %v1239_v11 = vadd.f32 %v4453_v30, %v1238_v10  ;;  %v3842_v12 = vpop.f32.mrb[66].mxu1  ;;  %3919 = vmatprep.mubr.msk.bf16.mxu0 %vm1452_vm3, %v1403_v7 }
 0x25f   : > { %v1362_v13 = vmax.f32 %v1247_v9, 0.0  ;;  %v1250_v14 = vadd.f32 %v3842_v12, %v4453_v30  ;;  %v1241_v15 = vpop.f32.mrb[67].mxu1  ;;  %3920 = vmatmul.mubr.msk.bf16.gmra.mrb[56].mxu0 %vm1452_vm3, %v1404_v6 }
 0x260   : > { %v1360_v16 = vmax.f32 %v1239_v11, 0.0  ;;  %v1242_v17 = vadd.f32 %v4453_v30, %v1241_v15 }
 0x261   : > { %v1363_v18 = vmax.f32 %v1250_v14, 0.0 }
 0x262   : > { %v1361_v19 = vmax.f32 %v1242_v17, 0.0 }
 0x263   : > { %v1406_v20 = vpack.c.bf16 %v1363_v18, %v1362_v13 }
 0x264   : > { %v1405_v21 = vpack.c.bf16 %v1361_v19, %v1360_v16  ;;  %v3845_v22 = vpop.f32.mrb[68].mxu1 }
 0x265   : > { %v1263_v23 = vadd.f32 %v3845_v22, %v4453_v30  ;;  %v1254_v24 = vpop.f32.mrb[69].mxu1 }
 0x266   : > { %v1255_v25 = vadd.f32 %v4453_v30, %v1254_v24  ;;  %v3846_v26 = vpop.f32.mrb[70].mxu1  ;;  %3923 = vmatprep.mubr.msk.bf16.mxu0 %vm1452_vm3, %v1405_v21 }
 0x267   : > { %v1366_v27 = vmax.f32 %v1263_v23, 0.0  ;;  %v1266_v28 = vadd.f32 %v3846_v26, %v4453_v30  ;;  %v1257_v29 = vpop.f32.mrb[71].mxu1  ;;  %3924 = vmatmul.mubr.msk.bf16.gmra.mrb[60].mxu0 %vm1452_vm3, %v1406_v20 }
 0x268   : > { %v1364_v31 = vmax.f32 %v1255_v25, 0.0  ;;  %v1258_v32 = vadd.f32 %v4453_v30, %v1257_v29 }
 0x269   : > { %v1367_v33 = vmax.f32 %v1266_v28, 0.0 }
 0x26a   : > { %v1365_v34 = vmax.f32 %v1258_v32, 0.0 }
 0x26b   : > { %v1408_v35 = vpack.c.bf16 %v1367_v33, %v1366_v27 }
 0x26c   : > { %v1407_v36 = vpack.c.bf16 %v1365_v34, %v1364_v31  ;;  %v3849_v37 = vpop.f32.mrb[72].mxu1 }
 0x26d   : > { %v1279_v38 = vadd.f32 %v3849_v37, %v4453_v30  ;;  %v1270_v39 = vpop.f32.mrb[73].mxu1 }
 0x26e   : > { %v1271_v40 = vadd.f32 %v4453_v30, %v1270_v39  ;;  %v3850_v41 = vpop.f32.mrb[74].mxu1  ;;  %3927 = vmatprep.mubr.msk.bf16.mxu0 %vm1452_vm3, %v1407_v36 }
 0x26f   : > { %v1370_v43 = vmax.f32 %v1279_v38, 0.0  ;;  %v1282_v44 = vadd.f32 %v3850_v41, %v4453_v30  ;;  %v1273_v45 = vpop.f32.mrb[75].mxu1  ;;  %3928 = vmatmul.mubr.msk.bf16.gmra.mrb[64].mxu0 %vm1452_vm3, %v1408_v35 }
 0x270   : > { %v1368_v46 = vmax.f32 %v1271_v40, 0.0  ;;  %v1274_v47 = vadd.f32 %v4453_v30, %v1273_v45 }
 0x271   : > { %v1371_v48 = vmax.f32 %v1282_v44, 0.0 }
 0x272   : > { %v1369_v49 = vmax.f32 %v1274_v47, 0.0 }
 0x273   : > { %v1410_v50 = vpack.c.bf16 %v1371_v48, %v1370_v43 }
 0x274   : > { %v1409_v51 = vpack.c.bf16 %v1369_v49, %v1368_v46  ;;  %v3853_v52 = vpop.f32.mrb[76].mxu1 }
 0x275   : > { %v1295_v53 = vadd.f32 %v3853_v52, %v4453_v30  ;;  %v1286_v54 = vpop.f32.mrb[77].mxu1 }
 0x276   : > { %v1287_v55 = vadd.f32 %v4453_v30, %v1286_v54  ;;  %v3854_v56 = vpop.f32.mrb[78].mxu1  ;;  %3931 = vmatprep.mubr.msk.bf16.mxu0 %vm1452_vm3, %v1409_v51 }
 0x277   : > { %v1374_v57 = vmax.f32 %v1295_v53, 0.0  ;;  %v1289_v58 = vpop.f32.mrb[79].mxu1  ;;  %3932 = vmatmul.mubr.msk.bf16.gmra.mrb[68].mxu0 %vm1452_vm3, %v1410_v50 }
 0x278   : > { %v1372_v59 = vmax.f32 %v1287_v55, 0.0  ;;  %v1290_v60 = vadd.f32 %v4453_v30, %v1289_v58 }
 0x279   : > { %v1412_v62 = vpack.c.bf16 %v1374_v57, %v1374_v57 }
 0x27a   : > { %v1373_v61 = vmax.f32 %v1290_v60, 0.0 }
 0x27c   : > { %v1411_v63 = vpack.c.bf16 %v1373_v61, %v1372_v59 }
 0x27e   : > { %3935 = vmatprep.mubr.msk.bf16.mxu0 %vm1452_vm3, %v1411_v63 }
 0x27f   : > { %3936 = vmatmul.mubr.msk.bf16.gmra.mrb[72].mxu0 %vm1452_vm3, %v1412_v62 }
 0x280   : > { %2651 = vmatprep.mubr.bf16.mxu0 %v4151_v42 }
 0x2c2   : > { %v3865_v1 = vpop.f32.mrb[0].mxu0 }
 0x2c3   : > { %v1610_v2 = vadd.f32 %v3865_v1, %v4592_v0  ;;  %v1601_v3 = vpop.f32.mrb[1].mxu0 }
 0x2c4   : > { %v1602_v30 = vadd.f32 %v4592_v0, %v1601_v3  ;;  %v3866_v4 = vpop.f32.mrb[2].mxu0 }
 0x2c5   : > { %v1613_v5 = vadd.f32 %v3866_v4, %v4592_v0  ;;  %v1604_v6 = vpop.f32.mrb[3].mxu0  ;;  %v1905_v8 = vmax.f32 %v1610_v2, 0.0 }
 0x2c6   : > { %v1605_v7 = vadd.f32 %v4592_v0, %v1604_v6  ;;  %v1903_v10 = vmax.f32 %v1602_v30, 0.0 }
 0x2c7   : > { %v1906_v9 = vmax.f32 %v1613_v5, 0.0 }
 0x2c8   : > { %v1904_v11 = vmax.f32 %v1605_v7, 0.0 }
 0x2c9   : > { %v1979_v12 = vpack.c.bf16 %v1906_v9, %v1905_v8 }
 0x2ca   : > { %v1978_v13 = vpack.c.bf16 %v1904_v11, %v1903_v10  ;;  %v3869_v14 = vpop.f32.mrb[4].mxu0 }
 0x2cb   : > { %v1626_v15 = vadd.f32 %v3869_v14, %v4592_v0  ;;  %v1617_v16 = vpop.f32.mrb[5].mxu0 }
 0x2cc   : > { %2241 = vmatmul.mubr.bf16.vlgmr.msra.gmra.mrb[80].mxu1 %v1978_v13  ;;  %2652 = vmatmul.mubr.bf16.vlgmr.msra.gmra.mrb[76].mxu0 %v1978_v13  ;;  %v1618_v17 = vadd.f32 %v4592_v0, %v1617_v16  ;;  %v3870_v18 = vpop.f32.mrb[6].mxu0 }
 0x2cd   : > { %v1909_v19 = vmax.f32 %v1626_v15, 0.0  ;;  %v1629_v20 = vadd.f32 %v3870_v18, %v4592_v0  ;;  %v1620_v21 = vpop.f32.mrb[7].mxu0  ;;  %2250 = vmatprep.mubr.bf16.mxu1 %v4151_v42  ;;  %2661 = vmatprep.mubr.bf16.mxu0 %v4151_v42 }
 0x2ce   : > { %v1907_v22 = vmax.f32 %v1618_v17, 0.0  ;;  %v1621_v23 = vadd.f32 %v4592_v0, %v1620_v21 }
 0x2cf   : > { %v1910_v24 = vmax.f32 %v1629_v20, 0.0 }
 0x2d0   : > { %v1908_v25 = vmax.f32 %v1621_v23, 0.0 }
 0x2d1   : > { %v1981_v26 = vpack.c.bf16 %v1910_v24, %v1909_v19 }
 0x2d2   : > { %v1980_v27 = vpack.c.bf16 %v1908_v25, %v1907_v22  ;;  %v3873_v28 = vpop.f32.mrb[8].mxu0 }
 0x2d3   : > { %v1642_v29 = vadd.f32 %v3873_v28, %v4592_v0  ;;  %v1633_v31 = vpop.f32.mrb[9].mxu0 }
 0x2d4   : > { %2251 = vmatmul.mubr.bf16.gmra.mrb[84].mxu1 %v1979_v12  ;;  %2662 = vmatmul.mubr.bf16.gmra.mrb[80].mxu0 %v1979_v12  ;;  %v1634_v32 = vadd.f32 %v4592_v0, %v1633_v31  ;;  %v3874_v33 = vpop.f32.mrb[10].mxu0 }
 0x2d5   : > { %2260 = vmatprep.mubr.bf16.mxu1 %v4151_v42  ;;  %2671 = vmatprep.mubr.bf16.mxu0 %v4151_v42  ;;  %v1913_v34 = vmax.f32 %v1642_v29, 0.0  ;;  %v1645_v35 = vadd.f32 %v3874_v33, %v4592_v0  ;;  %v1636_v36 = vpop.f32.mrb[11].mxu0 }
 0x2d6   : > { %v1911_v37 = vmax.f32 %v1634_v32, 0.0  ;;  %v1637_v38 = vadd.f32 %v4592_v0, %v1636_v36 }
 0x2d7   : > { %v1914_v39 = vmax.f32 %v1645_v35, 0.0 }
 0x2d8   : > { %v1912_v40 = vmax.f32 %v1637_v38, 0.0 }
 0x2d9   : > { %v1983_v41 = vpack.c.bf16 %v1914_v39, %v1913_v34 }
 0x2da   : > { %v1982_v43 = vpack.c.bf16 %v1912_v40, %v1911_v37  ;;  %v3877_v44 = vpop.f32.mrb[12].mxu0 }
 0x2db   : > { %v1658_v45 = vadd.f32 %v3877_v44, %v4592_v0  ;;  %v1649_v46 = vpop.f32.mrb[13].mxu0 }
 0x2dc   : > { %2261 = vmatmul.mubr.bf16.gmra.mrb[88].mxu1 %v1980_v27  ;;  %2672 = vmatmul.mubr.bf16.gmra.mrb[84].mxu0 %v1980_v27  ;;  %v1650_v47 = vadd.f32 %v4592_v0, %v1649_v46  ;;  %v3878_v48 = vpop.f32.mrb[14].mxu0 }
 0x2dd   : > { %2270 = vmatprep.mubr.bf16.mxu1 %v4151_v42  ;;  %2681 = vmatprep.mubr.bf16.mxu0 %v4151_v42  ;;  %v1917_v49 = vmax.f32 %v1658_v45, 0.0  ;;  %v1661_v50 = vadd.f32 %v3878_v48, %v4592_v0  ;;  %v1652_v51 = vpop.f32.mrb[15].mxu0 }
 0x2de   : > { %v1915_v52 = vmax.f32 %v1650_v47, 0.0  ;;  %v1653_v53 = vadd.f32 %v4592_v0, %v1652_v51 }
 0x2df   : > { %v1918_v54 = vmax.f32 %v1661_v50, 0.0 }
 0x2e0   : > { %v1916_v55 = vmax.f32 %v1653_v53, 0.0 }
 0x2e1   : > { %v4616_v56 = vpack.c.bf16 %v1918_v54, %v1917_v49 }
 0x2e2   : > { %v1984_v57 = vpack.c.bf16 %v1916_v55, %v1915_v52  ;;  %v3881_v58 = vpop.f32.mrb[16].mxu0 }
 0x2e3   : > { %v1674_v59 = vadd.f32 %v3881_v58, %v4592_v0  ;;  %v1665_v60 = vpop.f32.mrb[17].mxu0 }
 0x2e4   : > { %2271 = vmatmul.mubr.bf16.gmra.mrb[92].mxu1 %v1981_v26  ;;  %2682 = vmatmul.mubr.bf16.gmra.mrb[88].mxu0 %v1981_v26  ;;  %v1666_v61 = vadd.f32 %v4592_v0, %v1665_v60  ;;  %v3882_v62 = vpop.f32.mrb[18].mxu0 }
 0x2e5   : > { %2280 = vmatprep.mubr.bf16.mxu1 %v4151_v42  ;;  %2691 = vmatprep.mubr.bf16.mxu0 %v4151_v42  ;;  %v1921_v63 = vmax.f32 %v1674_v59, 0.0  ;;  %v1677_v1 = vadd.f32 %v3882_v62, %v4592_v0  ;;  %v1668_v2 = vpop.f32.mrb[19].mxu0 }
 0x2e6   : > { %v1919_v3 = vmax.f32 %v1666_v61, 0.0  ;;  %v1669_v30 = vadd.f32 %v4592_v0, %v1668_v2 }
 0x2e7   : > { %v1922_v4 = vmax.f32 %v1677_v1, 0.0 }
 0x2e8   : > { %v1920_v5 = vmax.f32 %v1669_v30, 0.0 }
 0x2e9   : > { %v4624_v6 = vpack.c.bf16 %v1922_v4, %v1921_v63 }
 0x2ea   : > { %v4626_v7 = vpack.c.bf16 %v1920_v5, %v1919_v3  ;;  %v3885_v8 = vpop.f32.mrb[20].mxu0 }
 0x2eb   : > { %v1690_v9 = vadd.f32 %v3885_v8, %v4592_v0  ;;  %v1681_v10 = vpop.f32.mrb[21].mxu0 }
 0x2ec   : > { %2281 = vmatmul.mubr.bf16.gmra.mrb[96].mxu1 %v1982_v43  ;;  %2692 = vmatmul.mubr.bf16.gmra.mrb[92].mxu0 %v1982_v43  ;;  %v1682_v11 = vadd.f32 %v4592_v0, %v1681_v10  ;;  %v3886_v12 = vpop.f32.mrb[22].mxu0 }
 0x2ed   : > { %2290 = vmatprep.mubr.bf16.mxu1 %v4151_v42  ;;  %2701 = vmatprep.mubr.bf16.mxu0 %v4151_v42  ;;  %v1925_v13 = vmax.f32 %v1690_v9, 0.0  ;;  %v1693_v14 = vadd.f32 %v3886_v12, %v4592_v0  ;;  %v1684_v15 = vpop.f32.mrb[23].mxu0 }
 0x2ee   : > { %v1923_v16 = vmax.f32 %v1682_v11, 0.0  ;;  %v1685_v17 = vadd.f32 %v4592_v0, %v1684_v15 }
 0x2ef   : > { %v1926_v18 = vmax.f32 %v1693_v14, 0.0 }
 0x2f0   : > { %v1924_v19 = vmax.f32 %v1685_v17, 0.0 }
 0x2f1   : > { %v4634_v20 = vpack.c.bf16 %v1926_v18, %v1925_v13 }
 0x2f2   : > { %v4636_v21 = vpack.c.bf16 %v1924_v19, %v1923_v16  ;;  %v3889_v22 = vpop.f32.mrb[24].mxu0 }
 0x2f3   : > { %v1706_v23 = vadd.f32 %v3889_v22, %v4592_v0  ;;  %v1697_v24 = vpop.f32.mrb[25].mxu0 }
 0x2f4   : > { %2291 = vmatmul.mubr.bf16.gmra.mrb[100].mxu1 %v1983_v41  ;;  %2702 = vmatmul.mubr.bf16.gmra.mrb[96].mxu0 %v1983_v41  ;;  %v1698_v25 = vadd.f32 %v4592_v0, %v1697_v24  ;;  %v3890_v26 = vpop.f32.mrb[26].mxu0 }
 0x2f5   : > { %2300 = vmatprep.mubr.bf16.mxu1 %v4151_v42  ;;  %2711 = vmatprep.mubr.bf16.mxu0 %v4151_v42  ;;  %v1929_v27 = vmax.f32 %v1706_v23, 0.0  ;;  %v1709_v28 = vadd.f32 %v3890_v26, %v4592_v0  ;;  %v1700_v29 = vpop.f32.mrb[27].mxu0 }
 0x2f6   : > { %v1927_v31 = vmax.f32 %v1698_v25, 0.0  ;;  %v1701_v32 = vadd.f32 %v4592_v0, %v1700_v29 }
 0x2f7   : > { %v1930_v33 = vmax.f32 %v1709_v28, 0.0 }
 0x2f8   : > { %v1928_v34 = vmax.f32 %v1701_v32, 0.0 }
 0x2f9   : > { %v4644_v35 = vpack.c.bf16 %v1930_v33, %v1929_v27 }
 0x2fa   : > { %v4646_v36 = vpack.c.bf16 %v1928_v34, %v1927_v31  ;;  %v3893_v37 = vpop.f32.mrb[28].mxu0 }
 0x2fb   : > { %v1722_v38 = vadd.f32 %v3893_v37, %v4592_v0  ;;  %v1713_v39 = vpop.f32.mrb[29].mxu0 }
 0x2fc   : > { %2301 = vmatmul.mubr.bf16.gmra.mrb[104].mxu1 %v1984_v57  ;;  %2712 = vmatmul.mubr.bf16.gmra.mrb[100].mxu0 %v1984_v57  ;;  %v1714_v40 = vadd.f32 %v4592_v0, %v1713_v39  ;;  %v3894_v41 = vpop.f32.mrb[30].mxu0 }
 0x2fd   : > { %2310 = vmatprep.mubr.bf16.mxu1 %v4151_v42  ;;  %2721 = vmatprep.mubr.bf16.mxu0 %v4151_v42  ;;  %v1933_v43 = vmax.f32 %v1722_v38, 0.0  ;;  %v1725_v44 = vadd.f32 %v3894_v41, %v4592_v0  ;;  %v1716_v45 = vpop.f32.mrb[31].mxu0 }
 0x2fe   : > { %v1931_v46 = vmax.f32 %v1714_v40, 0.0  ;;  %v1717_v47 = vadd.f32 %v4592_v0, %v1716_v45 }
 0x2ff   : > { %v1934_v48 = vmax.f32 %v1725_v44, 0.0 }
 0x300   : > { %v1932_v49 = vmax.f32 %v1717_v47, 0.0 }
 0x301   : > { %v4654_v50 = vpack.c.bf16 %v1934_v48, %v1933_v43 }
 0x302   : > { %v4656_v51 = vpack.c.bf16 %v1932_v49, %v1931_v46  ;;  %v3897_v52 = vpop.f32.mrb[32].mxu0 }
 0x303   : > { %v1738_v53 = vadd.f32 %v3897_v52, %v4592_v0  ;;  %v1729_v54 = vpop.f32.mrb[33].mxu0 }
 0x304   : > { %2311 = vmatmul.mubr.bf16.gmra.mrb[108].mxu1 %v4616_v56  ;;  %2722 = vmatmul.mubr.bf16.gmra.mrb[104].mxu0 %v4616_v56  ;;  %v1730_v55 = vadd.f32 %v4592_v0, %v1729_v54  ;;  %v3898_v57 = vpop.f32.mrb[34].mxu0 }
 0x305   : > { %2320 = vmatprep.mubr.bf16.mxu1 %v4151_v42  ;;  %2731 = vmatprep.mubr.bf16.mxu0 %v4151_v42  ;;  %v1937_v58 = vmax.f32 %v1738_v53, 0.0  ;;  %v1741_v59 = vadd.f32 %v3898_v57, %v4592_v0  ;;  %v1732_v60 = vpop.f32.mrb[35].mxu0 }
 0x306   : > { %v1935_v61 = vmax.f32 %v1730_v55, 0.0  ;;  %v1733_v62 = vadd.f32 %v4592_v0, %v1732_v60 }
 0x307   : > { %v1938_v63 = vmax.f32 %v1741_v59, 0.0 }
 0x308   : > { %v1936_v1 = vmax.f32 %v1733_v62, 0.0 }
 0x309   : > { %v4666_v2 = vpack.c.bf16 %v1938_v63, %v1937_v58 }
 0x30a   : > { %v4668_v3 = vpack.c.bf16 %v1936_v1, %v1935_v61  ;;  %v3901_v56 = vpop.f32.mrb[36].mxu0 }
 0x30b   : > { %v1754_v30 = vadd.f32 %v3901_v56, %v4592_v0  ;;  %v1745_v4 = vpop.f32.mrb[37].mxu0 }
 0x30c   : > { %2321 = vmatmul.mubr.bf16.gmra.mrb[112].mxu1 %v4626_v7  ;;  %2732 = vmatmul.mubr.bf16.gmra.mrb[108].mxu0 %v4626_v7  ;;  %v1746_v5 = vadd.f32 %v4592_v0, %v1745_v4  ;;  %v3902_v8 = vpop.f32.mrb[38].mxu0 }
 0x30d   : > { %2330 = vmatprep.mubr.bf16.mxu1 %v4151_v42  ;;  %2741 = vmatprep.mubr.bf16.mxu0 %v4151_v42  ;;  %v1941_v9 = vmax.f32 %v1754_v30, 0.0  ;;  %v1757_v10 = vadd.f32 %v3902_v8, %v4592_v0  ;;  %v1748_v11 = vpop.f32.mrb[39].mxu0 }
 0x30e   : > { %v1939_v12 = vmax.f32 %v1746_v5, 0.0  ;;  %v1749_v13 = vadd.f32 %v4592_v0, %v1748_v11 }
 0x30f   : > { %v1942_v14 = vmax.f32 %v1757_v10, 0.0 }
 0x310   : > { %v1940_v15 = vmax.f32 %v1749_v13, 0.0 }
 0x311   : > { %v4678_v16 = vpack.c.bf16 %v1942_v14, %v1941_v9 }
 0x312   : > { %v4680_v17 = vpack.c.bf16 %v1940_v15, %v1939_v12  ;;  %v3905_v7 = vpop.f32.mrb[40].mxu0 }
 0x313   : > { %v1770_v18 = vadd.f32 %v3905_v7, %v4592_v0  ;;  %v1761_v19 = vpop.f32.mrb[41].mxu0 }
 0x314   : > { %2331 = vmatmul.mubr.bf16.gmra.mrb[116].mxu1 %v4624_v6  ;;  %2742 = vmatmul.mubr.bf16.gmra.mrb[112].mxu0 %v4624_v6  ;;  %v1762_v22 = vadd.f32 %v4592_v0, %v1761_v19  ;;  %v3906_v23 = vpop.f32.mrb[42].mxu0 }
 0x315   : > { %2340 = vmatprep.mubr.bf16.mxu1 %v4151_v42  ;;  %2751 = vmatprep.mubr.bf16.mxu0 %v4151_v42  ;;  %v1945_v24 = vmax.f32 %v1770_v18, 0.0  ;;  %v1773_v25 = vadd.f32 %v3906_v23, %v4592_v0  ;;  %v1764_v26 = vpop.f32.mrb[43].mxu0 }
 0x316   : > { %v1943_v27 = vmax.f32 %v1762_v22, 0.0  ;;  %v1765_v28 = vadd.f32 %v4592_v0, %v1764_v26 }
 0x317   : > { %v1946_v29 = vmax.f32 %v1773_v25, 0.0 }
 0x318   : > { %v1944_v31 = vmax.f32 %v1765_v28, 0.0 }
 0x319   : > { %v4690_v32 = vpack.c.bf16 %v1946_v29, %v1945_v24 }
 0x31a   : > { %v4692_v33 = vpack.c.bf16 %v1944_v31, %v1943_v27  ;;  %v3909_v6 = vpop.f32.mrb[44].mxu0 }
 0x31b   : > { %v1786_v34 = vadd.f32 %v3909_v6, %v4592_v0  ;;  %v1777_v37 = vpop.f32.mrb[45].mxu0 }
 0x31c   : > { %2341 = vmatmul.mubr.bf16.gmra.mrb[120].mxu1 %v4636_v21  ;;  %2752 = vmatmul.mubr.bf16.gmra.mrb[116].mxu0 %v4636_v21  ;;  %v1778_v38 = vadd.f32 %v4592_v0, %v1777_v37  ;;  %v3910_v39 = vpop.f32.mrb[46].mxu0 }
 0x31d   : > { %2350 = vmatprep.mubr.bf16.mxu1 %v4151_v42  ;;  %2761 = vmatprep.mubr.bf16.mxu0 %v4151_v42  ;;  %v1949_v40 = vmax.f32 %v1786_v34, 0.0  ;;  %v1789_v41 = vadd.f32 %v3910_v39, %v4592_v0  ;;  %v1780_v43 = vpop.f32.mrb[47].mxu0 }
 0x31e   : > { %v1947_v44 = vmax.f32 %v1778_v38, 0.0  ;;  %v1781_v45 = vadd.f32 %v4592_v0, %v1780_v43 }
 0x31f   : > { %v1950_v46 = vmax.f32 %v1789_v41, 0.0 }
 0x320   : > { %v1948_v47 = vmax.f32 %v1781_v45, 0.0 }
 0x321   : > { %v4702_v48 = vpack.c.bf16 %v1950_v46, %v1949_v40 }
 0x322   : > { %v4704_v49 = vpack.c.bf16 %v1948_v47, %v1947_v44  ;;  %v3913_v21 = vpop.f32.mrb[48].mxu0 }
 0x323   : > { %v1802_v52 = vadd.f32 %v3913_v21, %v4592_v0  ;;  %v1793_v53 = vpop.f32.mrb[49].mxu0 }
 0x324   : > { %2351 = vmatmul.mubr.bf16.gmra.mrb[124].mxu1 %v4634_v20  ;;  %2762 = vmatmul.mubr.bf16.gmra.mrb[120].mxu0 %v4634_v20  ;;  %v1794_v54 = vadd.f32 %v4592_v0, %v1793_v53  ;;  %v3914_v55 = vpop.f32.mrb[50].mxu0 }
 0x325   : > { %2360 = vmatprep.mubr.bf16.mxu1 %v4151_v42  ;;  %2771 = vmatprep.mubr.bf16.mxu0 %v4151_v42  ;;  %v1953_v57 = vmax.f32 %v1802_v52, 0.0  ;;  %v1805_v58 = vadd.f32 %v3914_v55, %v4592_v0  ;;  %v1796_v59 = vpop.f32.mrb[51].mxu0 }
 0x326   : > { %v1951_v60 = vmax.f32 %v1794_v54, 0.0  ;;  %v1797_v61 = vadd.f32 %v4592_v0, %v1796_v59 }
 0x327   : > { %v1954_v62 = vmax.f32 %v1805_v58, 0.0 }
 0x328   : > { %v1952_v63 = vmax.f32 %v1797_v61, 0.0 }
 0x329   : > { %v4714_v1 = vpack.c.bf16 %v1954_v62, %v1953_v57 }
 0x32a   : > { %v4716_v56 = vpack.c.bf16 %v1952_v63, %v1951_v60  ;;  %v3917_v20 = vpop.f32.mrb[52].mxu0 }
 0x32b   : > { %v1818_v30 = vadd.f32 %v3917_v20, %v4592_v0  ;;  %v1809_v4 = vpop.f32.mrb[53].mxu0 }
 0x32c   : > { %2361 = vmatmul.mubr.bf16.gmra.mrb[128].mxu1 %v4646_v36  ;;  %2772 = vmatmul.mubr.bf16.gmra.mrb[124].mxu0 %v4646_v36  ;;  %v1810_v5 = vadd.f32 %v4592_v0, %v1809_v4  ;;  %v3918_v8 = vpop.f32.mrb[54].mxu0 }
 0x32d   : > { %2370 = vmatprep.mubr.bf16.mxu1 %v4151_v42  ;;  %2781 = vmatprep.mubr.bf16.mxu0 %v4151_v42  ;;  %v1957_v9 = vmax.f32 %v1818_v30, 0.0  ;;  %v1821_v10 = vadd.f32 %v3918_v8, %v4592_v0  ;;  %v1812_v11 = vpop.f32.mrb[55].mxu0 }
 0x32e   : > { %v1955_v12 = vmax.f32 %v1810_v5, 0.0  ;;  %v1813_v13 = vadd.f32 %v4592_v0, %v1812_v11 }
 0x32f   : > { %v1958_v14 = vmax.f32 %v1821_v10, 0.0 }
 0x330   : > { %v1956_v15 = vmax.f32 %v1813_v13, 0.0 }
 0x331   : > { %v4726_v7 = vpack.c.bf16 %v1958_v14, %v1957_v9 }
 0x332   : > { %v4728_v18 = vpack.c.bf16 %v1956_v15, %v1955_v12  ;;  %v3921_v36 = vpop.f32.mrb[56].mxu0 }
 0x333   : > { %v1834_v19 = vadd.f32 %v3921_v36, %v4592_v0  ;;  %v1825_v22 = vpop.f32.mrb[57].mxu0 }
 0x334   : > { %2371 = vmatmul.mubr.bf16.gmra.mrb[132].mxu1 %v4644_v35  ;;  %2782 = vmatmul.mubr.bf16.gmra.mrb[128].mxu0 %v4644_v35  ;;  %v1826_v23 = vadd.f32 %v4592_v0, %v1825_v22  ;;  %v3922_v24 = vpop.f32.mrb[58].mxu0 }
 0x335   : > { %2380 = vmatprep.mubr.bf16.mxu1 %v4151_v42  ;;  %2791 = vmatprep.mubr.bf16.mxu0 %v4151_v42  ;;  %v1961_v25 = vmax.f32 %v1834_v19, 0.0  ;;  %v1837_v26 = vadd.f32 %v3922_v24, %v4592_v0  ;;  %v1828_v27 = vpop.f32.mrb[59].mxu0 }
 0x336   : > { %v1959_v28 = vmax.f32 %v1826_v23, 0.0  ;;  %v1829_v29 = vadd.f32 %v4592_v0, %v1828_v27 }
 0x337   : > { %v1962_v31 = vmax.f32 %v1837_v26, 0.0 }
 0x338   : > { %v1960_v6 = vmax.f32 %v1829_v29, 0.0 }
 0x339   : > { %v4738_v34 = vpack.c.bf16 %v1962_v31, %v1961_v25 }
 0x33a   : > { %v4740_v37 = vpack.c.bf16 %v1960_v6, %v1959_v28  ;;  %v3925_v35 = vpop.f32.mrb[60].mxu0 }
 0x33b   : > { %v1850_v38 = vadd.f32 %v3925_v35, %v4592_v0  ;;  %v1841_v39 = vpop.f32.mrb[61].mxu0 }
 0x33c   : > { %2381 = vmatmul.mubr.bf16.gmra.mrb[136].mxu1 %v4656_v51  ;;  %2792 = vmatmul.mubr.bf16.gmra.mrb[132].mxu0 %v4656_v51  ;;  %v1842_v40 = vadd.f32 %v4592_v0, %v1841_v39  ;;  %v3926_v41 = vpop.f32.mrb[62].mxu0 }
 0x33d   : > { %2390 = vmatprep.mubr.bf16.mxu1 %v4151_v42  ;;  %2801 = vmatprep.mubr.bf16.mxu0 %v4151_v42  ;;  %v1965_v43 = vmax.f32 %v1850_v38, 0.0  ;;  %v1853_v44 = vadd.f32 %v3926_v41, %v4592_v0  ;;  %v1844_v45 = vpop.f32.mrb[63].mxu0 }
 0x33e   : > { %v1963_v46 = vmax.f32 %v1842_v40, 0.0  ;;  %v1845_v47 = vadd.f32 %v4592_v0, %v1844_v45 }
 0x33f   : > { %v1966_v21 = vmax.f32 %v1853_v44, 0.0 }
 0x340   : > { %v1964_v52 = vmax.f32 %v1845_v47, 0.0 }
 0x341   : > { %v4750_v53 = vpack.c.bf16 %v1966_v21, %v1965_v43 }
 0x342   : > { %v4752_v54 = vpack.c.bf16 %v1964_v52, %v1963_v46  ;;  %v3929_v51 = vpop.f32.mrb[64].mxu0 }
 0x343   : > { %v1866_v55 = vadd.f32 %v3929_v51, %v4592_v0  ;;  %v1857_v57 = vpop.f32.mrb[65].mxu0 }
 0x344   : > { %2391 = vmatmul.mubr.bf16.gmra.mrb[140].mxu1 %v4654_v50  ;;  %2802 = vmatmul.mubr.bf16.gmra.mrb[136].mxu0 %v4654_v50  ;;  %v1858_v58 = vadd.f32 %v4592_v0, %v1857_v57  ;;  %v3930_v59 = vpop.f32.mrb[66].mxu0 }
 0x345   : > { %2400 = vmatprep.mubr.bf16.mxu1 %v4151_v42  ;;  %2811 = vmatprep.mubr.bf16.mxu0 %v4151_v42  ;;  %v1969_v60 = vmax.f32 %v1866_v55, 0.0  ;;  %v1869_v61 = vadd.f32 %v3930_v59, %v4592_v0  ;;  %v1860_v62 = vpop.f32.mrb[67].mxu0 }
 0x346   : > { %v1967_v63 = vmax.f32 %v1858_v58, 0.0  ;;  %v1861_v20 = vadd.f32 %v4592_v0, %v1860_v62 }
 0x347   : > { %v1970_v30 = vmax.f32 %v1869_v61, 0.0 }
 0x348   : > { %v1968_v4 = vmax.f32 %v1861_v20, 0.0 }
 0x349   : > { %v4762_v5 = vpack.c.bf16 %v1970_v30, %v1969_v60 }
 0x34a   : > { %v4764_v8 = vpack.c.bf16 %v1968_v4, %v1967_v63  ;;  %v3933_v50 = vpop.f32.mrb[68].mxu0 }
 0x34b   : > { %v1882_v9 = vadd.f32 %v3933_v50, %v4592_v0  ;;  %v1873_v10 = vpop.f32.mrb[69].mxu0 }
 0x34c   : > { %2401 = vmatmul.mubr.bf16.gmra.mrb[144].mxu1 %v4668_v3  ;;  %2812 = vmatmul.mubr.bf16.gmra.mrb[140].mxu0 %v4668_v3  ;;  %v1874_v11 = vadd.f32 %v4592_v0, %v1873_v10  ;;  %v3934_v12 = vpop.f32.mrb[70].mxu0 }
 0x34d   : > { %2410 = vmatprep.mubr.bf16.mxu1 %v4151_v42  ;;  %2821 = vmatprep.mubr.bf16.mxu0 %v4151_v42  ;;  %v1973_v13 = vmax.f32 %v1882_v9, 0.0  ;;  %v1885_v14 = vadd.f32 %v3934_v12, %v4592_v0  ;;  %v1876_v15 = vpop.f32.mrb[71].mxu0 }
 0x34e   : > { %v1971_v36 = vmax.f32 %v1874_v11, 0.0  ;;  %v1877_v19 = vadd.f32 %v4592_v0, %v1876_v15 }
 0x34f   : > { %v1974_v22 = vmax.f32 %v1885_v14, 0.0 }
 0x350   : > { %v1972_v23 = vmax.f32 %v1877_v19, 0.0 }
 0x351   : > { %v4774_v24 = vpack.c.bf16 %v1974_v22, %v1973_v13 }
 0x352   : > { %v4776_v25 = vpack.c.bf16 %v1972_v23, %v1971_v36  ;;  %v4778_v3 = vpop.f32.mrb[72].mxu0 }
 0x353   : > { %v1889_v26 = vpop.f32.mrb[73].mxu0 }
 0x354   : > { %2411 = vmatmul.mubr.bf16.gmra.mrb[148].mxu1 %v4666_v2  ;;  %2822 = vmatmul.mubr.bf16.gmra.mrb[144].mxu0 %v4666_v2  ;;  %v1890_v27 = vadd.f32 %v4592_v0, %v1889_v26  ;;  %v3938_v28 = vpop.f32.mrb[74].mxu0 }
 0x355   : > { %2420 = vmatprep.mubr.bf16.mxu1 %v4151_v42  ;;  %2831 = vmatprep.mubr.bf16.mxu0 %v4151_v42  ;;  %v1892_v29 = vpop.f32.mrb[75].mxu0 }
 0x356   : > { %v1975_v31 = vmax.f32 %v1890_v27, 0.0  ;;  %v1893_v6 = vadd.f32 %v4592_v0, %v1892_v29 }
 0x358   : > { %v1976_v35 = vmax.f32 %v1893_v6, 0.0 }
 0x35a   : > { %v4786_v38 = vpack.c.bf16 %v1976_v35, %v1975_v31 }
 0x35c   : > { %2421 = vmatmul.mubr.bf16.gmra.mrb[152].mxu1 %v4680_v17  ;;  %2832 = vmatmul.mubr.bf16.gmra.mrb[148].mxu0 %v4680_v17 }
 0x35d   : > { %2430 = vmatprep.mubr.bf16.mxu1 %v4151_v42  ;;  %2841 = vmatprep.mubr.bf16.mxu0 %v4151_v42 }
 0x364   : > { %2431 = vmatmul.mubr.bf16.gmra.mrb[156].mxu1 %v4678_v16  ;;  %2842 = vmatmul.mubr.bf16.gmra.mrb[152].mxu0 %v4678_v16 }
 0x365   : > { %2440 = vmatprep.mubr.bf16.mxu1 %v4151_v42  ;;  %2851 = vmatprep.mubr.bf16.mxu0 %v4151_v42 }
 0x36c   : > { %2441 = vmatmul.mubr.bf16.gmra.mrb[160].mxu1 %v4692_v33  ;;  %2852 = vmatmul.mubr.bf16.gmra.mrb[156].mxu0 %v4692_v33 }
 0x36d   : > { %2450 = vmatprep.mubr.bf16.mxu1 %v4151_v42  ;;  %2861 = vmatprep.mubr.bf16.mxu0 %v4151_v42 }
 0x374   : > { %2451 = vmatmul.mubr.bf16.gmra.mrb[164].mxu1 %v4690_v32  ;;  %2862 = vmatmul.mubr.bf16.gmra.mrb[160].mxu0 %v4690_v32 }
 0x375   : > { %2460 = vmatprep.mubr.bf16.mxu1 %v4151_v42  ;;  %2871 = vmatprep.mubr.bf16.mxu0 %v4151_v42 }
 0x37c   : > { %2461 = vmatmul.mubr.bf16.gmra.mrb[168].mxu1 %v4704_v49  ;;  %2872 = vmatmul.mubr.bf16.gmra.mrb[164].mxu0 %v4704_v49 }
 0x37d   : > { %2470 = vmatprep.mubr.bf16.mxu1 %v4151_v42  ;;  %2881 = vmatprep.mubr.bf16.mxu0 %v4151_v42 }
 0x384   : > { %2471 = vmatmul.mubr.bf16.gmra.mrb[172].mxu1 %v4702_v48  ;;  %2882 = vmatmul.mubr.bf16.gmra.mrb[168].mxu0 %v4702_v48 }
 0x385   : > { %2480 = vmatprep.mubr.bf16.mxu1 %v4151_v42  ;;  %2891 = vmatprep.mubr.bf16.mxu0 %v4151_v42 }
 0x38c   : > { %2481 = vmatmul.mubr.bf16.gmra.mrb[176].mxu1 %v4716_v56  ;;  %2892 = vmatmul.mubr.bf16.gmra.mrb[172].mxu0 %v4716_v56 }
 0x38d   : > { %2490 = vmatprep.mubr.bf16.mxu1 %v4151_v42  ;;  %2901 = vmatprep.mubr.bf16.mxu0 %v4151_v42 }
 0x394   : > { %2491 = vmatmul.mubr.bf16.gmra.mrb[180].mxu1 %v4714_v1  ;;  %2902 = vmatmul.mubr.bf16.gmra.mrb[176].mxu0 %v4714_v1 }
 0x395   : > { %2500 = vmatprep.mubr.bf16.mxu1 %v4151_v42  ;;  %2911 = vmatprep.mubr.bf16.mxu0 %v4151_v42 }
 0x39c   : > { %2501 = vmatmul.mubr.bf16.gmra.mrb[184].mxu1 %v4728_v18  ;;  %2912 = vmatmul.mubr.bf16.gmra.mrb[180].mxu0 %v4728_v18 }
 0x39d   : > { %2510 = vmatprep.mubr.bf16.mxu1 %v4151_v42  ;;  %2921 = vmatprep.mubr.bf16.mxu0 %v4151_v42 }
 0x39f   : > { %v2242_v0 = vpop.f32.mrb[80].mxu1  ;;  %v2653_v2 = vpop.f32.mrb[76].mxu0 }
 0x3a0   : > { %v2244_v16 = vpop.f32.mrb[81].mxu1  ;;  %v2655_v17 = vpop.f32.mrb[77].mxu0 }
 0x3a1   : > { %v2246_v32 = vpop.f32.mrb[82].mxu1  ;;  %v2657_v33 = vpop.f32.mrb[78].mxu0 }
 0x3a2   : > { %v3031_v48 = vmax.f32 %v2242_v0, %v2246_v32  ;;  %v3191_v49 = vmax.f32 %v2653_v2, %v2657_v33  ;;  %v2248_v1 = vpop.f32.mrb[83].mxu1  ;;  %v2659_v56 = vpop.f32.mrb[79].mxu0 }
 0x3a3   : > { %v3111_v39 = vmax.f32 %v2244_v16, %v2248_v1  ;;  %v3271_v40 = vmax.f32 %v2655_v17, %v2659_v56 }
 0x3a4   : > { %2511 = vmatmul.mubr.bf16.gmra.mrb[188].mxu1 %v4726_v7  ;;  %2922 = vmatmul.mubr.bf16.gmra.mrb[184].mxu0 %v4726_v7 }
 0x3a5   : > { %2520 = vmatprep.mubr.bf16.mxu1 %v4151_v42  ;;  %2931 = vmatprep.mubr.bf16.mxu0 %v4151_v42 }
 0x3a7   : > { %v2252_v18 = vpop.f32.mrb[84].mxu1  ;;  %v2663_v41 = vpop.f32.mrb[80].mxu0 }
 0x3a8   : > { %v3032_v43 = vmax.f32 %v3031_v48, %v2252_v18  ;;  %v3192_v44 = vmax.f32 %v3191_v49, %v2663_v41  ;;  %v2254_v45 = vpop.f32.mrb[85].mxu1  ;;  %v2665_v46 = vpop.f32.mrb[81].mxu0 }
 0x3a9   : > { %v3112_v47 = vmax.f32 %v3111_v39, %v2254_v45  ;;  %v3272_v21 = vmax.f32 %v3271_v40, %v2665_v46  ;;  %v2256_v52 = vpop.f32.mrb[86].mxu1  ;;  %v2667_v51 = vpop.f32.mrb[82].mxu0 }
 0x3aa   : > { %v3033_v55 = vmax.f32 %v3032_v43, %v2256_v52  ;;  %v3193_v57 = vmax.f32 %v3192_v44, %v2667_v51  ;;  %v2258_v58 = vpop.f32.mrb[87].mxu1  ;;  %v2669_v59 = vpop.f32.mrb[83].mxu0 }
 0x3ab   : > { %v3113_v60 = vmax.f32 %v3112_v47, %v2258_v58  ;;  %v3273_v7 = vmax.f32 %v3272_v21, %v2669_v59 }
 0x3ac   : > { %2521 = vmatmul.mubr.bf16.gmra.mrb[192].mxu1 %v4740_v37  ;;  %2932 = vmatmul.mubr.bf16.gmra.mrb[188].mxu0 %v4740_v37 }
 0x3ad   : > { %2530 = vmatprep.mubr.bf16.mxu1 %v4151_v42  ;;  %2941 = vmatprep.mubr.bf16.mxu0 %v4151_v42 }
 0x3af   : > { %v2262_v61 = vpop.f32.mrb[88].mxu1  ;;  %v2673_v62 = vpop.f32.mrb[84].mxu0 }
 0x3b0   : > { %v3034_v63 = vmax.f32 %v3033_v55, %v2262_v61  ;;  %v3194_v20 = vmax.f32 %v3193_v57, %v2673_v62  ;;  %v2264_v30 = vpop.f32.mrb[89].mxu1  ;;  %v2675_v4 = vpop.f32.mrb[85].mxu0 }
 0x3b1   : > { %v3114_v50 = vmax.f32 %v3113_v60, %v2264_v30  ;;  %v3274_v9 = vmax.f32 %v3273_v7, %v2675_v4  ;;  %v2266_v10 = vpop.f32.mrb[90].mxu1  ;;  %v2677_v11 = vpop.f32.mrb[86].mxu0 }
 0x3b2   : > { %v3035_v12 = vmax.f32 %v3034_v63, %v2266_v10  ;;  %v3195_v13 = vmax.f32 %v3194_v20, %v2677_v11  ;;  %v2268_v14 = vpop.f32.mrb[91].mxu1  ;;  %v2679_v15 = vpop.f32.mrb[87].mxu0 }
 0x3b3   : > { %v3115_v36 = vmax.f32 %v3114_v50, %v2268_v14  ;;  %v3275_v37 = vmax.f32 %v3274_v9, %v2679_v15 }
 0x3b4   : > { %2531 = vmatmul.mubr.bf16.gmra.mrb[196].mxu1 %v4738_v34  ;;  %2942 = vmatmul.mubr.bf16.gmra.mrb[192].mxu0 %v4738_v34 }
 0x3b5   : > { %2540 = vmatprep.mubr.bf16.mxu1 %v4151_v42  ;;  %2951 = vmatprep.mubr.bf16.mxu0 %v4151_v42 }
 0x3b7   : > { %v2272_v19 = vpop.f32.mrb[92].mxu1  ;;  %v2683_v22 = vpop.f32.mrb[88].mxu0 }
 0x3b8   : > { %v3036_v23 = vmax.f32 %v3035_v12, %v2272_v19  ;;  %v3196_v26 = vmax.f32 %v3195_v13, %v2683_v22  ;;  %v2274_v27 = vpop.f32.mrb[93].mxu1  ;;  %v2685_v28 = vpop.f32.mrb[89].mxu0 }
 0x3b9   : > { %v3116_v29 = vmax.f32 %v3115_v36, %v2274_v27  ;;  %v3276_v31 = vmax.f32 %v3275_v37, %v2685_v28  ;;  %v2276_v6 = vpop.f32.mrb[94].mxu1  ;;  %v2687_v35 = vpop.f32.mrb[90].mxu0 }
 0x3ba   : > { %v3037_v0 = vmax.f32 %v3036_v23, %v2276_v6  ;;  %v3197_v2 = vmax.f32 %v3196_v26, %v2687_v35  ;;  %v2278_v16 = vpop.f32.mrb[95].mxu1  ;;  %v2689_v17 = vpop.f32.mrb[91].mxu0 }
 0x3bb   : > { %v3117_v32 = vmax.f32 %v3116_v29, %v2278_v16  ;;  %v3277_v34 = vmax.f32 %v3276_v31, %v2689_v17 }
 0x3bc   : > { %2541 = vmatmul.mubr.bf16.gmra.mrb[200].mxu1 %v4752_v54  ;;  %2952 = vmatmul.mubr.bf16.gmra.mrb[196].mxu0 %v4752_v54 }
 0x3bd   : > { %2550 = vmatprep.mubr.bf16.mxu1 %v4151_v42  ;;  %2961 = vmatprep.mubr.bf16.mxu0 %v4151_v42 }
 0x3bf   : > { %v2282_v33 = vpop.f32.mrb[96].mxu1  ;;  %v2693_v48 = vpop.f32.mrb[92].mxu0 }
 0x3c0   : > { %v3038_v49 = vmax.f32 %v3037_v0, %v2282_v33  ;;  %v3198_v1 = vmax.f32 %v3197_v2, %v2693_v48  ;;  %v2284_v56 = vpop.f32.mrb[97].mxu1  ;;  %v2695_v39 = vpop.f32.mrb[93].mxu0 }
 0x3c1   : > { %v3118_v40 = vmax.f32 %v3117_v32, %v2284_v56  ;;  %v3278_v18 = vmax.f32 %v3277_v34, %v2695_v39  ;;  %v2286_v41 = vpop.f32.mrb[98].mxu1  ;;  %v2697_v43 = vpop.f32.mrb[94].mxu0 }
 0x3c2   : > { %v3039_v44 = vmax.f32 %v3038_v49, %v2286_v41  ;;  %v3199_v45 = vmax.f32 %v3198_v1, %v2697_v43  ;;  %v2288_v46 = vpop.f32.mrb[99].mxu1  ;;  %v2699_v47 = vpop.f32.mrb[95].mxu0 }
 0x3c3   : > { %v3119_v21 = vmax.f32 %v3118_v40, %v2288_v46  ;;  %v3279_v54 = vmax.f32 %v3278_v18, %v2699_v47 }
 0x3c4   : > { %2551 = vmatmul.mubr.bf16.gmra.mrb[204].mxu1 %v4750_v53  ;;  %2962 = vmatmul.mubr.bf16.gmra.mrb[200].mxu0 %v4750_v53 }
 0x3c5   : > { %2560 = vmatprep.mubr.bf16.mxu1 %v4151_v42  ;;  %2971 = vmatprep.mubr.bf16.mxu0 %v4151_v42 }
 0x3c7   : > { %v2292_v52 = vpop.f32.mrb[100].mxu1  ;;  %v2703_v51 = vpop.f32.mrb[96].mxu0 }
 0x3c8   : > { %v3040_v55 = vmax.f32 %v3039_v44, %v2292_v52  ;;  %v3200_v57 = vmax.f32 %v3199_v45, %v2703_v51  ;;  %v2294_v58 = vpop.f32.mrb[101].mxu1  ;;  %v2705_v59 = vpop.f32.mrb[97].mxu0 }
 0x3c9   : > { %v3120_v60 = vmax.f32 %v3119_v21, %v2294_v58  ;;  %v3280_v7 = vmax.f32 %v3279_v54, %v2705_v59  ;;  %v2296_v61 = vpop.f32.mrb[102].mxu1  ;;  %v2707_v62 = vpop.f32.mrb[98].mxu0 }
 0x3ca   : > { %v3041_v63 = vmax.f32 %v3040_v55, %v2296_v61  ;;  %v3201_v20 = vmax.f32 %v3200_v57, %v2707_v62  ;;  %v2298_v30 = vpop.f32.mrb[103].mxu1  ;;  %v2709_v4 = vpop.f32.mrb[99].mxu0 }
 0x3cb   : > { %v3121_v50 = vmax.f32 %v3120_v60, %v2298_v30  ;;  %v3281_v53 = vmax.f32 %v3280_v7, %v2709_v4 }
 0x3cc   : > { %2561 = vmatmul.mubr.bf16.gmra.mrb[208].mxu1 %v4764_v8  ;;  %2972 = vmatmul.mubr.bf16.gmra.mrb[204].mxu0 %v4764_v8 }
 0x3cd   : > { %2570 = vmatprep.mubr.bf16.mxu1 %v4151_v42  ;;  %2981 = vmatprep.mubr.bf16.mxu0 %v4151_v42 }
 0x3cf   : > { %v2302_v9 = vpop.f32.mrb[104].mxu1  ;;  %v2713_v10 = vpop.f32.mrb[100].mxu0 }
 0x3d0   : > { %v3042_v11 = vmax.f32 %v3041_v63, %v2302_v9  ;;  %v3202_v12 = vmax.f32 %v3201_v20, %v2713_v10  ;;  %v2304_v13 = vpop.f32.mrb[105].mxu1  ;;  %v2715_v14 = vpop.f32.mrb[101].mxu0 }
 0x3d1   : > { %v3122_v15 = vmax.f32 %v3121_v50, %v2304_v13  ;;  %v3282_v36 = vmax.f32 %v3281_v53, %v2715_v14  ;;  %v2306_v37 = vpop.f32.mrb[106].mxu1  ;;  %v2717_v19 = vpop.f32.mrb[102].mxu0  ;;  %v4092_v50 = vld [vmem:[%s4915_s5] ss:$0 sm:$0xff] }
 0x3d2   : > { %v3043_v22 = vmax.f32 %v3042_v11, %v2306_v37  ;;  %v3203_v23 = vmax.f32 %v3202_v12, %v2717_v19  ;;  %v2308_v26 = vpop.f32.mrb[107].mxu1  ;;  %v2719_v27 = vpop.f32.mrb[103].mxu0 }
 0x3d3   : > { %v3123_v28 = vmax.f32 %v3122_v15, %v2308_v26  ;;  %v3283_v8 = vmax.f32 %v3282_v36, %v2719_v27 }
 0x3d4   : > { %2571 = vmatmul.mubr.bf16.gmra.mrb[212].mxu1 %v4762_v5  ;;  %2982 = vmatmul.mubr.bf16.gmra.mrb[208].mxu0 %v4762_v5 }
 0x3d5   : > { %2580 = vmatprep.mubr.bf16.mxu1 %v4151_v42  ;;  %2991 = vmatprep.mubr.bf16.mxu0 %v4151_v42 }
 0x3d7   : > { %v2312_v29 = vpop.f32.mrb[108].mxu1  ;;  %v2723_v31 = vpop.f32.mrb[104].mxu0 }
 0x3d8   : > { %v3044_v6 = vmax.f32 %v3043_v22, %v2312_v29  ;;  %v3204_v35 = vmax.f32 %v3203_v23, %v2723_v31  ;;  %v2314_v0 = vpop.f32.mrb[109].mxu1  ;;  %v2725_v2 = vpop.f32.mrb[105].mxu0 }
 0x3d9   : > { %v3124_v16 = vmax.f32 %v3123_v28, %v2314_v0  ;;  %v3284_v17 = vmax.f32 %v3283_v8, %v2725_v2  ;;  %v2316_v32 = vpop.f32.mrb[110].mxu1  ;;  %v2727_v34 = vpop.f32.mrb[106].mxu0 }
 0x3da   : > { %v3045_v33 = vmax.f32 %v3044_v6, %v2316_v32  ;;  %v3205_v48 = vmax.f32 %v3204_v35, %v2727_v34  ;;  %v2318_v49 = vpop.f32.mrb[111].mxu1  ;;  %v2729_v1 = vpop.f32.mrb[107].mxu0 }
 0x3db   : > { %v3125_v56 = vmax.f32 %v3124_v16, %v2318_v49  ;;  %v3285_v5 = vmax.f32 %v3284_v17, %v2729_v1 }
 0x3dc   : > { %2581 = vmatmul.mubr.bf16.gmra.mrb[216].mxu1 %v4776_v25  ;;  %2992 = vmatmul.mubr.bf16.gmra.mrb[212].mxu0 %v4776_v25 }
 0x3dd   : > { %2590 = vmatprep.mubr.bf16.mxu1 %v4151_v42  ;;  %3001 = vmatprep.mubr.bf16.mxu0 %v4151_v42 }
 0x3df   : > { %v2322_v39 = vpop.f32.mrb[112].mxu1  ;;  %v2733_v40 = vpop.f32.mrb[108].mxu0 }
 0x3e0   : > { %v3046_v18 = vmax.f32 %v3045_v33, %v2322_v39  ;;  %v3206_v41 = vmax.f32 %v3205_v48, %v2733_v40  ;;  %v2324_v43 = vpop.f32.mrb[113].mxu1  ;;  %v2735_v44 = vpop.f32.mrb[109].mxu0 }
 0x3e1   : > { %v3126_v45 = vmax.f32 %v3125_v56, %v2324_v43  ;;  %v3286_v46 = vmax.f32 %v3285_v5, %v2735_v44  ;;  %v2326_v47 = vpop.f32.mrb[114].mxu1  ;;  %v2737_v21 = vpop.f32.mrb[110].mxu0 }
 0x3e2   : > { %v3047_v54 = vmax.f32 %v3046_v18, %v2326_v47  ;;  %v3207_v52 = vmax.f32 %v3206_v41, %v2737_v21  ;;  %v2328_v51 = vpop.f32.mrb[115].mxu1  ;;  %v2739_v55 = vpop.f32.mrb[111].mxu0 }
 0x3e3   : > { %v3127_v57 = vmax.f32 %v3126_v45, %v2328_v51  ;;  %v3287_v25 = vmax.f32 %v3286_v46, %v2739_v55 }
 0x3e4   : > { %2591 = vmatmul.mubr.bf16.gmra.mrb[220].mxu1 %v4774_v24  ;;  %3002 = vmatmul.mubr.bf16.gmra.mrb[216].mxu0 %v4774_v24  ;;  %v1898_v24 = vadd.f32 %v4092_v50, %v4778_v3 }
 0x3e5   : > { %2600 = vmatprep.mubr.bf16.mxu1 %v4151_v42  ;;  %3011 = vmatprep.mubr.bf16.mxu0 %v4151_v42 }
 0x3e6   : > { %v1977_v14 = vmax.f32 %v1898_v24, 0.0 }
 0x3e7   : > { %v2332_v58 = vpop.f32.mrb[116].mxu1  ;;  %v2743_v59 = vpop.f32.mrb[112].mxu0 }
 0x3e8   : > { %v3048_v60 = vmax.f32 %v3047_v54, %v2332_v58  ;;  %v3208_v7 = vmax.f32 %v3207_v52, %v2743_v59  ;;  %v2334_v61 = vpop.f32.mrb[117].mxu1  ;;  %v2745_v62 = vpop.f32.mrb[113].mxu0  ;;  %v2015_v8 = vpack.c.bf16 %v1977_v14, %v1977_v14 }
 0x3e9   : > { %v3128_v63 = vmax.f32 %v3127_v57, %v2334_v61  ;;  %v3288_v20 = vmax.f32 %v3287_v25, %v2745_v62  ;;  %v2336_v30 = vpop.f32.mrb[118].mxu1  ;;  %v2747_v4 = vpop.f32.mrb[114].mxu0 }
 0x3ea   : > { %v3049_v53 = vmax.f32 %v3048_v60, %v2336_v30  ;;  %v3209_v9 = vmax.f32 %v3208_v7, %v2747_v4  ;;  %v2338_v10 = vpop.f32.mrb[119].mxu1  ;;  %v2749_v11 = vpop.f32.mrb[115].mxu0 }
 0x3eb   : > { %v3129_v12 = vmax.f32 %v3128_v63, %v2338_v10  ;;  %v3289_v13 = vmax.f32 %v3288_v20, %v2749_v11 }
 0x3ec   : > { %2601 = vmatmul.mubr.bf16.gmra.mrb[224].mxu1 %v4786_v38  ;;  %3012 = vmatmul.mubr.bf16.gmra.mrb[220].mxu0 %v4786_v38 }
 0x3ed   : > { %2610 = vmatprep.mubr.bf16.mxu1 %v4151_v42  ;;  %3021 = vmatprep.mubr.bf16.mxu0 %v4151_v42 }
 0x3ef   : > { %v2342_v15 = vpop.f32.mrb[120].mxu1  ;;  %v2753_v36 = vpop.f32.mrb[116].mxu0 }
 0x3f0   : > { %v3050_v37 = vmax.f32 %v3049_v53, %v2342_v15  ;;  %v3210_v19 = vmax.f32 %v3209_v9, %v2753_v36  ;;  %v2344_v3 = vpop.f32.mrb[121].mxu1  ;;  %v2755_v22 = vpop.f32.mrb[117].mxu0 }
 0x3f1   : > { %v3130_v23 = vmax.f32 %v3129_v12, %v2344_v3  ;;  %v3290_v26 = vmax.f32 %v3289_v13, %v2755_v22  ;;  %v2346_v27 = vpop.f32.mrb[122].mxu1  ;;  %v2757_v28 = vpop.f32.mrb[118].mxu0 }
 0x3f2   : > { %v3051_v29 = vmax.f32 %v3050_v37, %v2346_v27  ;;  %v3211_v31 = vmax.f32 %v3210_v19, %v2757_v28  ;;  %v2348_v6 = vpop.f32.mrb[123].mxu1  ;;  %v2759_v38 = vpop.f32.mrb[119].mxu0 }
 0x3f3   : > { %v3131_v35 = vmax.f32 %v3130_v23, %v2348_v6  ;;  %v3291_v0 = vmax.f32 %v3290_v26, %v2759_v38 }
 0x3f4   : > { %2611 = vmatmul.mubr.bf16.gmra.mrb[228].mxu1 %v2015_v8  ;;  %3022 = vmatmul.mubr.bf16.gmra.mrb[224].mxu0 %v2015_v8 }
 0x3f7   : > { %v2352_v42 = vpop.f32.mrb[124].mxu1  ;;  %v2763_v2 = vpop.f32.mrb[120].mxu0 }
 0x3f8   : > { %v3052_v16 = vmax.f32 %v3051_v29, %v2352_v42  ;;  %v3212_v17 = vmax.f32 %v3211_v31, %v2763_v2  ;;  %v2354_v32 = vpop.f32.mrb[125].mxu1  ;;  %v2765_v34 = vpop.f32.mrb[121].mxu0 }
 0x3f9   : > { %v3132_v33 = vmax.f32 %v3131_v35, %v2354_v32  ;;  %v3292_v48 = vmax.f32 %v3291_v0, %v2765_v34  ;;  %v2356_v49 = vpop.f32.mrb[126].mxu1  ;;  %v2767_v1 = vpop.f32.mrb[122].mxu0 }
 0x3fa   : > { %v3053_v56 = vmax.f32 %v3052_v16, %v2356_v49  ;;  %v3213_v5 = vmax.f32 %v3212_v17, %v2767_v1  ;;  %v2358_v39 = vpop.f32.mrb[127].mxu1  ;;  %v2769_v40 = vpop.f32.mrb[123].mxu0 }
 0x3fb   : > { %v3133_v18 = vmax.f32 %v3132_v33, %v2358_v39  ;;  %v3293_v41 = vmax.f32 %v3292_v48, %v2769_v40 }
 0x3ff   : > { %v2362_v43 = vpop.f32.mrb[128].mxu1  ;;  %v2773_v44 = vpop.f32.mrb[124].mxu0 }
 0x400   : > { %v3054_v45 = vmax.f32 %v3053_v56, %v2362_v43  ;;  %v3214_v46 = vmax.f32 %v3213_v5, %v2773_v44  ;;  %v2364_v47 = vpop.f32.mrb[129].mxu1  ;;  %v2775_v21 = vpop.f32.mrb[125].mxu0 }
 0x401   : > { %v3134_v54 = vmax.f32 %v3133_v18, %v2364_v47  ;;  %v3294_v52 = vmax.f32 %v3293_v41, %v2775_v21  ;;  %v2366_v51 = vpop.f32.mrb[130].mxu1  ;;  %v2777_v55 = vpop.f32.mrb[126].mxu0 }
 0x402   : > { %v3055_v57 = vmax.f32 %v3054_v45, %v2366_v51  ;;  %v3215_v25 = vmax.f32 %v3214_v46, %v2777_v55  ;;  %v2368_v58 = vpop.f32.mrb[131].mxu1  ;;  %v2779_v59 = vpop.f32.mrb[127].mxu0 }
 0x403   : > { %v3135_v60 = vmax.f32 %v3134_v54, %v2368_v58  ;;  %v3295_v7 = vmax.f32 %v3294_v52, %v2779_v59 }
 0x407   : > { %v2372_v61 = vpop.f32.mrb[132].mxu1  ;;  %v2783_v62 = vpop.f32.mrb[128].mxu0 }
 0x408   : > { %v3056_v63 = vmax.f32 %v3055_v57, %v2372_v61  ;;  %v3216_v20 = vmax.f32 %v3215_v25, %v2783_v62  ;;  %v2374_v30 = vpop.f32.mrb[133].mxu1  ;;  %v2785_v4 = vpop.f32.mrb[129].mxu0 }
 0x409   : > { %v3136_v50 = vmax.f32 %v3135_v60, %v2374_v30  ;;  %v3296_v24 = vmax.f32 %v3295_v7, %v2785_v4  ;;  %v2376_v53 = vpop.f32.mrb[134].mxu1  ;;  %v2787_v9 = vpop.f32.mrb[130].mxu0 }
 0x40a   : > { %v3057_v10 = vmax.f32 %v3056_v63, %v2376_v53  ;;  %v3217_v11 = vmax.f32 %v3216_v20, %v2787_v9  ;;  %v2378_v12 = vpop.f32.mrb[135].mxu1  ;;  %v2789_v13 = vpop.f32.mrb[131].mxu0 }
 0x40b   : > { %v3137_v14 = vmax.f32 %v3136_v50, %v2378_v12  ;;  %v3297_v15 = vmax.f32 %v3296_v24, %v2789_v13 }
 0x40f   : > { %v2382_v36 = vpop.f32.mrb[136].mxu1  ;;  %v2793_v37 = vpop.f32.mrb[132].mxu0 }
 0x410   : > { %v3058_v19 = vmax.f32 %v3057_v10, %v2382_v36  ;;  %v3218_v3 = vmax.f32 %v3217_v11, %v2793_v37  ;;  %v2384_v22 = vpop.f32.mrb[137].mxu1  ;;  %v2795_v23 = vpop.f32.mrb[133].mxu0 }
 0x411   : > { %v3138_v26 = vmax.f32 %v3137_v14, %v2384_v22  ;;  %v3298_v27 = vmax.f32 %v3297_v15, %v2795_v23  ;;  %v2386_v28 = vpop.f32.mrb[138].mxu1  ;;  %v2797_v8 = vpop.f32.mrb[134].mxu0 }
 0x412   : > { %v3059_v29 = vmax.f32 %v3058_v19, %v2386_v28  ;;  %v3219_v31 = vmax.f32 %v3218_v3, %v2797_v8  ;;  %v2388_v6 = vpop.f32.mrb[139].mxu1  ;;  %v2799_v38 = vpop.f32.mrb[135].mxu0 }
 0x413   : > { %v3139_v35 = vmax.f32 %v3138_v26, %v2388_v6  ;;  %v3299_v0 = vmax.f32 %v3298_v27, %v2799_v38 }
 0x417   : > { %v2392_v42 = vpop.f32.mrb[140].mxu1  ;;  %v2803_v2 = vpop.f32.mrb[136].mxu0 }
 0x418   : > { %v3060_v16 = vmax.f32 %v3059_v29, %v2392_v42  ;;  %v3220_v17 = vmax.f32 %v3219_v31, %v2803_v2  ;;  %v2394_v32 = vpop.f32.mrb[141].mxu1  ;;  %v2805_v34 = vpop.f32.mrb[137].mxu0 }
 0x419   : > { %v3140_v33 = vmax.f32 %v3139_v35, %v2394_v32  ;;  %v3300_v48 = vmax.f32 %v3299_v0, %v2805_v34  ;;  %v2396_v49 = vpop.f32.mrb[142].mxu1  ;;  %v2807_v1 = vpop.f32.mrb[138].mxu0 }
 0x41a   : > { %v3061_v56 = vmax.f32 %v3060_v16, %v2396_v49  ;;  %v3221_v5 = vmax.f32 %v3220_v17, %v2807_v1  ;;  %v2398_v39 = vpop.f32.mrb[143].mxu1  ;;  %v2809_v40 = vpop.f32.mrb[139].mxu0 }
 0x41b   : > { %v3141_v18 = vmax.f32 %v3140_v33, %v2398_v39  ;;  %v3301_v41 = vmax.f32 %v3300_v48, %v2809_v40 }
 0x41f   : > { %v2402_v43 = vpop.f32.mrb[144].mxu1  ;;  %v2813_v44 = vpop.f32.mrb[140].mxu0 }
 0x420   : > { %v3062_v45 = vmax.f32 %v3061_v56, %v2402_v43  ;;  %v3222_v46 = vmax.f32 %v3221_v5, %v2813_v44  ;;  %v2404_v47 = vpop.f32.mrb[145].mxu1  ;;  %v2815_v21 = vpop.f32.mrb[141].mxu0 }
 0x421   : > { %v3142_v54 = vmax.f32 %v3141_v18, %v2404_v47  ;;  %v3302_v52 = vmax.f32 %v3301_v41, %v2815_v21  ;;  %v2406_v51 = vpop.f32.mrb[146].mxu1  ;;  %v2817_v55 = vpop.f32.mrb[142].mxu0 }
 0x422   : > { %v3063_v57 = vmax.f32 %v3062_v45, %v2406_v51  ;;  %v3223_v25 = vmax.f32 %v3222_v46, %v2817_v55  ;;  %v2408_v58 = vpop.f32.mrb[147].mxu1  ;;  %v2819_v59 = vpop.f32.mrb[143].mxu0 }
 0x423   : > { %v3143_v60 = vmax.f32 %v3142_v54, %v2408_v58  ;;  %v3303_v7 = vmax.f32 %v3302_v52, %v2819_v59 }
 0x427   : > { %v2412_v61 = vpop.f32.mrb[148].mxu1  ;;  %v2823_v62 = vpop.f32.mrb[144].mxu0 }
 0x428   : > { %v3064_v63 = vmax.f32 %v3063_v57, %v2412_v61  ;;  %v3224_v20 = vmax.f32 %v3223_v25, %v2823_v62  ;;  %v2414_v30 = vpop.f32.mrb[149].mxu1  ;;  %v2825_v4 = vpop.f32.mrb[145].mxu0 }
 0x429   : > { %v3144_v50 = vmax.f32 %v3143_v60, %v2414_v30  ;;  %v3304_v24 = vmax.f32 %v3303_v7, %v2825_v4  ;;  %v2416_v53 = vpop.f32.mrb[150].mxu1  ;;  %v2827_v9 = vpop.f32.mrb[146].mxu0 }
 0x42a   : > { %v3065_v10 = vmax.f32 %v3064_v63, %v2416_v53  ;;  %v3225_v11 = vmax.f32 %v3224_v20, %v2827_v9  ;;  %v2418_v12 = vpop.f32.mrb[151].mxu1  ;;  %v2829_v13 = vpop.f32.mrb[147].mxu0 }
 0x42b   : > { %v3145_v14 = vmax.f32 %v3144_v50, %v2418_v12  ;;  %v3305_v15 = vmax.f32 %v3304_v24, %v2829_v13 }
 0x42f   : > { %v2422_v36 = vpop.f32.mrb[152].mxu1  ;;  %v2833_v37 = vpop.f32.mrb[148].mxu0 }
 0x430   : > { %v3066_v19 = vmax.f32 %v3065_v10, %v2422_v36  ;;  %v3226_v3 = vmax.f32 %v3225_v11, %v2833_v37  ;;  %v2424_v22 = vpop.f32.mrb[153].mxu1  ;;  %v2835_v23 = vpop.f32.mrb[149].mxu0 }
 0x431   : > { %v3146_v26 = vmax.f32 %v3145_v14, %v2424_v22  ;;  %v3306_v27 = vmax.f32 %v3305_v15, %v2835_v23  ;;  %v2426_v28 = vpop.f32.mrb[154].mxu1  ;;  %v2837_v8 = vpop.f32.mrb[150].mxu0 }
 0x432   : > { %v3067_v29 = vmax.f32 %v3066_v19, %v2426_v28  ;;  %v3227_v31 = vmax.f32 %v3226_v3, %v2837_v8  ;;  %v2428_v6 = vpop.f32.mrb[155].mxu1  ;;  %v2839_v38 = vpop.f32.mrb[151].mxu0 }
 0x433   : > { %v3147_v35 = vmax.f32 %v3146_v26, %v2428_v6  ;;  %v3307_v0 = vmax.f32 %v3306_v27, %v2839_v38 }
 0x437   : > { %v2432_v42 = vpop.f32.mrb[156].mxu1  ;;  %v2843_v2 = vpop.f32.mrb[152].mxu0 }
 0x438   : > { %v3068_v16 = vmax.f32 %v3067_v29, %v2432_v42  ;;  %v3228_v17 = vmax.f32 %v3227_v31, %v2843_v2  ;;  %v2434_v32 = vpop.f32.mrb[157].mxu1  ;;  %v2845_v34 = vpop.f32.mrb[153].mxu0  ;;  %v494_v42 = vlaneseq }
 0x439   : > { %v3148_v33 = vmax.f32 %v3147_v35, %v2434_v32  ;;  %v3308_v48 = vmax.f32 %v3307_v0, %v2845_v34  ;;  %v2436_v49 = vpop.f32.mrb[158].mxu1  ;;  %v2847_v1 = vpop.f32.mrb[154].mxu0 }
 0x43a   : > { %v3069_v56 = vmax.f32 %v3068_v16, %v2436_v49  ;;  %v3229_v5 = vmax.f32 %v3228_v17, %v2847_v1  ;;  %v2438_v39 = vpop.f32.mrb[159].mxu1  ;;  %v2849_v40 = vpop.f32.mrb[155].mxu0  ;;  %vm4869_vm4 = vcmp.lt.s32.totalorder %v494_v42, 512  ;;  %v4152_v16 = vmov -inf  }
 0x43b   : > { %v3149_v18 = vmax.f32 %v3148_v33, %v2438_v39  ;;  %v3309_v41 = vmax.f32 %v3308_v48, %v2849_v40  ;;  %498 = vst.msk [vmem:[#allocation2] sm:$0xf] %vm4869_vm4, %v4152_v16 }
 0x43f   : > { %v2442_v43 = vpop.f32.mrb[160].mxu1  ;;  %v2853_v44 = vpop.f32.mrb[156].mxu0 }
 0x440   : > { %v3070_v45 = vmax.f32 %v3069_v56, %v2442_v43  ;;  %v3230_v46 = vmax.f32 %v3229_v5, %v2853_v44  ;;  %v2444_v47 = vpop.f32.mrb[161].mxu1  ;;  %v2855_v21 = vpop.f32.mrb[157].mxu0 }
 0x441   : > { %v3150_v54 = vmax.f32 %v3149_v18, %v2444_v47  ;;  %v3310_v52 = vmax.f32 %v3309_v41, %v2855_v21  ;;  %v2446_v51 = vpop.f32.mrb[162].mxu1  ;;  %v2857_v55 = vpop.f32.mrb[158].mxu0 }
 0x442   : > { %v3071_v57 = vmax.f32 %v3070_v45, %v2446_v51  ;;  %v3231_v25 = vmax.f32 %v3230_v46, %v2857_v55  ;;  %v2448_v58 = vpop.f32.mrb[163].mxu1  ;;  %v2859_v59 = vpop.f32.mrb[159].mxu0 }
 0x443   : > { %v3151_v60 = vmax.f32 %v3150_v54, %v2448_v58  ;;  %v3311_v7 = vmax.f32 %v3310_v52, %v2859_v59 }
 0x447   : > { %v2452_v61 = vpop.f32.mrb[164].mxu1  ;;  %v2863_v62 = vpop.f32.mrb[160].mxu0 }
 0x448   : > { %v3072_v63 = vmax.f32 %v3071_v57, %v2452_v61  ;;  %v3232_v20 = vmax.f32 %v3231_v25, %v2863_v62  ;;  %v2454_v30 = vpop.f32.mrb[165].mxu1  ;;  %v2865_v4 = vpop.f32.mrb[161].mxu0 }
 0x449   : > { %v3152_v50 = vmax.f32 %v3151_v60, %v2454_v30  ;;  %v3312_v24 = vmax.f32 %v3311_v7, %v2865_v4  ;;  %v2456_v53 = vpop.f32.mrb[166].mxu1  ;;  %v2867_v9 = vpop.f32.mrb[162].mxu0 }
 0x44a   : > { %v3073_v10 = vmax.f32 %v3072_v63, %v2456_v53  ;;  %v3233_v11 = vmax.f32 %v3232_v20, %v2867_v9  ;;  %v2458_v12 = vpop.f32.mrb[167].mxu1  ;;  %v2869_v13 = vpop.f32.mrb[163].mxu0 }
 0x44b   : > { %v3153_v14 = vmax.f32 %v3152_v50, %v2458_v12  ;;  %v3313_v15 = vmax.f32 %v3312_v24, %v2869_v13 }
 0x44f   : > { %v2462_v36 = vpop.f32.mrb[168].mxu1  ;;  %v2873_v37 = vpop.f32.mrb[164].mxu0 }
 0x450   : > { %v3074_v19 = vmax.f32 %v3073_v10, %v2462_v36  ;;  %v3234_v3 = vmax.f32 %v3233_v11, %v2873_v37  ;;  %v2464_v22 = vpop.f32.mrb[169].mxu1  ;;  %v2875_v23 = vpop.f32.mrb[165].mxu0 }
 0x451   : > { %v3154_v26 = vmax.f32 %v3153_v14, %v2464_v22  ;;  %v3314_v27 = vmax.f32 %v3313_v15, %v2875_v23  ;;  %v2466_v28 = vpop.f32.mrb[170].mxu1  ;;  %v2877_v8 = vpop.f32.mrb[166].mxu0 }
 0x452   : > { %v3075_v29 = vmax.f32 %v3074_v19, %v2466_v28  ;;  %v3235_v31 = vmax.f32 %v3234_v3, %v2877_v8  ;;  %v2468_v6 = vpop.f32.mrb[171].mxu1  ;;  %v2879_v38 = vpop.f32.mrb[167].mxu0 }
 0x453   : > { %v3155_v35 = vmax.f32 %v3154_v26, %v2468_v6  ;;  %v3315_v0 = vmax.f32 %v3314_v27, %v2879_v38 }
 0x457   : > { %v2472_v17 = vpop.f32.mrb[172].mxu1  ;;  %v2883_v32 = vpop.f32.mrb[168].mxu0 }
 0x458   : > { %v3076_v34 = vmax.f32 %v3075_v29, %v2472_v17  ;;  %v3236_v33 = vmax.f32 %v3235_v31, %v2883_v32  ;;  %v2474_v48 = vpop.f32.mrb[173].mxu1  ;;  %v2885_v49 = vpop.f32.mrb[169].mxu0 }
 0x459   : > { %v3156_v1 = vmax.f32 %v3155_v35, %v2474_v48  ;;  %v3316_v56 = vmax.f32 %v3315_v0, %v2885_v49  ;;  %v2476_v5 = vpop.f32.mrb[174].mxu1  ;;  %v2887_v39 = vpop.f32.mrb[170].mxu0 }
 0x45a   : > { %v3077_v40 = vmax.f32 %v3076_v34, %v2476_v5  ;;  %v3237_v18 = vmax.f32 %v3236_v33, %v2887_v39  ;;  %v2478_v41 = vpop.f32.mrb[175].mxu1  ;;  %v2889_v43 = vpop.f32.mrb[171].mxu0 }
 0x45b   : > { %v3157_v44 = vmax.f32 %v3156_v1, %v2478_v41  ;;  %v3317_v45 = vmax.f32 %v3316_v56, %v2889_v43 }
 0x45f   : > { %v2482_v46 = vpop.f32.mrb[176].mxu1  ;;  %v2893_v47 = vpop.f32.mrb[172].mxu0 }
 0x460   : > { %v3078_v21 = vmax.f32 %v3077_v40, %v2482_v46  ;;  %v3238_v54 = vmax.f32 %v3237_v18, %v2893_v47  ;;  %v2484_v52 = vpop.f32.mrb[177].mxu1  ;;  %v2895_v51 = vpop.f32.mrb[173].mxu0 }
 0x461   : > { %v3158_v55 = vmax.f32 %v3157_v44, %v2484_v52  ;;  %v3318_v57 = vmax.f32 %v3317_v45, %v2895_v51  ;;  %v2486_v25 = vpop.f32.mrb[178].mxu1  ;;  %v2897_v58 = vpop.f32.mrb[174].mxu0 }
 0x462   : > { %v3079_v59 = vmax.f32 %v3078_v21, %v2486_v25  ;;  %v3239_v60 = vmax.f32 %v3238_v54, %v2897_v58  ;;  %v2488_v7 = vpop.f32.mrb[179].mxu1  ;;  %v2899_v61 = vpop.f32.mrb[175].mxu0 }
 0x463   : > { %v3159_v62 = vmax.f32 %v3158_v55, %v2488_v7  ;;  %v3319_v63 = vmax.f32 %v3318_v57, %v2899_v61 }
 0x467   : > { %v2492_v20 = vpop.f32.mrb[180].mxu1  ;;  %v2903_v30 = vpop.f32.mrb[176].mxu0 }
 0x468   : > { %v3080_v4 = vmax.f32 %v3079_v59, %v2492_v20  ;;  %v3240_v50 = vmax.f32 %v3239_v60, %v2903_v30  ;;  %v2494_v24 = vpop.f32.mrb[181].mxu1  ;;  %v2905_v53 = vpop.f32.mrb[177].mxu0 }
 0x469   : > { %v3160_v9 = vmax.f32 %v3159_v62, %v2494_v24  ;;  %v3320_v10 = vmax.f32 %v3319_v63, %v2905_v53  ;;  %v2496_v11 = vpop.f32.mrb[182].mxu1  ;;  %v2907_v12 = vpop.f32.mrb[178].mxu0 }
 0x46a   : > { %v3081_v13 = vmax.f32 %v3080_v4, %v2496_v11  ;;  %v3241_v14 = vmax.f32 %v3240_v50, %v2907_v12  ;;  %v2498_v15 = vpop.f32.mrb[183].mxu1  ;;  %v2909_v36 = vpop.f32.mrb[179].mxu0 }
 0x46b   : > { %v3161_v37 = vmax.f32 %v3160_v9, %v2498_v15  ;;  %v3321_v19 = vmax.f32 %v3320_v10, %v2909_v36 }
 0x46f   : > { %v2502_v3 = vpop.f32.mrb[184].mxu1  ;;  %v2913_v22 = vpop.f32.mrb[180].mxu0 }
 0x470   : > { %v3082_v23 = vmax.f32 %v3081_v13, %v2502_v3  ;;  %v3242_v26 = vmax.f32 %v3241_v14, %v2913_v22  ;;  %v2504_v27 = vpop.f32.mrb[185].mxu1  ;;  %v2915_v28 = vpop.f32.mrb[181].mxu0 }
 0x471   : > { %v3162_v8 = vmax.f32 %v3161_v37, %v2504_v27  ;;  %v3322_v29 = vmax.f32 %v3321_v19, %v2915_v28  ;;  %v2506_v31 = vpop.f32.mrb[186].mxu1  ;;  %v2917_v6 = vpop.f32.mrb[182].mxu0 }
 0x472   : > { %v3083_v38 = vmax.f32 %v3082_v23, %v2506_v31  ;;  %v3243_v35 = vmax.f32 %v3242_v26, %v2917_v6  ;;  %v2508_v0 = vpop.f32.mrb[187].mxu1  ;;  %v2919_v16 = vpop.f32.mrb[183].mxu0 }
 0x473   : > { %v3163_v17 = vmax.f32 %v3162_v8, %v2508_v0  ;;  %v3323_v32 = vmax.f32 %v3322_v29, %v2919_v16 }
 0x477   : > { %v2512_v34 = vpop.f32.mrb[188].mxu1  ;;  %v2923_v33 = vpop.f32.mrb[184].mxu0 }
 0x478   : > { %v3084_v48 = vmax.f32 %v3083_v38, %v2512_v34  ;;  %v3244_v49 = vmax.f32 %v3243_v35, %v2923_v33  ;;  %v2514_v1 = vpop.f32.mrb[189].mxu1  ;;  %v2925_v56 = vpop.f32.mrb[185].mxu0 }
 0x479   : > { %v3164_v5 = vmax.f32 %v3163_v17, %v2514_v1  ;;  %v3324_v39 = vmax.f32 %v3323_v32, %v2925_v56  ;;  %v2516_v40 = vpop.f32.mrb[190].mxu1  ;;  %v2927_v18 = vpop.f32.mrb[186].mxu0 }
 0x47a   : > { %v3085_v41 = vmax.f32 %v3084_v48, %v2516_v40  ;;  %v3245_v43 = vmax.f32 %v3244_v49, %v2927_v18  ;;  %v2518_v44 = vpop.f32.mrb[191].mxu1  ;;  %v2929_v45 = vpop.f32.mrb[187].mxu0 }
 0x47b   : > { %v3165_v46 = vmax.f32 %v3164_v5, %v2518_v44  ;;  %v3325_v47 = vmax.f32 %v3324_v39, %v2929_v45 }
 0x47f   : > { %v2522_v21 = vpop.f32.mrb[192].mxu1  ;;  %v2933_v54 = vpop.f32.mrb[188].mxu0 }
 0x480   : > { %v3086_v52 = vmax.f32 %v3085_v41, %v2522_v21  ;;  %v3246_v51 = vmax.f32 %v3245_v43, %v2933_v54  ;;  %v2524_v55 = vpop.f32.mrb[193].mxu1  ;;  %v2935_v57 = vpop.f32.mrb[189].mxu0 }
 0x481   : > { %v3166_v25 = vmax.f32 %v3165_v46, %v2524_v55  ;;  %v3326_v58 = vmax.f32 %v3325_v47, %v2935_v57  ;;  %v2526_v59 = vpop.f32.mrb[194].mxu1  ;;  %v2937_v60 = vpop.f32.mrb[190].mxu0 }
 0x482   : > { %v3087_v7 = vmax.f32 %v3086_v52, %v2526_v59  ;;  %v3247_v61 = vmax.f32 %v3246_v51, %v2937_v60  ;;  %v2528_v62 = vpop.f32.mrb[195].mxu1  ;;  %v2939_v63 = vpop.f32.mrb[191].mxu0 }
 0x483   : > { %v3167_v20 = vmax.f32 %v3166_v25, %v2528_v62  ;;  %v3327_v30 = vmax.f32 %v3326_v58, %v2939_v63 }
 0x487   : > { %v2532_v4 = vpop.f32.mrb[196].mxu1  ;;  %v2943_v50 = vpop.f32.mrb[192].mxu0 }
 0x488   : > { %v3088_v24 = vmax.f32 %v3087_v7, %v2532_v4  ;;  %v3248_v53 = vmax.f32 %v3247_v61, %v2943_v50  ;;  %v2534_v9 = vpop.f32.mrb[197].mxu1  ;;  %v2945_v10 = vpop.f32.mrb[193].mxu0 }
 0x489   : > { %v3168_v11 = vmax.f32 %v3167_v20, %v2534_v9  ;;  %v3328_v12 = vmax.f32 %v3327_v30, %v2945_v10  ;;  %v2536_v13 = vpop.f32.mrb[198].mxu1  ;;  %v2947_v14 = vpop.f32.mrb[194].mxu0 }
 0x48a   : > { %v3089_v15 = vmax.f32 %v3088_v24, %v2536_v13  ;;  %v3249_v36 = vmax.f32 %v3248_v53, %v2947_v14  ;;  %v2538_v37 = vpop.f32.mrb[199].mxu1  ;;  %v2949_v19 = vpop.f32.mrb[195].mxu0 }
 0x48b   : > { %v3169_v3 = vmax.f32 %v3168_v11, %v2538_v37  ;;  %v3329_v22 = vmax.f32 %v3328_v12, %v2949_v19 }
 0x48f   : > { %v2542_v23 = vpop.f32.mrb[200].mxu1  ;;  %v2953_v26 = vpop.f32.mrb[196].mxu0 }
 0x490   : > { %v3090_v27 = vmax.f32 %v3089_v15, %v2542_v23  ;;  %v3250_v28 = vmax.f32 %v3249_v36, %v2953_v26  ;;  %v2544_v8 = vpop.f32.mrb[201].mxu1  ;;  %v2955_v29 = vpop.f32.mrb[197].mxu0 }
 0x491   : > { %v3170_v31 = vmax.f32 %v3169_v3, %v2544_v8  ;;  %v3330_v6 = vmax.f32 %v3329_v22, %v2955_v29  ;;  %v2546_v38 = vpop.f32.mrb[202].mxu1  ;;  %v2957_v35 = vpop.f32.mrb[198].mxu0 }
 0x492   : > { %v3091_v0 = vmax.f32 %v3090_v27, %v2546_v38  ;;  %v3251_v16 = vmax.f32 %v3250_v28, %v2957_v35  ;;  %v2548_v17 = vpop.f32.mrb[203].mxu1  ;;  %v2959_v32 = vpop.f32.mrb[199].mxu0 }
 0x493   : > { %v3171_v34 = vmax.f32 %v3170_v31, %v2548_v17  ;;  %v3331_v33 = vmax.f32 %v3330_v6, %v2959_v32 }
 0x497   : > { %v2552_v48 = vpop.f32.mrb[204].mxu1  ;;  %v2963_v49 = vpop.f32.mrb[200].mxu0 }
 0x498   : > { %v3092_v1 = vmax.f32 %v3091_v0, %v2552_v48  ;;  %v3252_v56 = vmax.f32 %v3251_v16, %v2963_v49  ;;  %v2554_v5 = vpop.f32.mrb[205].mxu1  ;;  %v2965_v39 = vpop.f32.mrb[201].mxu0 }
 0x499   : > { %v3172_v40 = vmax.f32 %v3171_v34, %v2554_v5  ;;  %v3332_v18 = vmax.f32 %v3331_v33, %v2965_v39  ;;  %v2556_v41 = vpop.f32.mrb[206].mxu1  ;;  %v2967_v43 = vpop.f32.mrb[202].mxu0 }
 0x49a   : > { %v3093_v44 = vmax.f32 %v3092_v1, %v2556_v41  ;;  %v3253_v45 = vmax.f32 %v3252_v56, %v2967_v43  ;;  %v2558_v46 = vpop.f32.mrb[207].mxu1  ;;  %v2969_v47 = vpop.f32.mrb[203].mxu0 }
 0x49b   : > { %v3173_v21 = vmax.f32 %v3172_v40, %v2558_v46  ;;  %v3333_v54 = vmax.f32 %v3332_v18, %v2969_v47 }
 0x49f   : > { %v2562_v52 = vpop.f32.mrb[208].mxu1  ;;  %v2973_v51 = vpop.f32.mrb[204].mxu0 }
 0x4a0   : > { %v3094_v55 = vmax.f32 %v3093_v44, %v2562_v52  ;;  %v3254_v57 = vmax.f32 %v3253_v45, %v2973_v51  ;;  %v2564_v25 = vpop.f32.mrb[209].mxu1  ;;  %v2975_v58 = vpop.f32.mrb[205].mxu0 }
 0x4a1   : > { %v3174_v59 = vmax.f32 %v3173_v21, %v2564_v25  ;;  %v3334_v60 = vmax.f32 %v3333_v54, %v2975_v58  ;;  %v2566_v7 = vpop.f32.mrb[210].mxu1  ;;  %v2977_v61 = vpop.f32.mrb[206].mxu0 }
 0x4a2   : > { %v3095_v62 = vmax.f32 %v3094_v55, %v2566_v7  ;;  %v3255_v63 = vmax.f32 %v3254_v57, %v2977_v61  ;;  %v2568_v20 = vpop.f32.mrb[211].mxu1  ;;  %v2979_v30 = vpop.f32.mrb[207].mxu0 }
 0x4a3   : > { %v3175_v4 = vmax.f32 %v3174_v59, %v2568_v20  ;;  %v3335_v50 = vmax.f32 %v3334_v60, %v2979_v30 }
 0x4a7   : > { %v2572_v24 = vpop.f32.mrb[212].mxu1  ;;  %v2983_v53 = vpop.f32.mrb[208].mxu0 }
 0x4a8   : > { %v3096_v9 = vmax.f32 %v3095_v62, %v2572_v24  ;;  %v3256_v10 = vmax.f32 %v3255_v63, %v2983_v53  ;;  %v2574_v11 = vpop.f32.mrb[213].mxu1  ;;  %v2985_v12 = vpop.f32.mrb[209].mxu0 }
 0x4a9   : > { %v3176_v13 = vmax.f32 %v3175_v4, %v2574_v11  ;;  %v3336_v14 = vmax.f32 %v3335_v50, %v2985_v12  ;;  %v2576_v15 = vpop.f32.mrb[214].mxu1  ;;  %v2987_v36 = vpop.f32.mrb[210].mxu0 }
 0x4aa   : > { %v3097_v37 = vmax.f32 %v3096_v9, %v2576_v15  ;;  %v3257_v19 = vmax.f32 %v3256_v10, %v2987_v36  ;;  %v2578_v3 = vpop.f32.mrb[215].mxu1  ;;  %v2989_v22 = vpop.f32.mrb[211].mxu0 }
 0x4ab   : > { %v3177_v23 = vmax.f32 %v3176_v13, %v2578_v3  ;;  %v3337_v26 = vmax.f32 %v3336_v14, %v2989_v22 }
 0x4af   : > { %v2582_v27 = vpop.f32.mrb[216].mxu1  ;;  %v2993_v28 = vpop.f32.mrb[212].mxu0 }
 0x4b0   : > { %v3098_v8 = vmax.f32 %v3097_v37, %v2582_v27  ;;  %v3258_v29 = vmax.f32 %v3257_v19, %v2993_v28  ;;  %v2584_v31 = vpop.f32.mrb[217].mxu1  ;;  %v2995_v6 = vpop.f32.mrb[213].mxu0 }
 0x4b1   : > { %v3178_v38 = vmax.f32 %v3177_v23, %v2584_v31  ;;  %v3338_v35 = vmax.f32 %v3337_v26, %v2995_v6  ;;  %v2586_v0 = vpop.f32.mrb[218].mxu1  ;;  %v2997_v16 = vpop.f32.mrb[214].mxu0  ;;  %v4153_v6 = vmov 1966171168  }
 0x4b2   : > { %v3099_v17 = vmax.f32 %v3098_v8, %v2586_v0  ;;  %v3259_v32 = vmax.f32 %v3258_v29, %v2997_v16  ;;  %v2588_v34 = vpop.f32.mrb[219].mxu1  ;;  %v2999_v33 = vpop.f32.mrb[215].mxu0 }
 0x4b3   : > { %v3179_v48 = vmax.f32 %v3178_v38, %v2588_v34  ;;  %v3339_v49 = vmax.f32 %v3338_v35, %v2999_v33  ;;  %v3358_v38 = vunpack.c.l.s4 %v4153_v6 }
 0x4b7   : > { %v2592_v1 = vpop.f32.mrb[220].mxu1  ;;  %v3003_v56 = vpop.f32.mrb[216].mxu0 }
 0x4b8   : > { %v3100_v5 = vmax.f32 %v3099_v17, %v2592_v1  ;;  %v3260_v39 = vmax.f32 %v3259_v32, %v3003_v56  ;;  %v2594_v40 = vpop.f32.mrb[221].mxu1  ;;  %v3005_v18 = vpop.f32.mrb[217].mxu0  ;;  %v3361_v1 = vshrl.u32 %v494_v42, 7 }
 0x4b9   : > { %v3180_v41 = vmax.f32 %v3179_v48, %v2594_v40  ;;  %v3340_v43 = vmax.f32 %v3339_v49, %v3005_v18  ;;  %v2596_v44 = vpop.f32.mrb[222].mxu1  ;;  %v3007_v45 = vpop.f32.mrb[218].mxu0  ;;  %v3359_v49 = vunpack.c.0.s8 %v3358_v38 }
 0x4ba   : > { %v3101_v46 = vmax.f32 %v3100_v5, %v2596_v44  ;;  %v3261_v47 = vmax.f32 %v3260_v39, %v3007_v45  ;;  %v2598_v21 = vpop.f32.mrb[223].mxu1  ;;  %v3009_v54 = vpop.f32.mrb[219].mxu0 }
 0x4bb   : > { %v3181_v52 = vmax.f32 %v3180_v41, %v2598_v21  ;;  %v3341_v51 = vmax.f32 %v3340_v43, %v3009_v54  ;;  %v3362_v45 = vsub.s32 %v3359_v49, %v3361_v1 }
 0x4bf   : > { %v2602_v55 = vpop.f32.mrb[224].mxu1  ;;  %v3013_v57 = vpop.f32.mrb[220].mxu0 }
 0x4c0   : > { %v3102_v25 = vmax.f32 %v3101_v46, %v2602_v55  ;;  %v3262_v58 = vmax.f32 %v3261_v47, %v3013_v57  ;;  %v2604_v59 = vpop.f32.mrb[225].mxu1  ;;  %v3015_v60 = vpop.f32.mrb[221].mxu0  ;;  %v3030_v55 = vld [vmem:[#allocation2] sm:$0xf] }
 0x4c1   : > { %v3182_v7 = vmax.f32 %v3181_v52, %v2604_v59  ;;  %v3342_v61 = vmax.f32 %v3341_v51, %v3015_v60  ;;  %v2606_v62 = vpop.f32.mrb[226].mxu1  ;;  %v3017_v63 = vpop.f32.mrb[222].mxu0 }
 0x4c2   : > { %v3103_v20 = vmax.f32 %v3102_v25, %v2606_v62  ;;  %v3263_v30 = vmax.f32 %v3262_v58, %v3017_v63  ;;  %v2608_v4 = vpop.f32.mrb[227].mxu1  ;;  %v3019_v50 = vpop.f32.mrb[223].mxu0  ;;  %v3390_v25 = vld [vmem:[%s478_s19] sm:$0xf] }
 0x4c3   : > { %v3183_v24 = vmax.f32 %v3182_v7, %v2608_v4  ;;  %v3343_v53 = vmax.f32 %v3342_v61, %v3019_v50 }
 0x4c7   : > { %v2612_v9 = vpop.f32.mrb[228].mxu1  ;;  %v3023_v10 = vpop.f32.mrb[224].mxu0 }
 0x4c8   : > { %v3104_v11 = vmax.f32 %v3103_v20, %v2612_v9  ;;  %v3264_v12 = vmax.f32 %v3263_v30, %v3023_v10  ;;  %v2614_v13 = vpop.f32.mrb[229].mxu1  ;;  %v3025_v14 = vpop.f32.mrb[225].mxu0 }
 0x4c9   : > { %v3184_v15 = vmax.f32 %v3183_v24, %v2614_v13  ;;  %v3344_v36 = vmax.f32 %v3343_v53, %v3025_v14  ;;  %v2616_v37 = vpop.f32.mrb[230].mxu1  ;;  %v3027_v19 = vpop.f32.mrb[226].mxu0 }
 0x4ca   : > { %v3105_v3 = vrot.slane %v3104_v11, 4  ;;  %v3265_v22 = vrot.slane %v3264_v12, 4  ;;  %v2617_v23 = vpop.f32.mrb[231].mxu1  ;;  %v3028_v26 = vpop.f32.mrb[227].mxu0 }
 0x4cb   : > { %v3185_v27 = vrot.slane %v3184_v15, 4  ;;  %v3345_v28 = vrot.slane %v3344_v36, 4 }
 0x4cc   : > { %v3106_v8 = vmax.f32 %v3104_v11, %v3105_v3  ;;  %v3266_v29 = vmax.f32 %v3264_v12, %v3265_v22 }
 0x4cd   : > { %v3186_v31 = vmax.f32 %v3184_v15, %v3185_v27  ;;  %v3346_v35 = vmax.f32 %v3344_v36, %v3345_v28 }
 0x4ce   : > { %v3107_v0 = vrot.slane %v3106_v8, 2  ;;  %v3267_v16 = vrot.slane %v3266_v29, 2 }
 0x4cf   : > { %v3187_v17 = vrot.slane %v3186_v31, 2  ;;  %v3347_v32 = vrot.slane %v3346_v35, 2 }
 0x4d0   : > { %v3108_v34 = vmax.f32 %v3106_v8, %v3107_v0  ;;  %v3268_v33 = vmax.f32 %v3266_v29, %v3267_v16 }
 0x4d1   : > { %v3188_v48 = vmax.f32 %v3186_v31, %v3187_v17  ;;  %v3348_v56 = vmax.f32 %v3346_v35, %v3347_v32 }
 0x4d2   : > { %v3109_v5 = vrot.slane %v3108_v34, 1  ;;  %v3269_v39 = vrot.slane %v3268_v33, 1 }
 0x4d3   : > { %v3189_v40 = vrot.slane %v3188_v48, 1  ;;  %v3349_v18 = vrot.slane %v3348_v56, 1 }
 0x4d4   : > { %v3110_v41 = vmax.f32 %v3108_v34, %v3109_v5  ;;  %v3270_v43 = vmax.f32 %v3268_v33, %v3269_v39 }
 0x4d5   : > { %v3190_v44 = vmax.f32 %v3188_v48, %v3189_v40  ;;  %v3350_v46 = vmax.f32 %v3348_v56, %v3349_v18 }
 0x4d7   : > { %v3355_v47 = vcombine.low %v3110_v41, %v3190_v44  ;;  %v3356_v21 = vcombine.low %v3270_v43, %v3350_v46 }
 0x4d9   : > { %v3363_v54 = vrot.slane %v3355_v47, %v3362_v45  ;;  %v3370_v52 = vrot.slane %v3356_v21, %v3362_v45 }
 0x4db   : > { %v3371_v51 = vcombine.low %v3363_v54, %v3370_v52 }
 0x4dd   : > { %v3378_v42 = vrot.slane %v3371_v51, %v3362_v45 }
 0x4df   : > { %v3380_v57 = vmax.f32 %v3030_v55, %v3378_v42 }
 0x4e1   : > { %3385 = vst.msk [vmem:[#allocation2] sm:$0xf] %vm4869_vm4, %v3380_v57 }
 0x4e8   : > { %v3389_v58 = vld [vmem:[#allocation2] sm:$0xf] }
 0x4e9   : > { %v3391_v59 = vadd.f32 %v3390_v25, %v3389_v58 }
 0x4eb   : > { %3392 = vst.msk [vmem:[%s487_s27] sm:$0xf] %vm4869_vm4, %v3391_v59 }
 0x4ec PF: > { %s18_s11 = sadd.s32 1, %s4147_s11   ;;  %s4921_s27 = smov %s4127_s28 }
 0x4ed   : > { %p15_p12 = scmp.ge.s32.totalorder %s18_s11, 6   ;;  %s4922_s28 = smov %s4248_s16 }
 0x4ee   : > { %s4923_s29 = smov %s4139_s9  ;;  %s4924_s30 = smov %s4143_s10 }
 0x4ef   : > { %s4925_s9 = smov %s4928_s12  ;;  %s4926_s10 = smov %s4932_s13 }
 0x4f0   :  { %17 = sbr.rel (!%p15_p12) target bundleno = 4 (0x4), region = 127 }

// kernel: pointnet_forward.5
= control target key start
LH: loop header
LB: loop body
LE: loop exit
PB: predicated region body
PF: predicated region fallthrough
CT: control target
= control target key end

     0   :  { %v3528_v36 = vmov 1983009808   ;;  %v35_v38 = vlaneseq  ;;  %vm2632_vm0 = vcmask 517120   ;;  %s4667_s1 = inlined_call_operand.vmem [shape: bf16[1024,512], index: 1, kind: input, shape index: {}]   ;;  %s4668_s0 = inlined_call_operand.vmem [shape: f32[2,1024], index: 0, kind: input, shape index: {}]   ;;  %s4669_s3 = inlined_call_operand.vmem [shape: bf16[512,256], index: 3, kind: input, shape index: {}]   ;;  %s4670_s2 = inlined_call_operand.vmem [shape: f32[1,512], index: 2, kind: input, shape index: {}]   ;;  %s4671_s5 = inlined_call_operand.vmem [shape: bf16[256,64], index: 5, kind: input, shape index: {}]   ;;  %s4672_s4 = inlined_call_operand.vmem [shape: f32[1,256], index: 4, kind: input, shape index: {}]   ;;  %s4673_s6 = inlined_call_operand.vmem [shape: f32[1,64], index: 6, kind: input, shape index: {}]   ;;  %s4674_s7 = inlined_call_operand.vmem [shape: f32[2,64], index: 7, kind: output, shape index: {}]  }
   0x1   :  { %v3030_v0 = vld [vmem:[%s4667_s1 + $0x4] ss:$16 sps:$4 sm:$0xff]   ;;  %v3034_v2 = vld [vmem:[%s4667_s1] ss:$16 sps:$4 sm:$0xff]   ;;  %v33_v37 = vunpack.c.l.s4 %v3528_v36 }
   0x2   :  { %v3032_v1 = vld [vmem:[%s4667_s1 + $0x204] ss:$16 sps:$4 sm:$0xff]   ;;  %1639 = vmatprep.subr.bf16.mxu1 %v3030_v0  ;;  %v3035_v3 = vld [vmem:[%s4667_s1 + $0x200] ss:$16 sps:$4 sm:$0xff]   ;;  %v3686_v43 = vshrl.u32 %v35_v38, 7 }
   0x3   :  { %1680 = vmatprep.subr.bf16.mxu0 %v3032_v1  ;;  %v3036_v4 = vld [vmem:[%s4667_s1 + $0x24] ss:$16 sps:$4 sm:$0xff]   ;;  %1640 = vmatpush1.bf16.msra.mxu1 %v3034_v2  ;;  %v3040_v6 = vld [vmem:[%s4667_s1 + $0x20] ss:$16 sps:$4 sm:$0xff]   ;;  %v34_v42 = vunpack.c.0.s8 %v33_v37  ;;  %v3157_v37 = vld [vmem:[%s4667_s1 + $0x8c] ss:$16 sps:$4 sm:$0xff]  }
   0x4   :  { %1681 = vmatpush1.bf16.msra.mxu0 %v3035_v3  ;;  %v3038_v5 = vld [vmem:[%s4667_s1 + $0x224] ss:$16 sps:$4 sm:$0xff]   ;;  %1641 = vmatprep.subr.bf16.mxu1 %v3036_v4  ;;  %v3041_v7 = vld [vmem:[%s4667_s1 + $0x220] ss:$16 sps:$4 sm:$0xff]  }
   0x5   :  { %1682 = vmatprep.subr.bf16.mxu0 %v3038_v5  ;;  %v3042_v8 = vld [vmem:[%s4667_s1 + $0x44] ss:$16 sps:$4 sm:$0xff]   ;;  %v3046_v10 = vld [vmem:[%s4667_s1 + $0x40] ss:$16 sps:$4 sm:$0xff]   ;;  %v3704_v49 = vsub.s32 %v34_v42, %v3686_v43 }
   0x6   :  { %v3044_v9 = vld [vmem:[%s4667_s1 + $0x244] ss:$16 sps:$4 sm:$0xff]   ;;  %v3047_v11 = vld [vmem:[%s4667_s1 + $0x240] ss:$16 sps:$4 sm:$0xff]  }
   0x7   :  { %1642 = vmatpush1.bf16.msra.mxu1 %v3040_v6  ;;  %v3048_v12 = vld [vmem:[%s4667_s1 + $0x64] ss:$16 sps:$4 sm:$0xff]   ;;  %v3052_v14 = vld [vmem:[%s4667_s1 + $0x60] ss:$16 sps:$4 sm:$0xff]  }
   0x8   :  { %1683 = vmatpush1.bf16.msra.mxu0 %v3041_v7  ;;  %1643 = vmatprep.subr.bf16.mxu1 %v3042_v8  ;;  %v3050_v13 = vld [vmem:[%s4667_s1 + $0x264] ss:$16 sps:$4 sm:$0xff]   ;;  %v3053_v15 = vld [vmem:[%s4667_s1 + $0x260] ss:$16 sps:$4 sm:$0xff]   ;;  %v3759_v8 = vld [vmem:[%s4668_s0 + $0x8] sm:$0xff] }
   0x9   :  { %1684 = vmatprep.subr.bf16.mxu0 %v3044_v9  ;;  %v3054_v16 = vld [vmem:[%s4667_s1 + $0x84] ss:$16 sps:$4 sm:$0xff]   ;;  %v3058_v18 = vld [vmem:[%s4667_s1 + $0x80] ss:$16 sps:$4 sm:$0xff]  }
   0xa   :  { %v3056_v17 = vld [vmem:[%s4667_s1 + $0x284] ss:$16 sps:$4 sm:$0xff]   ;;  %v3059_v19 = vld [vmem:[%s4667_s1 + $0x280] ss:$16 sps:$4 sm:$0xff]  }
   0xb   :  { %1644 = vmatpush1.bf16.msra.mxu1 %v3046_v10  ;;  %v3060_v20 = vld [vmem:[%s4667_s1 + $0xa4] ss:$16 sps:$4 sm:$0xff]   ;;  %v3064_v22 = vld [vmem:[%s4667_s1 + $0xa0] ss:$16 sps:$4 sm:$0xff]  }
   0xc   :  { %1685 = vmatpush1.bf16.msra.mxu0 %v3047_v11  ;;  %1645 = vmatprep.subr.bf16.mxu1 %v3048_v12  ;;  %v3062_v21 = vld [vmem:[%s4667_s1 + $0x2a4] ss:$16 sps:$4 sm:$0xff]   ;;  %v3065_v23 = vld [vmem:[%s4667_s1 + $0x2a0] ss:$16 sps:$4 sm:$0xff]  }
   0xd   :  { %1686 = vmatprep.subr.bf16.mxu0 %v3050_v13  ;;  %v3066_v24 = vld [vmem:[%s4667_s1 + $0xc4] ss:$16 sps:$4 sm:$0xff]   ;;  %v3070_v26 = vld [vmem:[%s4667_s1 + $0xc0] ss:$16 sps:$4 sm:$0xff]   ;;  %v3775_v13 = vrot.slane %v3759_v8, %v3704_v49 }
   0xe   :  { %v3068_v25 = vld [vmem:[%s4667_s1 + $0x2c4] ss:$16 sps:$4 sm:$0xff]   ;;  %v3071_v27 = vld [vmem:[%s4667_s1 + $0x2c0] ss:$16 sps:$4 sm:$0xff]  }
   0xf   :  { %1646 = vmatpush1.bf16.msra.mxu1 %v3052_v14  ;;  %v3072_v28 = vld [vmem:[%s4667_s1 + $0xe4] ss:$16 sps:$4 sm:$0xff]   ;;  %v3076_v30 = vld [vmem:[%s4667_s1 + $0xe0] ss:$16 sps:$4 sm:$0xff]  }
  0x10   :  { %1687 = vmatpush1.bf16.msra.mxu0 %v3053_v15  ;;  %1647 = vmatprep.subr.bf16.mxu1 %v3054_v16  ;;  %v3074_v29 = vld [vmem:[%s4667_s1 + $0x2e4] ss:$16 sps:$4 sm:$0xff]   ;;  %v3077_v31 = vld [vmem:[%s4667_s1 + $0x2e0] ss:$16 sps:$4 sm:$0xff]  }
  0x11   :  { %1688 = vmatprep.subr.bf16.mxu0 %v3056_v17  ;;  %v3078_v32 = vld [vmem:[%s4667_s1 + $0x104] ss:$16 sps:$4 sm:$0xff]   ;;  %v3082_v34 = vld [vmem:[%s4667_s1 + $0x100] ss:$16 sps:$4 sm:$0xff]   ;;  %v3133_v17 = vld [vmem:[%s4667_s1 + $0xc] ss:$16 sps:$4 sm:$0xff]  }
  0x12   :  { %v3080_v33 = vld [vmem:[%s4667_s1 + $0x304] ss:$16 sps:$4 sm:$0xff]   ;;  %v3083_v35 = vld [vmem:[%s4667_s1 + $0x300] ss:$16 sps:$4 sm:$0xff]  }
  0x13   :  { %1648 = vmatpush1.bf16.msra.mxu1 %v3058_v18  ;;  %v3084_v39 = vld [vmem:[%s4667_s1 + $0x124] ss:$16 sps:$4 sm:$0xff]   ;;  %v3088_v41 = vld [vmem:[%s4667_s1 + $0x120] ss:$16 sps:$4 sm:$0xff]   ;;  %v63_v18 = vcombine.high %v3775_v13, %v3775_v13 }
  0x14   :  { %1689 = vmatpush1.bf16.msra.mxu0 %v3059_v19  ;;  %1649 = vmatprep.subr.bf16.mxu1 %v3060_v20  ;;  %v3086_v40 = vld [vmem:[%s4667_s1 + $0x324] ss:$16 sps:$4 sm:$0xff]   ;;  %v3089_v44 = vld [vmem:[%s4667_s1 + $0x320] ss:$16 sps:$4 sm:$0xff]  }
  0x15   :  { %1690 = vmatprep.subr.bf16.mxu0 %v3062_v21  ;;  %v3090_v45 = vld [vmem:[%s4667_s1 + $0x144] ss:$16 sps:$4 sm:$0xff]   ;;  %v3094_v47 = vld [vmem:[%s4667_s1 + $0x140] ss:$16 sps:$4 sm:$0xff]  }
  0x16   :  { %v3092_v46 = vld [vmem:[%s4667_s1 + $0x344] ss:$16 sps:$4 sm:$0xff]   ;;  %v3095_v48 = vld [vmem:[%s4667_s1 + $0x340] ss:$16 sps:$4 sm:$0xff]  }
  0x17   :  { %1650 = vmatpush1.bf16.msra.mxu1 %v3064_v22  ;;  %v3096_v50 = vld [vmem:[%s4667_s1 + $0x164] ss:$16 sps:$4 sm:$0xff]   ;;  %v3100_v55 = vld [vmem:[%s4667_s1 + $0x160] ss:$16 sps:$4 sm:$0xff]   ;;  %v3131_v22 = vld [vmem:[%s4667_s1 + $0x8] ss:$16 sps:$4 sm:$0xff]  }
  0x18   :  { %1691 = vmatpush1.bf16.msra.mxu0 %v3065_v23  ;;  %1651 = vmatprep.subr.bf16.mxu1 %v3066_v24  ;;  %v3098_v51 = vld [vmem:[%s4667_s1 + $0x364] ss:$16 sps:$4 sm:$0xff]   ;;  %v3101_v56 = vld [vmem:[%s4667_s1 + $0x360] ss:$16 sps:$4 sm:$0xff]   ;;  %v3139_v24 = vld [vmem:[%s4667_s1 + $0x2c] ss:$16 sps:$4 sm:$0xff]  }
  0x19   :  { %1692 = vmatprep.subr.bf16.mxu0 %v3068_v25  ;;  %v27_v52 = vld [vmem:[%s4668_s0] sm:$0xff]  ;;  %v3807_v25 = vpack.c.bf16 %v63_v18, %v63_v18  ;;  %v3217_v18 = vld [vmem:[%s4667_s1 + $0x1cc] ss:$16 sps:$4 sm:$0xff]  }
  0x1a   :  { %v38_v53 = vrot.slane %v27_v52, %v3704_v49  ;;  %v31_v54 = vcombine.high %v27_v52, %v27_v52  ;;  %v3102_v57 = vld [vmem:[%s4667_s1 + $0x184] ss:$16 sps:$4 sm:$0xff]   ;;  %v3106_v63 = vld [vmem:[%s4667_s1 + $0x180] ss:$16 sps:$4 sm:$0xff]  }
  0x1b   :  { %1652 = vmatpush1.bf16.msra.mxu1 %v3070_v26  ;;  %v3104_v58 = vld [vmem:[%s4667_s1 + $0x384] ss:$16 sps:$4 sm:$0xff]   ;;  %v3107_v0 = vld [vmem:[%s4667_s1 + $0x380] ss:$16 sps:$4 sm:$0xff]  }
  0x1c   :  { %1693 = vmatpush1.bf16.msra.mxu0 %v3071_v27  ;;  %1653 = vmatprep.subr.bf16.mxu1 %v3072_v28  ;;  %v46_v59 = vcombine.high %v38_v53, %v38_v53  ;;  %v45_v60 = vrot.slane %v31_v54, %v3704_v49  ;;  %v3108_v1 = vld [vmem:[%s4667_s1 + $0x1a4] ss:$16 sps:$4 sm:$0xff]   ;;  %v3112_v4 = vld [vmem:[%s4667_s1 + $0x1a0] ss:$16 sps:$4 sm:$0xff]   ;;  %v3791_v19 = vpack.c.bf16 %v38_v53, %v38_v53  ;;  %v3137_v27 = vld [vmem:[%s4667_s1 + $0x28] ss:$16 sps:$4 sm:$0xff]  }
  0x1d   :  { %1694 = vmatprep.subr.bf16.mxu0 %v3074_v29  ;;  %v3110_v2 = vld [vmem:[%s4667_s1 + $0x3a4] ss:$16 sps:$4 sm:$0xff]   ;;  %v3113_v5 = vld [vmem:[%s4667_s1 + $0x3a0] ss:$16 sps:$4 sm:$0xff]   ;;  %v3145_v29 = vld [vmem:[%s4667_s1 + $0x4c] ss:$16 sps:$4 sm:$0xff]  }
  0x1e   :  { %v74_v61 = vpack.c.bf16 %v46_v59, %v46_v59  ;;  %v47_v62 = vcombine.high %v45_v60, %v45_v60  ;;  %v3114_v6 = vld [vmem:[%s4667_s1 + $0x1c4] ss:$16 sps:$4 sm:$0xff]   ;;  %v3118_v9 = vld [vmem:[%s4667_s1 + $0x1c0] ss:$16 sps:$4 sm:$0xff]   ;;  %v3793_v20 = vpack.c.bf16 %v45_v60, %v45_v60  ;;  %v3173_v53 = vld [vmem:[%s4667_s1 + $0xe8] ss:$16 sps:$4 sm:$0xff]  }
  0x1f   :  { %1654 = vmatpush1.bf16.msra.mxu1 %v3076_v30  ;;  %v3116_v7 = vld [vmem:[%s4667_s1 + $0x3c4] ss:$16 sps:$4 sm:$0xff]   ;;  %v3119_v10 = vld [vmem:[%s4667_s1 + $0x3c0] ss:$16 sps:$4 sm:$0xff]   ;;  %v3187_v59 = vld [vmem:[%s4667_s1 + $0x12c] ss:$16 sps:$4 sm:$0xff]  }
  0x20   :  { %1695 = vmatpush1.bf16.msra.mxu0 %v3077_v31  ;;  %1655 = vmatprep.subr.bf16.mxu1 %v3078_v32  ;;  %v3741_v3 = vpack.c.bf16 %v47_v62, %v47_v62  ;;  %v3120_v11 = vld [vmem:[%s4667_s1 + $0x1e4] ss:$16 sps:$4 sm:$0xff]   ;;  %v3124_v14 = vld [vmem:[%s4667_s1 + $0x1e0] ss:$16 sps:$4 sm:$0xff]   ;;  %v3143_v31 = vld [vmem:[%s4667_s1 + $0x48] ss:$16 sps:$4 sm:$0xff]  }
  0x21   :  { %1696 = vmatprep.subr.bf16.mxu0 %v3080_v33  ;;  %1671 = vmatprep.mubr.bf16.mxu1 %v74_v61  ;;  %v3122_v12 = vld [vmem:[%s4667_s1 + $0x3e4] ss:$16 sps:$4 sm:$0xff]   ;;  %v3125_v15 = vld [vmem:[%s4667_s1 + $0x3e0] ss:$16 sps:$4 sm:$0xff]   ;;  %v3151_v33 = vld [vmem:[%s4667_s1 + $0x6c] ss:$16 sps:$4 sm:$0xff]  }
  0x22   :  { %1712 = vmatprep.mubr.bf16.mxu0 %v3741_v3  ;;  %v3130_v16 = vld [vmem:[%s4667_s1 + $0x404] ss:$16 sps:$4 sm:$0xff]   ;;  %v3128_v21 = vld [vmem:[%s4667_s1 + $0x400] ss:$16 sps:$4 sm:$0xff]  }
  0x23   :  { %1656 = vmatpush1.bf16.msra.mxu1 %v3082_v34  ;;  %v3136_v23 = vld [vmem:[%s4667_s1 + $0x424] ss:$16 sps:$4 sm:$0xff]   ;;  %v3134_v26 = vld [vmem:[%s4667_s1 + $0x420] ss:$16 sps:$4 sm:$0xff]  }
  0x24   :  { %1697 = vmatpush1.bf16.msra.mxu0 %v3083_v35  ;;  %1657 = vmatprep.subr.bf16.mxu1 %v3084_v39  ;;  %v3142_v28 = vld [vmem:[%s4667_s1 + $0x444] ss:$16 sps:$4 sm:$0xff]   ;;  %v3140_v30 = vld [vmem:[%s4667_s1 + $0x440] ss:$16 sps:$4 sm:$0xff]   ;;  %v3149_v35 = vld [vmem:[%s4667_s1 + $0x68] ss:$16 sps:$4 sm:$0xff]  }
  0x25   :  { %1698 = vmatprep.subr.bf16.mxu0 %v3086_v40  ;;  %v3148_v32 = vld [vmem:[%s4667_s1 + $0x464] ss:$16 sps:$4 sm:$0xff]   ;;  %v3146_v34 = vld [vmem:[%s4667_s1 + $0x460] ss:$16 sps:$4 sm:$0xff]   ;;  %v3155_v39 = vld [vmem:[%s4667_s1 + $0x88] ss:$16 sps:$4 sm:$0xff]  }
  0x26   :  { %v3154_v36 = vld [vmem:[%s4667_s1 + $0x484] ss:$16 sps:$4 sm:$0xff]   ;;  %v3152_v38 = vld [vmem:[%s4667_s1 + $0x480] ss:$16 sps:$4 sm:$0xff]  }
  0x27   :  { %1658 = vmatpush1.bf16.msra.mxu1 %v3088_v41  ;;  %v3160_v40 = vld [vmem:[%s4667_s1 + $0x4a4] ss:$16 sps:$4 sm:$0xff]   ;;  %v3163_v41 = vld [vmem:[%s4667_s1 + $0xac] ss:$16 sps:$4 sm:$0xff]   ;;  %v3158_v42 = vld [vmem:[%s4667_s1 + $0x4a0] ss:$16 sps:$4 sm:$0xff]  }
  0x28   :  { %1699 = vmatpush1.bf16.msra.mxu0 %v3089_v44  ;;  %1659 = vmatprep.subr.bf16.mxu1 %v3090_v45  ;;  %v3161_v44 = vld [vmem:[%s4667_s1 + $0xa8] ss:$16 sps:$4 sm:$0xff]   ;;  %v3166_v45 = vld [vmem:[%s4667_s1 + $0x4c4] ss:$16 sps:$4 sm:$0xff]   ;;  %v3170_v52 = vld [vmem:[%s4667_s1 + $0x4e0] ss:$16 sps:$4 sm:$0xff]  }
  0x29   :  { %1700 = vmatprep.subr.bf16.mxu0 %v3092_v46  ;;  %v3169_v46 = vld [vmem:[%s4667_s1 + $0xcc] ss:$16 sps:$4 sm:$0xff]   ;;  %v3178_v54 = vld [vmem:[%s4667_s1 + $0x504] ss:$16 sps:$4 sm:$0xff]   ;;  %v3182_v60 = vld [vmem:[%s4667_s1 + $0x520] ss:$16 sps:$4 sm:$0xff]  }
  0x2a   :  { %v3190_v62 = vld [vmem:[%s4667_s1 + $0x544] ss:$16 sps:$4 sm:$0xff]  }
  0x2b   :  { %1660 = vmatpush1.bf16.msra.mxu1 %v3094_v47  ;;  %v3164_v47 = vld [vmem:[%s4667_s1 + $0x4c0] ss:$16 sps:$4 sm:$0xff]  }
  0x2c   :  { %1701 = vmatpush1.bf16.msra.mxu0 %v3095_v48  ;;  %1661 = vmatprep.subr.bf16.mxu1 %v3096_v50  ;;  %v3167_v48 = vld [vmem:[%s4667_s1 + $0xc8] ss:$16 sps:$4 sm:$0xff]   ;;  %v3172_v50 = vld [vmem:[%s4667_s1 + $0x4e4] ss:$16 sps:$4 sm:$0xff]  }
  0x2d   :  { %1702 = vmatprep.subr.bf16.mxu0 %v3098_v51  ;;  %v3175_v51 = vld [vmem:[%s4667_s1 + $0xec] ss:$16 sps:$4 sm:$0xff]  }
  0x2f   :  { %1662 = vmatpush1.bf16.msra.mxu1 %v3100_v55  ;;  %v3181_v55 = vld [vmem:[%s4667_s1 + $0x10c] ss:$16 sps:$4 sm:$0xff]  }
  0x30   :  { %1703 = vmatpush1.bf16.msra.mxu0 %v3101_v56  ;;  %1663 = vmatprep.subr.bf16.mxu1 %v3102_v57  ;;  %v3176_v56 = vld [vmem:[%s4667_s1 + $0x500] ss:$16 sps:$4 sm:$0xff]   ;;  %v3179_v57 = vld [vmem:[%s4667_s1 + $0x108] ss:$16 sps:$4 sm:$0xff]  }
  0x31   :  { %1704 = vmatprep.subr.bf16.mxu0 %v3104_v58  ;;  %v3184_v58 = vld [vmem:[%s4667_s1 + $0x524] ss:$16 sps:$4 sm:$0xff]  }
  0x33   :  { %1664 = vmatpush1.bf16.msra.mxu1 %v3106_v63  ;;  %v3193_v63 = vld [vmem:[%s4667_s1 + $0x14c] ss:$16 sps:$4 sm:$0xff]  }
  0x34   :  { %1705 = vmatpush1.bf16.msra.mxu0 %v3107_v0  ;;  %1665 = vmatprep.subr.bf16.mxu1 %v3108_v1  ;;  %v3188_v0 = vld [vmem:[%s4667_s1 + $0x540] ss:$16 sps:$4 sm:$0xff]   ;;  %v3191_v1 = vld [vmem:[%s4667_s1 + $0x148] ss:$16 sps:$4 sm:$0xff]  }
  0x35   :  { %1706 = vmatprep.subr.bf16.mxu0 %v3110_v2  ;;  %v3196_v2 = vld [vmem:[%s4667_s1 + $0x564] ss:$16 sps:$4 sm:$0xff]  }
  0x37   :  { %1666 = vmatpush1.bf16.msra.mxu1 %v3112_v4  ;;  %v3199_v4 = vld [vmem:[%s4667_s1 + $0x16c] ss:$16 sps:$4 sm:$0xff]  }
  0x38   :  { %1707 = vmatpush1.bf16.msra.mxu0 %v3113_v5  ;;  %1667 = vmatprep.subr.bf16.mxu1 %v3114_v6  ;;  %v3194_v5 = vld [vmem:[%s4667_s1 + $0x560] ss:$16 sps:$4 sm:$0xff]   ;;  %v3197_v6 = vld [vmem:[%s4667_s1 + $0x168] ss:$16 sps:$4 sm:$0xff]  }
  0x39   :  { %1708 = vmatprep.subr.bf16.mxu0 %v3116_v7  ;;  %v3202_v7 = vld [vmem:[%s4667_s1 + $0x584] ss:$16 sps:$4 sm:$0xff]  }
  0x3b   :  { %1668 = vmatpush1.bf16.msra.mxu1 %v3118_v9  ;;  %v3205_v9 = vld [vmem:[%s4667_s1 + $0x18c] ss:$16 sps:$4 sm:$0xff]  }
  0x3c   :  { %1709 = vmatpush1.bf16.msra.mxu0 %v3119_v10  ;;  %1669 = vmatprep.subr.bf16.mxu1 %v3120_v11  ;;  %v3200_v10 = vld [vmem:[%s4667_s1 + $0x580] ss:$16 sps:$4 sm:$0xff]   ;;  %v3203_v11 = vld [vmem:[%s4667_s1 + $0x188] ss:$16 sps:$4 sm:$0xff]  }
  0x3d   :  { %1710 = vmatprep.subr.bf16.mxu0 %v3122_v12  ;;  %v3208_v12 = vld [vmem:[%s4667_s1 + $0x5a4] ss:$16 sps:$4 sm:$0xff]  }
  0x3f   :  { %1670 = vmatpush1.bf16.msra.mxu1 %v3124_v14  ;;  %v3211_v14 = vld [vmem:[%s4667_s1 + $0x1ac] ss:$16 sps:$4 sm:$0xff]  }
  0x40   :  { %1711 = vmatpush1.bf16.msra.mxu0 %v3125_v15  ;;  %1803 = vmatprep.subr.bf16.mxu1 %v3133_v17  ;;  %v3206_v15 = vld [vmem:[%s4667_s1 + $0x5a0] ss:$16 sps:$4 sm:$0xff]   ;;  %v3214_v17 = vld [vmem:[%s4667_s1 + $0x5c4] ss:$16 sps:$4 sm:$0xff]  }
  0x41   :  { %1721 = vmatprep.subr.bf16.mxu0 %v3130_v16  ;;  %v3209_v16 = vld [vmem:[%s4667_s1 + $0x1a8] ss:$16 sps:$4 sm:$0xff]  }
  0x42   :  { %1672 = vmatmul.mubr.bf16.vlgmr.msra.gmra.mrb[0].mxu1 %v3791_v19 }
  0x43   :  { %1713 = vmatmul.mubr.bf16.vlgmr.msra.gmra.mrb[0].mxu0 %v3793_v20  ;;  %1804 = vmatpush1.bf16.msra.mxu1 %v3131_v22  ;;  %v3212_v22 = vld [vmem:[%s4667_s1 + $0x5c0] ss:$16 sps:$4 sm:$0xff]  }
  0x44   :  { %1722 = vmatpush1.bf16.msra.mxu0 %v3128_v21  ;;  %1805 = vmatprep.subr.bf16.mxu1 %v3139_v24  ;;  %v48_v21 = vcombine.high %v3759_v8, %v3759_v8  ;;  %v3220_v24 = vld [vmem:[%s4667_s1 + $0x5e4] ss:$16 sps:$4 sm:$0xff]   ;;  %v3223_v8 = vld [vmem:[%s4667_s1 + $0x1ec] ss:$16 sps:$4 sm:$0xff]  }
  0x45   :  { %1723 = vmatprep.subr.bf16.mxu0 %v3136_v23  ;;  %1753 = vmatprep.mubr.bf16.mxu0 %v3807_v25  ;;  %v3215_v23 = vld [vmem:[%s4667_s1 + $0x1c8] ss:$16 sps:$4 sm:$0xff]  }
  0x46   :  { %1835 = vmatprep.mubr.bf16.mxu1 %v74_v61  ;;  %v3185_v61 = vld [vmem:[%s4667_s1 + $0x128] ss:$16 sps:$4 sm:$0xff]  }
  0x47   :  { %1806 = vmatpush1.bf16.msra.mxu1 %v3137_v27  ;;  %v3218_v27 = vld [vmem:[%s4667_s1 + $0x5e0] ss:$16 sps:$4 sm:$0xff]  }
  0x48   :  { %1724 = vmatpush1.bf16.msra.mxu0 %v3134_v26  ;;  %1807 = vmatprep.subr.bf16.mxu1 %v3145_v29  ;;  %v3983_v26 = vrot.slane %v48_v21, %v3704_v49  ;;  %v3226_v29 = vld [vmem:[%s4667_s1 + $0x604] ss:$16 sps:$4 sm:$0xff]   ;;  %v3229_v49 = vld [vmem:[%s4667_s1 + $0x20c] ss:$16 sps:$4 sm:$0xff]   ;;  %v3296_v21 = vld [vmem:[%s4667_s1 + $0x780] ss:$16 sps:$4 sm:$0xff]  }
  0x49   :  { %1725 = vmatprep.subr.bf16.mxu0 %v3142_v28  ;;  %v3221_v28 = vld [vmem:[%s4667_s1 + $0x1e8] ss:$16 sps:$4 sm:$0xff]  }
  0x4b   :  { %1808 = vmatpush1.bf16.msra.mxu1 %v3143_v31  ;;  %v4001_v31 = vpack.c.bf16 %v3775_v13, %v3775_v13  ;;  %v3235_v13 = vld [vmem:[%s4667_s1 + $0x22c] ss:$16 sps:$4 sm:$0xff]  }
  0x4c   :  { %1726 = vmatpush1.bf16.msra.mxu0 %v3140_v30  ;;  %1809 = vmatprep.subr.bf16.mxu1 %v3151_v33  ;;  %v64_v30 = vcombine.high %v3983_v26, %v3983_v26  ;;  %v3227_v33 = vld [vmem:[%s4667_s1 + $0x208] ss:$16 sps:$4 sm:$0xff]  }
  0x4d   :  { %1727 = vmatprep.subr.bf16.mxu0 %v3148_v32  ;;  %v3224_v32 = vld [vmem:[%s4667_s1 + $0x600] ss:$16 sps:$4 sm:$0xff]  }
  0x4f   :  { %1810 = vmatpush1.bf16.msra.mxu1 %v3149_v35  ;;  %v4015_v35 = vpack.c.bf16 %v64_v30, %v64_v30  ;;  %v3311_v30 = vld [vmem:[%s4667_s1 + $0x3c8] ss:$16 sps:$4 sm:$0xff]  }
  0x50   :  { %1728 = vmatpush1.bf16.msra.mxu0 %v3146_v34  ;;  %1811 = vmatprep.subr.bf16.mxu1 %v3157_v37  ;;  %v3232_v34 = vld [vmem:[%s4667_s1 + $0x624] ss:$16 sps:$4 sm:$0xff]   ;;  %v3233_v37 = vld [vmem:[%s4667_s1 + $0x228] ss:$16 sps:$4 sm:$0xff]  }
  0x51   :  { %1729 = vmatprep.subr.bf16.mxu0 %v3154_v36  ;;  %v3230_v36 = vld [vmem:[%s4667_s1 + $0x620] ss:$16 sps:$4 sm:$0xff]  }
  0x53   :  { %1812 = vmatpush1.bf16.msra.mxu1 %v3155_v39  ;;  %v3236_v39 = vld [vmem:[%s4667_s1 + $0x640] ss:$16 sps:$4 sm:$0xff]  }
  0x54   :  { %1730 = vmatpush1.bf16.msra.mxu0 %v3152_v38  ;;  %1813 = vmatprep.subr.bf16.mxu1 %v3163_v41  ;;  %v3238_v38 = vld [vmem:[%s4667_s1 + $0x644] ss:$16 sps:$4 sm:$0xff]  }
  0x55   :  { %1731 = vmatprep.subr.bf16.mxu0 %v3160_v40  ;;  %v3239_v40 = vld [vmem:[%s4667_s1 + $0x248] ss:$16 sps:$4 sm:$0xff]   ;;  %v3244_v41 = vld [vmem:[%s4667_s1 + $0x664] ss:$16 sps:$4 sm:$0xff]  }
  0x57   :  { %1814 = vmatpush1.bf16.msra.mxu1 %v3161_v44  ;;  %v3245_v44 = vld [vmem:[%s4667_s1 + $0x268] ss:$16 sps:$4 sm:$0xff]  }
  0x58   :  { %1732 = vmatpush1.bf16.msra.mxu0 %v3158_v42  ;;  %1815 = vmatprep.subr.bf16.mxu1 %v3169_v46  ;;  %v3242_v42 = vld [vmem:[%s4667_s1 + $0x660] ss:$16 sps:$4 sm:$0xff]   ;;  %v3253_v46 = vld [vmem:[%s4667_s1 + $0x28c] ss:$16 sps:$4 sm:$0xff]  }
  0x59   :  { %1733 = vmatprep.subr.bf16.mxu0 %v3166_v45  ;;  %v3250_v45 = vld [vmem:[%s4667_s1 + $0x684] ss:$16 sps:$4 sm:$0xff]  }
  0x5b   :  { %1816 = vmatpush1.bf16.msra.mxu1 %v3167_v48  ;;  %v3251_v48 = vld [vmem:[%s4667_s1 + $0x288] ss:$16 sps:$4 sm:$0xff]  }
  0x5c   :  { %1734 = vmatpush1.bf16.msra.mxu0 %v3164_v47  ;;  %1817 = vmatprep.subr.bf16.mxu1 %v3175_v51  ;;  %v3248_v47 = vld [vmem:[%s4667_s1 + $0x680] ss:$16 sps:$4 sm:$0xff]   ;;  %v3259_v51 = vld [vmem:[%s4667_s1 + $0x2ac] ss:$16 sps:$4 sm:$0xff]  }
  0x5d   :  { %1735 = vmatprep.subr.bf16.mxu0 %v3172_v50  ;;  %v3256_v50 = vld [vmem:[%s4667_s1 + $0x6a4] ss:$16 sps:$4 sm:$0xff]  }
  0x5f   :  { %1818 = vmatpush1.bf16.msra.mxu1 %v3173_v53  ;;  %v3257_v53 = vld [vmem:[%s4667_s1 + $0x2a8] ss:$16 sps:$4 sm:$0xff]  }
  0x60   :  { %1736 = vmatpush1.bf16.msra.mxu0 %v3170_v52  ;;  %1819 = vmatprep.subr.bf16.mxu1 %v3181_v55  ;;  %v3254_v52 = vld [vmem:[%s4667_s1 + $0x6a0] ss:$16 sps:$4 sm:$0xff]   ;;  %v3265_v55 = vld [vmem:[%s4667_s1 + $0x2cc] ss:$16 sps:$4 sm:$0xff]  }
  0x61   :  { %1737 = vmatprep.subr.bf16.mxu0 %v3178_v54  ;;  %v3262_v54 = vld [vmem:[%s4667_s1 + $0x6c4] ss:$16 sps:$4 sm:$0xff]  }
  0x63   :  { %1820 = vmatpush1.bf16.msra.mxu1 %v3179_v57  ;;  %v3263_v57 = vld [vmem:[%s4667_s1 + $0x2c8] ss:$16 sps:$4 sm:$0xff]  }
  0x64   :  { %1738 = vmatpush1.bf16.msra.mxu0 %v3176_v56  ;;  %1821 = vmatprep.subr.bf16.mxu1 %v3187_v59  ;;  %v3260_v56 = vld [vmem:[%s4667_s1 + $0x6c0] ss:$16 sps:$4 sm:$0xff]   ;;  %v3271_v59 = vld [vmem:[%s4667_s1 + $0x2ec] ss:$16 sps:$4 sm:$0xff]  }
  0x65   :  { %1739 = vmatprep.subr.bf16.mxu0 %v3184_v58  ;;  %v3268_v58 = vld [vmem:[%s4667_s1 + $0x6e4] ss:$16 sps:$4 sm:$0xff]  }
  0x67   :  { %1822 = vmatpush1.bf16.msra.mxu1 %v3185_v61  ;;  %v3269_v61 = vld [vmem:[%s4667_s1 + $0x2e8] ss:$16 sps:$4 sm:$0xff]  }
  0x68   :  { %1740 = vmatpush1.bf16.msra.mxu0 %v3182_v60  ;;  %1823 = vmatprep.subr.bf16.mxu1 %v3193_v63  ;;  %v3266_v60 = vld [vmem:[%s4667_s1 + $0x6e0] ss:$16 sps:$4 sm:$0xff]   ;;  %v3277_v63 = vld [vmem:[%s4667_s1 + $0x30c] ss:$16 sps:$4 sm:$0xff]  }
  0x69   :  { %1741 = vmatprep.subr.bf16.mxu0 %v3190_v62  ;;  %v3274_v62 = vld [vmem:[%s4667_s1 + $0x704] ss:$16 sps:$4 sm:$0xff]  }
  0x6b   :  { %1824 = vmatpush1.bf16.msra.mxu1 %v3191_v1  ;;  %v3275_v1 = vld [vmem:[%s4667_s1 + $0x308] ss:$16 sps:$4 sm:$0xff]  }
  0x6c   :  { %1742 = vmatpush1.bf16.msra.mxu0 %v3188_v0  ;;  %1825 = vmatprep.subr.bf16.mxu1 %v3199_v4  ;;  %v3272_v0 = vld [vmem:[%s4667_s1 + $0x700] ss:$16 sps:$4 sm:$0xff]   ;;  %v3283_v4 = vld [vmem:[%s4667_s1 + $0x32c] ss:$16 sps:$4 sm:$0xff]  }
  0x6d   :  { %1743 = vmatprep.subr.bf16.mxu0 %v3196_v2  ;;  %v3280_v2 = vld [vmem:[%s4667_s1 + $0x724] ss:$16 sps:$4 sm:$0xff]  }
  0x6f   :  { %1826 = vmatpush1.bf16.msra.mxu1 %v3197_v6  ;;  %v3281_v6 = vld [vmem:[%s4667_s1 + $0x328] ss:$16 sps:$4 sm:$0xff]  }
  0x70   :  { %1744 = vmatpush1.bf16.msra.mxu0 %v3194_v5  ;;  %1827 = vmatprep.subr.bf16.mxu1 %v3205_v9  ;;  %v3278_v5 = vld [vmem:[%s4667_s1 + $0x720] ss:$16 sps:$4 sm:$0xff]   ;;  %v3289_v9 = vld [vmem:[%s4667_s1 + $0x34c] ss:$16 sps:$4 sm:$0xff]  }
  0x71   :  { %1745 = vmatprep.subr.bf16.mxu0 %v3202_v7  ;;  %v3286_v7 = vld [vmem:[%s4667_s1 + $0x744] ss:$16 sps:$4 sm:$0xff]  }
  0x73   :  { %1828 = vmatpush1.bf16.msra.mxu1 %v3203_v11  ;;  %v3287_v11 = vld [vmem:[%s4667_s1 + $0x348] ss:$16 sps:$4 sm:$0xff]  }
  0x74   :  { %1746 = vmatpush1.bf16.msra.mxu0 %v3200_v10  ;;  %1829 = vmatprep.subr.bf16.mxu1 %v3211_v14  ;;  %v3284_v10 = vld [vmem:[%s4667_s1 + $0x740] ss:$16 sps:$4 sm:$0xff]   ;;  %v3295_v14 = vld [vmem:[%s4667_s1 + $0x36c] ss:$16 sps:$4 sm:$0xff]  }
  0x75   :  { %1747 = vmatprep.subr.bf16.mxu0 %v3208_v12  ;;  %v3292_v12 = vld [vmem:[%s4667_s1 + $0x764] ss:$16 sps:$4 sm:$0xff]  }
  0x77   :  { %1830 = vmatpush1.bf16.msra.mxu1 %v3209_v16  ;;  %v3293_v16 = vld [vmem:[%s4667_s1 + $0x368] ss:$16 sps:$4 sm:$0xff]  }
  0x78   :  { %1748 = vmatpush1.bf16.msra.mxu0 %v3206_v15  ;;  %1831 = vmatprep.subr.bf16.mxu1 %v3217_v18  ;;  %v3290_v15 = vld [vmem:[%s4667_s1 + $0x760] ss:$16 sps:$4 sm:$0xff]   ;;  %v3301_v18 = vld [vmem:[%s4667_s1 + $0x38c] ss:$16 sps:$4 sm:$0xff]  }
  0x79   :  { %1749 = vmatprep.subr.bf16.mxu0 %v3214_v17  ;;  %v3298_v17 = vld [vmem:[%s4667_s1 + $0x784] ss:$16 sps:$4 sm:$0xff]  }
  0x7b   :  { %1832 = vmatpush1.bf16.msra.mxu1 %v3215_v23  ;;  %v3304_v23 = vld [vmem:[%s4667_s1 + $0x7a4] ss:$16 sps:$4 sm:$0xff]  }
  0x7c   :  { %1750 = vmatpush1.bf16.msra.mxu0 %v3212_v22  ;;  %1833 = vmatprep.subr.bf16.mxu1 %v3223_v8  ;;  %v3299_v22 = vld [vmem:[%s4667_s1 + $0x388] ss:$16 sps:$4 sm:$0xff]   ;;  %v3302_v8 = vld [vmem:[%s4667_s1 + $0x7a0] ss:$16 sps:$4 sm:$0xff]  }
  0x7d   :  { %1751 = vmatprep.subr.bf16.mxu0 %v3220_v24  ;;  %v3307_v24 = vld [vmem:[%s4667_s1 + $0x3ac] ss:$16 sps:$4 sm:$0xff]  }
  0x7f   :  { %1834 = vmatpush1.bf16.msra.mxu1 %v3221_v28  ;;  %v3310_v28 = vld [vmem:[%s4667_s1 + $0x7c4] ss:$16 sps:$4 sm:$0xff]  }
  0x80   :  { %1752 = vmatpush1.bf16.msra.mxu0 %v3218_v27  ;;  %1844 = vmatprep.subr.bf16.mxu1 %v3229_v49  ;;  %v3305_v27 = vld [vmem:[%s4667_s1 + $0x3a8] ss:$16 sps:$4 sm:$0xff]   ;;  %v3308_v49 = vld [vmem:[%s4667_s1 + $0x7c0] ss:$16 sps:$4 sm:$0xff]  }
  0x81   :  { %1762 = vmatprep.subr.bf16.mxu0 %v3226_v29  ;;  %v3313_v29 = vld [vmem:[%s4667_s1 + $0x3cc] ss:$16 sps:$4 sm:$0xff]  }
  0x82   :  { %1836 = vmatmul.mubr.bf16.vlgmr.msra.gmra.mrb[4].mxu1 %v3791_v19  ;;  %v3241_v19 = vld [vmem:[%s4667_s1 + $0x24c] ss:$16 sps:$4 sm:$0xff]  }
  0x83   :  { %1754 = vmatmul.mubr.bf16.vlgmr.msra.gmra.mrb[0].mxu0 %v4001_v31  ;;  %1845 = vmatpush1.bf16.msra.mxu1 %v3227_v33  ;;  %v3319_v33 = vld [vmem:[%s4667_s1 + $0x3ec] ss:$16 sps:$4 sm:$0xff]  }
  0x84   :  { %1763 = vmatpush1.bf16.msra.mxu0 %v3224_v32  ;;  %1846 = vmatprep.subr.bf16.mxu1 %v3235_v13  ;;  %v3316_v32 = vld [vmem:[%s4667_s1 + $0x7e4] ss:$16 sps:$4 sm:$0xff]   ;;  %v3317_v13 = vld [vmem:[%s4667_s1 + $0x3e8] ss:$16 sps:$4 sm:$0xff]  }
  0x85   :  { %1764 = vmatprep.subr.bf16.mxu0 %v3232_v34  ;;  %1794 = vmatprep.mubr.bf16.mxu0 %v4015_v35  ;;  %v3314_v34 = vld [vmem:[%s4667_s1 + $0x7e0] ss:$16 sps:$4 sm:$0xff]  }
  0x86   :  { %1876 = vmatprep.mubr.bf16.mxu1 %v3741_v3  ;;  %v3247_v3 = vld [vmem:[%s4667_s1 + $0x26c] ss:$16 sps:$4 sm:$0xff]  }
  0x87   :  { %1847 = vmatpush1.bf16.msra.mxu1 %v3233_v37  ;;  %v4200_v37 = vpack.c.bf16 %v3983_v26, %v3983_v26  ;;  %v3323_v26 = vld [vmem:[%s4667_s1 + $0x428] ss:$16 sps:$4 sm:$0xff]  }
  0x88   :  { %1765 = vmatpush1.bf16.msra.mxu0 %v3230_v36  ;;  %1848 = vmatprep.subr.bf16.mxu1 %v3241_v19  ;;  %v3322_v36 = vld [vmem:[%s4667_s1 + $0x40c] ss:$16 sps:$4 sm:$0xff]  }
  0x89   :  { %1766 = vmatprep.subr.bf16.mxu0 %v3238_v38  ;;  %v3320_v38 = vld [vmem:[%s4667_s1 + $0x408] ss:$16 sps:$4 sm:$0xff]   ;;  %v3325_v19 = vld [vmem:[%s4667_s1 + $0x42c] ss:$16 sps:$4 sm:$0xff]  }
  0x8b   :  { %1849 = vmatpush1.bf16.msra.mxu1 %v3239_v40  ;;  %v3416_v40 = vld [vmem:[%s4669_s3] ss:$8 sps:$4 sm:$0xff]  }
  0x8c   :  { %1767 = vmatpush1.bf16.msra.mxu0 %v3236_v39  ;;  %1850 = vmatprep.subr.bf16.mxu1 %v3247_v3  ;;  %v3328_v39 = vld [vmem:[%s4667_s1 + $0x44c] ss:$16 sps:$4 sm:$0xff]   ;;  %v3326_v3 = vld [vmem:[%s4667_s1 + $0x448] ss:$16 sps:$4 sm:$0xff]  }
  0x8d   :  { %1768 = vmatprep.subr.bf16.mxu0 %v3244_v41  ;;  %v3421_v41 = vld [vmem:[%s4669_s3 + $0x14] ss:$8 sps:$4 sm:$0xff]  }
  0x8f   :  { %1851 = vmatpush1.bf16.msra.mxu1 %v3245_v44  ;;  %v3424_v44 = vld [vmem:[%s4669_s3 + $0x24] ss:$8 sps:$4 sm:$0xff]  }
  0x90   :  { %1769 = vmatpush1.bf16.msra.mxu0 %v3242_v42  ;;  %1852 = vmatprep.subr.bf16.mxu1 %v3253_v46  ;;  %v3419_v42 = vld [vmem:[%s4669_s3 + $0x10] ss:$8 sps:$4 sm:$0xff]   ;;  %v3334_v46 = vld [vmem:[%s4667_s1 + $0x48c] ss:$16 sps:$4 sm:$0xff]  }
  0x91   :  { %1770 = vmatprep.subr.bf16.mxu0 %v3250_v45  ;;  %v3329_v45 = vld [vmem:[%s4667_s1 + $0x468] ss:$16 sps:$4 sm:$0xff]  }
  0x93   :  { %1853 = vmatpush1.bf16.msra.mxu1 %v3251_v48  ;;  %v3427_v48 = vld [vmem:[%s4669_s3 + $0x34] ss:$8 sps:$4 sm:$0xff]  }
  0x94   :  { %1771 = vmatpush1.bf16.msra.mxu0 %v3248_v47  ;;  %1854 = vmatprep.subr.bf16.mxu1 %v3259_v51  ;;  %v3422_v47 = vld [vmem:[%s4669_s3 + $0x20] ss:$8 sps:$4 sm:$0xff]   ;;  %v3337_v51 = vld [vmem:[%s4667_s1 + $0x4ac] ss:$16 sps:$4 sm:$0xff]  }
  0x95   :  { %1772 = vmatprep.subr.bf16.mxu0 %v3256_v50  ;;  %v3332_v50 = vld [vmem:[%s4667_s1 + $0x488] ss:$16 sps:$4 sm:$0xff]  }
  0x97   :  { %1855 = vmatpush1.bf16.msra.mxu1 %v3257_v53  ;;  %v3430_v53 = vld [vmem:[%s4669_s3 + $0x44] ss:$8 sps:$4 sm:$0xff]  }
  0x98   :  { %1773 = vmatpush1.bf16.msra.mxu0 %v3254_v52  ;;  %1856 = vmatprep.subr.bf16.mxu1 %v3265_v55  ;;  %v3425_v52 = vld [vmem:[%s4669_s3 + $0x30] ss:$8 sps:$4 sm:$0xff]   ;;  %v3340_v55 = vld [vmem:[%s4667_s1 + $0x4cc] ss:$16 sps:$4 sm:$0xff]  }
  0x99   :  { %1774 = vmatprep.subr.bf16.mxu0 %v3262_v54  ;;  %v3335_v54 = vld [vmem:[%s4667_s1 + $0x4a8] ss:$16 sps:$4 sm:$0xff]  }
  0x9b   :  { %1857 = vmatpush1.bf16.msra.mxu1 %v3263_v57  ;;  %v3433_v57 = vld [vmem:[%s4669_s3 + $0x54] ss:$8 sps:$4 sm:$0xff]  }
  0x9c   :  { %1775 = vmatpush1.bf16.msra.mxu0 %v3260_v56  ;;  %1858 = vmatprep.subr.bf16.mxu1 %v3271_v59  ;;  %v3428_v56 = vld [vmem:[%s4669_s3 + $0x40] ss:$8 sps:$4 sm:$0xff]   ;;  %v3431_v59 = vld [vmem:[%s4669_s3 + $0x50] ss:$8 sps:$4 sm:$0xff]  }
  0x9d   :  { %1776 = vmatprep.subr.bf16.mxu0 %v3268_v58  ;;  %v3338_v58 = vld [vmem:[%s4667_s1 + $0x4c8] ss:$16 sps:$4 sm:$0xff]  }
  0x9f   :  { %1859 = vmatpush1.bf16.msra.mxu1 %v3269_v61  ;;  %v3436_v61 = vld [vmem:[%s4669_s3 + $0x64] ss:$8 sps:$4 sm:$0xff]  }
  0xa0   :  { %1777 = vmatpush1.bf16.msra.mxu0 %v3266_v60  ;;  %1860 = vmatprep.subr.bf16.mxu1 %v3277_v63  ;;  %v3343_v60 = vld [vmem:[%s4667_s1 + $0x4ec] ss:$16 sps:$4 sm:$0xff]   ;;  %v3434_v63 = vld [vmem:[%s4669_s3 + $0x60] ss:$8 sps:$4 sm:$0xff]  }
  0xa1   :  { %1778 = vmatprep.subr.bf16.mxu0 %v3274_v62  ;;  %v3341_v62 = vld [vmem:[%s4667_s1 + $0x4e8] ss:$16 sps:$4 sm:$0xff]  }
  0xa3   :  { %1861 = vmatpush1.bf16.msra.mxu1 %v3275_v1  ;;  %v3439_v1 = vld [vmem:[%s4669_s3 + $0x74] ss:$8 sps:$4 sm:$0xff]  }
  0xa4   :  { %1779 = vmatpush1.bf16.msra.mxu0 %v3272_v0  ;;  %1862 = vmatprep.subr.bf16.mxu1 %v3283_v4  ;;  %v3346_v0 = vld [vmem:[%s4667_s1 + $0x50c] ss:$16 sps:$4 sm:$0xff]   ;;  %v3437_v4 = vld [vmem:[%s4669_s3 + $0x70] ss:$8 sps:$4 sm:$0xff]  }
  0xa5   :  { %1780 = vmatprep.subr.bf16.mxu0 %v3280_v2  ;;  %v3344_v2 = vld [vmem:[%s4667_s1 + $0x508] ss:$16 sps:$4 sm:$0xff]  }
  0xa7   :  { %1863 = vmatpush1.bf16.msra.mxu1 %v3281_v6  ;;  %v3442_v6 = vld [vmem:[%s4669_s3 + $0x84] ss:$8 sps:$4 sm:$0xff]  }
  0xa8   :  { %1781 = vmatpush1.bf16.msra.mxu0 %v3278_v5  ;;  %1864 = vmatprep.subr.bf16.mxu1 %v3289_v9  ;;  %v3349_v5 = vld [vmem:[%s4667_s1 + $0x52c] ss:$16 sps:$4 sm:$0xff]   ;;  %v3440_v9 = vld [vmem:[%s4669_s3 + $0x80] ss:$8 sps:$4 sm:$0xff]  }
  0xa9   :  { %1782 = vmatprep.subr.bf16.mxu0 %v3286_v7  ;;  %v3347_v7 = vld [vmem:[%s4667_s1 + $0x528] ss:$16 sps:$4 sm:$0xff]  }
  0xab   :  { %1865 = vmatpush1.bf16.msra.mxu1 %v3287_v11  ;;  %v3445_v11 = vld [vmem:[%s4669_s3 + $0x94] ss:$8 sps:$4 sm:$0xff]  }
  0xac   :  { %1783 = vmatpush1.bf16.msra.mxu0 %v3284_v10  ;;  %1866 = vmatprep.subr.bf16.mxu1 %v3295_v14  ;;  %v3352_v10 = vld [vmem:[%s4667_s1 + $0x54c] ss:$16 sps:$4 sm:$0xff]   ;;  %v3443_v14 = vld [vmem:[%s4669_s3 + $0x90] ss:$8 sps:$4 sm:$0xff]  }
  0xad   :  { %1784 = vmatprep.subr.bf16.mxu0 %v3292_v12  ;;  %v3350_v12 = vld [vmem:[%s4667_s1 + $0x548] ss:$16 sps:$4 sm:$0xff]  }
  0xaf   :  { %1867 = vmatpush1.bf16.msra.mxu1 %v3293_v16  ;;  %v3448_v16 = vld [vmem:[%s4669_s3 + $0xa4] ss:$8 sps:$4 sm:$0xff]  }
  0xb0   :  { %1785 = vmatpush1.bf16.msra.mxu0 %v3290_v15  ;;  %1868 = vmatprep.subr.bf16.mxu1 %v3301_v18  ;;  %v3355_v15 = vld [vmem:[%s4667_s1 + $0x56c] ss:$16 sps:$4 sm:$0xff]   ;;  %v3446_v18 = vld [vmem:[%s4669_s3 + $0xa0] ss:$8 sps:$4 sm:$0xff]  }
  0xb1   :  { %1786 = vmatprep.subr.bf16.mxu0 %v3298_v17  ;;  %v3353_v17 = vld [vmem:[%s4667_s1 + $0x568] ss:$16 sps:$4 sm:$0xff]  }
  0xb3   :  { %1869 = vmatpush1.bf16.msra.mxu1 %v3299_v22  ;;  %v3451_v22 = vld [vmem:[%s4669_s3 + $0xb4] ss:$8 sps:$4 sm:$0xff]  }
  0xb4   :  { %1787 = vmatpush1.bf16.msra.mxu0 %v3296_v21  ;;  %1870 = vmatprep.subr.bf16.mxu1 %v3307_v24  ;;  %v3358_v21 = vld [vmem:[%s4667_s1 + $0x58c] ss:$16 sps:$4 sm:$0xff]   ;;  %v3449_v24 = vld [vmem:[%s4669_s3 + $0xb0] ss:$8 sps:$4 sm:$0xff]  }
  0xb5   :  { %1788 = vmatprep.subr.bf16.mxu0 %v3304_v23  ;;  %v3356_v23 = vld [vmem:[%s4667_s1 + $0x588] ss:$16 sps:$4 sm:$0xff]  }
  0xb7   :  { %1871 = vmatpush1.bf16.msra.mxu1 %v3305_v27  ;;  %v3454_v27 = vld [vmem:[%s4669_s3 + $0xc4] ss:$8 sps:$4 sm:$0xff]  }
  0xb8   :  { %1789 = vmatpush1.bf16.msra.mxu0 %v3302_v8  ;;  %1872 = vmatprep.subr.bf16.mxu1 %v3313_v29  ;;  %v3361_v8 = vld [vmem:[%s4667_s1 + $0x5ac] ss:$16 sps:$4 sm:$0xff]   ;;  %v3452_v29 = vld [vmem:[%s4669_s3 + $0xc0] ss:$8 sps:$4 sm:$0xff]  }
  0xb9   :  { %1790 = vmatprep.subr.bf16.mxu0 %v3310_v28  ;;  %v3359_v28 = vld [vmem:[%s4667_s1 + $0x5a8] ss:$16 sps:$4 sm:$0xff]  }
  0xbb   :  { %1873 = vmatpush1.bf16.msra.mxu1 %v3311_v30  ;;  %v3457_v30 = vld [vmem:[%s4669_s3 + $0xd4] ss:$8 sps:$4 sm:$0xff]  }
  0xbc   :  { %1791 = vmatpush1.bf16.msra.mxu0 %v3308_v49  ;;  %1874 = vmatprep.subr.bf16.mxu1 %v3319_v33  ;;  %v3364_v49 = vld [vmem:[%s4667_s1 + $0x5cc] ss:$16 sps:$4 sm:$0xff]   ;;  %v3455_v33 = vld [vmem:[%s4669_s3 + $0xd0] ss:$8 sps:$4 sm:$0xff]  }
  0xbd   :  { %1792 = vmatprep.subr.bf16.mxu0 %v3316_v32  ;;  %v3362_v32 = vld [vmem:[%s4667_s1 + $0x5c8] ss:$16 sps:$4 sm:$0xff]  }
  0xbf   :  { %1875 = vmatpush1.bf16.msra.mxu1 %v3317_v13  ;;  %v3365_v13 = vld [vmem:[%s4667_s1 + $0x5e8] ss:$16 sps:$4 sm:$0xff]  }
  0xc0   :  { %1793 = vmatpush1.bf16.msra.mxu0 %v3314_v34  ;;  %1885 = vmatprep.subr.bf16.mxu1 %v3322_v36  ;;  %v3367_v34 = vld [vmem:[%s4667_s1 + $0x5ec] ss:$16 sps:$4 sm:$0xff]  }
  0xc1   :  { %v3370_v36 = vld [vmem:[%s4667_s1 + $0x60c] ss:$16 sps:$4 sm:$0xff]  }
  0xc2   :  { %1877 = vmatmul.mubr.bf16.vlgmr.msra.gmra.mrb[4].mxu1 %v3793_v20  ;;  %v3418_v20 = vld [vmem:[%s4669_s3 + $0x4] ss:$8 sps:$4 sm:$0xff]  }
  0xc3   :  { %1795 = vmatmul.mubr.bf16.vlgmr.msra.gmra.mrb[0].mxu0 %v4200_v37  ;;  %1886 = vmatpush1.bf16.msra.mxu1 %v3320_v38  ;;  %v3368_v38 = vld [vmem:[%s4667_s1 + $0x608] ss:$16 sps:$4 sm:$0xff]  }
  0xc4   :  { %1917 = vmatprep.mubr.bf16.mxu1 %v3807_v25  ;;  %1887 = vmatprep.subr.bf16.mxu1 %v3325_v19  ;;  %v3331_v25 = vld [vmem:[%s4667_s1 + $0x46c] ss:$16 sps:$4 sm:$0xff]  }
  0xc5   :  { %2371 = vmatprep.subr.bf16.mxu0 %v3418_v20  ;;  %v3373_v19 = vld [vmem:[%s4667_s1 + $0x62c] ss:$16 sps:$4 sm:$0xff]  }
  0xc6   :  { %2372 = vmatpush1.bf16.msra.mxu0 %v3416_v40  ;;  %v3374_v40 = vld [vmem:[%s4667_s1 + $0x648] ss:$16 sps:$4 sm:$0xff]   ;;  %v3382_v20 = vld [vmem:[%s4667_s1 + $0x68c] ss:$16 sps:$4 sm:$0xff]  }
  0xc7   :  { %1888 = vmatpush1.bf16.msra.mxu1 %v3323_v26  ;;  %2373 = vmatprep.subr.bf16.mxu0 %v3421_v41  ;;  %v3371_v26 = vld [vmem:[%s4667_s1 + $0x628] ss:$16 sps:$4 sm:$0xff]  }
  0xc8   :  { %1889 = vmatprep.subr.bf16.mxu1 %v3328_v39  ;;  %v3376_v39 = vld [vmem:[%s4667_s1 + $0x64c] ss:$16 sps:$4 sm:$0xff]   ;;  %v3380_v41 = vld [vmem:[%s4667_s1 + $0x688] ss:$16 sps:$4 sm:$0xff]  }
  0xca   :  { %2374 = vmatpush1.bf16.msra.mxu0 %v3419_v42  ;;  %v3388_v42 = vld [vmem:[%s4667_s1 + $0x6cc] ss:$16 sps:$4 sm:$0xff]  }
  0xcb   :  { %1890 = vmatpush1.bf16.msra.mxu1 %v3326_v3  ;;  %2375 = vmatprep.subr.bf16.mxu0 %v3424_v44  ;;  %v3385_v3 = vld [vmem:[%s4667_s1 + $0x6ac] ss:$16 sps:$4 sm:$0xff]  }
  0xcc   :  { %1891 = vmatprep.subr.bf16.mxu1 %v3331_v25  ;;  %v3383_v25 = vld [vmem:[%s4667_s1 + $0x6a8] ss:$16 sps:$4 sm:$0xff]   ;;  %v3460_v44 = vld [vmem:[%s4669_s3 + $0xe4] ss:$8 sps:$4 sm:$0xff]  }
  0xce   :  { %2376 = vmatpush1.bf16.msra.mxu0 %v3422_v47 }
  0xcf   :  { %1892 = vmatpush1.bf16.msra.mxu1 %v3329_v45  ;;  %2377 = vmatprep.subr.bf16.mxu0 %v3427_v48 }
  0xd0   :  { %1893 = vmatprep.subr.bf16.mxu1 %v3334_v46  ;;  %v3458_v46 = vld [vmem:[%s4669_s3 + $0xe0] ss:$8 sps:$4 sm:$0xff]  }
  0xd2   :  { %2378 = vmatpush1.bf16.msra.mxu0 %v3425_v52  ;;  %v3391_v52 = vld [vmem:[%s4667_s1 + $0x6ec] ss:$16 sps:$4 sm:$0xff]  }
  0xd3   :  { %1894 = vmatpush1.bf16.msra.mxu1 %v3332_v50  ;;  %2379 = vmatprep.subr.bf16.mxu0 %v3430_v53  ;;  %v3386_v50 = vld [vmem:[%s4667_s1 + $0x6c8] ss:$16 sps:$4 sm:$0xff]   ;;  %v3463_v53 = vld [vmem:[%s4669_s3 + $0xf4] ss:$8 sps:$4 sm:$0xff]  }
  0xd4   :  { %1895 = vmatprep.subr.bf16.mxu1 %v3337_v51 }
  0xd6   :  { %2380 = vmatpush1.bf16.msra.mxu0 %v3428_v56  ;;  %v3394_v56 = vld [vmem:[%s4667_s1 + $0x70c] ss:$16 sps:$4 sm:$0xff]  }
  0xd7   :  { %1896 = vmatpush1.bf16.msra.mxu1 %v3335_v54  ;;  %2381 = vmatprep.subr.bf16.mxu0 %v3433_v57  ;;  %v3461_v54 = vld [vmem:[%s4669_s3 + $0xf0] ss:$8 sps:$4 sm:$0xff]   ;;  %v3466_v57 = vld [vmem:[%s4669_s3 + $0x104] ss:$8 sps:$4 sm:$0xff]  }
  0xd8   :  { %1897 = vmatprep.subr.bf16.mxu1 %v3340_v55  ;;  %v3389_v55 = vld [vmem:[%s4667_s1 + $0x6e8] ss:$16 sps:$4 sm:$0xff]  }
  0xda   :  { %2382 = vmatpush1.bf16.msra.mxu0 %v3431_v59  ;;  %v3397_v59 = vld [vmem:[%s4667_s1 + $0x72c] ss:$16 sps:$4 sm:$0xff]  }
  0xdb   :  { %1898 = vmatpush1.bf16.msra.mxu1 %v3338_v58  ;;  %2383 = vmatprep.subr.bf16.mxu0 %v3436_v61  ;;  %v3392_v58 = vld [vmem:[%s4667_s1 + $0x708] ss:$16 sps:$4 sm:$0xff]   ;;  %v3400_v61 = vld [vmem:[%s4667_s1 + $0x74c] ss:$16 sps:$4 sm:$0xff]  }
  0xdc   :  { %1899 = vmatprep.subr.bf16.mxu1 %v3343_v60  ;;  %v3395_v60 = vld [vmem:[%s4667_s1 + $0x728] ss:$16 sps:$4 sm:$0xff]  }
  0xde   :  { %2384 = vmatpush1.bf16.msra.mxu0 %v3434_v63  ;;  %v3403_v63 = vld [vmem:[%s4667_s1 + $0x76c] ss:$16 sps:$4 sm:$0xff]  }
  0xdf   :  { %1900 = vmatpush1.bf16.msra.mxu1 %v3341_v62  ;;  %2385 = vmatprep.subr.bf16.mxu0 %v3439_v1  ;;  %v3398_v62 = vld [vmem:[%s4667_s1 + $0x748] ss:$16 sps:$4 sm:$0xff]   ;;  %v3406_v1 = vld [vmem:[%s4667_s1 + $0x78c] ss:$16 sps:$4 sm:$0xff]  }
  0xe0   :  { %1901 = vmatprep.subr.bf16.mxu1 %v3346_v0  ;;  %v3401_v0 = vld [vmem:[%s4667_s1 + $0x768] ss:$16 sps:$4 sm:$0xff]  }
  0xe2   :  { %2386 = vmatpush1.bf16.msra.mxu0 %v3437_v4  ;;  %v3409_v4 = vld [vmem:[%s4667_s1 + $0x7ac] ss:$16 sps:$4 sm:$0xff]  }
  0xe3   :  { %1902 = vmatpush1.bf16.msra.mxu1 %v3344_v2  ;;  %2387 = vmatprep.subr.bf16.mxu0 %v3442_v6  ;;  %v3404_v2 = vld [vmem:[%s4667_s1 + $0x788] ss:$16 sps:$4 sm:$0xff]   ;;  %v3412_v6 = vld [vmem:[%s4667_s1 + $0x7cc] ss:$16 sps:$4 sm:$0xff]  }
  0xe4   :  { %1903 = vmatprep.subr.bf16.mxu1 %v3349_v5  ;;  %v3407_v5 = vld [vmem:[%s4667_s1 + $0x7a8] ss:$16 sps:$4 sm:$0xff]  }
  0xe6   :  { %2388 = vmatpush1.bf16.msra.mxu0 %v3440_v9  ;;  %v3415_v9 = vld [vmem:[%s4667_s1 + $0x7ec] ss:$16 sps:$4 sm:$0xff]  }
  0xe7   :  { %1904 = vmatpush1.bf16.msra.mxu1 %v3347_v7  ;;  %2389 = vmatprep.subr.bf16.mxu0 %v3445_v11  ;;  %v3410_v7 = vld [vmem:[%s4667_s1 + $0x7c8] ss:$16 sps:$4 sm:$0xff]   ;;  %v341_v11 = vsub.s32 0, %v3686_v43 }
  0xe8   :  { %1905 = vmatprep.subr.bf16.mxu1 %v3352_v10  ;;  %v3413_v10 = vld [vmem:[%s4667_s1 + $0x7e8] ss:$16 sps:$4 sm:$0xff]  }
  0xea   :  { %2390 = vmatpush1.bf16.msra.mxu0 %v3443_v14  ;;  %v345_v14 = vsub.s32 1, %v3686_v43 }
  0xeb   :  { %1906 = vmatpush1.bf16.msra.mxu1 %v3350_v12  ;;  %2391 = vmatprep.subr.bf16.mxu0 %v3448_v16  ;;  %v4500_v12 = vld [vmem:[%s4670_s2] sm:$0xf] }
  0xec   :  { %1907 = vmatprep.subr.bf16.mxu1 %v3355_v15  ;;  %v342_v15 = vrot.slane %v4500_v12, %v341_v11  ;;  %v346_v16 = vrot.slane %v4500_v12, %v345_v14 }
  0xee   :  { %2392 = vmatpush1.bf16.msra.mxu0 %v3446_v18 }
  0xef   :  { %1908 = vmatpush1.bf16.msra.mxu1 %v3353_v17  ;;  %2393 = vmatprep.subr.bf16.mxu0 %v3451_v22 }
  0xf0   :  { %1909 = vmatprep.subr.bf16.mxu1 %v3358_v21 }
  0xf2   :  { %2394 = vmatpush1.bf16.msra.mxu0 %v3449_v24 }
  0xf3   :  { %1910 = vmatpush1.bf16.msra.mxu1 %v3356_v23  ;;  %2395 = vmatprep.subr.bf16.mxu0 %v3454_v27 }
  0xf4   :  { %1911 = vmatprep.subr.bf16.mxu1 %v3361_v8 }
  0xf6   :  { %2396 = vmatpush1.bf16.msra.mxu0 %v3452_v29 }
  0xf7   :  { %1912 = vmatpush1.bf16.msra.mxu1 %v3359_v28  ;;  %2397 = vmatprep.subr.bf16.mxu0 %v3457_v30 }
  0xf8   :  { %1913 = vmatprep.subr.bf16.mxu1 %v3364_v49  ;;  %v3464_v49 = vld [vmem:[%s4669_s3 + $0x100] ss:$8 sps:$4 sm:$0xff]  }
  0xfa   :  { %2398 = vmatpush1.bf16.msra.mxu0 %v3455_v33  ;;  %v3467_v33 = vld [vmem:[%s4669_s3 + $0x110] ss:$8 sps:$4 sm:$0xff]  }
  0xfb   :  { %1914 = vmatpush1.bf16.msra.mxu1 %v3362_v32  ;;  %2399 = vmatprep.subr.bf16.mxu0 %v3460_v44  ;;  %v3469_v32 = vld [vmem:[%s4669_s3 + $0x114] ss:$8 sps:$4 sm:$0xff]   ;;  %v3520_v44 = vld [vmem:[%s4671_s5 + $0x60] sm:$0xff]  }
  0xfc   :  { %1915 = vmatprep.subr.bf16.mxu1 %v3367_v34  ;;  %v3472_v34 = vld [vmem:[%s4669_s3 + $0x124] ss:$8 sps:$4 sm:$0xff]  }
  0xfe   :  { %2400 = vmatpush1.bf16.msra.mxu0 %v3458_v46  ;;  %v3479_v46 = vld [vmem:[%s4669_s3 + $0x150] ss:$8 sps:$4 sm:$0xff]  }
  0xff   :  { %1916 = vmatpush1.bf16.msra.mxu1 %v3365_v13  ;;  %2401 = vmatprep.subr.bf16.mxu0 %v3463_v53  ;;  %v3512_v13 = vld [vmem:[%s4671_s5 + $0x40] sm:$0xff]   ;;  %v3485_v53 = vld [vmem:[%s4669_s3 + $0x170] ss:$8 sps:$4 sm:$0xff]  }
 0x100   :  { %1926 = vmatprep.subr.bf16.mxu1 %v3370_v36  ;;  %v3513_v36 = vld [vmem:[%s4671_s5] sm:$0xff]  }
 0x102   :  { %1918 = vmatmul.mubr.bf16.vlgmr.msra.gmra.mrb[4].mxu1 %v4001_v31  ;;  %v3379_v31 = vld [vmem:[%s4667_s1 + $0x66c] ss:$16 sps:$4 sm:$0xff]   ;;  %2402 = vmatpush1.bf16.msra.mxu0 %v3461_v54 }
 0x103   :  { %1927 = vmatpush1.bf16.msra.mxu1 %v3368_v38  ;;  %1958 = vmatprep.mubr.bf16.mxu1 %v4015_v35  ;;  %v3377_v35 = vld [vmem:[%s4667_s1 + $0x668] ss:$16 sps:$4 sm:$0xff]   ;;  %v3490_v54 = vld [vmem:[%s4669_s3 + $0x184] ss:$8 sps:$4 sm:$0xff]  }
 0x104   :  { %1928 = vmatprep.subr.bf16.mxu1 %v3373_v19  ;;  %2412 = vmatprep.subr.bf16.mxu0 %v3466_v57  ;;  %v3470_v38 = vld [vmem:[%s4669_s3 + $0x120] ss:$8 sps:$4 sm:$0xff]   ;;  %v3491_v57 = vld [vmem:[%s4669_s3 + $0x190] ss:$8 sps:$4 sm:$0xff]  }
 0x105   :  { %v3514_v19 = vld [vmem:[%s4671_s5 + $0x48] sm:$0xff]  }
 0x107   :  { %1929 = vmatpush1.bf16.msra.mxu1 %v3371_v26  ;;  %v3515_v26 = vld [vmem:[%s4671_s5 + $0x8] sm:$0xff]  }
 0x108   :  { %1930 = vmatprep.subr.bf16.mxu1 %v3376_v39  ;;  %v3516_v39 = vld [vmem:[%s4671_s5 + $0x50] sm:$0xff]  }
 0x10b   :  { %1931 = vmatpush1.bf16.msra.mxu1 %v3374_v40  ;;  %v3475_v40 = vld [vmem:[%s4669_s3 + $0x134] ss:$8 sps:$4 sm:$0xff]  }
 0x10c   :  { %1932 = vmatprep.subr.bf16.mxu1 %v3379_v31  ;;  %v3473_v31 = vld [vmem:[%s4669_s3 + $0x130] ss:$8 sps:$4 sm:$0xff]  }
 0x10f   :  { %1933 = vmatpush1.bf16.msra.mxu1 %v3377_v35  ;;  %v3517_v35 = vld [vmem:[%s4671_s5 + $0x10] sm:$0xff]  }
 0x110   :  { %1934 = vmatprep.subr.bf16.mxu1 %v3382_v20  ;;  %v3518_v20 = vld [vmem:[%s4671_s5 + $0x58] sm:$0xff]  }
 0x113   :  { %1935 = vmatpush1.bf16.msra.mxu1 %v3380_v41  ;;  %v3478_v41 = vld [vmem:[%s4669_s3 + $0x144] ss:$8 sps:$4 sm:$0xff]  }
 0x114   :  { %1936 = vmatprep.subr.bf16.mxu1 %v3385_v3  ;;  %v3476_v3 = vld [vmem:[%s4669_s3 + $0x140] ss:$8 sps:$4 sm:$0xff]  }
 0x115   :  { %v1673_v45 = vpop.f32.mrb[0].mxu1 }
 0x116   :  { %v1675_v47 = vpop.f32.mrb[1].mxu1  ;;  %v1674_v17 = vadd.f32 %v1673_v45, %v342_v15  ;;  %v3521_v45 = vld [vmem:[%s4671_s5 + $0x20] sm:$0xff]  }
 0x117   :  { %v1677_v48 = vpop.f32.mrb[2].mxu1  ;;  %1937 = vmatpush1.bf16.msra.mxu1 %v3383_v25  ;;  %v1676_v18 = vadd.f32 %v1675_v47, %v346_v16  ;;  %v3481_v25 = vld [vmem:[%s4669_s3 + $0x154] ss:$8 sps:$4 sm:$0xff]   ;;  %v3522_v47 = vld [vmem:[%s4671_s5 + $0x68] sm:$0xff]  }
 0x118   :  { %v1678_v51 = vpop.f32.mrb[3].mxu1  ;;  %1938 = vmatprep.subr.bf16.mxu1 %v3388_v42  ;;  %v3519_v42 = vld [vmem:[%s4671_s5 + $0x18] sm:$0xff]   ;;  %v3484_v48 = vld [vmem:[%s4669_s3 + $0x164] ss:$8 sps:$4 sm:$0xff]  }
 0x119   :  { %v3482_v51 = vld [vmem:[%s4669_s3 + $0x160] ss:$8 sps:$4 sm:$0xff]  }
 0x11b   :  { %1939 = vmatpush1.bf16.msra.mxu1 %v3386_v50  ;;  %v3523_v50 = vld [vmem:[%s4671_s5 + $0x28] sm:$0xff]  }
 0x11c   :  { %1940 = vmatprep.subr.bf16.mxu1 %v3391_v52  ;;  %v3487_v52 = vld [vmem:[%s4669_s3 + $0x174] ss:$8 sps:$4 sm:$0xff]  }
 0x11f   :  { %1941 = vmatpush1.bf16.msra.mxu1 %v3389_v55  ;;  %v3488_v55 = vld [vmem:[%s4669_s3 + $0x180] ss:$8 sps:$4 sm:$0xff]  }
 0x120   :  { %1942 = vmatprep.subr.bf16.mxu1 %v3394_v56  ;;  %v3493_v56 = vld [vmem:[%s4669_s3 + $0x194] ss:$8 sps:$4 sm:$0xff]  }
 0x123   :  { %1943 = vmatpush1.bf16.msra.mxu1 %v3392_v58  ;;  %v3496_v58 = vld [vmem:[%s4669_s3 + $0x1a4] ss:$8 sps:$4 sm:$0xff]  }
 0x124   :  { %1944 = vmatprep.subr.bf16.mxu1 %v3397_v59  ;;  %v3494_v59 = vld [vmem:[%s4669_s3 + $0x1a0] ss:$8 sps:$4 sm:$0xff]  }
 0x127   :  { %1945 = vmatpush1.bf16.msra.mxu1 %v3395_v60  ;;  %v3499_v60 = vld [vmem:[%s4669_s3 + $0x1b4] ss:$8 sps:$4 sm:$0xff]  }
 0x128   :  { %1946 = vmatprep.subr.bf16.mxu1 %v3400_v61  ;;  %v3497_v61 = vld [vmem:[%s4669_s3 + $0x1b0] ss:$8 sps:$4 sm:$0xff]  }
 0x12b   :  { %1947 = vmatpush1.bf16.msra.mxu1 %v3398_v62  ;;  %v3502_v62 = vld [vmem:[%s4669_s3 + $0x1c4] ss:$8 sps:$4 sm:$0xff]  }
 0x12c   :  { %1948 = vmatprep.subr.bf16.mxu1 %v3403_v63  ;;  %v3500_v63 = vld [vmem:[%s4669_s3 + $0x1c0] ss:$8 sps:$4 sm:$0xff]  }
 0x12f   :  { %1949 = vmatpush1.bf16.msra.mxu1 %v3401_v0  ;;  %v3505_v0 = vld [vmem:[%s4669_s3 + $0x1d4] ss:$8 sps:$4 sm:$0xff]  }
 0x130   :  { %1950 = vmatprep.subr.bf16.mxu1 %v3406_v1  ;;  %v3503_v1 = vld [vmem:[%s4669_s3 + $0x1d0] ss:$8 sps:$4 sm:$0xff]  }
 0x133   :  { %1951 = vmatpush1.bf16.msra.mxu1 %v3404_v2  ;;  %v3508_v2 = vld [vmem:[%s4669_s3 + $0x1e4] ss:$8 sps:$4 sm:$0xff]  }
 0x134   :  { %1952 = vmatprep.subr.bf16.mxu1 %v3409_v4  ;;  %v3506_v4 = vld [vmem:[%s4669_s3 + $0x1e0] ss:$8 sps:$4 sm:$0xff]  }
 0x137   :  { %1953 = vmatpush1.bf16.msra.mxu1 %v3407_v5  ;;  %v3511_v5 = vld [vmem:[%s4669_s3 + $0x1f4] ss:$8 sps:$4 sm:$0xff]  }
 0x138   :  { %1954 = vmatprep.subr.bf16.mxu1 %v3412_v6  ;;  %v3509_v6 = vld [vmem:[%s4669_s3 + $0x1f0] ss:$8 sps:$4 sm:$0xff]  }
 0x13b   :  { %1955 = vmatpush1.bf16.msra.mxu1 %v3410_v7  ;;  %v349_v7 = vsub.s32 2, %v3686_v43 }
 0x13c   :  { %1956 = vmatprep.subr.bf16.mxu1 %v3415_v9  ;;  %v353_v9 = vsub.s32 3, %v3686_v43 }
 0x13e   :  { %v354_v15 = vrot.slane %v4500_v12, %v353_v9 }
 0x13f   :  { %1957 = vmatpush1.bf16.msra.mxu1 %v3413_v10  ;;  %v350_v10 = vrot.slane %v4500_v12, %v349_v7  ;;  %v3525_v12 = vld [vmem:[%s4671_s5 + $0x30] sm:$0xff]  }
 0x140   :  { %2975 = vmatprep.subr.bf16.mxu1 %v3512_v13 }
 0x142   :  { %1959 = vmatmul.mubr.bf16.vlgmr.msra.gmra.mrb[4].mxu1 %v4200_v37 }
 0x143   :  { %2976 = vmatpush3.bf16.msra.mxu1 %v3513_v36 }
 0x144   :  { %2977 = vmatprep.subr.bf16.mxu1 %v3514_v19 }
 0x147   :  { %2978 = vmatpush3.bf16.msra.mxu1 %v3515_v26 }
 0x148   :  { %2979 = vmatprep.subr.bf16.mxu1 %v3516_v39 }
 0x14b   :  { %2980 = vmatpush3.bf16.msra.mxu1 %v3517_v35 }
 0x14c   :  { %2981 = vmatprep.subr.bf16.mxu1 %v3518_v20 }
 0x14f   :  { %2982 = vmatpush3.bf16.msra.mxu1 %v3519_v42 }
 0x150   :  { %2983 = vmatprep.subr.bf16.mxu1 %v3520_v44 }
 0x153   :  { %2984 = vmatpush3.bf16.msra.mxu1 %v3521_v45 }
 0x154   :  { %2985 = vmatprep.subr.bf16.mxu1 %v3522_v47 }
 0x157   :  { %2986 = vmatpush3.bf16.msra.mxu1 %v3523_v50 }
 0x196   :  { %v1796_v37 = vpop.f32.mrb[0].mxu0 }
 0x197   :  { %v2998_v21 = vadd.f32 %v1796_v37, %v1674_v17  ;;  %v1798_v22 = vpop.f32.mrb[1].mxu0 }
 0x198   :  { %v3000_v23 = vadd.f32 %v1798_v22, %v1676_v18  ;;  %v1800_v24 = vpop.f32.mrb[2].mxu0 }
 0x199   :  { %v1967_v8 = vmax.f32 %v2998_v21, 0.0  ;;  %v1801_v27 = vpop.f32.mrb[3].mxu0 }
 0x19a   :  { %v1968_v28 = vmax.f32 %v3000_v23, 0.0 }
 0x19b   :  { %v1971_v30 = vpack.c.bf16 %v1967_v8, %v1967_v8 }
 0x19c   :  { %v1972_v29 = vpack.c.bf16 %v1968_v28, %v1968_v28  ;;  %v3524_v28 = vld [vmem:[%s4671_s5 + $0x70] sm:$0xff]  }
 0x19d   :  { %2987 = vmatprep.subr.bf16.mxu1 %v3524_v28 }
 0x19e   :  { %2403 = vmatprep.mubr.bf16.mxu0 %v1972_v29  ;;  %2988 = vmatpush3.bf16.msra.mxu1 %v3525_v12  ;;  %v3526_v29 = vld [vmem:[%s4671_s5 + $0x78] sm:$0xff]  }
 0x19f   :  { %2404 = vmatmul.mubr.bf16.vlgmr.msra.gmra.mrb[4].mxu0 %v1971_v30  ;;  %2989 = vmatprep.subr.bf16.mxu1 %v3526_v29  ;;  %v2039_v30 = vld [vmem:[%s4672_s4] sm:$0x3] }
 0x1a0   :  { %2413 = vmatpush1.bf16.msra.mxu0 %v3464_v49  ;;  %v3527_v49 = vld [vmem:[%s4671_s5 + $0x38] sm:$0xff]  }
 0x1a1   :  { %2414 = vmatprep.subr.bf16.mxu0 %v3469_v32  ;;  %v2044_v32 = vrot.slane %v2039_v30, %v341_v11  ;;  %v2958_v11 = vld [vmem:[%s4673_s6] ss:$0 sm:$0xff] }
 0x1a2   :  { %2990 = vmatpush3.bf16.msra.mxu1 %v3527_v49 }
 0x1a4   :  { %2415 = vmatpush1.bf16.msra.mxu0 %v3467_v33  ;;  %v2048_v33 = vrot.slane %v2039_v30, %v345_v14 }
 0x1a5   :  { %2416 = vmatprep.subr.bf16.mxu0 %v3472_v34 }
 0x1a8   :  { %2417 = vmatpush1.bf16.msra.mxu0 %v3470_v38 }
 0x1a9   :  { %2418 = vmatprep.subr.bf16.mxu0 %v3475_v40 }
 0x1ac   :  { %2419 = vmatpush1.bf16.msra.mxu0 %v3473_v31 }
 0x1ad   :  { %2420 = vmatprep.subr.bf16.mxu0 %v3478_v41 }
 0x1b0   :  { %2421 = vmatpush1.bf16.msra.mxu0 %v3476_v3 }
 0x1b1   :  { %2422 = vmatprep.subr.bf16.mxu0 %v3481_v25 }
 0x1b4   :  { %2423 = vmatpush1.bf16.msra.mxu0 %v3479_v46 }
 0x1b5   :  { %2424 = vmatprep.subr.bf16.mxu0 %v3484_v48 }
 0x1b8   :  { %2425 = vmatpush1.bf16.msra.mxu0 %v3482_v51 }
 0x1b9   :  { %2426 = vmatprep.subr.bf16.mxu0 %v3487_v52 }
 0x1bc   :  { %2427 = vmatpush1.bf16.msra.mxu0 %v3485_v53 }
 0x1bd   :  { %2428 = vmatprep.subr.bf16.mxu0 %v3490_v54 }
 0x1c0   :  { %2429 = vmatpush1.bf16.msra.mxu0 %v3488_v55 }
 0x1c1   :  { %2430 = vmatprep.subr.bf16.mxu0 %v3493_v56 }
 0x1c4   :  { %2431 = vmatpush1.bf16.msra.mxu0 %v3491_v57 }
 0x1c5   :  { %2432 = vmatprep.subr.bf16.mxu0 %v3496_v58 }
 0x1c8   :  { %2433 = vmatpush1.bf16.msra.mxu0 %v3494_v59 }
 0x1c9   :  { %2434 = vmatprep.subr.bf16.mxu0 %v3499_v60 }
 0x1cc   :  { %2435 = vmatpush1.bf16.msra.mxu0 %v3497_v61 }
 0x1cd   :  { %2436 = vmatprep.subr.bf16.mxu0 %v3502_v62 }
 0x1d0   :  { %2437 = vmatpush1.bf16.msra.mxu0 %v3500_v63 }
 0x1d1   :  { %2438 = vmatprep.subr.bf16.mxu0 %v3505_v0 }
 0x1d4   :  { %2439 = vmatpush1.bf16.msra.mxu0 %v3503_v1 }
 0x1d5   :  { %2440 = vmatprep.subr.bf16.mxu0 %v3508_v2 }
 0x1d8   :  { %2441 = vmatpush1.bf16.msra.mxu0 %v3506_v4 }
 0x1d9   :  { %2442 = vmatprep.subr.bf16.mxu0 %v3511_v5 }
 0x1dc   :  { %2443 = vmatpush1.bf16.msra.mxu0 %v3509_v6 }
 0x215   :  { %v1960_v16 = vpop.f32.mrb[4].mxu1 }
 0x216   :  { %v3001_v17 = vadd.f32 %v1960_v16, %v350_v10  ;;  %v1962_v18 = vpop.f32.mrb[5].mxu1 }
 0x217   :  { %v3002_v37 = vadd.f32 %v1962_v18, %v354_v15  ;;  %v1964_v21 = vpop.f32.mrb[6].mxu1 }
 0x218   :  { %v1969_v22 = vmax.f32 %v3001_v17, 0.0  ;;  %v1965_v23 = vpop.f32.mrb[7].mxu1 }
 0x219   :  { %v1970_v24 = vmax.f32 %v3002_v37, 0.0 }
 0x21a   :  { %v1973_v27 = vpack.c.bf16 %v1969_v22, %v1969_v22 }
 0x21b   :  { %v1974_v8 = vpack.c.bf16 %v1970_v24, %v1970_v24 }
 0x21d   :  { %2444 = vmatprep.mubr.bf16.mxu0 %v1974_v8 }
 0x21e   :  { %2445 = vmatmul.mubr.bf16.vlgmr.msra.gmra.mrb[4].mxu0 %v1973_v27 }
 0x2f1   :  { %v2446_v34 = vpop.f32.mrb[4].mxu0 }
 0x2f2   :  { %v3003_v13 = vadd.f32 %v2446_v34, %v2044_v32  ;;  %v2448_v36 = vpop.f32.mrb[5].mxu0 }
 0x2f3   :  { %v3004_v38 = vadd.f32 %v2448_v36, %v2048_v33  ;;  %v2450_v19 = vpop.f32.mrb[6].mxu0 }
 0x2f4   :  { %v2453_v26 = vmax.f32 %v3003_v13, 0.0  ;;  %v2451_v39 = vpop.f32.mrb[7].mxu0 }
 0x2f5   :  { %v2454_v40 = vmax.f32 %v3004_v38, 0.0 }
 0x2f6   :  { %v2455_v35 = vpack.c.bf16 %v2453_v26, %v2453_v26 }
 0x2f7   :  { %v2456_v31 = vpack.c.bf16 %v2454_v40, %v2454_v40 }
 0x2f9   :  { %2624 = vmatprep.mubr.bf16.mxu1 %v2456_v31 }
 0x2fa   :  { %2625 = vmatmul.mubr.bf16.vlgmr.msra.gmra.mrb[8].mxu1 %v2455_v35 }
 0x3cd   :  { %v2991_v20 = vpop.f32.mrb[8].mxu1 }
 0x3ce   :  { %v2992_v41 = vpop.f32.mrb[9].mxu1 }
 0x3cf   :  { %v2993_v43 = vadd.f32 %v2992_v41, %v2991_v20  ;;  %v2994_v14 = vpop.f32.mrb[10].mxu1 }
 0x3d0   :  { %v2995_v3 = vpop.f32.mrb[11].mxu1 }
 0x3d1   :  { %v2627_v25 = vadd.f32 %v2993_v43, %v2958_v11 }
 0x3d3   :  { %2633 = vst.msk [vmem:[%s4674_s7] sm:$0x3] %vm2632_vm0, %v2627_v25 }

// kernel: pointnet_forward.7
= control target key start
LH: loop header
LB: loop body
LE: loop exit
PB: predicated region body
PF: predicated region fallthrough
CT: control target
= control target key end

     0   :  { %v3564_v36 = vmov 1983009808   ;;  %v36_v38 = vlaneseq  ;;  %s4713_s0 = inlined_call_operand.vmem [shape: f32[2,1024], index: 0, kind: input, shape index: {}]   ;;  %s4714_s1 = inlined_call_operand.vmem [shape: bf16[1024,512], index: 1, kind: input, shape index: {}]   ;;  %s4715_s2 = inlined_call_operand.vmem [shape: f32[1,512], index: 2, kind: input, shape index: {}]   ;;  %s4716_s3 = inlined_call_operand.vmem [shape: bf16[512,256], index: 3, kind: input, shape index: {}]   ;;  %s4717_s4 = inlined_call_operand.vmem [shape: f32[1,256], index: 4, kind: input, shape index: {}]   ;;  %s4718_s5 = inlined_call_operand.vmem [shape: bf16[256,2], index: 5, kind: input, shape index: {}]   ;;  %s4719_s6 = inlined_call_operand.vmem [shape: f32[1,2], index: 6, kind: input, shape index: {}]   ;;  %s4720_s7 = inlined_call_operand.hbm [shape: f32[2,2], index: 7, kind: output, shape index: {}]  }
   0x1   :  { %v3042_v0 = vld [vmem:[%s4714_s1 + $0x4] ss:$16 sps:$4 sm:$0xff]   ;;  %v3046_v2 = vld [vmem:[%s4714_s1] ss:$16 sps:$4 sm:$0xff]   ;;  %v34_v37 = vunpack.c.l.s4 %v3564_v36 }
   0x2   :  { %v3044_v1 = vld [vmem:[%s4714_s1 + $0x204] ss:$16 sps:$4 sm:$0xff]   ;;  %1640 = vmatprep.subr.bf16.mxu1 %v3042_v0  ;;  %v3047_v3 = vld [vmem:[%s4714_s1 + $0x200] ss:$16 sps:$4 sm:$0xff]   ;;  %v3723_v43 = vshrl.u32 %v36_v38, 7 }
   0x3   :  { %1681 = vmatprep.subr.bf16.mxu0 %v3044_v1  ;;  %v3048_v4 = vld [vmem:[%s4714_s1 + $0x24] ss:$16 sps:$4 sm:$0xff]   ;;  %1641 = vmatpush1.bf16.msra.mxu1 %v3046_v2  ;;  %v3052_v6 = vld [vmem:[%s4714_s1 + $0x20] ss:$16 sps:$4 sm:$0xff]   ;;  %v35_v42 = vunpack.c.0.s8 %v34_v37  ;;  %v3174_v37 = vld [vmem:[%s4714_s1 + $0xac] ss:$16 sps:$4 sm:$0xff]  }
   0x4   :  { %1682 = vmatpush1.bf16.msra.mxu0 %v3047_v3  ;;  %v3050_v5 = vld [vmem:[%s4714_s1 + $0x224] ss:$16 sps:$4 sm:$0xff]   ;;  %1642 = vmatprep.subr.bf16.mxu1 %v3048_v4  ;;  %v3053_v7 = vld [vmem:[%s4714_s1 + $0x220] ss:$16 sps:$4 sm:$0xff]  }
   0x5   :  { %1683 = vmatprep.subr.bf16.mxu0 %v3050_v5  ;;  %v3054_v8 = vld [vmem:[%s4714_s1 + $0x44] ss:$16 sps:$4 sm:$0xff]   ;;  %v3058_v10 = vld [vmem:[%s4714_s1 + $0x40] ss:$16 sps:$4 sm:$0xff]   ;;  %v3741_v49 = vsub.s32 %v35_v42, %v3723_v43  ;;  %v3898_v42 = vld [vmem:[%s4713_s0 + $0x8] sm:$0xff] }
   0x6   :  { %v3056_v9 = vld [vmem:[%s4714_s1 + $0x244] ss:$16 sps:$4 sm:$0xff]   ;;  %v3059_v11 = vld [vmem:[%s4714_s1 + $0x240] ss:$16 sps:$4 sm:$0xff]  }
   0x7   :  { %1643 = vmatpush1.bf16.msra.mxu1 %v3052_v6  ;;  %v3060_v12 = vld [vmem:[%s4714_s1 + $0x64] ss:$16 sps:$4 sm:$0xff]   ;;  %v3064_v14 = vld [vmem:[%s4714_s1 + $0x60] ss:$16 sps:$4 sm:$0xff]  }
   0x8   :  { %1684 = vmatpush1.bf16.msra.mxu0 %v3053_v7  ;;  %1644 = vmatprep.subr.bf16.mxu1 %v3054_v8  ;;  %v3062_v13 = vld [vmem:[%s4714_s1 + $0x264] ss:$16 sps:$4 sm:$0xff]   ;;  %v3065_v15 = vld [vmem:[%s4714_s1 + $0x260] ss:$16 sps:$4 sm:$0xff]  }
   0x9   :  { %1685 = vmatprep.subr.bf16.mxu0 %v3056_v9  ;;  %v3066_v16 = vld [vmem:[%s4714_s1 + $0x84] ss:$16 sps:$4 sm:$0xff]   ;;  %v3070_v18 = vld [vmem:[%s4714_s1 + $0x80] ss:$16 sps:$4 sm:$0xff]  }
   0xa   :  { %v3068_v17 = vld [vmem:[%s4714_s1 + $0x284] ss:$16 sps:$4 sm:$0xff]   ;;  %v3071_v19 = vld [vmem:[%s4714_s1 + $0x280] ss:$16 sps:$4 sm:$0xff]  }
   0xb   :  { %1645 = vmatpush1.bf16.msra.mxu1 %v3058_v10  ;;  %v3072_v20 = vld [vmem:[%s4714_s1 + $0xa4] ss:$16 sps:$4 sm:$0xff]   ;;  %v3076_v22 = vld [vmem:[%s4714_s1 + $0xa0] ss:$16 sps:$4 sm:$0xff]  }
   0xc   :  { %1686 = vmatpush1.bf16.msra.mxu0 %v3059_v11  ;;  %1646 = vmatprep.subr.bf16.mxu1 %v3060_v12  ;;  %v3074_v21 = vld [vmem:[%s4714_s1 + $0x2a4] ss:$16 sps:$4 sm:$0xff]   ;;  %v3077_v23 = vld [vmem:[%s4714_s1 + $0x2a0] ss:$16 sps:$4 sm:$0xff]  }
   0xd   :  { %1687 = vmatprep.subr.bf16.mxu0 %v3062_v13  ;;  %v3078_v24 = vld [vmem:[%s4714_s1 + $0xc4] ss:$16 sps:$4 sm:$0xff]   ;;  %v3082_v26 = vld [vmem:[%s4714_s1 + $0xc0] ss:$16 sps:$4 sm:$0xff]  }
   0xe   :  { %v3080_v25 = vld [vmem:[%s4714_s1 + $0x2c4] ss:$16 sps:$4 sm:$0xff]   ;;  %v3083_v27 = vld [vmem:[%s4714_s1 + $0x2c0] ss:$16 sps:$4 sm:$0xff]  }
   0xf   :  { %1647 = vmatpush1.bf16.msra.mxu1 %v3064_v14  ;;  %v3084_v28 = vld [vmem:[%s4714_s1 + $0xe4] ss:$16 sps:$4 sm:$0xff]   ;;  %v3088_v30 = vld [vmem:[%s4714_s1 + $0xe0] ss:$16 sps:$4 sm:$0xff]  }
  0x10   :  { %1688 = vmatpush1.bf16.msra.mxu0 %v3065_v15  ;;  %1648 = vmatprep.subr.bf16.mxu1 %v3066_v16  ;;  %v3086_v29 = vld [vmem:[%s4714_s1 + $0x2e4] ss:$16 sps:$4 sm:$0xff]   ;;  %v3089_v31 = vld [vmem:[%s4714_s1 + $0x2e0] ss:$16 sps:$4 sm:$0xff]   ;;  %v3144_v15 = vld [vmem:[%s4714_s1 + $0xc] ss:$16 sps:$4 sm:$0xff]  }
  0x11   :  { %1689 = vmatprep.subr.bf16.mxu0 %v3068_v17  ;;  %v3090_v32 = vld [vmem:[%s4714_s1 + $0x104] ss:$16 sps:$4 sm:$0xff]   ;;  %v3094_v34 = vld [vmem:[%s4714_s1 + $0x100] ss:$16 sps:$4 sm:$0xff]  }
  0x12   :  { %v3092_v33 = vld [vmem:[%s4714_s1 + $0x304] ss:$16 sps:$4 sm:$0xff]   ;;  %v3095_v35 = vld [vmem:[%s4714_s1 + $0x300] ss:$16 sps:$4 sm:$0xff]  }
  0x13   :  { %1649 = vmatpush1.bf16.msra.mxu1 %v3070_v18  ;;  %v3096_v39 = vld [vmem:[%s4714_s1 + $0x124] ss:$16 sps:$4 sm:$0xff]   ;;  %v3100_v41 = vld [vmem:[%s4714_s1 + $0x120] ss:$16 sps:$4 sm:$0xff]  }
  0x14   :  { %1690 = vmatpush1.bf16.msra.mxu0 %v3071_v19  ;;  %1650 = vmatprep.subr.bf16.mxu1 %v3072_v20  ;;  %v3098_v40 = vld [vmem:[%s4714_s1 + $0x324] ss:$16 sps:$4 sm:$0xff]   ;;  %v3101_v44 = vld [vmem:[%s4714_s1 + $0x320] ss:$16 sps:$4 sm:$0xff]   ;;  %v3142_v19 = vld [vmem:[%s4714_s1 + $0x8] ss:$16 sps:$4 sm:$0xff]  }
  0x15   :  { %1691 = vmatprep.subr.bf16.mxu0 %v3074_v21  ;;  %v3102_v45 = vld [vmem:[%s4714_s1 + $0x144] ss:$16 sps:$4 sm:$0xff]   ;;  %v3106_v47 = vld [vmem:[%s4714_s1 + $0x140] ss:$16 sps:$4 sm:$0xff]   ;;  %v3150_v21 = vld [vmem:[%s4714_s1 + $0x2c] ss:$16 sps:$4 sm:$0xff]  }
  0x16   :  { %v3104_v46 = vld [vmem:[%s4714_s1 + $0x344] ss:$16 sps:$4 sm:$0xff]   ;;  %v3107_v48 = vld [vmem:[%s4714_s1 + $0x340] ss:$16 sps:$4 sm:$0xff]  }
  0x17   :  { %1651 = vmatpush1.bf16.msra.mxu1 %v3076_v22  ;;  %v3108_v50 = vld [vmem:[%s4714_s1 + $0x164] ss:$16 sps:$4 sm:$0xff]   ;;  %v3112_v53 = vld [vmem:[%s4714_s1 + $0x160] ss:$16 sps:$4 sm:$0xff]  }
  0x18   :  { %1692 = vmatpush1.bf16.msra.mxu0 %v3077_v23  ;;  %1652 = vmatprep.subr.bf16.mxu1 %v3078_v24  ;;  %v3110_v51 = vld [vmem:[%s4714_s1 + $0x364] ss:$16 sps:$4 sm:$0xff]   ;;  %v3113_v56 = vld [vmem:[%s4714_s1 + $0x360] ss:$16 sps:$4 sm:$0xff]   ;;  %v3148_v23 = vld [vmem:[%s4714_s1 + $0x28] ss:$16 sps:$4 sm:$0xff]  }
  0x19   :  { %1693 = vmatprep.subr.bf16.mxu0 %v3080_v25  ;;  %v28_v52 = vld [vmem:[%s4713_s0] sm:$0xff]  ;;  %v3156_v25 = vld [vmem:[%s4714_s1 + $0x4c] ss:$16 sps:$4 sm:$0xff]  }
  0x1a   :  { %v39_v54 = vrot.slane %v28_v52, %v3741_v49  ;;  %v32_v55 = vcombine.high %v28_v52, %v28_v52  ;;  %v3114_v57 = vld [vmem:[%s4714_s1 + $0x184] ss:$16 sps:$4 sm:$0xff]   ;;  %v3118_v61 = vld [vmem:[%s4714_s1 + $0x180] ss:$16 sps:$4 sm:$0xff]  }
  0x1b   :  { %1653 = vmatpush1.bf16.msra.mxu1 %v3082_v26  ;;  %v3116_v58 = vld [vmem:[%s4714_s1 + $0x384] ss:$16 sps:$4 sm:$0xff]   ;;  %v3119_v0 = vld [vmem:[%s4714_s1 + $0x380] ss:$16 sps:$4 sm:$0xff]  }
  0x1c   :  { %1694 = vmatpush1.bf16.msra.mxu0 %v3083_v27  ;;  %1654 = vmatprep.subr.bf16.mxu1 %v3084_v28  ;;  %v47_v59 = vcombine.high %v39_v54, %v39_v54  ;;  %v46_v60 = vrot.slane %v32_v55, %v3741_v49  ;;  %v3120_v1 = vld [vmem:[%s4714_s1 + $0x1a4] ss:$16 sps:$4 sm:$0xff]   ;;  %v3124_v4 = vld [vmem:[%s4714_s1 + $0x1a0] ss:$16 sps:$4 sm:$0xff]   ;;  %v3817_v16 = vpack.c.bf16 %v39_v54, %v39_v54  ;;  %v3154_v27 = vld [vmem:[%s4714_s1 + $0x48] ss:$16 sps:$4 sm:$0xff]  }
  0x1d   :  { %1695 = vmatprep.subr.bf16.mxu0 %v3086_v29  ;;  %v3122_v2 = vld [vmem:[%s4714_s1 + $0x3a4] ss:$16 sps:$4 sm:$0xff]   ;;  %v3125_v5 = vld [vmem:[%s4714_s1 + $0x3a0] ss:$16 sps:$4 sm:$0xff]   ;;  %v3162_v29 = vld [vmem:[%s4714_s1 + $0x6c] ss:$16 sps:$4 sm:$0xff]  }
  0x1e   :  { %v75_v62 = vpack.c.bf16 %v47_v59, %v47_v59  ;;  %v48_v63 = vcombine.high %v46_v60, %v46_v60  ;;  %v3126_v6 = vld [vmem:[%s4714_s1 + $0x1c4] ss:$16 sps:$4 sm:$0xff]   ;;  %v3130_v8 = vld [vmem:[%s4714_s1 + $0x1c0] ss:$16 sps:$4 sm:$0xff]   ;;  %v3822_v18 = vpack.c.bf16 %v46_v60, %v46_v60  ;;  %v3192_v55 = vld [vmem:[%s4714_s1 + $0x10c] ss:$16 sps:$4 sm:$0xff]  }
  0x1f   :  { %1655 = vmatpush1.bf16.msra.mxu1 %v3088_v30  ;;  %v3128_v7 = vld [vmem:[%s4714_s1 + $0x3c4] ss:$16 sps:$4 sm:$0xff]   ;;  %v3131_v9 = vld [vmem:[%s4714_s1 + $0x3c0] ss:$16 sps:$4 sm:$0xff]   ;;  %v3198_v59 = vld [vmem:[%s4714_s1 + $0x12c] ss:$16 sps:$4 sm:$0xff]  }
  0x20   :  { %1696 = vmatpush1.bf16.msra.mxu0 %v3089_v31  ;;  %1656 = vmatprep.subr.bf16.mxu1 %v3090_v32  ;;  %v3778_v3 = vpack.c.bf16 %v48_v63, %v48_v63  ;;  %v3132_v10 = vld [vmem:[%s4714_s1 + $0x1e4] ss:$16 sps:$4 sm:$0xff]   ;;  %v3136_v12 = vld [vmem:[%s4714_s1 + $0x1e0] ss:$16 sps:$4 sm:$0xff]   ;;  %v3160_v31 = vld [vmem:[%s4714_s1 + $0x68] ss:$16 sps:$4 sm:$0xff]  }
  0x21   :  { %1697 = vmatprep.subr.bf16.mxu0 %v3092_v33  ;;  %1672 = vmatprep.mubr.bf16.mxu1 %v75_v62  ;;  %v3134_v11 = vld [vmem:[%s4714_s1 + $0x3e4] ss:$16 sps:$4 sm:$0xff]   ;;  %v3137_v13 = vld [vmem:[%s4714_s1 + $0x3e0] ss:$16 sps:$4 sm:$0xff]   ;;  %v3168_v33 = vld [vmem:[%s4714_s1 + $0x8c] ss:$16 sps:$4 sm:$0xff]  }
  0x22   :  { %1713 = vmatprep.mubr.bf16.mxu0 %v3778_v3  ;;  %v3141_v14 = vld [vmem:[%s4714_s1 + $0x404] ss:$16 sps:$4 sm:$0xff]   ;;  %v3139_v17 = vld [vmem:[%s4714_s1 + $0x400] ss:$16 sps:$4 sm:$0xff]   ;;  %v3204_v63 = vld [vmem:[%s4714_s1 + $0x14c] ss:$16 sps:$4 sm:$0xff]  }
  0x23   :  { %1657 = vmatpush1.bf16.msra.mxu1 %v3094_v34  ;;  %v3147_v20 = vld [vmem:[%s4714_s1 + $0x424] ss:$16 sps:$4 sm:$0xff]   ;;  %v3145_v22 = vld [vmem:[%s4714_s1 + $0x420] ss:$16 sps:$4 sm:$0xff]  }
  0x24   :  { %1698 = vmatpush1.bf16.msra.mxu0 %v3095_v35  ;;  %1658 = vmatprep.subr.bf16.mxu1 %v3096_v39  ;;  %v3153_v24 = vld [vmem:[%s4714_s1 + $0x444] ss:$16 sps:$4 sm:$0xff]   ;;  %v3151_v26 = vld [vmem:[%s4714_s1 + $0x440] ss:$16 sps:$4 sm:$0xff]   ;;  %v3166_v35 = vld [vmem:[%s4714_s1 + $0x88] ss:$16 sps:$4 sm:$0xff]  }
  0x25   :  { %1699 = vmatprep.subr.bf16.mxu0 %v3098_v40  ;;  %v3159_v28 = vld [vmem:[%s4714_s1 + $0x464] ss:$16 sps:$4 sm:$0xff]   ;;  %v3157_v30 = vld [vmem:[%s4714_s1 + $0x460] ss:$16 sps:$4 sm:$0xff]   ;;  %v3172_v39 = vld [vmem:[%s4714_s1 + $0xa8] ss:$16 sps:$4 sm:$0xff]  }
  0x26   :  { %v3165_v32 = vld [vmem:[%s4714_s1 + $0x484] ss:$16 sps:$4 sm:$0xff]   ;;  %v3163_v34 = vld [vmem:[%s4714_s1 + $0x480] ss:$16 sps:$4 sm:$0xff]  }
  0x27   :  { %1659 = vmatpush1.bf16.msra.mxu1 %v3100_v41  ;;  %v3171_v36 = vld [vmem:[%s4714_s1 + $0x4a4] ss:$16 sps:$4 sm:$0xff]   ;;  %v3169_v38 = vld [vmem:[%s4714_s1 + $0x4a0] ss:$16 sps:$4 sm:$0xff]   ;;  %v3180_v41 = vld [vmem:[%s4714_s1 + $0xcc] ss:$16 sps:$4 sm:$0xff]  }
  0x28   :  { %1700 = vmatpush1.bf16.msra.mxu0 %v3101_v44  ;;  %1660 = vmatprep.subr.bf16.mxu1 %v3102_v45  ;;  %v3177_v40 = vld [vmem:[%s4714_s1 + $0x4c4] ss:$16 sps:$4 sm:$0xff]   ;;  %v3902_v44 = vrot.slane %v3898_v42, %v3741_v49  ;;  %v3175_v45 = vld [vmem:[%s4714_s1 + $0x4c0] ss:$16 sps:$4 sm:$0xff]  }
  0x29   :  { %1701 = vmatprep.subr.bf16.mxu0 %v3104_v46  ;;  %v3178_v46 = vld [vmem:[%s4714_s1 + $0xc8] ss:$16 sps:$4 sm:$0xff]   ;;  %v3181_v52 = vld [vmem:[%s4714_s1 + $0x4e0] ss:$16 sps:$4 sm:$0xff]   ;;  %v3189_v54 = vld [vmem:[%s4714_s1 + $0x504] ss:$16 sps:$4 sm:$0xff]  }
  0x2a   :  { %v3193_v60 = vld [vmem:[%s4714_s1 + $0x520] ss:$16 sps:$4 sm:$0xff]  }
  0x2b   :  { %1661 = vmatpush1.bf16.msra.mxu1 %v3106_v47  ;;  %v64_v47 = vcombine.high %v3902_v44, %v3902_v44 }
  0x2c   :  { %1702 = vmatpush1.bf16.msra.mxu0 %v3107_v48  ;;  %1662 = vmatprep.subr.bf16.mxu1 %v3108_v50  ;;  %v3183_v48 = vld [vmem:[%s4714_s1 + $0x4e4] ss:$16 sps:$4 sm:$0xff]   ;;  %v3186_v50 = vld [vmem:[%s4714_s1 + $0xec] ss:$16 sps:$4 sm:$0xff]  }
  0x2d   :  { %1703 = vmatprep.subr.bf16.mxu0 %v3110_v51  ;;  %v3918_v51 = vpack.c.bf16 %v64_v47, %v64_v47  ;;  %v3262_v47 = vld [vmem:[%s4714_s1 + $0x288] ss:$16 sps:$4 sm:$0xff]  }
  0x2f   :  { %1663 = vmatpush1.bf16.msra.mxu1 %v3112_v53  ;;  %v3184_v53 = vld [vmem:[%s4714_s1 + $0xe8] ss:$16 sps:$4 sm:$0xff]  }
  0x30   :  { %1704 = vmatpush1.bf16.msra.mxu0 %v3113_v56  ;;  %1664 = vmatprep.subr.bf16.mxu1 %v3114_v57  ;;  %v3187_v56 = vld [vmem:[%s4714_s1 + $0x500] ss:$16 sps:$4 sm:$0xff]   ;;  %v3190_v57 = vld [vmem:[%s4714_s1 + $0x108] ss:$16 sps:$4 sm:$0xff]  }
  0x31   :  { %1705 = vmatprep.subr.bf16.mxu0 %v3116_v58  ;;  %v3195_v58 = vld [vmem:[%s4714_s1 + $0x524] ss:$16 sps:$4 sm:$0xff]  }
  0x33   :  { %1665 = vmatpush1.bf16.msra.mxu1 %v3118_v61  ;;  %v3196_v61 = vld [vmem:[%s4714_s1 + $0x128] ss:$16 sps:$4 sm:$0xff]  }
  0x34   :  { %1706 = vmatpush1.bf16.msra.mxu0 %v3119_v0  ;;  %1666 = vmatprep.subr.bf16.mxu1 %v3120_v1  ;;  %v3199_v0 = vld [vmem:[%s4714_s1 + $0x540] ss:$16 sps:$4 sm:$0xff]   ;;  %v3202_v1 = vld [vmem:[%s4714_s1 + $0x148] ss:$16 sps:$4 sm:$0xff]  }
  0x35   :  { %1707 = vmatprep.subr.bf16.mxu0 %v3122_v2  ;;  %v3207_v2 = vld [vmem:[%s4714_s1 + $0x564] ss:$16 sps:$4 sm:$0xff]  }
  0x37   :  { %1667 = vmatpush1.bf16.msra.mxu1 %v3124_v4  ;;  %v3210_v4 = vld [vmem:[%s4714_s1 + $0x16c] ss:$16 sps:$4 sm:$0xff]  }
  0x38   :  { %1708 = vmatpush1.bf16.msra.mxu0 %v3125_v5  ;;  %1668 = vmatprep.subr.bf16.mxu1 %v3126_v6  ;;  %v3205_v5 = vld [vmem:[%s4714_s1 + $0x560] ss:$16 sps:$4 sm:$0xff]   ;;  %v3208_v6 = vld [vmem:[%s4714_s1 + $0x168] ss:$16 sps:$4 sm:$0xff]  }
  0x39   :  { %1709 = vmatprep.subr.bf16.mxu0 %v3128_v7  ;;  %v3213_v7 = vld [vmem:[%s4714_s1 + $0x584] ss:$16 sps:$4 sm:$0xff]  }
  0x3b   :  { %1669 = vmatpush1.bf16.msra.mxu1 %v3130_v8  ;;  %v3216_v8 = vld [vmem:[%s4714_s1 + $0x18c] ss:$16 sps:$4 sm:$0xff]  }
  0x3c   :  { %1710 = vmatpush1.bf16.msra.mxu0 %v3131_v9  ;;  %1670 = vmatprep.subr.bf16.mxu1 %v3132_v10  ;;  %v3211_v9 = vld [vmem:[%s4714_s1 + $0x580] ss:$16 sps:$4 sm:$0xff]   ;;  %v3214_v10 = vld [vmem:[%s4714_s1 + $0x188] ss:$16 sps:$4 sm:$0xff]  }
  0x3d   :  { %1711 = vmatprep.subr.bf16.mxu0 %v3134_v11  ;;  %v3219_v11 = vld [vmem:[%s4714_s1 + $0x5a4] ss:$16 sps:$4 sm:$0xff]  }
  0x3f   :  { %1671 = vmatpush1.bf16.msra.mxu1 %v3136_v12  ;;  %v3222_v12 = vld [vmem:[%s4714_s1 + $0x1ac] ss:$16 sps:$4 sm:$0xff]  }
  0x40   :  { %1712 = vmatpush1.bf16.msra.mxu0 %v3137_v13  ;;  %1804 = vmatprep.subr.bf16.mxu1 %v3144_v15  ;;  %v3217_v13 = vld [vmem:[%s4714_s1 + $0x5a0] ss:$16 sps:$4 sm:$0xff]   ;;  %v3225_v15 = vld [vmem:[%s4714_s1 + $0x5c4] ss:$16 sps:$4 sm:$0xff]  }
  0x41   :  { %1722 = vmatprep.subr.bf16.mxu0 %v3141_v14  ;;  %v3220_v14 = vld [vmem:[%s4714_s1 + $0x1a8] ss:$16 sps:$4 sm:$0xff]  }
  0x42   :  { %1673 = vmatmul.mubr.bf16.vlgmr.msra.gmra.mrb[0].mxu1 %v3817_v16 }
  0x43   :  { %1714 = vmatmul.mubr.bf16.vlgmr.msra.gmra.mrb[0].mxu0 %v3822_v18  ;;  %1805 = vmatpush1.bf16.msra.mxu1 %v3142_v19  ;;  %v49_v19 = vcombine.high %v3898_v42, %v3898_v42  ;;  %v3256_v42 = vld [vmem:[%s4714_s1 + $0x268] ss:$16 sps:$4 sm:$0xff]  }
  0x44   :  { %1723 = vmatpush1.bf16.msra.mxu0 %v3139_v17  ;;  %1806 = vmatprep.subr.bf16.mxu1 %v3150_v21  ;;  %v3228_v17 = vld [vmem:[%s4714_s1 + $0x1cc] ss:$16 sps:$4 sm:$0xff]   ;;  %v3226_v21 = vld [vmem:[%s4714_s1 + $0x1c8] ss:$16 sps:$4 sm:$0xff]  }
  0x45   :  { %1724 = vmatprep.subr.bf16.mxu0 %v3147_v20  ;;  %1836 = vmatprep.mubr.bf16.mxu1 %v75_v62  ;;  %v3201_v62 = vld [vmem:[%s4714_s1 + $0x544] ss:$16 sps:$4 sm:$0xff]   ;;  %v3223_v20 = vld [vmem:[%s4714_s1 + $0x5c0] ss:$16 sps:$4 sm:$0xff]  }
  0x46   :  { %1754 = vmatprep.mubr.bf16.mxu0 %v3918_v51 }
  0x47   :  { %1807 = vmatpush1.bf16.msra.mxu1 %v3148_v23  ;;  %v3234_v23 = vld [vmem:[%s4714_s1 + $0x1ec] ss:$16 sps:$4 sm:$0xff]  }
  0x48   :  { %1725 = vmatpush1.bf16.msra.mxu0 %v3145_v22  ;;  %1808 = vmatprep.subr.bf16.mxu1 %v3156_v25  ;;  %v3231_v22 = vld [vmem:[%s4714_s1 + $0x5e4] ss:$16 sps:$4 sm:$0xff]   ;;  %v3229_v25 = vld [vmem:[%s4714_s1 + $0x5e0] ss:$16 sps:$4 sm:$0xff]  }
  0x49   :  { %1726 = vmatprep.subr.bf16.mxu0 %v3153_v24  ;;  %v4020_v24 = vrot.slane %v49_v19, %v3741_v49  ;;  %v3240_v49 = vld [vmem:[%s4714_s1 + $0x20c] ss:$16 sps:$4 sm:$0xff]   ;;  %v3307_v19 = vld [vmem:[%s4714_s1 + $0x780] ss:$16 sps:$4 sm:$0xff]  }
  0x4b   :  { %1809 = vmatpush1.bf16.msra.mxu1 %v3154_v27  ;;  %v3237_v27 = vld [vmem:[%s4714_s1 + $0x604] ss:$16 sps:$4 sm:$0xff]  }
  0x4c   :  { %1727 = vmatpush1.bf16.msra.mxu0 %v3151_v26  ;;  %1810 = vmatprep.subr.bf16.mxu1 %v3162_v29  ;;  %v3232_v26 = vld [vmem:[%s4714_s1 + $0x1e8] ss:$16 sps:$4 sm:$0xff]   ;;  %v4038_v29 = vpack.c.bf16 %v3902_v44, %v3902_v44  ;;  %v3261_v44 = vld [vmem:[%s4714_s1 + $0x684] ss:$16 sps:$4 sm:$0xff]  }
  0x4d   :  { %1728 = vmatprep.subr.bf16.mxu0 %v3159_v28  ;;  %v65_v28 = vcombine.high %v4020_v24, %v4020_v24 }
  0x4f   :  { %1811 = vmatpush1.bf16.msra.mxu1 %v3160_v31  ;;  %v3238_v31 = vld [vmem:[%s4714_s1 + $0x208] ss:$16 sps:$4 sm:$0xff]  }
  0x50   :  { %1729 = vmatpush1.bf16.msra.mxu0 %v3157_v30  ;;  %1812 = vmatprep.subr.bf16.mxu1 %v3168_v33  ;;  %v3235_v30 = vld [vmem:[%s4714_s1 + $0x600] ss:$16 sps:$4 sm:$0xff]   ;;  %v3246_v33 = vld [vmem:[%s4714_s1 + $0x22c] ss:$16 sps:$4 sm:$0xff]  }
  0x51   :  { %1730 = vmatprep.subr.bf16.mxu0 %v3165_v32  ;;  %v3243_v32 = vld [vmem:[%s4714_s1 + $0x624] ss:$16 sps:$4 sm:$0xff]  }
  0x53   :  { %1813 = vmatpush1.bf16.msra.mxu1 %v3166_v35  ;;  %v3241_v35 = vld [vmem:[%s4714_s1 + $0x620] ss:$16 sps:$4 sm:$0xff]  }
  0x54   :  { %1731 = vmatpush1.bf16.msra.mxu0 %v3163_v34  ;;  %1814 = vmatprep.subr.bf16.mxu1 %v3174_v37  ;;  %v4052_v34 = vpack.c.bf16 %v65_v28, %v65_v28  ;;  %v3249_v37 = vld [vmem:[%s4714_s1 + $0x644] ss:$16 sps:$4 sm:$0xff]   ;;  %v3322_v28 = vld [vmem:[%s4714_s1 + $0x3c8] ss:$16 sps:$4 sm:$0xff]  }
  0x55   :  { %1732 = vmatprep.subr.bf16.mxu0 %v3171_v36  ;;  %v3244_v36 = vld [vmem:[%s4714_s1 + $0x228] ss:$16 sps:$4 sm:$0xff]  }
  0x57   :  { %1815 = vmatpush1.bf16.msra.mxu1 %v3172_v39  ;;  %v3250_v39 = vld [vmem:[%s4714_s1 + $0x248] ss:$16 sps:$4 sm:$0xff]  }
  0x58   :  { %1733 = vmatpush1.bf16.msra.mxu0 %v3169_v38  ;;  %1816 = vmatprep.subr.bf16.mxu1 %v3180_v41  ;;  %v3247_v38 = vld [vmem:[%s4714_s1 + $0x640] ss:$16 sps:$4 sm:$0xff]  }
  0x59   :  { %1734 = vmatprep.subr.bf16.mxu0 %v3177_v40  ;;  %v3255_v40 = vld [vmem:[%s4714_s1 + $0x664] ss:$16 sps:$4 sm:$0xff]   ;;  %v3253_v41 = vld [vmem:[%s4714_s1 + $0x660] ss:$16 sps:$4 sm:$0xff]  }
  0x5b   :  { %1817 = vmatpush1.bf16.msra.mxu1 %v3178_v46  ;;  %v3259_v46 = vld [vmem:[%s4714_s1 + $0x680] ss:$16 sps:$4 sm:$0xff]  }
  0x5c   :  { %1735 = vmatpush1.bf16.msra.mxu0 %v3175_v45  ;;  %1818 = vmatprep.subr.bf16.mxu1 %v3186_v50  ;;  %v3264_v45 = vld [vmem:[%s4714_s1 + $0x28c] ss:$16 sps:$4 sm:$0xff]  }
  0x5d   :  { %1736 = vmatprep.subr.bf16.mxu0 %v3183_v48  ;;  %v3267_v48 = vld [vmem:[%s4714_s1 + $0x6a4] ss:$16 sps:$4 sm:$0xff]   ;;  %v3270_v50 = vld [vmem:[%s4714_s1 + $0x2ac] ss:$16 sps:$4 sm:$0xff]  }
  0x5f   :  { %1819 = vmatpush1.bf16.msra.mxu1 %v3184_v53  ;;  %v3268_v53 = vld [vmem:[%s4714_s1 + $0x2a8] ss:$16 sps:$4 sm:$0xff]  }
  0x60   :  { %1737 = vmatpush1.bf16.msra.mxu0 %v3181_v52  ;;  %1820 = vmatprep.subr.bf16.mxu1 %v3192_v55  ;;  %v3265_v52 = vld [vmem:[%s4714_s1 + $0x6a0] ss:$16 sps:$4 sm:$0xff]   ;;  %v3276_v55 = vld [vmem:[%s4714_s1 + $0x2cc] ss:$16 sps:$4 sm:$0xff]  }
  0x61   :  { %1738 = vmatprep.subr.bf16.mxu0 %v3189_v54  ;;  %v3273_v54 = vld [vmem:[%s4714_s1 + $0x6c4] ss:$16 sps:$4 sm:$0xff]  }
  0x63   :  { %1821 = vmatpush1.bf16.msra.mxu1 %v3190_v57  ;;  %v3274_v57 = vld [vmem:[%s4714_s1 + $0x2c8] ss:$16 sps:$4 sm:$0xff]  }
  0x64   :  { %1739 = vmatpush1.bf16.msra.mxu0 %v3187_v56  ;;  %1822 = vmatprep.subr.bf16.mxu1 %v3198_v59  ;;  %v3271_v56 = vld [vmem:[%s4714_s1 + $0x6c0] ss:$16 sps:$4 sm:$0xff]   ;;  %v3282_v59 = vld [vmem:[%s4714_s1 + $0x2ec] ss:$16 sps:$4 sm:$0xff]  }
  0x65   :  { %1740 = vmatprep.subr.bf16.mxu0 %v3195_v58  ;;  %v3279_v58 = vld [vmem:[%s4714_s1 + $0x6e4] ss:$16 sps:$4 sm:$0xff]  }
  0x67   :  { %1823 = vmatpush1.bf16.msra.mxu1 %v3196_v61  ;;  %v3280_v61 = vld [vmem:[%s4714_s1 + $0x2e8] ss:$16 sps:$4 sm:$0xff]  }
  0x68   :  { %1741 = vmatpush1.bf16.msra.mxu0 %v3193_v60  ;;  %1824 = vmatprep.subr.bf16.mxu1 %v3204_v63  ;;  %v3277_v60 = vld [vmem:[%s4714_s1 + $0x6e0] ss:$16 sps:$4 sm:$0xff]   ;;  %v3288_v63 = vld [vmem:[%s4714_s1 + $0x30c] ss:$16 sps:$4 sm:$0xff]  }
  0x69   :  { %1742 = vmatprep.subr.bf16.mxu0 %v3201_v62  ;;  %v3285_v62 = vld [vmem:[%s4714_s1 + $0x704] ss:$16 sps:$4 sm:$0xff]  }
  0x6b   :  { %1825 = vmatpush1.bf16.msra.mxu1 %v3202_v1  ;;  %v3286_v1 = vld [vmem:[%s4714_s1 + $0x308] ss:$16 sps:$4 sm:$0xff]  }
  0x6c   :  { %1743 = vmatpush1.bf16.msra.mxu0 %v3199_v0  ;;  %1826 = vmatprep.subr.bf16.mxu1 %v3210_v4  ;;  %v3283_v0 = vld [vmem:[%s4714_s1 + $0x700] ss:$16 sps:$4 sm:$0xff]   ;;  %v3294_v4 = vld [vmem:[%s4714_s1 + $0x32c] ss:$16 sps:$4 sm:$0xff]  }
  0x6d   :  { %1744 = vmatprep.subr.bf16.mxu0 %v3207_v2  ;;  %v3291_v2 = vld [vmem:[%s4714_s1 + $0x724] ss:$16 sps:$4 sm:$0xff]  }
  0x6f   :  { %1827 = vmatpush1.bf16.msra.mxu1 %v3208_v6  ;;  %v3292_v6 = vld [vmem:[%s4714_s1 + $0x328] ss:$16 sps:$4 sm:$0xff]  }
  0x70   :  { %1745 = vmatpush1.bf16.msra.mxu0 %v3205_v5  ;;  %1828 = vmatprep.subr.bf16.mxu1 %v3216_v8  ;;  %v3289_v5 = vld [vmem:[%s4714_s1 + $0x720] ss:$16 sps:$4 sm:$0xff]   ;;  %v3300_v8 = vld [vmem:[%s4714_s1 + $0x34c] ss:$16 sps:$4 sm:$0xff]  }
  0x71   :  { %1746 = vmatprep.subr.bf16.mxu0 %v3213_v7  ;;  %v3297_v7 = vld [vmem:[%s4714_s1 + $0x744] ss:$16 sps:$4 sm:$0xff]  }
  0x73   :  { %1829 = vmatpush1.bf16.msra.mxu1 %v3214_v10  ;;  %v3298_v10 = vld [vmem:[%s4714_s1 + $0x348] ss:$16 sps:$4 sm:$0xff]  }
  0x74   :  { %1747 = vmatpush1.bf16.msra.mxu0 %v3211_v9  ;;  %1830 = vmatprep.subr.bf16.mxu1 %v3222_v12  ;;  %v3295_v9 = vld [vmem:[%s4714_s1 + $0x740] ss:$16 sps:$4 sm:$0xff]   ;;  %v3306_v12 = vld [vmem:[%s4714_s1 + $0x36c] ss:$16 sps:$4 sm:$0xff]  }
  0x75   :  { %1748 = vmatprep.subr.bf16.mxu0 %v3219_v11  ;;  %v3303_v11 = vld [vmem:[%s4714_s1 + $0x764] ss:$16 sps:$4 sm:$0xff]  }
  0x77   :  { %1831 = vmatpush1.bf16.msra.mxu1 %v3220_v14  ;;  %v3304_v14 = vld [vmem:[%s4714_s1 + $0x368] ss:$16 sps:$4 sm:$0xff]  }
  0x78   :  { %1749 = vmatpush1.bf16.msra.mxu0 %v3217_v13  ;;  %1832 = vmatprep.subr.bf16.mxu1 %v3228_v17  ;;  %v3301_v13 = vld [vmem:[%s4714_s1 + $0x760] ss:$16 sps:$4 sm:$0xff]   ;;  %v3312_v17 = vld [vmem:[%s4714_s1 + $0x38c] ss:$16 sps:$4 sm:$0xff]  }
  0x79   :  { %1750 = vmatprep.subr.bf16.mxu0 %v3225_v15  ;;  %v3309_v15 = vld [vmem:[%s4714_s1 + $0x784] ss:$16 sps:$4 sm:$0xff]  }
  0x7b   :  { %1833 = vmatpush1.bf16.msra.mxu1 %v3226_v21  ;;  %v3315_v21 = vld [vmem:[%s4714_s1 + $0x7a4] ss:$16 sps:$4 sm:$0xff]  }
  0x7c   :  { %1751 = vmatpush1.bf16.msra.mxu0 %v3223_v20  ;;  %1834 = vmatprep.subr.bf16.mxu1 %v3234_v23  ;;  %v3310_v20 = vld [vmem:[%s4714_s1 + $0x388] ss:$16 sps:$4 sm:$0xff]   ;;  %v3313_v23 = vld [vmem:[%s4714_s1 + $0x7a0] ss:$16 sps:$4 sm:$0xff]  }
  0x7d   :  { %1752 = vmatprep.subr.bf16.mxu0 %v3231_v22  ;;  %v3318_v22 = vld [vmem:[%s4714_s1 + $0x3ac] ss:$16 sps:$4 sm:$0xff]  }
  0x7f   :  { %1835 = vmatpush1.bf16.msra.mxu1 %v3232_v26  ;;  %v3321_v26 = vld [vmem:[%s4714_s1 + $0x7c4] ss:$16 sps:$4 sm:$0xff]  }
  0x80   :  { %1753 = vmatpush1.bf16.msra.mxu0 %v3229_v25  ;;  %1845 = vmatprep.subr.bf16.mxu1 %v3240_v49  ;;  %v3316_v25 = vld [vmem:[%s4714_s1 + $0x3a8] ss:$16 sps:$4 sm:$0xff]   ;;  %v3319_v49 = vld [vmem:[%s4714_s1 + $0x7c0] ss:$16 sps:$4 sm:$0xff]  }
  0x81   :  { %1763 = vmatprep.subr.bf16.mxu0 %v3237_v27  ;;  %v3324_v27 = vld [vmem:[%s4714_s1 + $0x3cc] ss:$16 sps:$4 sm:$0xff]  }
  0x82   :  { %1837 = vmatmul.mubr.bf16.vlgmr.msra.gmra.mrb[4].mxu1 %v3817_v16  ;;  %v3252_v16 = vld [vmem:[%s4714_s1 + $0x24c] ss:$16 sps:$4 sm:$0xff]  }
  0x83   :  { %1755 = vmatmul.mubr.bf16.vlgmr.msra.gmra.mrb[0].mxu0 %v4038_v29  ;;  %1846 = vmatpush1.bf16.msra.mxu1 %v3238_v31  ;;  %v3330_v31 = vld [vmem:[%s4714_s1 + $0x3ec] ss:$16 sps:$4 sm:$0xff]  }
  0x84   :  { %1764 = vmatpush1.bf16.msra.mxu0 %v3235_v30  ;;  %1847 = vmatprep.subr.bf16.mxu1 %v3246_v33  ;;  %v3327_v30 = vld [vmem:[%s4714_s1 + $0x7e4] ss:$16 sps:$4 sm:$0xff]   ;;  %v3328_v33 = vld [vmem:[%s4714_s1 + $0x3e8] ss:$16 sps:$4 sm:$0xff]  }
  0x85   :  { %1765 = vmatprep.subr.bf16.mxu0 %v3243_v32  ;;  %1795 = vmatprep.mubr.bf16.mxu0 %v4052_v34  ;;  %v3325_v32 = vld [vmem:[%s4714_s1 + $0x7e0] ss:$16 sps:$4 sm:$0xff]  }
  0x86   :  { %1877 = vmatprep.mubr.bf16.mxu1 %v3778_v3  ;;  %v3258_v3 = vld [vmem:[%s4714_s1 + $0x26c] ss:$16 sps:$4 sm:$0xff]  }
  0x87   :  { %1848 = vmatpush1.bf16.msra.mxu1 %v3244_v36  ;;  %v3332_v36 = vld [vmem:[%s4714_s1 + $0x408] ss:$16 sps:$4 sm:$0xff]  }
  0x88   :  { %1766 = vmatpush1.bf16.msra.mxu0 %v3241_v35  ;;  %1849 = vmatprep.subr.bf16.mxu1 %v3252_v16  ;;  %v3334_v35 = vld [vmem:[%s4714_s1 + $0x40c] ss:$16 sps:$4 sm:$0xff]  }
  0x89   :  { %1767 = vmatprep.subr.bf16.mxu0 %v3249_v37  ;;  %v4240_v37 = vpack.c.bf16 %v4020_v24, %v4020_v24  ;;  %v3337_v16 = vld [vmem:[%s4714_s1 + $0x42c] ss:$16 sps:$4 sm:$0xff]  }
  0x8a   :  { %v3430_v24 = vld [vmem:[%s4716_s3 + $0x4] ss:$8 sps:$4 sm:$0xff]  }
  0x8b   :  { %1850 = vmatpush1.bf16.msra.mxu1 %v3250_v39  ;;  %v3335_v39 = vld [vmem:[%s4714_s1 + $0x428] ss:$16 sps:$4 sm:$0xff]  }
  0x8c   :  { %1768 = vmatpush1.bf16.msra.mxu0 %v3247_v38  ;;  %1851 = vmatprep.subr.bf16.mxu1 %v3258_v3  ;;  %v3428_v38 = vld [vmem:[%s4716_s3] ss:$8 sps:$4 sm:$0xff]   ;;  %v3431_v3 = vld [vmem:[%s4716_s3 + $0x10] ss:$8 sps:$4 sm:$0xff]  }
  0x8d   :  { %1769 = vmatprep.subr.bf16.mxu0 %v3255_v40  ;;  %v3433_v40 = vld [vmem:[%s4716_s3 + $0x14] ss:$8 sps:$4 sm:$0xff]  }
  0x8f   :  { %1852 = vmatpush1.bf16.msra.mxu1 %v3256_v42  ;;  %v3343_v42 = vld [vmem:[%s4714_s1 + $0x46c] ss:$16 sps:$4 sm:$0xff]  }
  0x90   :  { %1770 = vmatpush1.bf16.msra.mxu0 %v3253_v41  ;;  %1853 = vmatprep.subr.bf16.mxu1 %v3264_v45  ;;  %v3338_v41 = vld [vmem:[%s4714_s1 + $0x448] ss:$16 sps:$4 sm:$0xff]  }
  0x91   :  { %1771 = vmatprep.subr.bf16.mxu0 %v3261_v44  ;;  %v3434_v44 = vld [vmem:[%s4716_s3 + $0x20] ss:$8 sps:$4 sm:$0xff]  }
  0x92   :  { %v3341_v45 = vld [vmem:[%s4714_s1 + $0x468] ss:$16 sps:$4 sm:$0xff]  }
  0x93   :  { %1854 = vmatpush1.bf16.msra.mxu1 %v3262_v47  ;;  %v3439_v47 = vld [vmem:[%s4716_s3 + $0x34] ss:$8 sps:$4 sm:$0xff]  }
  0x94   :  { %1772 = vmatpush1.bf16.msra.mxu0 %v3259_v46  ;;  %1855 = vmatprep.subr.bf16.mxu1 %v3270_v50  ;;  %v3346_v46 = vld [vmem:[%s4714_s1 + $0x48c] ss:$16 sps:$4 sm:$0xff]  }
  0x95   :  { %1773 = vmatprep.subr.bf16.mxu0 %v3267_v48  ;;  %v3437_v48 = vld [vmem:[%s4716_s3 + $0x30] ss:$8 sps:$4 sm:$0xff]   ;;  %v3442_v50 = vld [vmem:[%s4716_s3 + $0x44] ss:$8 sps:$4 sm:$0xff]  }
  0x97   :  { %1856 = vmatpush1.bf16.msra.mxu1 %v3268_v53  ;;  %v3349_v53 = vld [vmem:[%s4714_s1 + $0x4ac] ss:$16 sps:$4 sm:$0xff]  }
  0x98   :  { %1774 = vmatpush1.bf16.msra.mxu0 %v3265_v52  ;;  %1857 = vmatprep.subr.bf16.mxu1 %v3276_v55  ;;  %v3344_v52 = vld [vmem:[%s4714_s1 + $0x488] ss:$16 sps:$4 sm:$0xff]   ;;  %v3445_v55 = vld [vmem:[%s4716_s3 + $0x54] ss:$8 sps:$4 sm:$0xff]  }
  0x99   :  { %1775 = vmatprep.subr.bf16.mxu0 %v3273_v54  ;;  %v3440_v54 = vld [vmem:[%s4716_s3 + $0x40] ss:$8 sps:$4 sm:$0xff]  }
  0x9b   :  { %1858 = vmatpush1.bf16.msra.mxu1 %v3274_v57  ;;  %v3352_v57 = vld [vmem:[%s4714_s1 + $0x4cc] ss:$16 sps:$4 sm:$0xff]  }
  0x9c   :  { %1776 = vmatpush1.bf16.msra.mxu0 %v3271_v56  ;;  %1859 = vmatprep.subr.bf16.mxu1 %v3282_v59  ;;  %v3347_v56 = vld [vmem:[%s4714_s1 + $0x4a8] ss:$16 sps:$4 sm:$0xff]  }
  0x9d   :  { %1777 = vmatprep.subr.bf16.mxu0 %v3279_v58 }
  0x9f   :  { %1860 = vmatpush1.bf16.msra.mxu1 %v3280_v61 }
  0xa0   :  { %1778 = vmatpush1.bf16.msra.mxu0 %v3277_v60  ;;  %1861 = vmatprep.subr.bf16.mxu1 %v3288_v63 }
  0xa1   :  { %1779 = vmatprep.subr.bf16.mxu0 %v3285_v62 }
  0xa3   :  { %1862 = vmatpush1.bf16.msra.mxu1 %v3286_v1 }
  0xa4   :  { %1780 = vmatpush1.bf16.msra.mxu0 %v3283_v0  ;;  %1863 = vmatprep.subr.bf16.mxu1 %v3294_v4 }
  0xa5   :  { %1781 = vmatprep.subr.bf16.mxu0 %v3291_v2 }
  0xa7   :  { %1864 = vmatpush1.bf16.msra.mxu1 %v3292_v6 }
  0xa8   :  { %1782 = vmatpush1.bf16.msra.mxu0 %v3289_v5  ;;  %1865 = vmatprep.subr.bf16.mxu1 %v3300_v8 }
  0xa9   :  { %1783 = vmatprep.subr.bf16.mxu0 %v3297_v7 }
  0xab   :  { %1866 = vmatpush1.bf16.msra.mxu1 %v3298_v10 }
  0xac   :  { %1784 = vmatpush1.bf16.msra.mxu0 %v3295_v9  ;;  %1867 = vmatprep.subr.bf16.mxu1 %v3306_v12 }
  0xad   :  { %1785 = vmatprep.subr.bf16.mxu0 %v3303_v11 }
  0xaf   :  { %1868 = vmatpush1.bf16.msra.mxu1 %v3304_v14 }
  0xb0   :  { %1786 = vmatpush1.bf16.msra.mxu0 %v3301_v13  ;;  %1869 = vmatprep.subr.bf16.mxu1 %v3312_v17 }
  0xb1   :  { %1787 = vmatprep.subr.bf16.mxu0 %v3309_v15 }
  0xb3   :  { %1870 = vmatpush1.bf16.msra.mxu1 %v3310_v20 }
  0xb4   :  { %1788 = vmatpush1.bf16.msra.mxu0 %v3307_v19  ;;  %1871 = vmatprep.subr.bf16.mxu1 %v3318_v22 }
  0xb5   :  { %1789 = vmatprep.subr.bf16.mxu0 %v3315_v21 }
  0xb7   :  { %1872 = vmatpush1.bf16.msra.mxu1 %v3316_v25 }
  0xb8   :  { %1790 = vmatpush1.bf16.msra.mxu0 %v3313_v23  ;;  %1873 = vmatprep.subr.bf16.mxu1 %v3324_v27 }
  0xb9   :  { %1791 = vmatprep.subr.bf16.mxu0 %v3321_v26 }
  0xbb   :  { %1874 = vmatpush1.bf16.msra.mxu1 %v3322_v28 }
  0xbc   :  { %1792 = vmatpush1.bf16.msra.mxu0 %v3319_v49  ;;  %1875 = vmatprep.subr.bf16.mxu1 %v3330_v31 }
  0xbd   :  { %1793 = vmatprep.subr.bf16.mxu0 %v3327_v30 }
  0xbf   :  { %1876 = vmatpush1.bf16.msra.mxu1 %v3328_v33 }
  0xc0   :  { %1794 = vmatpush1.bf16.msra.mxu0 %v3325_v32  ;;  %1886 = vmatprep.subr.bf16.mxu1 %v3334_v35 }
  0xc1   :  { %2372 = vmatprep.subr.bf16.mxu0 %v3430_v24 }
  0xc2   :  { %1878 = vmatmul.mubr.bf16.vlgmr.msra.gmra.mrb[4].mxu1 %v3822_v18  ;;  %v3340_v18 = vld [vmem:[%s4714_s1 + $0x44c] ss:$16 sps:$4 sm:$0xff]  }
  0xc3   :  { %1796 = vmatmul.mubr.bf16.vlgmr.msra.gmra.mrb[0].mxu0 %v4240_v37  ;;  %1887 = vmatpush1.bf16.msra.mxu1 %v3332_v36 }
  0xc4   :  { %1918 = vmatprep.mubr.bf16.mxu1 %v3918_v51  ;;  %1888 = vmatprep.subr.bf16.mxu1 %v3337_v16  ;;  %v3436_v51 = vld [vmem:[%s4716_s3 + $0x24] ss:$8 sps:$4 sm:$0xff]  }
  0xc5   :  { %2373 = vmatpush1.bf16.msra.mxu0 %v3428_v38 }
  0xc6   :  { %2374 = vmatprep.subr.bf16.mxu0 %v3433_v40 }
  0xc7   :  { %1889 = vmatpush1.bf16.msra.mxu1 %v3335_v39 }
  0xc8   :  { %1890 = vmatprep.subr.bf16.mxu1 %v3340_v18 }
  0xc9   :  { %2375 = vmatpush1.bf16.msra.mxu0 %v3431_v3 }
  0xca   :  { %2376 = vmatprep.subr.bf16.mxu0 %v3436_v51 }
  0xcb   :  { %1891 = vmatpush1.bf16.msra.mxu1 %v3338_v41 }
  0xcc   :  { %1892 = vmatprep.subr.bf16.mxu1 %v3343_v42 }
  0xcd   :  { %2377 = vmatpush1.bf16.msra.mxu0 %v3434_v44 }
  0xce   :  { %2378 = vmatprep.subr.bf16.mxu0 %v3439_v47 }
  0xcf   :  { %1893 = vmatpush1.bf16.msra.mxu1 %v3341_v45 }
  0xd0   :  { %1894 = vmatprep.subr.bf16.mxu1 %v3346_v46 }
  0xd1   :  { %2379 = vmatpush1.bf16.msra.mxu0 %v3437_v48 }
  0xd2   :  { %2380 = vmatprep.subr.bf16.mxu0 %v3442_v50 }
  0xd3   :  { %1895 = vmatpush1.bf16.msra.mxu1 %v3344_v52 }
  0xd4   :  { %1896 = vmatprep.subr.bf16.mxu1 %v3349_v53 }
  0xd5   :  { %12 = vsyncpa [#allocation3], 0  ;;  %2381 = vmatpush1.bf16.msra.mxu0 %v3440_v54  ;;  %v3443_v58 = vld [vmem:[%s4716_s3 + $0x50] ss:$8 sps:$4 sm:$0xff]   ;;  %v3448_v59 = vld [vmem:[%s4716_s3 + $0x64] ss:$8 sps:$4 sm:$0xff]  }
  0xd6   :  { %2382 = vmatprep.subr.bf16.mxu0 %v3445_v55  ;;  %v3350_v60 = vld [vmem:[%s4714_s1 + $0x4c8] ss:$16 sps:$4 sm:$0xff]   ;;  %v3355_v61 = vld [vmem:[%s4714_s1 + $0x4ec] ss:$16 sps:$4 sm:$0xff]   ;;  %s3565_s30 = smov [#allocation2]   ;;  %vm2633_vm0 = vcmask 9216  }
  0xd7   :  { %1897 = vmatpush1.bf16.msra.mxu1 %v3347_v56  ;;  %v3446_v62 = vld [vmem:[%s4716_s3 + $0x60] ss:$8 sps:$4 sm:$0xff]   ;;  %v3451_v63 = vld [vmem:[%s4716_s3 + $0x74] ss:$8 sps:$4 sm:$0xff]   ;;  %v3449_v2 = vld [vmem:[%s4716_s3 + $0x70] ss:$8 sps:$4 sm:$0xff]  }
  0xd8   :  { %1898 = vmatprep.subr.bf16.mxu1 %v3352_v57  ;;  %v3353_v0 = vld [vmem:[%s4714_s1 + $0x4e8] ss:$16 sps:$4 sm:$0xff]   ;;  %v3358_v1 = vld [vmem:[%s4714_s1 + $0x50c] ss:$16 sps:$4 sm:$0xff]   ;;  %s2641_s8 = sshll.u32 %s3565_s30, 4  ;;  %s2642_s8 = int_to_ptr.vmem [resolvable:$true] %s2641_s8 }
  0xd9   :  { %2383 = vmatpush1.bf16.msra.mxu0 %v3443_v58  ;;  %v3454_v4 = vld [vmem:[%s4716_s3 + $0x84] ss:$8 sps:$4 sm:$0xff]   ;;  %v3356_v5 = vld [vmem:[%s4714_s1 + $0x508] ss:$16 sps:$4 sm:$0xff]   ;;  %v3457_v8 = vld [vmem:[%s4716_s3 + $0x94] ss:$8 sps:$4 sm:$0xff]   ;;  %p3545_p1 = scmp.lt.s32.totalorder %s2642_s8, %s2642_s8 }
  0xda   :  { %2384 = vmatprep.subr.bf16.mxu0 %v3448_v59  ;;  %v3361_v6 = vld [vmem:[%s4714_s1 + $0x52c] ss:$16 sps:$4 sm:$0xff]   ;;  %v3452_v7 = vld [vmem:[%s4716_s3 + $0x80] ss:$8 sps:$4 sm:$0xff]   ;;  %v3455_v11 = vld [vmem:[%s4716_s3 + $0x90] ss:$8 sps:$4 sm:$0xff]  }
  0xdb   :  { %1899 = vmatpush1.bf16.msra.mxu1 %v3350_v60  ;;  %v3359_v9 = vld [vmem:[%s4714_s1 + $0x528] ss:$16 sps:$4 sm:$0xff]   ;;  %v3364_v10 = vld [vmem:[%s4714_s1 + $0x54c] ss:$16 sps:$4 sm:$0xff]   ;;  %s3540_s9 = scalar_lea.vmem %s2642_s8, 32 }
  0xdc   :  { %1900 = vmatprep.subr.bf16.mxu1 %v3355_v61  ;;  %v3460_v12 = vld [vmem:[%s4716_s3 + $0xa4] ss:$8 sps:$4 sm:$0xff]   ;;  %v3362_v13 = vld [vmem:[%s4714_s1 + $0x548] ss:$16 sps:$4 sm:$0xff]   ;;  %v3463_v17 = vld [vmem:[%s4716_s3 + $0xb4] ss:$8 sps:$4 sm:$0xff]   ;;  %p3541_p0 = scmp.ne.s32.totalorder %s2642_s8, %s3540_s9  ;;  %p3546_p2 = scmp.lt.s32.totalorder %s3540_s9, %s3540_s9 }
  0xdd   :  { %2385 = vmatpush1.bf16.msra.mxu0 %v3446_v62  ;;  %v3367_v14 = vld [vmem:[%s4714_s1 + $0x56c] ss:$16 sps:$4 sm:$0xff]   ;;  %v3458_v15 = vld [vmem:[%s4716_s3 + $0xa0] ss:$8 sps:$4 sm:$0xff]   ;;  %v3461_v21 = vld [vmem:[%s4716_s3 + $0xb0] ss:$8 sps:$4 sm:$0xff]  }
  0xde   :  { %2386 = vmatprep.subr.bf16.mxu0 %v3451_v63  ;;  %v3365_v19 = vld [vmem:[%s4714_s1 + $0x568] ss:$16 sps:$4 sm:$0xff]   ;;  %v3370_v20 = vld [vmem:[%s4714_s1 + $0x58c] ss:$16 sps:$4 sm:$0xff]   ;;  %p3547_p3 = por %p3546_p2, %p3545_p1 }
  0xdf   :  { %1901 = vmatpush1.bf16.msra.mxu1 %v3353_v0  ;;  %v3466_v22 = vld [vmem:[%s4716_s3 + $0xc4] ss:$8 sps:$4 sm:$0xff]   ;;  %v3368_v23 = vld [vmem:[%s4714_s1 + $0x588] ss:$16 sps:$4 sm:$0xff]   ;;  %v3469_v27 = vld [vmem:[%s4716_s3 + $0xd4] ss:$8 sps:$4 sm:$0xff]  }
  0xe0   :  { %1902 = vmatprep.subr.bf16.mxu1 %v3358_v1  ;;  %v3373_v25 = vld [vmem:[%s4714_s1 + $0x5ac] ss:$16 sps:$4 sm:$0xff]   ;;  %v3464_v26 = vld [vmem:[%s4716_s3 + $0xc0] ss:$8 sps:$4 sm:$0xff]   ;;  %v3467_v30 = vld [vmem:[%s4716_s3 + $0xd0] ss:$8 sps:$4 sm:$0xff]   ;;  %p3548_p4 = pnand %p3547_p3, %p3541_p0 }
  0xe1   :  { %2387 = vmatpush1.bf16.msra.mxu0 %v3449_v2  ;;  %v3371_v49 = vld [vmem:[%s4714_s1 + $0x5a8] ss:$16 sps:$4 sm:$0xff]   ;;  %v3376_v28 = vld [vmem:[%s4714_s1 + $0x5cc] ss:$16 sps:$4 sm:$0xff]  }
  0xe2   :  { %2388 = vmatprep.subr.bf16.mxu0 %v3454_v4  ;;  %v3374_v31 = vld [vmem:[%s4714_s1 + $0x5c8] ss:$16 sps:$4 sm:$0xff]   ;;  %v3379_v32 = vld [vmem:[%s4714_s1 + $0x5ec] ss:$16 sps:$4 sm:$0xff]  }
  0xe3   :  { %1903 = vmatpush1.bf16.msra.mxu1 %v3356_v5  ;;  %v3377_v33 = vld [vmem:[%s4714_s1 + $0x5e8] ss:$16 sps:$4 sm:$0xff]   ;;  %v3382_v35 = vld [vmem:[%s4714_s1 + $0x60c] ss:$16 sps:$4 sm:$0xff]  }
  0xe4   :  { %1904 = vmatprep.subr.bf16.mxu1 %v3361_v6  ;;  %v3380_v36 = vld [vmem:[%s4714_s1 + $0x608] ss:$16 sps:$4 sm:$0xff]   ;;  %v3385_v16 = vld [vmem:[%s4714_s1 + $0x62c] ss:$16 sps:$4 sm:$0xff]  }
  0xe5   :  { %2389 = vmatpush1.bf16.msra.mxu0 %v3452_v7  ;;  %v3383_v38 = vld [vmem:[%s4714_s1 + $0x628] ss:$16 sps:$4 sm:$0xff]   ;;  %v3388_v24 = vld [vmem:[%s4714_s1 + $0x64c] ss:$16 sps:$4 sm:$0xff]  }
  0xe6   :  { %2390 = vmatprep.subr.bf16.mxu0 %v3457_v8  ;;  %v3386_v39 = vld [vmem:[%s4714_s1 + $0x648] ss:$16 sps:$4 sm:$0xff]   ;;  %v3394_v40 = vld [vmem:[%s4714_s1 + $0x68c] ss:$16 sps:$4 sm:$0xff]  }
  0xe7   :  { %1905 = vmatpush1.bf16.msra.mxu1 %v3359_v9  ;;  %v3392_v18 = vld [vmem:[%s4714_s1 + $0x688] ss:$16 sps:$4 sm:$0xff]   ;;  %v3397_v3 = vld [vmem:[%s4714_s1 + $0x6ac] ss:$16 sps:$4 sm:$0xff]  }
  0xe8   :  { %1906 = vmatprep.subr.bf16.mxu1 %v3364_v10  ;;  %v3395_v51 = vld [vmem:[%s4714_s1 + $0x6a8] ss:$16 sps:$4 sm:$0xff]   ;;  %v3400_v41 = vld [vmem:[%s4714_s1 + $0x6cc] ss:$16 sps:$4 sm:$0xff]   ;;  %v342_v10 = vsub.s32 0, %v3723_v43 }
  0xe9   :  { %2391 = vmatpush1.bf16.msra.mxu0 %v3455_v11  ;;  %v3472_v42 = vld [vmem:[%s4716_s3 + $0xe4] ss:$8 sps:$4 sm:$0xff]   ;;  %v3470_v45 = vld [vmem:[%s4716_s3 + $0xe0] ss:$8 sps:$4 sm:$0xff]   ;;  %v3475_v53 = vld [vmem:[%s4716_s3 + $0xf4] ss:$8 sps:$4 sm:$0xff]  }
  0xea   :  { %2392 = vmatprep.subr.bf16.mxu0 %v3460_v12  ;;  %v3398_v48 = vld [vmem:[%s4714_s1 + $0x6c8] ss:$16 sps:$4 sm:$0xff]   ;;  %v3403_v52 = vld [vmem:[%s4714_s1 + $0x6ec] ss:$16 sps:$4 sm:$0xff]   ;;  %v4537_v11 = vld [vmem:[%s4715_s2] sm:$0xf] }
  0xeb   :  { %1907 = vmatpush1.bf16.msra.mxu1 %v3362_v13  ;;  %v3473_v54 = vld [vmem:[%s4716_s3 + $0xf0] ss:$8 sps:$4 sm:$0xff]   ;;  %v3406_v56 = vld [vmem:[%s4714_s1 + $0x70c] ss:$16 sps:$4 sm:$0xff]   ;;  %v346_v12 = vsub.s32 1, %v3723_v43  ;;  %v343_v13 = vrot.slane %v4537_v11, %v342_v10 }
  0xec   :  { %1908 = vmatprep.subr.bf16.mxu1 %v3367_v14  ;;  %v3401_v55 = vld [vmem:[%s4714_s1 + $0x6e8] ss:$16 sps:$4 sm:$0xff]   ;;  %v3478_v57 = vld [vmem:[%s4716_s3 + $0x104] ss:$8 sps:$4 sm:$0xff]  }
  0xed   :  { %2393 = vmatpush1.bf16.msra.mxu0 %v3458_v15  ;;  %v3404_v58 = vld [vmem:[%s4714_s1 + $0x708] ss:$16 sps:$4 sm:$0xff]   ;;  %v3409_v59 = vld [vmem:[%s4714_s1 + $0x72c] ss:$16 sps:$4 sm:$0xff]   ;;  %v347_v14 = vrot.slane %v4537_v11, %v346_v12 }
  0xee   :  { %2394 = vmatprep.subr.bf16.mxu0 %v3463_v17  ;;  %v3407_v60 = vld [vmem:[%s4714_s1 + $0x728] ss:$16 sps:$4 sm:$0xff]   ;;  %v3412_v61 = vld [vmem:[%s4714_s1 + $0x74c] ss:$16 sps:$4 sm:$0xff]  }
  0xef   :  { %1909 = vmatpush1.bf16.msra.mxu1 %v3365_v19  ;;  %v3410_v62 = vld [vmem:[%s4714_s1 + $0x748] ss:$16 sps:$4 sm:$0xff]   ;;  %v3415_v63 = vld [vmem:[%s4714_s1 + $0x76c] ss:$16 sps:$4 sm:$0xff]  }
  0xf0   :  { %1910 = vmatprep.subr.bf16.mxu1 %v3370_v20  ;;  %v3413_v0 = vld [vmem:[%s4714_s1 + $0x768] ss:$16 sps:$4 sm:$0xff]   ;;  %v3418_v1 = vld [vmem:[%s4714_s1 + $0x78c] ss:$16 sps:$4 sm:$0xff]  }
  0xf1   :  { %2395 = vmatpush1.bf16.msra.mxu0 %v3461_v21  ;;  %v3416_v2 = vld [vmem:[%s4714_s1 + $0x788] ss:$16 sps:$4 sm:$0xff]   ;;  %v3421_v4 = vld [vmem:[%s4714_s1 + $0x7ac] ss:$16 sps:$4 sm:$0xff]  }
  0xf2   :  { %2396 = vmatprep.subr.bf16.mxu0 %v3466_v22  ;;  %v3419_v5 = vld [vmem:[%s4714_s1 + $0x7a8] ss:$16 sps:$4 sm:$0xff]   ;;  %v3424_v6 = vld [vmem:[%s4714_s1 + $0x7cc] ss:$16 sps:$4 sm:$0xff]  }
  0xf3   :  { %1911 = vmatpush1.bf16.msra.mxu1 %v3368_v23  ;;  %v3422_v7 = vld [vmem:[%s4714_s1 + $0x7c8] ss:$16 sps:$4 sm:$0xff]   ;;  %v3427_v8 = vld [vmem:[%s4714_s1 + $0x7ec] ss:$16 sps:$4 sm:$0xff]  }
  0xf4   :  { %1912 = vmatprep.subr.bf16.mxu1 %v3373_v25  ;;  %v3425_v9 = vld [vmem:[%s4714_s1 + $0x7e8] ss:$16 sps:$4 sm:$0xff]  }
  0xf5   :  { %2397 = vmatpush1.bf16.msra.mxu0 %v3464_v26 }
  0xf6   :  { %2398 = vmatprep.subr.bf16.mxu0 %v3469_v27 }
  0xf7   :  { %1913 = vmatpush1.bf16.msra.mxu1 %v3371_v49  ;;  %v3476_v49 = vld [vmem:[%s4716_s3 + $0x100] ss:$8 sps:$4 sm:$0xff]  }
  0xf8   :  { %1914 = vmatprep.subr.bf16.mxu1 %v3376_v28 }
  0xf9   :  { %2399 = vmatpush1.bf16.msra.mxu0 %v3467_v30  ;;  %v3481_v30 = vld [vmem:[%s4716_s3 + $0x114] ss:$8 sps:$4 sm:$0xff]  }
  0xfa   :  { %2400 = vmatprep.subr.bf16.mxu0 %v3472_v42  ;;  %v3493_v42 = vld [vmem:[%s4716_s3 + $0x154] ss:$8 sps:$4 sm:$0xff]  }
  0xfb   :  { %1915 = vmatpush1.bf16.msra.mxu1 %v3374_v31  ;;  %v3524_v31 = vld [vmem:[%s4718_s5 + $0x40] sm:$0xff]  }
  0xfc   :  { %1916 = vmatprep.subr.bf16.mxu1 %v3379_v32  ;;  %v3525_v32 = vld [vmem:[%s4718_s5] sm:$0xff]  }
  0xfd   :  { %2401 = vmatpush1.bf16.msra.mxu0 %v3470_v45  ;;  %v3534_v45 = vld [vmem:[%s4718_s5 + $0x68] sm:$0xff]  }
  0xfe   :  { %2402 = vmatprep.subr.bf16.mxu0 %v3475_v53  ;;  %v3497_v53 = vld [vmem:[%s4716_s3 + $0x170] ss:$8 sps:$4 sm:$0xff]  }
  0xff   :  { %1917 = vmatpush1.bf16.msra.mxu1 %v3377_v33  ;;  %v3526_v33 = vld [vmem:[%s4718_s5 + $0x48] sm:$0xff]  }
 0x100   :  { %1927 = vmatprep.subr.bf16.mxu1 %v3382_v35  ;;  %v3479_v35 = vld [vmem:[%s4716_s3 + $0x110] ss:$8 sps:$4 sm:$0xff]  }
 0x101   :  { %2403 = vmatpush1.bf16.msra.mxu0 %v3473_v54  ;;  %v3502_v54 = vld [vmem:[%s4716_s3 + $0x184] ss:$8 sps:$4 sm:$0xff]  }
 0x102   :  { %1919 = vmatmul.mubr.bf16.vlgmr.msra.gmra.mrb[4].mxu1 %v4038_v29  ;;  %v3391_v29 = vld [vmem:[%s4714_s1 + $0x66c] ss:$16 sps:$4 sm:$0xff]   ;;  %2413 = vmatprep.subr.bf16.mxu0 %v3478_v57  ;;  %v3503_v57 = vld [vmem:[%s4716_s3 + $0x190] ss:$8 sps:$4 sm:$0xff]  }
 0x103   :  { %1928 = vmatpush1.bf16.msra.mxu1 %v3380_v36  ;;  %1959 = vmatprep.mubr.bf16.mxu1 %v4052_v34  ;;  %v3389_v34 = vld [vmem:[%s4714_s1 + $0x668] ss:$16 sps:$4 sm:$0xff]   ;;  %v3484_v36 = vld [vmem:[%s4716_s3 + $0x124] ss:$8 sps:$4 sm:$0xff]  }
 0x104   :  { %1929 = vmatprep.subr.bf16.mxu1 %v3385_v16  ;;  %v3527_v16 = vld [vmem:[%s4718_s5 + $0x8] sm:$0xff]  }
 0x107   :  { %1930 = vmatpush1.bf16.msra.mxu1 %v3383_v38  ;;  %v3528_v38 = vld [vmem:[%s4718_s5 + $0x50] sm:$0xff]  }
 0x108   :  { %1931 = vmatprep.subr.bf16.mxu1 %v3388_v24  ;;  %v3482_v24 = vld [vmem:[%s4716_s3 + $0x120] ss:$8 sps:$4 sm:$0xff]  }
 0x10b   :  { %1932 = vmatpush1.bf16.msra.mxu1 %v3386_v39  ;;  %v3487_v39 = vld [vmem:[%s4716_s3 + $0x134] ss:$8 sps:$4 sm:$0xff]  }
 0x10c   :  { %1933 = vmatprep.subr.bf16.mxu1 %v3391_v29  ;;  %v3529_v29 = vld [vmem:[%s4718_s5 + $0x10] sm:$0xff]  }
 0x10f   :  { %1934 = vmatpush1.bf16.msra.mxu1 %v3389_v34  ;;  %v3530_v34 = vld [vmem:[%s4718_s5 + $0x58] sm:$0xff]  }
 0x110   :  { %1935 = vmatprep.subr.bf16.mxu1 %v3394_v40  ;;  %v3485_v40 = vld [vmem:[%s4716_s3 + $0x130] ss:$8 sps:$4 sm:$0xff]  }
 0x113   :  { %1936 = vmatpush1.bf16.msra.mxu1 %v3392_v18  ;;  %v3490_v18 = vld [vmem:[%s4716_s3 + $0x144] ss:$8 sps:$4 sm:$0xff]  }
 0x114   :  { %1937 = vmatprep.subr.bf16.mxu1 %v3397_v3  ;;  %v3531_v3 = vld [vmem:[%s4718_s5 + $0x18] sm:$0xff]  }
 0x115   :  { %v1674_v44 = vpop.f32.mrb[0].mxu1 }
 0x116   :  { %v1676_v46 = vpop.f32.mrb[1].mxu1  ;;  %v1675_v15 = vadd.f32 %v1674_v44, %v343_v13  ;;  %v3533_v44 = vld [vmem:[%s4718_s5 + $0x20] sm:$0xff]  }
 0x117   :  { %v1678_v47 = vpop.f32.mrb[2].mxu1  ;;  %1938 = vmatpush1.bf16.msra.mxu1 %v3395_v51  ;;  %v1677_v17 = vadd.f32 %v1676_v46, %v347_v14  ;;  %v3532_v51 = vld [vmem:[%s4718_s5 + $0x60] sm:$0xff]   ;;  %v3491_v46 = vld [vmem:[%s4716_s3 + $0x150] ss:$8 sps:$4 sm:$0xff]  }
 0x118   :  { %v1679_v50 = vpop.f32.mrb[3].mxu1  ;;  %1939 = vmatprep.subr.bf16.mxu1 %v3400_v41  ;;  %v3488_v41 = vld [vmem:[%s4716_s3 + $0x140] ss:$8 sps:$4 sm:$0xff]   ;;  %v3496_v47 = vld [vmem:[%s4716_s3 + $0x164] ss:$8 sps:$4 sm:$0xff]  }
 0x119   :  { %v3494_v50 = vld [vmem:[%s4716_s3 + $0x160] ss:$8 sps:$4 sm:$0xff]  }
 0x11b   :  { %1940 = vmatpush1.bf16.msra.mxu1 %v3398_v48  ;;  %v3535_v48 = vld [vmem:[%s4718_s5 + $0x28] sm:$0xff]  }
 0x11c   :  { %1941 = vmatprep.subr.bf16.mxu1 %v3403_v52  ;;  %v3499_v52 = vld [vmem:[%s4716_s3 + $0x174] ss:$8 sps:$4 sm:$0xff]  }
 0x11f   :  { %1942 = vmatpush1.bf16.msra.mxu1 %v3401_v55  ;;  %v3500_v55 = vld [vmem:[%s4716_s3 + $0x180] ss:$8 sps:$4 sm:$0xff]  }
 0x120   :  { %1943 = vmatprep.subr.bf16.mxu1 %v3406_v56  ;;  %v3505_v56 = vld [vmem:[%s4716_s3 + $0x194] ss:$8 sps:$4 sm:$0xff]  }
 0x123   :  { %1944 = vmatpush1.bf16.msra.mxu1 %v3404_v58  ;;  %v3508_v58 = vld [vmem:[%s4716_s3 + $0x1a4] ss:$8 sps:$4 sm:$0xff]  }
 0x124   :  { %1945 = vmatprep.subr.bf16.mxu1 %v3409_v59  ;;  %v3506_v59 = vld [vmem:[%s4716_s3 + $0x1a0] ss:$8 sps:$4 sm:$0xff]  }
 0x127   :  { %1946 = vmatpush1.bf16.msra.mxu1 %v3407_v60  ;;  %v3511_v60 = vld [vmem:[%s4716_s3 + $0x1b4] ss:$8 sps:$4 sm:$0xff]  }
 0x128   :  { %1947 = vmatprep.subr.bf16.mxu1 %v3412_v61  ;;  %v3509_v61 = vld [vmem:[%s4716_s3 + $0x1b0] ss:$8 sps:$4 sm:$0xff]  }
 0x12b   :  { %1948 = vmatpush1.bf16.msra.mxu1 %v3410_v62  ;;  %v3514_v62 = vld [vmem:[%s4716_s3 + $0x1c4] ss:$8 sps:$4 sm:$0xff]  }
 0x12c   :  { %1949 = vmatprep.subr.bf16.mxu1 %v3415_v63  ;;  %v3512_v63 = vld [vmem:[%s4716_s3 + $0x1c0] ss:$8 sps:$4 sm:$0xff]  }
 0x12f   :  { %1950 = vmatpush1.bf16.msra.mxu1 %v3413_v0  ;;  %v3517_v0 = vld [vmem:[%s4716_s3 + $0x1d4] ss:$8 sps:$4 sm:$0xff]  }
 0x130   :  { %1951 = vmatprep.subr.bf16.mxu1 %v3418_v1  ;;  %v3515_v1 = vld [vmem:[%s4716_s3 + $0x1d0] ss:$8 sps:$4 sm:$0xff]  }
 0x133   :  { %1952 = vmatpush1.bf16.msra.mxu1 %v3416_v2  ;;  %v3520_v2 = vld [vmem:[%s4716_s3 + $0x1e4] ss:$8 sps:$4 sm:$0xff]  }
 0x134   :  { %1953 = vmatprep.subr.bf16.mxu1 %v3421_v4  ;;  %v3518_v4 = vld [vmem:[%s4716_s3 + $0x1e0] ss:$8 sps:$4 sm:$0xff]  }
 0x137   :  { %1954 = vmatpush1.bf16.msra.mxu1 %v3419_v5  ;;  %v3523_v5 = vld [vmem:[%s4716_s3 + $0x1f4] ss:$8 sps:$4 sm:$0xff]  }
 0x138   :  { %1955 = vmatprep.subr.bf16.mxu1 %v3424_v6  ;;  %v3521_v6 = vld [vmem:[%s4716_s3 + $0x1f0] ss:$8 sps:$4 sm:$0xff]  }
 0x13b   :  { %1956 = vmatpush1.bf16.msra.mxu1 %v3422_v7  ;;  %v350_v7 = vsub.s32 2, %v3723_v43 }
 0x13c   :  { %1957 = vmatprep.subr.bf16.mxu1 %v3427_v8  ;;  %v354_v8 = vsub.s32 3, %v3723_v43 }
 0x13e   :  { %v355_v13 = vrot.slane %v4537_v11, %v354_v8 }
 0x13f   :  { %1958 = vmatpush1.bf16.msra.mxu1 %v3425_v9  ;;  %v351_v9 = vrot.slane %v4537_v11, %v350_v7  ;;  %v3537_v11 = vld [vmem:[%s4718_s5 + $0x30] sm:$0xff]  }
 0x140   :  { %2986 = vmatprep.subr.bf16.mxu1 %v3524_v31 }
 0x142   :  { %1960 = vmatmul.mubr.bf16.vlgmr.msra.gmra.mrb[4].mxu1 %v4240_v37 }
 0x143   :  { %2987 = vmatpush3.bf16.msra.mxu1 %v3525_v32 }
 0x144   :  { %2988 = vmatprep.subr.bf16.mxu1 %v3526_v33 }
 0x147   :  { %2989 = vmatpush3.bf16.msra.mxu1 %v3527_v16 }
 0x148   :  { %2990 = vmatprep.subr.bf16.mxu1 %v3528_v38 }
 0x14b   :  { %2991 = vmatpush3.bf16.msra.mxu1 %v3529_v29 }
 0x14c   :  { %2992 = vmatprep.subr.bf16.mxu1 %v3530_v34 }
 0x14f   :  { %2993 = vmatpush3.bf16.msra.mxu1 %v3531_v3 }
 0x150   :  { %2994 = vmatprep.subr.bf16.mxu1 %v3532_v51 }
 0x153   :  { %2995 = vmatpush3.bf16.msra.mxu1 %v3533_v44 }
 0x154   :  { %2996 = vmatprep.subr.bf16.mxu1 %v3534_v45 }
 0x157   :  { %2997 = vmatpush3.bf16.msra.mxu1 %v3535_v48 }
 0x196   :  { %v1797_v37 = vpop.f32.mrb[0].mxu0 }
 0x197   :  { %v3009_v19 = vadd.f32 %v1797_v37, %v1675_v15  ;;  %v1799_v20 = vpop.f32.mrb[1].mxu0 }
 0x198   :  { %v3011_v21 = vadd.f32 %v1799_v20, %v1677_v17  ;;  %v1801_v22 = vpop.f32.mrb[2].mxu0 }
 0x199   :  { %v1968_v23 = vmax.f32 %v3009_v19, 0.0  ;;  %v1802_v25 = vpop.f32.mrb[3].mxu0 }
 0x19a   :  { %v1969_v26 = vmax.f32 %v3011_v21, 0.0 }
 0x19b   :  { %v1972_v28 = vpack.c.bf16 %v1968_v23, %v1968_v23 }
 0x19c   :  { %v1973_v27 = vpack.c.bf16 %v1969_v26, %v1969_v26  ;;  %v3536_v26 = vld [vmem:[%s4718_s5 + $0x70] sm:$0xff]  }
 0x19d   :  { %2998 = vmatprep.subr.bf16.mxu1 %v3536_v26 }
 0x19e   :  { %2404 = vmatprep.mubr.bf16.mxu0 %v1973_v27  ;;  %2999 = vmatpush3.bf16.msra.mxu1 %v3537_v11  ;;  %v3538_v27 = vld [vmem:[%s4718_s5 + $0x78] sm:$0xff]  }
 0x19f   :  { %2405 = vmatmul.mubr.bf16.vlgmr.msra.gmra.mrb[4].mxu0 %v1972_v28  ;;  %3000 = vmatprep.subr.bf16.mxu1 %v3538_v27  ;;  %v2040_v28 = vld [vmem:[%s4717_s4] sm:$0x3] }
 0x1a0   :  { %2414 = vmatpush1.bf16.msra.mxu0 %v3476_v49  ;;  %v3539_v49 = vld [vmem:[%s4718_s5 + $0x38] sm:$0xff]   ;;  %v2049_v31 = vrot.slane %v2040_v28, %v346_v12 }
 0x1a1   :  { %2415 = vmatprep.subr.bf16.mxu0 %v3481_v30  ;;  %v2045_v30 = vrot.slane %v2040_v28, %v342_v10  ;;  %v2969_v10 = vld [vmem:[%s4719_s6] ss:$0 sm:$0xff] }
 0x1a2   :  { %3001 = vmatpush3.bf16.msra.mxu1 %v3539_v49 }
 0x1a4   :  { %2416 = vmatpush1.bf16.msra.mxu0 %v3479_v35 }
 0x1a5   :  { %2417 = vmatprep.subr.bf16.mxu0 %v3484_v36 }
 0x1a8   :  { %2418 = vmatpush1.bf16.msra.mxu0 %v3482_v24 }
 0x1a9   :  { %2419 = vmatprep.subr.bf16.mxu0 %v3487_v39 }
 0x1ac   :  { %2420 = vmatpush1.bf16.msra.mxu0 %v3485_v40 }
 0x1ad   :  { %2421 = vmatprep.subr.bf16.mxu0 %v3490_v18 }
 0x1b0   :  { %2422 = vmatpush1.bf16.msra.mxu0 %v3488_v41 }
 0x1b1   :  { %2423 = vmatprep.subr.bf16.mxu0 %v3493_v42 }
 0x1b4   :  { %2424 = vmatpush1.bf16.msra.mxu0 %v3491_v46 }
 0x1b5   :  { %2425 = vmatprep.subr.bf16.mxu0 %v3496_v47 }
 0x1b8   :  { %2426 = vmatpush1.bf16.msra.mxu0 %v3494_v50 }
 0x1b9   :  { %2427 = vmatprep.subr.bf16.mxu0 %v3499_v52 }
 0x1bc   :  { %2428 = vmatpush1.bf16.msra.mxu0 %v3497_v53 }
 0x1bd   :  { %2429 = vmatprep.subr.bf16.mxu0 %v3502_v54 }
 0x1c0   :  { %2430 = vmatpush1.bf16.msra.mxu0 %v3500_v55 }
 0x1c1   :  { %2431 = vmatprep.subr.bf16.mxu0 %v3505_v56 }
 0x1c4   :  { %2432 = vmatpush1.bf16.msra.mxu0 %v3503_v57 }
 0x1c5   :  { %2433 = vmatprep.subr.bf16.mxu0 %v3508_v58 }
 0x1c8   :  { %2434 = vmatpush1.bf16.msra.mxu0 %v3506_v59 }
 0x1c9   :  { %2435 = vmatprep.subr.bf16.mxu0 %v3511_v60 }
 0x1cc   :  { %2436 = vmatpush1.bf16.msra.mxu0 %v3509_v61 }
 0x1cd   :  { %2437 = vmatprep.subr.bf16.mxu0 %v3514_v62 }
 0x1d0   :  { %2438 = vmatpush1.bf16.msra.mxu0 %v3512_v63 }
 0x1d1   :  { %2439 = vmatprep.subr.bf16.mxu0 %v3517_v0 }
 0x1d4   :  { %2440 = vmatpush1.bf16.msra.mxu0 %v3515_v1 }
 0x1d5   :  { %2441 = vmatprep.subr.bf16.mxu0 %v3520_v2 }
 0x1d8   :  { %2442 = vmatpush1.bf16.msra.mxu0 %v3518_v4 }
 0x1d9   :  { %2443 = vmatprep.subr.bf16.mxu0 %v3523_v5 }
 0x1dc   :  { %2444 = vmatpush1.bf16.msra.mxu0 %v3521_v6 }
 0x215   :  { %v1961_v14 = vpop.f32.mrb[4].mxu1 }
 0x216   :  { %v3012_v15 = vadd.f32 %v1961_v14, %v351_v9  ;;  %v1963_v17 = vpop.f32.mrb[5].mxu1 }
 0x217   :  { %v3013_v37 = vadd.f32 %v1963_v17, %v355_v13  ;;  %v1965_v19 = vpop.f32.mrb[6].mxu1 }
 0x218   :  { %v1970_v20 = vmax.f32 %v3012_v15, 0.0  ;;  %v1966_v21 = vpop.f32.mrb[7].mxu1 }
 0x219   :  { %v1971_v22 = vmax.f32 %v3013_v37, 0.0 }
 0x21a   :  { %v1974_v25 = vpack.c.bf16 %v1970_v20, %v1970_v20 }
 0x21b   :  { %v1975_v23 = vpack.c.bf16 %v1971_v22, %v1971_v22 }
 0x21d   :  { %2445 = vmatprep.mubr.bf16.mxu0 %v1975_v23 }
 0x21e   :  { %2446 = vmatmul.mubr.bf16.vlgmr.msra.gmra.mrb[4].mxu0 %v1974_v25 }
 0x2f1   :  { %v2447_v32 = vpop.f32.mrb[4].mxu0 }
 0x2f2   :  { %v3014_v33 = vadd.f32 %v2447_v32, %v2045_v30  ;;  %v2449_v35 = vpop.f32.mrb[5].mxu0 }
 0x2f3   :  { %v3015_v36 = vadd.f32 %v2449_v35, %v2049_v31  ;;  %v2451_v16 = vpop.f32.mrb[6].mxu0 }
 0x2f4   :  { %v2454_v38 = vmax.f32 %v3014_v33, 0.0  ;;  %v2452_v24 = vpop.f32.mrb[7].mxu0 }
 0x2f5   :  { %v2455_v39 = vmax.f32 %v3015_v36, 0.0 }
 0x2f6   :  { %v2456_v34 = vpack.c.bf16 %v2454_v38, %v2454_v38 }
 0x2f7   :  { %v2457_v29 = vpack.c.bf16 %v2455_v39, %v2455_v39 }
 0x2f9   :  { %2625 = vmatprep.mubr.bf16.mxu1 %v2457_v29 }
 0x2fa   :  { %2626 = vmatmul.mubr.bf16.vlgmr.msra.gmra.mrb[8].mxu1 %v2456_v34 }
 0x3cd   :  { %v3002_v40 = vpop.f32.mrb[8].mxu1 }
 0x3ce   :  { %v3003_v18 = vpop.f32.mrb[9].mxu1 }
 0x3cf   :  { %v3004_v43 = vadd.f32 %v3003_v18, %v3002_v40  ;;  %v3005_v12 = vpop.f32.mrb[10].mxu1 }
 0x3d0   :  { %v3006_v3 = vpop.f32.mrb[11].mxu1 }
 0x3d1   :  { %v2628_v51 = vadd.f32 %v3004_v43, %v2969_v10 }
 0x3d3   :  { %2634 = vst.msk [vmem:[#allocation2] sm:$0x3] %vm2633_vm0, %v2628_v51 }
 0x3d4   :  { %3551 = shalt.err (!%p3548_p4)
}
 0x3d5   :  { %s3552_s6 = scalar_lea.hbm %s4720_s7, 32 }
 0x3d6   :  { %p3553_p5 = scmp.ne.s32.totalorder %s4720_s7, %s3552_s6  ;;  %p3556_p6 = scmp.lt.u32.totalorder %s3552_s6, %s4720_s7 }
 0x3d8   :  { %p3558_p7 = pnand %p3556_p6, %p3553_p5 }
 0x3da   :  { %3561 = shalt.err (!%p3558_p7)
}
 0x3db   :  { %2644 = dma.vmem_to_hbm [thread:$0]  %s2642_s8, 32, %s4720_s7, [#allocation3]  }
 0x3dc   :  { %3562 = dma.done.wait [#allocation3], 32  }
 0x3dd   :  { %3563 = vsyncadd [#allocation3], 4294967264 }
 0x3de   :  { %2648 = vsyncpa [#allocation3], 1 }

</bundles_post_ra>
